<compile_context>
chip_gen: v7x
topology: tpu7x:2x2x1
jax: 0.10.0
libtpu: 0.0.40
codegen_flags: <defaults>
</compile_context>

<pallas_src>
import functools
import numpy as np

import jax
import jax.numpy as jnp
from jax.experimental import pallas as pl
from jax.experimental.pallas import tpu as pltpu


# ----------------------------- configuration (scaled-down swin) --------------
IMG = 16            # image size (proxy for 224)
IN_CH = 3
PATCH = 2           # patch size (proxy for 4)
EMBED = 16          # embed dim (proxy for 128)
WINDOW = 4          # window size (proxy for 7)
DEPTHS = (2, 2)     # proxy for (2, 2, 18, 2)
HEADS = (2, 4)      # proxy for (4, 8, 16, 32)
MLP_RATIO = 2       # proxy for 4
NUM_CLASSES = 64    # proxy for 21841
LATENT = 32         # proxy for 1024
BATCH = 2
LN_EPS = 1e-5
BN_EPS = 1e-5
NEG_INF = -1e9      # cross-window exclusion (exp underflows to exactly 0 in f32)


# ----------------------------- small in-kernel helpers -----------------------
def _ln(v, g, b, eps):
    mu = jnp.mean(v, axis=-1, keepdims=True)
    var = jnp.mean((v - mu) ** 2, axis=-1, keepdims=True)
    return (v - mu) * jax.lax.rsqrt(var + eps) * g + b


def _swin_block(x, st, bi, num_heads, eps):
    """One fused Swin block on the [L, C] activations (all operands VMEM-resident)."""
    h = _ln(x, st["ln1_g"][bi], st["ln1_b"][bi], eps)
    attn = None
    for hh in range(num_heads):                       # static unroll (nH = 2 or 4)
        # per-head weights are contiguous planes -> no lane slicing in the kernel
        qh = jnp.dot(h, st["wq"][bi, hh], preferred_element_type=jnp.float32) + st["bq"][bi, hh]
        kh = jnp.dot(h, st["wk"][bi, hh], preferred_element_type=jnp.float32) + st["bk"][bi, hh]
        vh = jnp.dot(h, st["wv"][bi, hh], preferred_element_type=jnp.float32) + st["bv"][bi, hh]
        s = jax.lax.dot_general(qh, kh, (((1,), (1,)), ((), ())),
                                preferred_element_type=jnp.float32)     # [L, L]
        s = s + st["bias"][bi, hh]                    # window/shift/rel-pos bias (precomputed)
        s = s - jnp.max(s, axis=-1, keepdims=True)
        e = jnp.exp(s)
        p = e * pl.reciprocal(jnp.sum(e, axis=-1, keepdims=True), approx=True)
        oh = jnp.dot(p, vh, preferred_element_type=jnp.float32)         # [L, dh]
        contrib = jnp.dot(oh, st["pw"][bi, hh], preferred_element_type=jnp.float32)
        attn = contrib if attn is None else attn + contrib
    x = x + attn + st["pb"][bi]

    h2 = _ln(x, st["ln2_g"][bi], st["ln2_b"][bi], eps)
    h2 = jnp.dot(h2, st["fc1_w"][bi], preferred_element_type=jnp.float32) + st["fc1_b"][bi]
    # TODO(synk): PyTorch Swin MLP uses exact-erf GELU; tanh approximation used here.
    h2 = jax.nn.gelu(h2, approximate=True)
    h2 = jnp.dot(h2, st["fc2_w"][bi], preferred_element_type=jnp.float32) + st["fc2_b"][bi]
    return x + h2


def _patch_merge(x, mg, eps):
    """PatchMerging: 2x2 gather (selection matmuls) -> LN(4C) -> Linear(4C->2C, no bias)."""
    C = x.shape[-1]
    hks = [jnp.dot(mg["sel"][k], x, preferred_element_type=jnp.float32) for k in range(4)]
    ssum = hks[0].sum(-1, keepdims=True)
    for k in range(1, 4):
        ssum = ssum + hks[k].sum(-1, keepdims=True)
    mu = ssum / (4.0 * C)
    vsum = ((hks[0] - mu) ** 2).sum(-1, keepdims=True)
    for k in range(1, 4):
        vsum = vsum + ((hks[k] - mu) ** 2).sum(-1, keepdims=True)
    inv = jax.lax.rsqrt(vsum / (4.0 * C) + eps)
    out = None
    for k in range(4):
        nk = (hks[k] - mu) * inv * mg["g"][k] + mg["beta"][k]
        contrib = jnp.dot(nk, mg["w"][k], preferred_element_type=jnp.float32)
        out = contrib if out is None else out + contrib
    return out


# ----------------------------- the single fused kernel -----------------------
def _fused_forward_kernel(x_ref, *refs, treedef, num_leaves, eps):
    param_refs = refs[:num_leaves]
    o_ref = refs[num_leaves]
    p = jax.tree_util.tree_unflatten(treedef, param_refs)

    # patch embed: unfolded patches [L, P*P*Cin] -> linear -> LN
    x = x_ref[0].astype(jnp.float32)                                   # [64, 12]
    x = jnp.dot(x, p["pe_w"][...], preferred_element_type=jnp.float32) + p["pe_b"][...]
    x = _ln(x, p["pe_g"][...], p["pe_beta"][...], eps)                 # [64, EMBED]

    # stages (fully unrolled; everything stays in vregs/VMEM)
    for li in range(len(DEPTHS)):
        st = p["stages"][li]
        for bi in range(DEPTHS[li]):
            x = _swin_block(x, st, bi, HEADS[li], eps)
        if li < len(DEPTHS) - 1:
            x = _patch_merge(x, p["merges"][li], eps)

    # final LN -> global average pool -> folded (head @ BN-eval @ fc) matmul
    # TODO(synk): nn.Dropout(0.2) is stochastic in train mode; eval-mode identity here.
    xn = _ln(x, p["norm_g"][...], p["norm_b"][...], eps)
    pooled = jnp.mean(xn, axis=0, keepdims=True)                       # [1, D]
    out = jnp.dot(pooled, p["wf"][...], preferred_element_type=jnp.float32) + p["bf"][...]
    o_ref[0] = out.astype(o_ref.dtype)


# ----------------------------- precomputed attention bias ---------------------
def _build_attn_bias(rel_table, H, W, ws, shift, num_heads):
    """Full [nH, L, L] additive attention bias over original token order.

    Encodes: (shifted-)window membership (cross-window pairs -> NEG_INF), Swin's -100
    shifted-window region mask, and the relative-position bias.  Exactly equivalent to
    per-window attention on the cyclically rolled feature map.
    """
    N = ws * ws
    L = H * W

    coords = np.stack(np.meshgrid(np.arange(ws), np.arange(ws), indexing="ij"))
    cf = coords.reshape(2, -1)
    rel = (cf[:, :, None] - cf[:, None, :]).transpose(1, 2, 0) + (ws - 1)
    rel_idx = rel[..., 0] * (2 * ws - 1) + rel[..., 1]                  # [N, N]
    rel_bias = rel_table[rel_idx.reshape(-1)].reshape(N, N, num_heads)
    rel_bias = jnp.transpose(rel_bias, (2, 0, 1))                       # [nH, N, N]

    r = np.repeat(np.arange(H)[:, None], W, axis=1)
    c = np.repeat(np.arange(W)[None, :], H, axis=0)
    rs = (r - shift) % H
    cs = (c - shift) % W
    win = (rs // ws) * (W // ws) + (cs // ws)
    pos = (rs % ws) * ws + (cs % ws)
    win_f = win.reshape(L)
    pos_f = pos.reshape(L)
    same_win = win_f[:, None] == win_f[None, :]                         # [L, L]

    if shift > 0:
        img_mask = np.zeros((H, W), np.int32)
        cnt = 0
        for hsl in (slice(0, -ws), slice(-ws, -shift), slice(-shift, None)):
            for wsl in (slice(0, -ws), slice(-ws, -shift), slice(-shift, None)):
                img_mask[hsl, wsl] = cnt
                cnt += 1
        region_f = img_mask[rs, cs].reshape(L)
        shift_mask = np.where(region_f[:, None] != region_f[None, :], -100.0, 0.0)
    else:
        shift_mask = np.zeros((L, L), np.float32)

    pair_bias = rel_bias[:, pos_f[:, None], pos_f[None, :]]             # [nH, L, L]
    full = jnp.where(jnp.asarray(same_win)[None],
                     pair_bias + jnp.asarray(shift_mask, dtype=jnp.float32)[None],
                     jnp.float32(NEG_INF))
    return full.astype(jnp.float32)


# ----------------------------- parameters ------------------------------------
class KeyGen:
    def __init__(self, key):
        self.key = key

    def __call__(self):
        self.key, sub = jax.random.split(self.key)
        return sub


def _lin(kg, fan_in, fan_out):
    w = jax.random.normal(kg(), (fan_in, fan_out), jnp.float32) * 0.02
    b = jnp.zeros((fan_out,), jnp.float32)
    return w, b


def init_params(key):
    kg = KeyGen(key)
    p = {}

    # patch embed (Conv2d kxk stride k as unfold + matmul); flattening order (kh,kw,Cin)
    # is self-consistent with the synthetic weights below.
    # TODO(synk): real PyTorch Conv2d weights flatten (Cin,kh,kw) — remap if loading ckpts.
    pe_w, pe_b = _lin(kg, PATCH * PATCH * IN_CH, EMBED)
    p["pe_w"] = pe_w
    p["pe_b"] = pe_b.reshape(1, EMBED)
    p["pe_g"] = jnp.ones((1, EMBED), jnp.float32)
    p["pe_beta"] = jnp.zeros((1, EMBED), jnp.float32)

    stages, merges = [], []
    res = IMG // PATCH
    dim = EMBED
    for li, depth in enumerate(DEPTHS):
        nH = HEADS[li]
        dh = dim // nH
        ws = min(WINDOW, res)
        hidden = dim * MLP_RATIO
        scale = dh ** -0.5
        acc = {k: [] for k in ("ln1_g", "ln1_b", "wq", "wk", "wv", "bq", "bk", "bv",
                               "bias", "pw", "pb", "ln2_g", "ln2_b",
                               "fc1_w", "fc1_b", "fc2_w", "fc2_b")}
        for bi in range(depth):
            shift = 0 if (bi % 2 == 0 or res <= WINDOW) else WINDOW // 2
            qkv_w, qkv_b = _lin(kg, dim, 3 * dim)
            # pre-split per head (contiguous planes); fold 1/sqrt(dh) into Q
            acc["wq"].append(qkv_w[:, 0:dim].reshape(dim, nH, dh).transpose(1, 0, 2) * scale)
            acc["wk"].append(qkv_w[:, dim:2 * dim].reshape(dim, nH, dh).transpose(1, 0, 2))
            acc["wv"].append(qkv_w[:, 2 * dim:3 * dim].reshape(dim, nH, dh).transpose(1, 0, 2))
            acc["bq"].append((qkv_b[0:dim] * scale).reshape(nH, 1, dh))
            acc["bk"].append(qkv_b[dim:2 * dim].reshape(nH, 1, dh))
            acc["bv"].append(qkv_b[2 * dim:3 * dim].reshape(nH, 1, dh))

            rel_table = jax.random.normal(kg(), ((2 * ws - 1) ** 2, nH), jnp.float32) * 0.02
            acc["bias"].append(_build_attn_bias(rel_table, res, res, ws, shift, nH))

            proj_w, proj_b = _lin(kg, dim, dim)
            acc["pw"].append(proj_w.reshape(nH, dh, dim))     # per-head rows, contiguous
            acc["pb"].append(proj_b.reshape(1, dim))

            acc["ln1_g"].append(jnp.ones((1, dim), jnp.float32))
            acc["ln1_b"].append(jnp.zeros((1, dim), jnp.float32))
            acc["ln2_g"].append(jnp.ones((1, dim), jnp.float32))
            acc["ln2_b"].append(jnp.zeros((1, dim), jnp.float32))

            fc1_w, fc1_b = _lin(kg, dim, hidden)
            fc2_w, fc2_b = _lin(kg, hidden, dim)
            acc["fc1_w"].append(fc1_w)
            acc["fc1_b"].append(fc1_b.reshape(1, hidden))
            acc["fc2_w"].append(fc2_w)
            acc["fc2_b"].append(fc2_b.reshape(1, dim))

        stages.append({k: jnp.stack(v, axis=0) for k, v in acc.items()})

        if li < len(DEPTHS) - 1:
            # patch merging: 2x2 selection matrices + per-quadrant LN / reduction weights
            Hh = Wh = res
            sel = np.zeros((4, (Hh // 2) * (Wh // 2), Hh * Wh), np.float32)
            for k, (dr, dc) in enumerate(((0, 0), (1, 0), (0, 1), (1, 1))):
                for rr in range(Hh // 2):
                    for cc in range(Wh // 2):
                        sel[k, rr * (Wh // 2) + cc, (2 * rr + dr) * Wh + (2 * cc + dc)] = 1.0
            pm_w, _ = _lin(kg, 4 * dim, 2 * dim)              # reduction: bias=False
            merges.append({
                "sel": jnp.asarray(sel),
                "g": jnp.ones((4, 1, dim), jnp.float32),
                "beta": jnp.zeros((4, 1, dim), jnp.float32),
                "w": pm_w.reshape(4, dim, 2 * dim),
            })
            res //= 2
            dim *= 2

    p["stages"] = stages
    p["merges"] = merges

    p["norm_g"] = jnp.ones((1, dim), jnp.float32)
    p["norm_b"] = jnp.zeros((1, dim), jnp.float32)

    # classifier head + BatchNorm1d(eval) + fc folded into one matmul (exact)
    head_w, head_b = _lin(kg, dim, NUM_CLASSES)
    bn_mean = jax.random.normal(kg(), (NUM_CLASSES,), jnp.float32) * 0.1
    bn_var = jax.random.uniform(kg(), (NUM_CLASSES,), jnp.float32, minval=0.5, maxval=1.5)
    bn_g = jnp.ones((NUM_CLASSES,), jnp.float32)
    bn_b = jnp.zeros((NUM_CLASSES,), jnp.float32)
    fc_w, fc_b = _lin(kg, NUM_CLASSES, LATENT)
    s = bn_g * jax.lax.rsqrt(bn_var + BN_EPS)
    p["wf"] = (head_w * s[None, :]) @ fc_w                               # [D, LATENT]
    p["bf"] = (((head_b - bn_mean) * s + bn_b) @ fc_w + fc_b).reshape(1, LATENT)
    return p


# ----------------------------- model forward ---------------------------------
def swin_forward(params, x_nchw):
    B = x_nchw.shape[0]
    # NCHW (PyTorch) -> NHWC -> unfolded patches [B, L, P*P*Cin] (single XLA prep op)
    x = jnp.transpose(x_nchw, (0, 2, 3, 1)).astype(jnp.float32)
    Hp, Wp = IMG // PATCH, IMG // PATCH
    xp = x.reshape(B, Hp, PATCH, Wp, PATCH, IN_CH)
    xp = jnp.transpose(xp, (0, 1, 3, 2, 4, 5)).reshape(B, Hp * Wp, PATCH * PATCH * IN_CH)

    leaves, treedef = jax.tree_util.tree_flatten(params)

    def winv(shape):
        nd = len(shape)
        return pl.BlockSpec(shape, lambda i, _nd=nd: (0,) * _nd)   # grid-invariant weight

    in_specs = [pl.BlockSpec((1, Hp * Wp, PATCH * PATCH * IN_CH), lambda i: (i, 0, 0))]
    in_specs += [winv(leaf.shape) for leaf in leaves]

    kern = functools.partial(_fused_forward_kernel, treedef=treedef,
                             num_leaves=len(leaves), eps=LN_EPS)
    out = pl.pallas_call(
        kern,
        out_shape=jax.ShapeDtypeStruct((B, 1, LATENT), jnp.float32),
        grid=(B,),
        in_specs=in_specs,
        out_specs=pl.BlockSpec((1, 1, LATENT), lambda i: (i, 0, 0)),
        compiler_params=pltpu.CompilerParams(dimension_semantics=("parallel",)),
    )(xp, *leaves)
    return out.reshape(B, LATENT)


# ----------------------------- main -------------------------------------------
if __name__ == "__main__":
    key = jax.random.PRNGKey(0)
    pkey, xkey = jax.random.split(key)
    params = init_params(pkey)

    # PyTorch-convention NCHW input (scaled-down: 2 x 3 x 16 x 16)
    x = jax.random.normal(xkey, (BATCH, IN_CH, IMG, IMG), jnp.float32)

    out = jax.jit(swin_forward)(params, x)
    out = jax.block_until_ready(out)
    assert out.shape == (BATCH, LATENT), out.shape
    assert bool(jnp.all(jnp.isfinite(out)))
    print("KERNEL_OK")
</pallas_src>

<mosaic_0001>
module attributes {stable_mosaic.version = 11 : i64} {
  func.func @_fused_forward_kernel(%arg0: i32, %arg1: memref<1x64x12xf32, #tpu.memory_space<vmem>>, %arg2: memref<1x32xf32, #tpu.memory_space<vmem>>, %arg3: memref<4x1x16xf32, #tpu.memory_space<vmem>>, %arg4: memref<4x1x16xf32, #tpu.memory_space<vmem>>, %arg5: memref<4x16x64xf32, #tpu.memory_space<vmem>>, %arg6: memref<4x16x32xf32, #tpu.memory_space<vmem>>, %arg7: memref<1x32xf32, #tpu.memory_space<vmem>>, %arg8: memref<1x32xf32, #tpu.memory_space<vmem>>, %arg9: memref<1x16xf32, #tpu.memory_space<vmem>>, %arg10: memref<1x16xf32, #tpu.memory_space<vmem>>, %arg11: memref<1x16xf32, #tpu.memory_space<vmem>>, %arg12: memref<12x16xf32, #tpu.memory_space<vmem>>, %arg13: memref<2x2x64x64xf32, #tpu.memory_space<vmem>>, %arg14: memref<2x2x1x8xf32, #tpu.memory_space<vmem>>, %arg15: memref<2x2x1x8xf32, #tpu.memory_space<vmem>>, %arg16: memref<2x2x1x8xf32, #tpu.memory_space<vmem>>, %arg17: memref<2x1x32xf32, #tpu.memory_space<vmem>>, %arg18: memref<2x16x32xf32, #tpu.memory_space<vmem>>, %arg19: memref<2x1x16xf32, #tpu.memory_space<vmem>>, %arg20: memref<2x32x16xf32, #tpu.memory_space<vmem>>, %arg21: memref<2x1x16xf32, #tpu.memory_space<vmem>>, %arg22: memref<2x1x16xf32, #tpu.memory_space<vmem>>, %arg23: memref<2x1x16xf32, #tpu.memory_space<vmem>>, %arg24: memref<2x1x16xf32, #tpu.memory_space<vmem>>, %arg25: memref<2x1x16xf32, #tpu.memory_space<vmem>>, %arg26: memref<2x2x8x16xf32, #tpu.memory_space<vmem>>, %arg27: memref<2x2x16x8xf32, #tpu.memory_space<vmem>>, %arg28: memref<2x2x16x8xf32, #tpu.memory_space<vmem>>, %arg29: memref<2x2x16x8xf32, #tpu.memory_space<vmem>>, %arg30: memref<2x4x16x16xf32, #tpu.memory_space<vmem>>, %arg31: memref<2x4x1x8xf32, #tpu.memory_space<vmem>>, %arg32: memref<2x4x1x8xf32, #tpu.memory_space<vmem>>, %arg33: memref<2x4x1x8xf32, #tpu.memory_space<vmem>>, %arg34: memref<2x1x64xf32, #tpu.memory_space<vmem>>, %arg35: memref<2x32x64xf32, #tpu.memory_space<vmem>>, %arg36: memref<2x1x32xf32, #tpu.memory_space<vmem>>, %arg37: memref<2x64x32xf32, #tpu.memory_space<vmem>>, %arg38: memref<2x1x32xf32, #tpu.memory_space<vmem>>, %arg39: memref<2x1x32xf32, #tpu.memory_space<vmem>>, %arg40: memref<2x1x32xf32, #tpu.memory_space<vmem>>, %arg41: memref<2x1x32xf32, #tpu.memory_space<vmem>>, %arg42: memref<2x1x32xf32, #tpu.memory_space<vmem>>, %arg43: memref<2x4x8x32xf32, #tpu.memory_space<vmem>>, %arg44: memref<2x4x32x8xf32, #tpu.memory_space<vmem>>, %arg45: memref<2x4x32x8xf32, #tpu.memory_space<vmem>>, %arg46: memref<2x4x32x8xf32, #tpu.memory_space<vmem>>, %arg47: memref<32x32xf32, #tpu.memory_space<vmem>>, %arg48: memref<1x1x32xf32, #tpu.memory_space<vmem>>) attributes {dimension_semantics = [#tpu.dimension_semantics<parallel>], iteration_bounds = array<i64: 2>, scalar_prefetch = 0 : i64, scratch_operands = 0 : i64, tpu.core_type = #tpu.core_type<tc>, window_params = [{transform_indices = @transform_0, window_bounds = array<i64: 1, 64, 12>}, {pipeline_mode = #tpu.pipeline_mode<synchronous>, transform_indices = @transform_1, window_bounds = array<i64: 1, 32>}, {pipeline_mode = #tpu.pipeline_mode<synchronous>, transform_indices = @transform_2, window_bounds = array<i64: 4, 1, 16>}, {pipeline_mode = #tpu.pipeline_mode<synchronous>, transform_indices = @transform_3, window_bounds = array<i64: 4, 1, 16>}, {pipeline_mode = #tpu.pipeline_mode<synchronous>, transform_indices = @transform_4, window_bounds = array<i64: 4, 16, 64>}, {pipeline_mode = #tpu.pipeline_mode<synchronous>, transform_indices = @transform_5, window_bounds = array<i64: 4, 16, 32>}, {pipeline_mode = #tpu.pipeline_mode<synchronous>, transform_indices = @transform_6, window_bounds = array<i64: 1, 32>}, {pipeline_mode = #tpu.pipeline_mode<synchronous>, transform_indices = @transform_7, window_bounds = array<i64: 1, 32>}, {pipeline_mode = #tpu.pipeline_mode<synchronous>, transform_indices = @transform_8, window_bounds = array<i64: 1, 16>}, {pipeline_mode = #tpu.pipeline_mode<synchronous>, transform_indices = @transform_9, window_bounds = array<i64: 1, 16>}, {pipeline_mode = #tpu.pipeline_mode<synchronous>, transform_indices = @transform_10, window_bounds = array<i64: 1, 16>}, {pipeline_mode = #tpu.pipeline_mode<synchronous>, transform_indices = @transform_11, window_bounds = array<i64: 12, 16>}, {pipeline_mode = #tpu.pipeline_mode<synchronous>, transform_indices = @transform_12, window_bounds = array<i64: 2, 2, 64, 64>}, {pipeline_mode = #tpu.pipeline_mode<synchronous>, transform_indices = @transform_13, window_bounds = array<i64: 2, 2, 1, 8>}, {pipeline_mode = #tpu.pipeline_mode<synchronous>, transform_indices = @transform_14, window_bounds = array<i64: 2, 2, 1, 8>}, {pipeline_mode = #tpu.pipeline_mode<synchronous>, transform_indices = @transform_15, window_bounds = array<i64: 2, 2, 1, 8>}, {pipeline_mode = #tpu.pipeline_mode<synchronous>, transform_indices = @transform_16, window_bounds = array<i64: 2, 1, 32>}, {pipeline_mode = #tpu.pipeline_mode<synchronous>, transform_indices = @transform_17, window_bounds = array<i64: 2, 16, 32>}, {pipeline_mode = #tpu.pipeline_mode<synchronous>, transform_indices = @transform_18, window_bounds = array<i64: 2, 1, 16>}, {pipeline_mode = #tpu.pipeline_mode<synchronous>, transform_indices = @transform_19, window_bounds = array<i64: 2, 32, 16>}, {pipeline_mode = #tpu.pipeline_mode<synchronous>, transform_indices = @transform_20, window_bounds = array<i64: 2, 1, 16>}, {pipeline_mode = #tpu.pipeline_mode<synchronous>, transform_indices = @transform_21, window_bounds = array<i64: 2, 1, 16>}, {pipeline_mode = #tpu.pipeline_mode<synchronous>, transform_indices = @transform_22, window_bounds = array<i64: 2, 1, 16>}, {pipeline_mode = #tpu.pipeline_mode<synchronous>, transform_indices = @transform_23, window_bounds = array<i64: 2, 1, 16>}, {pipeline_mode = #tpu.pipeline_mode<synchronous>, transform_indices = @transform_24, window_bounds = array<i64: 2, 1, 16>}, {pipeline_mode = #tpu.pipeline_mode<synchronous>, transform_indices = @transform_25, window_bounds = array<i64: 2, 2, 8, 16>}, {pipeline_mode = #tpu.pipeline_mode<synchronous>, transform_indices = @transform_26, window_bounds = array<i64: 2, 2, 16, 8>}, {pipeline_mode = #tpu.pipeline_mode<synchronous>, transform_indices = @transform_27, window_bounds = array<i64: 2, 2, 16, 8>}, {pipeline_mode = #tpu.pipeline_mode<synchronous>, transform_indices = @transform_28, window_bounds = array<i64: 2, 2, 16, 8>}, {pipeline_mode = #tpu.pipeline_mode<synchronous>, transform_indices = @transform_29, window_bounds = array<i64: 2, 4, 16, 16>}, {pipeline_mode = #tpu.pipeline_mode<synchronous>, transform_indices = @transform_30, window_bounds = array<i64: 2, 4, 1, 8>}, {pipeline_mode = #tpu.pipeline_mode<synchronous>, transform_indices = @transform_31, window_bounds = array<i64: 2, 4, 1, 8>}, {pipeline_mode = #tpu.pipeline_mode<synchronous>, transform_indices = @transform_32, window_bounds = array<i64: 2, 4, 1, 8>}, {pipeline_mode = #tpu.pipeline_mode<synchronous>, transform_indices = @transform_33, window_bounds = array<i64: 2, 1, 64>}, {pipeline_mode = #tpu.pipeline_mode<synchronous>, transform_indices = @transform_34, window_bounds = array<i64: 2, 32, 64>}, {pipeline_mode = #tpu.pipeline_mode<synchronous>, transform_indices = @transform_35, window_bounds = array<i64: 2, 1, 32>}, {pipeline_mode = #tpu.pipeline_mode<synchronous>, transform_indices = @transform_36, window_bounds = array<i64: 2, 64, 32>}, {pipeline_mode = #tpu.pipeline_mode<synchronous>, transform_indices = @transform_37, window_bounds = array<i64: 2, 1, 32>}, {pipeline_mode = #tpu.pipeline_mode<synchronous>, transform_indices = @transform_38, window_bounds = array<i64: 2, 1, 32>}, {pipeline_mode = #tpu.pipeline_mode<synchronous>, transform_indices = @transform_39, window_bounds = array<i64: 2, 1, 32>}, {pipeline_mode = #tpu.pipeline_mode<synchronous>, transform_indices = @transform_40, window_bounds = array<i64: 2, 1, 32>}, {pipeline_mode = #tpu.pipeline_mode<synchronous>, transform_indices = @transform_41, window_bounds = array<i64: 2, 1, 32>}, {pipeline_mode = #tpu.pipeline_mode<synchronous>, transform_indices = @transform_42, window_bounds = array<i64: 2, 4, 8, 32>}, {pipeline_mode = #tpu.pipeline_mode<synchronous>, transform_indices = @transform_43, window_bounds = array<i64: 2, 4, 32, 8>}, {pipeline_mode = #tpu.pipeline_mode<synchronous>, transform_indices = @transform_44, window_bounds = array<i64: 2, 4, 32, 8>}, {pipeline_mode = #tpu.pipeline_mode<synchronous>, transform_indices = @transform_45, window_bounds = array<i64: 2, 4, 32, 8>}, {pipeline_mode = #tpu.pipeline_mode<synchronous>, transform_indices = @transform_46, window_bounds = array<i64: 32, 32>}, {transform_indices = @transform_47, window_bounds = array<i64: 1, 1, 32>}]} {
    %c0 = arith.constant 0 : index
    %c0_0 = arith.constant 0 : index
    %c0_1 = arith.constant 0 : index
    %0 = vector.load %arg1[%c0, %c0_0, %c0_1] : memref<1x64x12xf32, #tpu.memory_space<vmem>>, vector<1x64x12xf32>
    %1 = vector.shape_cast %0 : vector<1x64x12xf32> to vector<64x12xf32>
    %c0_2 = arith.constant 0 : index
    %c0_3 = arith.constant 0 : index
    %2 = vector.load %arg12[%c0_2, %c0_3] : memref<12x16xf32, #tpu.memory_space<vmem>>, vector<12x16xf32>
    %cst = arith.constant dense<0.000000e+00> : vector<64x16xf32>
    %3 = tpu.matmul %1, %2, %cst {dimension_numbers = #tpu.dot_dimension_numbers<[1], [0], [0], [1], [0, 0, 1, 1], [], []>} : vector<64x12xf32>, vector<12x16xf32>, vector<64x16xf32> -> vector<64x16xf32>
    %c0_4 = arith.constant 0 : index
    %c0_5 = arith.constant 0 : index
    %4 = vector.load %arg9[%c0_4, %c0_5] : memref<1x16xf32, #tpu.memory_space<vmem>>, vector<1x16xf32>
    %5 = vector.broadcast %4 : vector<1x16xf32> to vector<64x16xf32>
    %6 = arith.addf %3, %5 : vector<64x16xf32>
    %c0_6 = arith.constant 0 : index
    %c0_7 = arith.constant 0 : index
    %7 = vector.load %arg11[%c0_6, %c0_7] : memref<1x16xf32, #tpu.memory_space<vmem>>, vector<1x16xf32>
    %c0_8 = arith.constant 0 : index
    %c0_9 = arith.constant 0 : index
    %8 = vector.load %arg10[%c0_8, %c0_9] : memref<1x16xf32, #tpu.memory_space<vmem>>, vector<1x16xf32>
    %cst_10 = arith.constant dense<0.000000e+00> : vector<64xf32>
    %9 = vector.multi_reduction <add>, %6, %cst_10 [1] : vector<64x16xf32> to vector<64xf32>
    %10 = vector.shape_cast %9 : vector<64xf32> to vector<64x1xf32>
    %cst_11 = arith.constant 1.600000e+01 : f32
    %11 = vector.broadcast %cst_11 : f32 to vector<64x1xf32>
    %12 = arith.divf %10, %11 : vector<64x1xf32>
    %13 = vector.broadcast %12 : vector<64x1xf32> to vector<64x16xf32>
    %14 = arith.subf %6, %13 : vector<64x16xf32>
    %15 = arith.mulf %14, %14 : vector<64x16xf32>
    %cst_12 = arith.constant dense<0.000000e+00> : vector<64xf32>
    %16 = vector.multi_reduction <add>, %15, %cst_12 [1] : vector<64x16xf32> to vector<64xf32>
    %17 = vector.shape_cast %16 : vector<64xf32> to vector<64x1xf32>
    %cst_13 = arith.constant 1.600000e+01 : f32
    %18 = vector.broadcast %cst_13 : f32 to vector<64x1xf32>
    %19 = arith.divf %17, %18 : vector<64x1xf32>
    %20 = vector.broadcast %12 : vector<64x1xf32> to vector<64x16xf32>
    %21 = arith.subf %6, %20 : vector<64x16xf32>
    %cst_14 = arith.constant 9.99999974E-6 : f32
    %22 = vector.broadcast %cst_14 : f32 to vector<64x1xf32>
    %23 = arith.addf %19, %22 : vector<64x1xf32>
    %24 = math.rsqrt %23 : vector<64x1xf32>
    %25 = vector.broadcast %24 : vector<64x1xf32> to vector<64x16xf32>
    %26 = arith.mulf %21, %25 : vector<64x16xf32>
    %27 = vector.broadcast %7 : vector<1x16xf32> to vector<64x16xf32>
    %28 = arith.mulf %26, %27 : vector<64x16xf32>
    %29 = vector.broadcast %8 : vector<1x16xf32> to vector<64x16xf32>
    %30 = arith.addf %28, %29 : vector<64x16xf32>
    %c0_15 = arith.constant 0 : index
    %c0_16 = arith.constant 0 : index
    %c0_17 = arith.constant 0 : index
    %31 = vector.load %arg22[%c0_15, %c0_16, %c0_17] : memref<2x1x16xf32, #tpu.memory_space<vmem>>, vector<1x1x16xf32>
    %32 = vector.shape_cast %31 : vector<1x1x16xf32> to vector<1x16xf32>
    %c0_18 = arith.constant 0 : index
    %c0_19 = arith.constant 0 : index
    %c0_20 = arith.constant 0 : index
    %33 = vector.load %arg21[%c0_18, %c0_19, %c0_20] : memref<2x1x16xf32, #tpu.memory_space<vmem>>, vector<1x1x16xf32>
    %34 = vector.shape_cast %33 : vector<1x1x16xf32> to vector<1x16xf32>
    %cst_21 = arith.constant dense<0.000000e+00> : vector<64xf32>
    %35 = vector.multi_reduction <add>, %30, %cst_21 [1] : vector<64x16xf32> to vector<64xf32>
    %36 = vector.shape_cast %35 : vector<64xf32> to vector<64x1xf32>
    %cst_22 = arith.constant 1.600000e+01 : f32
    %37 = vector.broadcast %cst_22 : f32 to vector<64x1xf32>
    %38 = arith.divf %36, %37 : vector<64x1xf32>
    %39 = vector.broadcast %38 : vector<64x1xf32> to vector<64x16xf32>
    %40 = arith.subf %30, %39 : vector<64x16xf32>
    %41 = arith.mulf %40, %40 : vector<64x16xf32>
    %cst_23 = arith.constant dense<0.000000e+00> : vector<64xf32>
    %42 = vector.multi_reduction <add>, %41, %cst_23 [1] : vector<64x16xf32> to vector<64xf32>
    %43 = vector.shape_cast %42 : vector<64xf32> to vector<64x1xf32>
    %cst_24 = arith.constant 1.600000e+01 : f32
    %44 = vector.broadcast %cst_24 : f32 to vector<64x1xf32>
    %45 = arith.divf %43, %44 : vector<64x1xf32>
    %46 = vector.broadcast %38 : vector<64x1xf32> to vector<64x16xf32>
    %47 = arith.subf %30, %46 : vector<64x16xf32>
    %cst_25 = arith.constant 9.99999974E-6 : f32
    %48 = vector.broadcast %cst_25 : f32 to vector<64x1xf32>
    %49 = arith.addf %45, %48 : vector<64x1xf32>
    %50 = math.rsqrt %49 : vector<64x1xf32>
    %51 = vector.broadcast %50 : vector<64x1xf32> to vector<64x16xf32>
    %52 = arith.mulf %47, %51 : vector<64x16xf32>
    %53 = vector.broadcast %32 : vector<1x16xf32> to vector<64x16xf32>
    %54 = arith.mulf %52, %53 : vector<64x16xf32>
    %55 = vector.broadcast %34 : vector<1x16xf32> to vector<64x16xf32>
    %56 = arith.addf %54, %55 : vector<64x16xf32>
    %c0_26 = arith.constant 0 : index
    %c0_27 = arith.constant 0 : index
    %c0_28 = arith.constant 0 : index
    %c0_29 = arith.constant 0 : index
    %57 = vector.load %arg28[%c0_26, %c0_27, %c0_28, %c0_29] : memref<2x2x16x8xf32, #tpu.memory_space<vmem>>, vector<1x1x16x8xf32>
    %58 = vector.shape_cast %57 : vector<1x1x16x8xf32> to vector<16x8xf32>
    %cst_30 = arith.constant dense<0.000000e+00> : vector<64x8xf32>
    %59 = tpu.matmul %56, %58, %cst_30 {dimension_numbers = #tpu.dot_dimension_numbers<[1], [0], [0], [1], [0, 0, 1, 1], [], []>} : vector<64x16xf32>, vector<16x8xf32>, vector<64x8xf32> -> vector<64x8xf32>
    %c0_31 = arith.constant 0 : index
    %c0_32 = arith.constant 0 : index
    %c0_33 = arith.constant 0 : index
    %c0_34 = arith.constant 0 : index
    %60 = vector.load %arg15[%c0_31, %c0_32, %c0_33, %c0_34] : memref<2x2x1x8xf32, #tpu.memory_space<vmem>>, vector<1x1x1x8xf32>
    %61 = vector.shape_cast %60 : vector<1x1x1x8xf32> to vector<1x8xf32>
    %62 = vector.broadcast %61 : vector<1x8xf32> to vector<64x8xf32>
    %63 = arith.addf %59, %62 : vector<64x8xf32>
    %c0_35 = arith.constant 0 : index
    %c0_36 = arith.constant 0 : index
    %c0_37 = arith.constant 0 : index
    %c0_38 = arith.constant 0 : index
    %64 = vector.load %arg27[%c0_35, %c0_36, %c0_37, %c0_38] : memref<2x2x16x8xf32, #tpu.memory_space<vmem>>, vector<1x1x16x8xf32>
    %65 = vector.shape_cast %64 : vector<1x1x16x8xf32> to vector<16x8xf32>
    %cst_39 = arith.constant dense<0.000000e+00> : vector<64x8xf32>
    %66 = tpu.matmul %56, %65, %cst_39 {dimension_numbers = #tpu.dot_dimension_numbers<[1], [0], [0], [1], [0, 0, 1, 1], [], []>} : vector<64x16xf32>, vector<16x8xf32>, vector<64x8xf32> -> vector<64x8xf32>
    %c0_40 = arith.constant 0 : index
    %c0_41 = arith.constant 0 : index
    %c0_42 = arith.constant 0 : index
    %c0_43 = arith.constant 0 : index
    %67 = vector.load %arg14[%c0_40, %c0_41, %c0_42, %c0_43] : memref<2x2x1x8xf32, #tpu.memory_space<vmem>>, vector<1x1x1x8xf32>
    %68 = vector.shape_cast %67 : vector<1x1x1x8xf32> to vector<1x8xf32>
    %69 = vector.broadcast %68 : vector<1x8xf32> to vector<64x8xf32>
    %70 = arith.addf %66, %69 : vector<64x8xf32>
    %c0_44 = arith.constant 0 : index
    %c0_45 = arith.constant 0 : index
    %c0_46 = arith.constant 0 : index
    %c0_47 = arith.constant 0 : index
    %71 = vector.load %arg29[%c0_44, %c0_45, %c0_46, %c0_47] : memref<2x2x16x8xf32, #tpu.memory_space<vmem>>, vector<1x1x16x8xf32>
    %72 = vector.shape_cast %71 : vector<1x1x16x8xf32> to vector<16x8xf32>
    %cst_48 = arith.constant dense<0.000000e+00> : vector<64x8xf32>
    %73 = tpu.matmul %56, %72, %cst_48 {dimension_numbers = #tpu.dot_dimension_numbers<[1], [0], [0], [1], [0, 0, 1, 1], [], []>} : vector<64x16xf32>, vector<16x8xf32>, vector<64x8xf32> -> vector<64x8xf32>
    %c0_49 = arith.constant 0 : index
    %c0_50 = arith.constant 0 : index
    %c0_51 = arith.constant 0 : index
    %c0_52 = arith.constant 0 : index
    %74 = vector.load %arg16[%c0_49, %c0_50, %c0_51, %c0_52] : memref<2x2x1x8xf32, #tpu.memory_space<vmem>>, vector<1x1x1x8xf32>
    %75 = vector.shape_cast %74 : vector<1x1x1x8xf32> to vector<1x8xf32>
    %76 = vector.broadcast %75 : vector<1x8xf32> to vector<64x8xf32>
    %77 = arith.addf %73, %76 : vector<64x8xf32>
    %cst_53 = arith.constant dense<0.000000e+00> : vector<64x64xf32>
    %78 = tpu.matmul %63, %70, %cst_53 {dimension_numbers = #tpu.dot_dimension_numbers<[1], [1], [0], [0], [0, 0, 1, 0], [], []>} : vector<64x8xf32>, vector<64x8xf32>, vector<64x64xf32> -> vector<64x64xf32>
    %c0_54 = arith.constant 0 : index
    %c0_55 = arith.constant 0 : index
    %c0_56 = arith.constant 0 : index
    %c0_57 = arith.constant 0 : index
    %79 = vector.load %arg13[%c0_54, %c0_55, %c0_56, %c0_57] : memref<2x2x64x64xf32, #tpu.memory_space<vmem>>, vector<1x1x64x64xf32>
    %80 = vector.shape_cast %79 : vector<1x1x64x64xf32> to vector<64x64xf32>
    %81 = arith.addf %78, %80 : vector<64x64xf32>
    %cst_58 = arith.constant dense<0xFF800000> : vector<64xf32>
    %82 = vector.multi_reduction <maximumf>, %81, %cst_58 [1] : vector<64x64xf32> to vector<64xf32>
    %83 = vector.shape_cast %82 : vector<64xf32> to vector<64x1xf32>
    %84 = vector.broadcast %83 : vector<64x1xf32> to vector<64x64xf32>
    %85 = arith.subf %81, %84 : vector<64x64xf32>
    %86 = math.exp %85 : vector<64x64xf32>
    %cst_59 = arith.constant dense<0.000000e+00> : vector<64xf32>
    %87 = vector.multi_reduction <add>, %86, %cst_59 [1] : vector<64x64xf32> to vector<64xf32>
    %88 = vector.shape_cast %87 : vector<64xf32> to vector<64x1xf32>
    %89 = tpu.reciprocal %88 {approx = true} : vector<64x1xf32> -> vector<64x1xf32>
    %90 = vector.broadcast %89 : vector<64x1xf32> to vector<64x64xf32>
    %91 = arith.mulf %86, %90 : vector<64x64xf32>
    %cst_60 = arith.constant dense<0.000000e+00> : vector<64x8xf32>
    %92 = tpu.matmul %91, %77, %cst_60 {dimension_numbers = #tpu.dot_dimension_numbers<[1], [0], [0], [1], [0, 0, 1, 1], [], []>} : vector<64x64xf32>, vector<64x8xf32>, vector<64x8xf32> -> vector<64x8xf32>
    %c0_61 = arith.constant 0 : index
    %c0_62 = arith.constant 0 : index
    %c0_63 = arith.constant 0 : index
    %c0_64 = arith.constant 0 : index
    %93 = vector.load %arg26[%c0_61, %c0_62, %c0_63, %c0_64] : memref<2x2x8x16xf32, #tpu.memory_space<vmem>>, vector<1x1x8x16xf32>
    %94 = vector.shape_cast %93 : vector<1x1x8x16xf32> to vector<8x16xf32>
    %cst_65 = arith.constant dense<0.000000e+00> : vector<64x16xf32>
    %95 = tpu.matmul %92, %94, %cst_65 {dimension_numbers = #tpu.dot_dimension_numbers<[1], [0], [0], [1], [0, 0, 1, 1], [], []>} : vector<64x8xf32>, vector<8x16xf32>, vector<64x16xf32> -> vector<64x16xf32>
    %c0_66 = arith.constant 0 : index
    %c1 = arith.constant 1 : index
    %c0_67 = arith.constant 0 : index
    %c0_68 = arith.constant 0 : index
    %96 = vector.load %arg28[%c0_66, %c1, %c0_67, %c0_68] : memref<2x2x16x8xf32, #tpu.memory_space<vmem>>, vector<1x1x16x8xf32>
    %97 = vector.shape_cast %96 : vector<1x1x16x8xf32> to vector<16x8xf32>
    %cst_69 = arith.constant dense<0.000000e+00> : vector<64x8xf32>
    %98 = tpu.matmul %56, %97, %cst_69 {dimension_numbers = #tpu.dot_dimension_numbers<[1], [0], [0], [1], [0, 0, 1, 1], [], []>} : vector<64x16xf32>, vector<16x8xf32>, vector<64x8xf32> -> vector<64x8xf32>
    %c0_70 = arith.constant 0 : index
    %c1_71 = arith.constant 1 : index
    %c0_72 = arith.constant 0 : index
    %c0_73 = arith.constant 0 : index
    %99 = vector.load %arg15[%c0_70, %c1_71, %c0_72, %c0_73] : memref<2x2x1x8xf32, #tpu.memory_space<vmem>>, vector<1x1x1x8xf32>
    %100 = vector.shape_cast %99 : vector<1x1x1x8xf32> to vector<1x8xf32>
    %101 = vector.broadcast %100 : vector<1x8xf32> to vector<64x8xf32>
    %102 = arith.addf %98, %101 : vector<64x8xf32>
    %c0_74 = arith.constant 0 : index
    %c1_75 = arith.constant 1 : index
    %c0_76 = arith.constant 0 : index
    %c0_77 = arith.constant 0 : index
    %103 = vector.load %arg27[%c0_74, %c1_75, %c0_76, %c0_77] : memref<2x2x16x8xf32, #tpu.memory_space<vmem>>, vector<1x1x16x8xf32>
    %104 = vector.shape_cast %103 : vector<1x1x16x8xf32> to vector<16x8xf32>
    %cst_78 = arith.constant dense<0.000000e+00> : vector<64x8xf32>
    %105 = tpu.matmul %56, %104, %cst_78 {dimension_numbers = #tpu.dot_dimension_numbers<[1], [0], [0], [1], [0, 0, 1, 1], [], []>} : vector<64x16xf32>, vector<16x8xf32>, vector<64x8xf32> -> vector<64x8xf32>
    %c0_79 = arith.constant 0 : index
    %c1_80 = arith.constant 1 : index
    %c0_81 = arith.constant 0 : index
    %c0_82 = arith.constant 0 : index
    %106 = vector.load %arg14[%c0_79, %c1_80, %c0_81, %c0_82] : memref<2x2x1x8xf32, #tpu.memory_space<vmem>>, vector<1x1x1x8xf32>
    %107 = vector.shape_cast %106 : vector<1x1x1x8xf32> to vector<1x8xf32>
    %108 = vector.broadcast %107 : vector<1x8xf32> to vector<64x8xf32>
    %109 = arith.addf %105, %108 : vector<64x8xf32>
    %c0_83 = arith.constant 0 : index
    %c1_84 = arith.constant 1 : index
    %c0_85 = arith.constant 0 : index
    %c0_86 = arith.constant 0 : index
    %110 = vector.load %arg29[%c0_83, %c1_84, %c0_85, %c0_86] : memref<2x2x16x8xf32, #tpu.memory_space<vmem>>, vector<1x1x16x8xf32>
    %111 = vector.shape_cast %110 : vector<1x1x16x8xf32> to vector<16x8xf32>
    %cst_87 = arith.constant dense<0.000000e+00> : vector<64x8xf32>
    %112 = tpu.matmul %56, %111, %cst_87 {dimension_numbers = #tpu.dot_dimension_numbers<[1], [0], [0], [1], [0, 0, 1, 1], [], []>} : vector<64x16xf32>, vector<16x8xf32>, vector<64x8xf32> -> vector<64x8xf32>
    %c0_88 = arith.constant 0 : index
    %c1_89 = arith.constant 1 : index
    %c0_90 = arith.constant 0 : index
    %c0_91 = arith.constant 0 : index
    %113 = vector.load %arg16[%c0_88, %c1_89, %c0_90, %c0_91] : memref<2x2x1x8xf32, #tpu.memory_space<vmem>>, vector<1x1x1x8xf32>
    %114 = vector.shape_cast %113 : vector<1x1x1x8xf32> to vector<1x8xf32>
    %115 = vector.broadcast %114 : vector<1x8xf32> to vector<64x8xf32>
    %116 = arith.addf %112, %115 : vector<64x8xf32>
    %cst_92 = arith.constant dense<0.000000e+00> : vector<64x64xf32>
    %117 = tpu.matmul %102, %109, %cst_92 {dimension_numbers = #tpu.dot_dimension_numbers<[1], [1], [0], [0], [0, 0, 1, 0], [], []>} : vector<64x8xf32>, vector<64x8xf32>, vector<64x64xf32> -> vector<64x64xf32>
    %c0_93 = arith.constant 0 : index
    %c1_94 = arith.constant 1 : index
    %c0_95 = arith.constant 0 : index
    %c0_96 = arith.constant 0 : index
    %118 = vector.load %arg13[%c0_93, %c1_94, %c0_95, %c0_96] : memref<2x2x64x64xf32, #tpu.memory_space<vmem>>, vector<1x1x64x64xf32>
    %119 = vector.shape_cast %118 : vector<1x1x64x64xf32> to vector<64x64xf32>
    %120 = arith.addf %117, %119 : vector<64x64xf32>
    %cst_97 = arith.constant dense<0xFF800000> : vector<64xf32>
    %121 = vector.multi_reduction <maximumf>, %120, %cst_97 [1] : vector<64x64xf32> to vector<64xf32>
    %122 = vector.shape_cast %121 : vector<64xf32> to vector<64x1xf32>
    %123 = vector.broadcast %122 : vector<64x1xf32> to vector<64x64xf32>
    %124 = arith.subf %120, %123 : vector<64x64xf32>
    %125 = math.exp %124 : vector<64x64xf32>
    %cst_98 = arith.constant dense<0.000000e+00> : vector<64xf32>
    %126 = vector.multi_reduction <add>, %125, %cst_98 [1] : vector<64x64xf32> to vector<64xf32>
    %127 = vector.shape_cast %126 : vector<64xf32> to vector<64x1xf32>
    %128 = tpu.reciprocal %127 {approx = true} : vector<64x1xf32> -> vector<64x1xf32>
    %129 = vector.broadcast %128 : vector<64x1xf32> to vector<64x64xf32>
    %130 = arith.mulf %125, %129 : vector<64x64xf32>
    %cst_99 = arith.constant dense<0.000000e+00> : vector<64x8xf32>
    %131 = tpu.matmul %130, %116, %cst_99 {dimension_numbers = #tpu.dot_dimension_numbers<[1], [0], [0], [1], [0, 0, 1, 1], [], []>} : vector<64x64xf32>, vector<64x8xf32>, vector<64x8xf32> -> vector<64x8xf32>
    %c0_100 = arith.constant 0 : index
    %c1_101 = arith.constant 1 : index
    %c0_102 = arith.constant 0 : index
    %c0_103 = arith.constant 0 : index
    %132 = vector.load %arg26[%c0_100, %c1_101, %c0_102, %c0_103] : memref<2x2x8x16xf32, #tpu.memory_space<vmem>>, vector<1x1x8x16xf32>
    %133 = vector.shape_cast %132 : vector<1x1x8x16xf32> to vector<8x16xf32>
    %cst_104 = arith.constant dense<0.000000e+00> : vector<64x16xf32>
    %134 = tpu.matmul %131, %133, %cst_104 {dimension_numbers = #tpu.dot_dimension_numbers<[1], [0], [0], [1], [0, 0, 1, 1], [], []>} : vector<64x8xf32>, vector<8x16xf32>, vector<64x16xf32> -> vector<64x16xf32>
    %135 = arith.addf %95, %134 : vector<64x16xf32>
    %136 = arith.addf %30, %135 : vector<64x16xf32>
    %c0_105 = arith.constant 0 : index
    %c0_106 = arith.constant 0 : index
    %c0_107 = arith.constant 0 : index
    %137 = vector.load %arg25[%c0_105, %c0_106, %c0_107] : memref<2x1x16xf32, #tpu.memory_space<vmem>>, vector<1x1x16xf32>
    %138 = vector.shape_cast %137 : vector<1x1x16xf32> to vector<1x16xf32>
    %139 = vector.broadcast %138 : vector<1x16xf32> to vector<64x16xf32>
    %140 = arith.addf %136, %139 : vector<64x16xf32>
    %c0_108 = arith.constant 0 : index
    %c0_109 = arith.constant 0 : index
    %c0_110 = arith.constant 0 : index
    %141 = vector.load %arg24[%c0_108, %c0_109, %c0_110] : memref<2x1x16xf32, #tpu.memory_space<vmem>>, vector<1x1x16xf32>
    %142 = vector.shape_cast %141 : vector<1x1x16xf32> to vector<1x16xf32>
    %c0_111 = arith.constant 0 : index
    %c0_112 = arith.constant 0 : index
    %c0_113 = arith.constant 0 : index
    %143 = vector.load %arg23[%c0_111, %c0_112, %c0_113] : memref<2x1x16xf32, #tpu.memory_space<vmem>>, vector<1x1x16xf32>
    %144 = vector.shape_cast %143 : vector<1x1x16xf32> to vector<1x16xf32>
    %cst_114 = arith.constant dense<0.000000e+00> : vector<64xf32>
    %145 = vector.multi_reduction <add>, %140, %cst_114 [1] : vector<64x16xf32> to vector<64xf32>
    %146 = vector.shape_cast %145 : vector<64xf32> to vector<64x1xf32>
    %cst_115 = arith.constant 1.600000e+01 : f32
    %147 = vector.broadcast %cst_115 : f32 to vector<64x1xf32>
    %148 = arith.divf %146, %147 : vector<64x1xf32>
    %149 = vector.broadcast %148 : vector<64x1xf32> to vector<64x16xf32>
    %150 = arith.subf %140, %149 : vector<64x16xf32>
    %151 = arith.mulf %150, %150 : vector<64x16xf32>
    %cst_116 = arith.constant dense<0.000000e+00> : vector<64xf32>
    %152 = vector.multi_reduction <add>, %151, %cst_116 [1] : vector<64x16xf32> to vector<64xf32>
    %153 = vector.shape_cast %152 : vector<64xf32> to vector<64x1xf32>
    %cst_117 = arith.constant 1.600000e+01 : f32
    %154 = vector.broadcast %cst_117 : f32 to vector<64x1xf32>
    %155 = arith.divf %153, %154 : vector<64x1xf32>
    %156 = vector.broadcast %148 : vector<64x1xf32> to vector<64x16xf32>
    %157 = arith.subf %140, %156 : vector<64x16xf32>
    %cst_118 = arith.constant 9.99999974E-6 : f32
    %158 = vector.broadcast %cst_118 : f32 to vector<64x1xf32>
    %159 = arith.addf %155, %158 : vector<64x1xf32>
    %160 = math.rsqrt %159 : vector<64x1xf32>
    %161 = vector.broadcast %160 : vector<64x1xf32> to vector<64x16xf32>
    %162 = arith.mulf %157, %161 : vector<64x16xf32>
    %163 = vector.broadcast %142 : vector<1x16xf32> to vector<64x16xf32>
    %164 = arith.mulf %162, %163 : vector<64x16xf32>
    %165 = vector.broadcast %144 : vector<1x16xf32> to vector<64x16xf32>
    %166 = arith.addf %164, %165 : vector<64x16xf32>
    %c0_119 = arith.constant 0 : index
    %c0_120 = arith.constant 0 : index
    %c0_121 = arith.constant 0 : index
    %167 = vector.load %arg18[%c0_119, %c0_120, %c0_121] : memref<2x16x32xf32, #tpu.memory_space<vmem>>, vector<1x16x32xf32>
    %168 = vector.shape_cast %167 : vector<1x16x32xf32> to vector<16x32xf32>
    %cst_122 = arith.constant dense<0.000000e+00> : vector<64x32xf32>
    %169 = tpu.matmul %166, %168, %cst_122 {dimension_numbers = #tpu.dot_dimension_numbers<[1], [0], [0], [1], [0, 0, 1, 1], [], []>} : vector<64x16xf32>, vector<16x32xf32>, vector<64x32xf32> -> vector<64x32xf32>
    %c0_123 = arith.constant 0 : index
    %c0_124 = arith.constant 0 : index
    %c0_125 = arith.constant 0 : index
    %170 = vector.load %arg17[%c0_123, %c0_124, %c0_125] : memref<2x1x32xf32, #tpu.memory_space<vmem>>, vector<1x1x32xf32>
    %171 = vector.shape_cast %170 : vector<1x1x32xf32> to vector<1x32xf32>
    %172 = vector.broadcast %171 : vector<1x32xf32> to vector<64x32xf32>
    %173 = arith.addf %169, %172 : vector<64x32xf32>
    %174 = arith.mulf %173, %173 : vector<64x32xf32>
    %175 = arith.mulf %173, %174 : vector<64x32xf32>
    %cst_126 = arith.constant 4.471500e-02 : f32
    %176 = vector.broadcast %cst_126 : f32 to vector<64x32xf32>
    %177 = arith.mulf %176, %175 : vector<64x32xf32>
    %178 = arith.addf %173, %177 : vector<64x32xf32>
    %cst_127 = arith.constant 0.797884583 : f32
    %179 = vector.broadcast %cst_127 : f32 to vector<64x32xf32>
    %180 = arith.mulf %179, %178 : vector<64x32xf32>
    %181 = math.tanh %180 : vector<64x32xf32>
    %cst_128 = arith.constant 1.000000e+00 : f32
    %182 = vector.broadcast %cst_128 : f32 to vector<64x32xf32>
    %183 = arith.addf %182, %181 : vector<64x32xf32>
    %cst_129 = arith.constant 5.000000e-01 : f32
    %184 = vector.broadcast %cst_129 : f32 to vector<64x32xf32>
    %185 = arith.mulf %184, %183 : vector<64x32xf32>
    %186 = arith.mulf %173, %185 : vector<64x32xf32>
    %c0_130 = arith.constant 0 : index
    %c0_131 = arith.constant 0 : index
    %c0_132 = arith.constant 0 : index
    %187 = vector.load %arg20[%c0_130, %c0_131, %c0_132] : memref<2x32x16xf32, #tpu.memory_space<vmem>>, vector<1x32x16xf32>
    %188 = vector.shape_cast %187 : vector<1x32x16xf32> to vector<32x16xf32>
    %cst_133 = arith.constant dense<0.000000e+00> : vector<64x16xf32>
    %189 = tpu.matmul %186, %188, %cst_133 {dimension_numbers = #tpu.dot_dimension_numbers<[1], [0], [0], [1], [0, 0, 1, 1], [], []>} : vector<64x32xf32>, vector<32x16xf32>, vector<64x16xf32> -> vector<64x16xf32>
    %c0_134 = arith.constant 0 : index
    %c0_135 = arith.constant 0 : index
    %c0_136 = arith.constant 0 : index
    %190 = vector.load %arg19[%c0_134, %c0_135, %c0_136] : memref<2x1x16xf32, #tpu.memory_space<vmem>>, vector<1x1x16xf32>
    %191 = vector.shape_cast %190 : vector<1x1x16xf32> to vector<1x16xf32>
    %192 = vector.broadcast %191 : vector<1x16xf32> to vector<64x16xf32>
    %193 = arith.addf %189, %192 : vector<64x16xf32>
    %194 = arith.addf %140, %193 : vector<64x16xf32>
    %c1_137 = arith.constant 1 : index
    %c0_138 = arith.constant 0 : index
    %c0_139 = arith.constant 0 : index
    %195 = vector.load %arg22[%c1_137, %c0_138, %c0_139] : memref<2x1x16xf32, #tpu.memory_space<vmem>>, vector<1x1x16xf32>
    %196 = vector.shape_cast %195 : vector<1x1x16xf32> to vector<1x16xf32>
    %c1_140 = arith.constant 1 : index
    %c0_141 = arith.constant 0 : index
    %c0_142 = arith.constant 0 : index
    %197 = vector.load %arg21[%c1_140, %c0_141, %c0_142] : memref<2x1x16xf32, #tpu.memory_space<vmem>>, vector<1x1x16xf32>
    %198 = vector.shape_cast %197 : vector<1x1x16xf32> to vector<1x16xf32>
    %cst_143 = arith.constant dense<0.000000e+00> : vector<64xf32>
    %199 = vector.multi_reduction <add>, %194, %cst_143 [1] : vector<64x16xf32> to vector<64xf32>
    %200 = vector.shape_cast %199 : vector<64xf32> to vector<64x1xf32>
    %cst_144 = arith.constant 1.600000e+01 : f32
    %201 = vector.broadcast %cst_144 : f32 to vector<64x1xf32>
    %202 = arith.divf %200, %201 : vector<64x1xf32>
    %203 = vector.broadcast %202 : vector<64x1xf32> to vector<64x16xf32>
    %204 = arith.subf %194, %203 : vector<64x16xf32>
    %205 = arith.mulf %204, %204 : vector<64x16xf32>
    %cst_145 = arith.constant dense<0.000000e+00> : vector<64xf32>
    %206 = vector.multi_reduction <add>, %205, %cst_145 [1] : vector<64x16xf32> to vector<64xf32>
    %207 = vector.shape_cast %206 : vector<64xf32> to vector<64x1xf32>
    %cst_146 = arith.constant 1.600000e+01 : f32
    %208 = vector.broadcast %cst_146 : f32 to vector<64x1xf32>
    %209 = arith.divf %207, %208 : vector<64x1xf32>
    %210 = vector.broadcast %202 : vector<64x1xf32> to vector<64x16xf32>
    %211 = arith.subf %194, %210 : vector<64x16xf32>
    %cst_147 = arith.constant 9.99999974E-6 : f32
    %212 = vector.broadcast %cst_147 : f32 to vector<64x1xf32>
    %213 = arith.addf %209, %212 : vector<64x1xf32>
    %214 = math.rsqrt %213 : vector<64x1xf32>
    %215 = vector.broadcast %214 : vector<64x1xf32> to vector<64x16xf32>
    %216 = arith.mulf %211, %215 : vector<64x16xf32>
    %217 = vector.broadcast %196 : vector<1x16xf32> to vector<64x16xf32>
    %218 = arith.mulf %216, %217 : vector<64x16xf32>
    %219 = vector.broadcast %198 : vector<1x16xf32> to vector<64x16xf32>
    %220 = arith.addf %218, %219 : vector<64x16xf32>
    %c1_148 = arith.constant 1 : index
    %c0_149 = arith.constant 0 : index
    %c0_150 = arith.constant 0 : index
    %c0_151 = arith.constant 0 : index
    %221 = vector.load %arg28[%c1_148, %c0_149, %c0_150, %c0_151] : memref<2x2x16x8xf32, #tpu.memory_space<vmem>>, vector<1x1x16x8xf32>
    %222 = vector.shape_cast %221 : vector<1x1x16x8xf32> to vector<16x8xf32>
    %cst_152 = arith.constant dense<0.000000e+00> : vector<64x8xf32>
    %223 = tpu.matmul %220, %222, %cst_152 {dimension_numbers = #tpu.dot_dimension_numbers<[1], [0], [0], [1], [0, 0, 1, 1], [], []>} : vector<64x16xf32>, vector<16x8xf32>, vector<64x8xf32> -> vector<64x8xf32>
    %c1_153 = arith.constant 1 : index
    %c0_154 = arith.constant 0 : index
    %c0_155 = arith.constant 0 : index
    %c0_156 = arith.constant 0 : index
    %224 = vector.load %arg15[%c1_153, %c0_154, %c0_155, %c0_156] : memref<2x2x1x8xf32, #tpu.memory_space<vmem>>, vector<1x1x1x8xf32>
    %225 = vector.shape_cast %224 : vector<1x1x1x8xf32> to vector<1x8xf32>
    %226 = vector.broadcast %225 : vector<1x8xf32> to vector<64x8xf32>
    %227 = arith.addf %223, %226 : vector<64x8xf32>
    %c1_157 = arith.constant 1 : index
    %c0_158 = arith.constant 0 : index
    %c0_159 = arith.constant 0 : index
    %c0_160 = arith.constant 0 : index
    %228 = vector.load %arg27[%c1_157, %c0_158, %c0_159, %c0_160] : memref<2x2x16x8xf32, #tpu.memory_space<vmem>>, vector<1x1x16x8xf32>
    %229 = vector.shape_cast %228 : vector<1x1x16x8xf32> to vector<16x8xf32>
    %cst_161 = arith.constant dense<0.000000e+00> : vector<64x8xf32>
    %230 = tpu.matmul %220, %229, %cst_161 {dimension_numbers = #tpu.dot_dimension_numbers<[1], [0], [0], [1], [0, 0, 1, 1], [], []>} : vector<64x16xf32>, vector<16x8xf32>, vector<64x8xf32> -> vector<64x8xf32>
    %c1_162 = arith.constant 1 : index
    %c0_163 = arith.constant 0 : index
    %c0_164 = arith.constant 0 : index
    %c0_165 = arith.constant 0 : index
    %231 = vector.load %arg14[%c1_162, %c0_163, %c0_164, %c0_165] : memref<2x2x1x8xf32, #tpu.memory_space<vmem>>, vector<1x1x1x8xf32>
    %232 = vector.shape_cast %231 : vector<1x1x1x8xf32> to vector<1x8xf32>
    %233 = vector.broadcast %232 : vector<1x8xf32> to vector<64x8xf32>
    %234 = arith.addf %230, %233 : vector<64x8xf32>
    %c1_166 = arith.constant 1 : index
    %c0_167 = arith.constant 0 : index
    %c0_168 = arith.constant 0 : index
    %c0_169 = arith.constant 0 : index
    %235 = vector.load %arg29[%c1_166, %c0_167, %c0_168, %c0_169] : memref<2x2x16x8xf32, #tpu.memory_space<vmem>>, vector<1x1x16x8xf32>
    %236 = vector.shape_cast %235 : vector<1x1x16x8xf32> to vector<16x8xf32>
    %cst_170 = arith.constant dense<0.000000e+00> : vector<64x8xf32>
    %237 = tpu.matmul %220, %236, %cst_170 {dimension_numbers = #tpu.dot_dimension_numbers<[1], [0], [0], [1], [0, 0, 1, 1], [], []>} : vector<64x16xf32>, vector<16x8xf32>, vector<64x8xf32> -> vector<64x8xf32>
    %c1_171 = arith.constant 1 : index
    %c0_172 = arith.constant 0 : index
    %c0_173 = arith.constant 0 : index
    %c0_174 = arith.constant 0 : index
    %238 = vector.load %arg16[%c1_171, %c0_172, %c0_173, %c0_174] : memref<2x2x1x8xf32, #tpu.memory_space<vmem>>, vector<1x1x1x8xf32>
    %239 = vector.shape_cast %238 : vector<1x1x1x8xf32> to vector<1x8xf32>
    %240 = vector.broadcast %239 : vector<1x8xf32> to vector<64x8xf32>
    %241 = arith.addf %237, %240 : vector<64x8xf32>
    %cst_175 = arith.constant dense<0.000000e+00> : vector<64x64xf32>
    %242 = tpu.matmul %227, %234, %cst_175 {dimension_numbers = #tpu.dot_dimension_numbers<[1], [1], [0], [0], [0, 0, 1, 0], [], []>} : vector<64x8xf32>, vector<64x8xf32>, vector<64x64xf32> -> vector<64x64xf32>
    %c1_176 = arith.constant 1 : index
    %c0_177 = arith.constant 0 : index
    %c0_178 = arith.constant 0 : index
    %c0_179 = arith.constant 0 : index
    %243 = vector.load %arg13[%c1_176, %c0_177, %c0_178, %c0_179] : memref<2x2x64x64xf32, #tpu.memory_space<vmem>>, vector<1x1x64x64xf32>
    %244 = vector.shape_cast %243 : vector<1x1x64x64xf32> to vector<64x64xf32>
    %245 = arith.addf %242, %244 : vector<64x64xf32>
    %cst_180 = arith.constant dense<0xFF800000> : vector<64xf32>
    %246 = vector.multi_reduction <maximumf>, %245, %cst_180 [1] : vector<64x64xf32> to vector<64xf32>
    %247 = vector.shape_cast %246 : vector<64xf32> to vector<64x1xf32>
    %248 = vector.broadcast %247 : vector<64x1xf32> to vector<64x64xf32>
    %249 = arith.subf %245, %248 : vector<64x64xf32>
    %250 = math.exp %249 : vector<64x64xf32>
    %cst_181 = arith.constant dense<0.000000e+00> : vector<64xf32>
    %251 = vector.multi_reduction <add>, %250, %cst_181 [1] : vector<64x64xf32> to vector<64xf32>
    %252 = vector.shape_cast %251 : vector<64xf32> to vector<64x1xf32>
    %253 = tpu.reciprocal %252 {approx = true} : vector<64x1xf32> -> vector<64x1xf32>
    %254 = vector.broadcast %253 : vector<64x1xf32> to vector<64x64xf32>
    %255 = arith.mulf %250, %254 : vector<64x64xf32>
    %cst_182 = arith.constant dense<0.000000e+00> : vector<64x8xf32>
    %256 = tpu.matmul %255, %241, %cst_182 {dimension_numbers = #tpu.dot_dimension_numbers<[1], [0], [0], [1], [0, 0, 1, 1], [], []>} : vector<64x64xf32>, vector<64x8xf32>, vector<64x8xf32> -> vector<64x8xf32>
    %c1_183 = arith.constant 1 : index
    %c0_184 = arith.constant 0 : index
    %c0_185 = arith.constant 0 : index
    %c0_186 = arith.constant 0 : index
    %257 = vector.load %arg26[%c1_183, %c0_184, %c0_185, %c0_186] : memref<2x2x8x16xf32, #tpu.memory_space<vmem>>, vector<1x1x8x16xf32>
    %258 = vector.shape_cast %257 : vector<1x1x8x16xf32> to vector<8x16xf32>
    %cst_187 = arith.constant dense<0.000000e+00> : vector<64x16xf32>
    %259 = tpu.matmul %256, %258, %cst_187 {dimension_numbers = #tpu.dot_dimension_numbers<[1], [0], [0], [1], [0, 0, 1, 1], [], []>} : vector<64x8xf32>, vector<8x16xf32>, vector<64x16xf32> -> vector<64x16xf32>
    %c1_188 = arith.constant 1 : index
    %c1_189 = arith.constant 1 : index
    %c0_190 = arith.constant 0 : index
    %c0_191 = arith.constant 0 : index
    %260 = vector.load %arg28[%c1_188, %c1_189, %c0_190, %c0_191] : memref<2x2x16x8xf32, #tpu.memory_space<vmem>>, vector<1x1x16x8xf32>
    %261 = vector.shape_cast %260 : vector<1x1x16x8xf32> to vector<16x8xf32>
    %cst_192 = arith.constant dense<0.000000e+00> : vector<64x8xf32>
    %262 = tpu.matmul %220, %261, %cst_192 {dimension_numbers = #tpu.dot_dimension_numbers<[1], [0], [0], [1], [0, 0, 1, 1], [], []>} : vector<64x16xf32>, vector<16x8xf32>, vector<64x8xf32> -> vector<64x8xf32>
    %c1_193 = arith.constant 1 : index
    %c1_194 = arith.constant 1 : index
    %c0_195 = arith.constant 0 : index
    %c0_196 = arith.constant 0 : index
    %263 = vector.load %arg15[%c1_193, %c1_194, %c0_195, %c0_196] : memref<2x2x1x8xf32, #tpu.memory_space<vmem>>, vector<1x1x1x8xf32>
    %264 = vector.shape_cast %263 : vector<1x1x1x8xf32> to vector<1x8xf32>
    %265 = vector.broadcast %264 : vector<1x8xf32> to vector<64x8xf32>
    %266 = arith.addf %262, %265 : vector<64x8xf32>
    %c1_197 = arith.constant 1 : index
    %c1_198 = arith.constant 1 : index
    %c0_199 = arith.constant 0 : index
    %c0_200 = arith.constant 0 : index
    %267 = vector.load %arg27[%c1_197, %c1_198, %c0_199, %c0_200] : memref<2x2x16x8xf32, #tpu.memory_space<vmem>>, vector<1x1x16x8xf32>
    %268 = vector.shape_cast %267 : vector<1x1x16x8xf32> to vector<16x8xf32>
    %cst_201 = arith.constant dense<0.000000e+00> : vector<64x8xf32>
    %269 = tpu.matmul %220, %268, %cst_201 {dimension_numbers = #tpu.dot_dimension_numbers<[1], [0], [0], [1], [0, 0, 1, 1], [], []>} : vector<64x16xf32>, vector<16x8xf32>, vector<64x8xf32> -> vector<64x8xf32>
    %c1_202 = arith.constant 1 : index
    %c1_203 = arith.constant 1 : index
    %c0_204 = arith.constant 0 : index
    %c0_205 = arith.constant 0 : index
    %270 = vector.load %arg14[%c1_202, %c1_203, %c0_204, %c0_205] : memref<2x2x1x8xf32, #tpu.memory_space<vmem>>, vector<1x1x1x8xf32>
    %271 = vector.shape_cast %270 : vector<1x1x1x8xf32> to vector<1x8xf32>
    %272 = vector.broadcast %271 : vector<1x8xf32> to vector<64x8xf32>
    %273 = arith.addf %269, %272 : vector<64x8xf32>
    %c1_206 = arith.constant 1 : index
    %c1_207 = arith.constant 1 : index
    %c0_208 = arith.constant 0 : index
    %c0_209 = arith.constant 0 : index
    %274 = vector.load %arg29[%c1_206, %c1_207, %c0_208, %c0_209] : memref<2x2x16x8xf32, #tpu.memory_space<vmem>>, vector<1x1x16x8xf32>
    %275 = vector.shape_cast %274 : vector<1x1x16x8xf32> to vector<16x8xf32>
    %cst_210 = arith.constant dense<0.000000e+00> : vector<64x8xf32>
    %276 = tpu.matmul %220, %275, %cst_210 {dimension_numbers = #tpu.dot_dimension_numbers<[1], [0], [0], [1], [0, 0, 1, 1], [], []>} : vector<64x16xf32>, vector<16x8xf32>, vector<64x8xf32> -> vector<64x8xf32>
    %c1_211 = arith.constant 1 : index
    %c1_212 = arith.constant 1 : index
    %c0_213 = arith.constant 0 : index
    %c0_214 = arith.constant 0 : index
    %277 = vector.load %arg16[%c1_211, %c1_212, %c0_213, %c0_214] : memref<2x2x1x8xf32, #tpu.memory_space<vmem>>, vector<1x1x1x8xf32>
    %278 = vector.shape_cast %277 : vector<1x1x1x8xf32> to vector<1x8xf32>
    %279 = vector.broadcast %278 : vector<1x8xf32> to vector<64x8xf32>
    %280 = arith.addf %276, %279 : vector<64x8xf32>
    %cst_215 = arith.constant dense<0.000000e+00> : vector<64x64xf32>
    %281 = tpu.matmul %266, %273, %cst_215 {dimension_numbers = #tpu.dot_dimension_numbers<[1], [1], [0], [0], [0, 0, 1, 0], [], []>} : vector<64x8xf32>, vector<64x8xf32>, vector<64x64xf32> -> vector<64x64xf32>
    %c1_216 = arith.constant 1 : index
    %c1_217 = arith.constant 1 : index
    %c0_218 = arith.constant 0 : index
    %c0_219 = arith.constant 0 : index
    %282 = vector.load %arg13[%c1_216, %c1_217, %c0_218, %c0_219] : memref<2x2x64x64xf32, #tpu.memory_space<vmem>>, vector<1x1x64x64xf32>
    %283 = vector.shape_cast %282 : vector<1x1x64x64xf32> to vector<64x64xf32>
    %284 = arith.addf %281, %283 : vector<64x64xf32>
    %cst_220 = arith.constant dense<0xFF800000> : vector<64xf32>
    %285 = vector.multi_reduction <maximumf>, %284, %cst_220 [1] : vector<64x64xf32> to vector<64xf32>
    %286 = vector.shape_cast %285 : vector<64xf32> to vector<64x1xf32>
    %287 = vector.broadcast %286 : vector<64x1xf32> to vector<64x64xf32>
    %288 = arith.subf %284, %287 : vector<64x64xf32>
    %289 = math.exp %288 : vector<64x64xf32>
    %cst_221 = arith.constant dense<0.000000e+00> : vector<64xf32>
    %290 = vector.multi_reduction <add>, %289, %cst_221 [1] : vector<64x64xf32> to vector<64xf32>
    %291 = vector.shape_cast %290 : vector<64xf32> to vector<64x1xf32>
    %292 = tpu.reciprocal %291 {approx = true} : vector<64x1xf32> -> vector<64x1xf32>
    %293 = vector.broadcast %292 : vector<64x1xf32> to vector<64x64xf32>
    %294 = arith.mulf %289, %293 : vector<64x64xf32>
    %cst_222 = arith.constant dense<0.000000e+00> : vector<64x8xf32>
    %295 = tpu.matmul %294, %280, %cst_222 {dimension_numbers = #tpu.dot_dimension_numbers<[1], [0], [0], [1], [0, 0, 1, 1], [], []>} : vector<64x64xf32>, vector<64x8xf32>, vector<64x8xf32> -> vector<64x8xf32>
    %c1_223 = arith.constant 1 : index
    %c1_224 = arith.constant 1 : index
    %c0_225 = arith.constant 0 : index
    %c0_226 = arith.constant 0 : index
    %296 = vector.load %arg26[%c1_223, %c1_224, %c0_225, %c0_226] : memref<2x2x8x16xf32, #tpu.memory_space<vmem>>, vector<1x1x8x16xf32>
    %297 = vector.shape_cast %296 : vector<1x1x8x16xf32> to vector<8x16xf32>
    %cst_227 = arith.constant dense<0.000000e+00> : vector<64x16xf32>
    %298 = tpu.matmul %295, %297, %cst_227 {dimension_numbers = #tpu.dot_dimension_numbers<[1], [0], [0], [1], [0, 0, 1, 1], [], []>} : vector<64x8xf32>, vector<8x16xf32>, vector<64x16xf32> -> vector<64x16xf32>
    %299 = arith.addf %259, %298 : vector<64x16xf32>
    %300 = arith.addf %194, %299 : vector<64x16xf32>
    %c1_228 = arith.constant 1 : index
    %c0_229 = arith.constant 0 : index
    %c0_230 = arith.constant 0 : index
    %301 = vector.load %arg25[%c1_228, %c0_229, %c0_230] : memref<2x1x16xf32, #tpu.memory_space<vmem>>, vector<1x1x16xf32>
    %302 = vector.shape_cast %301 : vector<1x1x16xf32> to vector<1x16xf32>
    %303 = vector.broadcast %302 : vector<1x16xf32> to vector<64x16xf32>
    %304 = arith.addf %300, %303 : vector<64x16xf32>
    %c1_231 = arith.constant 1 : index
    %c0_232 = arith.constant 0 : index
    %c0_233 = arith.constant 0 : index
    %305 = vector.load %arg24[%c1_231, %c0_232, %c0_233] : memref<2x1x16xf32, #tpu.memory_space<vmem>>, vector<1x1x16xf32>
    %306 = vector.shape_cast %305 : vector<1x1x16xf32> to vector<1x16xf32>
    %c1_234 = arith.constant 1 : index
    %c0_235 = arith.constant 0 : index
    %c0_236 = arith.constant 0 : index
    %307 = vector.load %arg23[%c1_234, %c0_235, %c0_236] : memref<2x1x16xf32, #tpu.memory_space<vmem>>, vector<1x1x16xf32>
    %308 = vector.shape_cast %307 : vector<1x1x16xf32> to vector<1x16xf32>
    %cst_237 = arith.constant dense<0.000000e+00> : vector<64xf32>
    %309 = vector.multi_reduction <add>, %304, %cst_237 [1] : vector<64x16xf32> to vector<64xf32>
    %310 = vector.shape_cast %309 : vector<64xf32> to vector<64x1xf32>
    %cst_238 = arith.constant 1.600000e+01 : f32
    %311 = vector.broadcast %cst_238 : f32 to vector<64x1xf32>
    %312 = arith.divf %310, %311 : vector<64x1xf32>
    %313 = vector.broadcast %312 : vector<64x1xf32> to vector<64x16xf32>
    %314 = arith.subf %304, %313 : vector<64x16xf32>
    %315 = arith.mulf %314, %314 : vector<64x16xf32>
    %cst_239 = arith.constant dense<0.000000e+00> : vector<64xf32>
    %316 = vector.multi_reduction <add>, %315, %cst_239 [1] : vector<64x16xf32> to vector<64xf32>
    %317 = vector.shape_cast %316 : vector<64xf32> to vector<64x1xf32>
    %cst_240 = arith.constant 1.600000e+01 : f32
    %318 = vector.broadcast %cst_240 : f32 to vector<64x1xf32>
    %319 = arith.divf %317, %318 : vector<64x1xf32>
    %320 = vector.broadcast %312 : vector<64x1xf32> to vector<64x16xf32>
    %321 = arith.subf %304, %320 : vector<64x16xf32>
    %cst_241 = arith.constant 9.99999974E-6 : f32
    %322 = vector.broadcast %cst_241 : f32 to vector<64x1xf32>
    %323 = arith.addf %319, %322 : vector<64x1xf32>
    %324 = math.rsqrt %323 : vector<64x1xf32>
    %325 = vector.broadcast %324 : vector<64x1xf32> to vector<64x16xf32>
    %326 = arith.mulf %321, %325 : vector<64x16xf32>
    %327 = vector.broadcast %306 : vector<1x16xf32> to vector<64x16xf32>
    %328 = arith.mulf %326, %327 : vector<64x16xf32>
    %329 = vector.broadcast %308 : vector<1x16xf32> to vector<64x16xf32>
    %330 = arith.addf %328, %329 : vector<64x16xf32>
    %c1_242 = arith.constant 1 : index
    %c0_243 = arith.constant 0 : index
    %c0_244 = arith.constant 0 : index
    %331 = vector.load %arg18[%c1_242, %c0_243, %c0_244] : memref<2x16x32xf32, #tpu.memory_space<vmem>>, vector<1x16x32xf32>
    %332 = vector.shape_cast %331 : vector<1x16x32xf32> to vector<16x32xf32>
    %cst_245 = arith.constant dense<0.000000e+00> : vector<64x32xf32>
    %333 = tpu.matmul %330, %332, %cst_245 {dimension_numbers = #tpu.dot_dimension_numbers<[1], [0], [0], [1], [0, 0, 1, 1], [], []>} : vector<64x16xf32>, vector<16x32xf32>, vector<64x32xf32> -> vector<64x32xf32>
    %c1_246 = arith.constant 1 : index
    %c0_247 = arith.constant 0 : index
    %c0_248 = arith.constant 0 : index
    %334 = vector.load %arg17[%c1_246, %c0_247, %c0_248] : memref<2x1x32xf32, #tpu.memory_space<vmem>>, vector<1x1x32xf32>
    %335 = vector.shape_cast %334 : vector<1x1x32xf32> to vector<1x32xf32>
    %336 = vector.broadcast %335 : vector<1x32xf32> to vector<64x32xf32>
    %337 = arith.addf %333, %336 : vector<64x32xf32>
    %338 = arith.mulf %337, %337 : vector<64x32xf32>
    %339 = arith.mulf %337, %338 : vector<64x32xf32>
    %cst_249 = arith.constant 4.471500e-02 : f32
    %340 = vector.broadcast %cst_249 : f32 to vector<64x32xf32>
    %341 = arith.mulf %340, %339 : vector<64x32xf32>
    %342 = arith.addf %337, %341 : vector<64x32xf32>
    %cst_250 = arith.constant 0.797884583 : f32
    %343 = vector.broadcast %cst_250 : f32 to vector<64x32xf32>
    %344 = arith.mulf %343, %342 : vector<64x32xf32>
    %345 = math.tanh %344 : vector<64x32xf32>
    %cst_251 = arith.constant 1.000000e+00 : f32
    %346 = vector.broadcast %cst_251 : f32 to vector<64x32xf32>
    %347 = arith.addf %346, %345 : vector<64x32xf32>
    %cst_252 = arith.constant 5.000000e-01 : f32
    %348 = vector.broadcast %cst_252 : f32 to vector<64x32xf32>
    %349 = arith.mulf %348, %347 : vector<64x32xf32>
    %350 = arith.mulf %337, %349 : vector<64x32xf32>
    %c1_253 = arith.constant 1 : index
    %c0_254 = arith.constant 0 : index
    %c0_255 = arith.constant 0 : index
    %351 = vector.load %arg20[%c1_253, %c0_254, %c0_255] : memref<2x32x16xf32, #tpu.memory_space<vmem>>, vector<1x32x16xf32>
    %352 = vector.shape_cast %351 : vector<1x32x16xf32> to vector<32x16xf32>
    %cst_256 = arith.constant dense<0.000000e+00> : vector<64x16xf32>
    %353 = tpu.matmul %350, %352, %cst_256 {dimension_numbers = #tpu.dot_dimension_numbers<[1], [0], [0], [1], [0, 0, 1, 1], [], []>} : vector<64x32xf32>, vector<32x16xf32>, vector<64x16xf32> -> vector<64x16xf32>
    %c1_257 = arith.constant 1 : index
    %c0_258 = arith.constant 0 : index
    %c0_259 = arith.constant 0 : index
    %354 = vector.load %arg19[%c1_257, %c0_258, %c0_259] : memref<2x1x16xf32, #tpu.memory_space<vmem>>, vector<1x1x16xf32>
    %355 = vector.shape_cast %354 : vector<1x1x16xf32> to vector<1x16xf32>
    %356 = vector.broadcast %355 : vector<1x16xf32> to vector<64x16xf32>
    %357 = arith.addf %353, %356 : vector<64x16xf32>
    %358 = arith.addf %304, %357 : vector<64x16xf32>
    %c0_260 = arith.constant 0 : index
    %c0_261 = arith.constant 0 : index
    %c0_262 = arith.constant 0 : index
    %359 = vector.load %arg5[%c0_260, %c0_261, %c0_262] : memref<4x16x64xf32, #tpu.memory_space<vmem>>, vector<1x16x64xf32>
    %360 = vector.shape_cast %359 : vector<1x16x64xf32> to vector<16x64xf32>
    %cst_263 = arith.constant dense<0.000000e+00> : vector<16x16xf32>
    %361 = tpu.matmul %360, %358, %cst_263 {dimension_numbers = #tpu.dot_dimension_numbers<[1], [0], [0], [1], [0, 0, 1, 1], [], []>} : vector<16x64xf32>, vector<64x16xf32>, vector<16x16xf32> -> vector<16x16xf32>
    %c1_264 = arith.constant 1 : index
    %c0_265 = arith.constant 0 : index
    %c0_266 = arith.constant 0 : index
    %362 = vector.load %arg5[%c1_264, %c0_265, %c0_266] : memref<4x16x64xf32, #tpu.memory_space<vmem>>, vector<1x16x64xf32>
    %363 = vector.shape_cast %362 : vector<1x16x64xf32> to vector<16x64xf32>
    %cst_267 = arith.constant dense<0.000000e+00> : vector<16x16xf32>
    %364 = tpu.matmul %363, %358, %cst_267 {dimension_numbers = #tpu.dot_dimension_numbers<[1], [0], [0], [1], [0, 0, 1, 1], [], []>} : vector<16x64xf32>, vector<64x16xf32>, vector<16x16xf32> -> vector<16x16xf32>
    %c2 = arith.constant 2 : index
    %c0_268 = arith.constant 0 : index
    %c0_269 = arith.constant 0 : index
    %365 = vector.load %arg5[%c2, %c0_268, %c0_269] : memref<4x16x64xf32, #tpu.memory_space<vmem>>, vector<1x16x64xf32>
    %366 = vector.shape_cast %365 : vector<1x16x64xf32> to vector<16x64xf32>
    %cst_270 = arith.constant dense<0.000000e+00> : vector<16x16xf32>
    %367 = tpu.matmul %366, %358, %cst_270 {dimension_numbers = #tpu.dot_dimension_numbers<[1], [0], [0], [1], [0, 0, 1, 1], [], []>} : vector<16x64xf32>, vector<64x16xf32>, vector<16x16xf32> -> vector<16x16xf32>
    %c3 = arith.constant 3 : index
    %c0_271 = arith.constant 0 : index
    %c0_272 = arith.constant 0 : index
    %368 = vector.load %arg5[%c3, %c0_271, %c0_272] : memref<4x16x64xf32, #tpu.memory_space<vmem>>, vector<1x16x64xf32>
    %369 = vector.shape_cast %368 : vector<1x16x64xf32> to vector<16x64xf32>
    %cst_273 = arith.constant dense<0.000000e+00> : vector<16x16xf32>
    %370 = tpu.matmul %369, %358, %cst_273 {dimension_numbers = #tpu.dot_dimension_numbers<[1], [0], [0], [1], [0, 0, 1, 1], [], []>} : vector<16x64xf32>, vector<64x16xf32>, vector<16x16xf32> -> vector<16x16xf32>
    %cst_274 = arith.constant dense<0.000000e+00> : vector<16xf32>
    %371 = vector.multi_reduction <add>, %361, %cst_274 [1] : vector<16x16xf32> to vector<16xf32>
    %372 = vector.shape_cast %371 : vector<16xf32> to vector<16x1xf32>
    %cst_275 = arith.constant dense<0.000000e+00> : vector<16xf32>
    %373 = vector.multi_reduction <add>, %364, %cst_275 [1] : vector<16x16xf32> to vector<16xf32>
    %374 = vector.shape_cast %373 : vector<16xf32> to vector<16x1xf32>
    %375 = arith.addf %372, %374 : vector<16x1xf32>
    %cst_276 = arith.constant dense<0.000000e+00> : vector<16xf32>
    %376 = vector.multi_reduction <add>, %367, %cst_276 [1] : vector<16x16xf32> to vector<16xf32>
    %377 = vector.shape_cast %376 : vector<16xf32> to vector<16x1xf32>
    %378 = arith.addf %375, %377 : vector<16x1xf32>
    %cst_277 = arith.constant dense<0.000000e+00> : vector<16xf32>
    %379 = vector.multi_reduction <add>, %370, %cst_277 [1] : vector<16x16xf32> to vector<16xf32>
    %380 = vector.shape_cast %379 : vector<16xf32> to vector<16x1xf32>
    %381 = arith.addf %378, %380 : vector<16x1xf32>
    %cst_278 = arith.constant 6.400000e+01 : f32
    %382 = vector.broadcast %cst_278 : f32 to vector<16x1xf32>
    %383 = arith.divf %381, %382 : vector<16x1xf32>
    %384 = vector.broadcast %383 : vector<16x1xf32> to vector<16x16xf32>
    %385 = arith.subf %361, %384 : vector<16x16xf32>
    %386 = arith.mulf %385, %385 : vector<16x16xf32>
    %cst_279 = arith.constant dense<0.000000e+00> : vector<16xf32>
    %387 = vector.multi_reduction <add>, %386, %cst_279 [1] : vector<16x16xf32> to vector<16xf32>
    %388 = vector.shape_cast %387 : vector<16xf32> to vector<16x1xf32>
    %389 = vector.broadcast %383 : vector<16x1xf32> to vector<16x16xf32>
    %390 = arith.subf %364, %389 : vector<16x16xf32>
    %391 = arith.mulf %390, %390 : vector<16x16xf32>
    %cst_280 = arith.constant dense<0.000000e+00> : vector<16xf32>
    %392 = vector.multi_reduction <add>, %391, %cst_280 [1] : vector<16x16xf32> to vector<16xf32>
    %393 = vector.shape_cast %392 : vector<16xf32> to vector<16x1xf32>
    %394 = arith.addf %388, %393 : vector<16x1xf32>
    %395 = vector.broadcast %383 : vector<16x1xf32> to vector<16x16xf32>
    %396 = arith.subf %367, %395 : vector<16x16xf32>
    %397 = arith.mulf %396, %396 : vector<16x16xf32>
    %cst_281 = arith.constant dense<0.000000e+00> : vector<16xf32>
    %398 = vector.multi_reduction <add>, %397, %cst_281 [1] : vector<16x16xf32> to vector<16xf32>
    %399 = vector.shape_cast %398 : vector<16xf32> to vector<16x1xf32>
    %400 = arith.addf %394, %399 : vector<16x1xf32>
    %401 = vector.broadcast %383 : vector<16x1xf32> to vector<16x16xf32>
    %402 = arith.subf %370, %401 : vector<16x16xf32>
    %403 = arith.mulf %402, %402 : vector<16x16xf32>
    %cst_282 = arith.constant dense<0.000000e+00> : vector<16xf32>
    %404 = vector.multi_reduction <add>, %403, %cst_282 [1] : vector<16x16xf32> to vector<16xf32>
    %405 = vector.shape_cast %404 : vector<16xf32> to vector<16x1xf32>
    %406 = arith.addf %400, %405 : vector<16x1xf32>
    %cst_283 = arith.constant 6.400000e+01 : f32
    %407 = vector.broadcast %cst_283 : f32 to vector<16x1xf32>
    %408 = arith.divf %406, %407 : vector<16x1xf32>
    %cst_284 = arith.constant 9.99999974E-6 : f32
    %409 = vector.broadcast %cst_284 : f32 to vector<16x1xf32>
    %410 = arith.addf %408, %409 : vector<16x1xf32>
    %411 = math.rsqrt %410 : vector<16x1xf32>
    %412 = vector.broadcast %383 : vector<16x1xf32> to vector<16x16xf32>
    %413 = arith.subf %361, %412 : vector<16x16xf32>
    %414 = vector.broadcast %411 : vector<16x1xf32> to vector<16x16xf32>
    %415 = arith.mulf %413, %414 : vector<16x16xf32>
    %c0_285 = arith.constant 0 : index
    %c0_286 = arith.constant 0 : index
    %c0_287 = arith.constant 0 : index
    %416 = vector.load %arg4[%c0_285, %c0_286, %c0_287] : memref<4x1x16xf32, #tpu.memory_space<vmem>>, vector<1x1x16xf32>
    %417 = vector.shape_cast %416 : vector<1x1x16xf32> to vector<1x16xf32>
    %418 = vector.broadcast %417 : vector<1x16xf32> to vector<16x16xf32>
    %419 = arith.mulf %415, %418 : vector<16x16xf32>
    %c0_288 = arith.constant 0 : index
    %c0_289 = arith.constant 0 : index
    %c0_290 = arith.constant 0 : index
    %420 = vector.load %arg3[%c0_288, %c0_289, %c0_290] : memref<4x1x16xf32, #tpu.memory_space<vmem>>, vector<1x1x16xf32>
    %421 = vector.shape_cast %420 : vector<1x1x16xf32> to vector<1x16xf32>
    %422 = vector.broadcast %421 : vector<1x16xf32> to vector<16x16xf32>
    %423 = arith.addf %419, %422 : vector<16x16xf32>
    %c0_291 = arith.constant 0 : index
    %c0_292 = arith.constant 0 : index
    %c0_293 = arith.constant 0 : index
    %424 = vector.load %arg6[%c0_291, %c0_292, %c0_293] : memref<4x16x32xf32, #tpu.memory_space<vmem>>, vector<1x16x32xf32>
    %425 = vector.shape_cast %424 : vector<1x16x32xf32> to vector<16x32xf32>
    %cst_294 = arith.constant dense<0.000000e+00> : vector<16x32xf32>
    %426 = tpu.matmul %423, %425, %cst_294 {dimension_numbers = #tpu.dot_dimension_numbers<[1], [0], [0], [1], [0, 0, 1, 1], [], []>} : vector<16x16xf32>, vector<16x32xf32>, vector<16x32xf32> -> vector<16x32xf32>
    %427 = vector.broadcast %383 : vector<16x1xf32> to vector<16x16xf32>
    %428 = arith.subf %364, %427 : vector<16x16xf32>
    %429 = vector.broadcast %411 : vector<16x1xf32> to vector<16x16xf32>
    %430 = arith.mulf %428, %429 : vector<16x16xf32>
    %c1_295 = arith.constant 1 : index
    %c0_296 = arith.constant 0 : index
    %c0_297 = arith.constant 0 : index
    %431 = vector.load %arg4[%c1_295, %c0_296, %c0_297] : memref<4x1x16xf32, #tpu.memory_space<vmem>>, vector<1x1x16xf32>
    %432 = vector.shape_cast %431 : vector<1x1x16xf32> to vector<1x16xf32>
    %433 = vector.broadcast %432 : vector<1x16xf32> to vector<16x16xf32>
    %434 = arith.mulf %430, %433 : vector<16x16xf32>
    %c1_298 = arith.constant 1 : index
    %c0_299 = arith.constant 0 : index
    %c0_300 = arith.constant 0 : index
    %435 = vector.load %arg3[%c1_298, %c0_299, %c0_300] : memref<4x1x16xf32, #tpu.memory_space<vmem>>, vector<1x1x16xf32>
    %436 = vector.shape_cast %435 : vector<1x1x16xf32> to vector<1x16xf32>
    %437 = vector.broadcast %436 : vector<1x16xf32> to vector<16x16xf32>
    %438 = arith.addf %434, %437 : vector<16x16xf32>
    %c1_301 = arith.constant 1 : index
    %c0_302 = arith.constant 0 : index
    %c0_303 = arith.constant 0 : index
    %439 = vector.load %arg6[%c1_301, %c0_302, %c0_303] : memref<4x16x32xf32, #tpu.memory_space<vmem>>, vector<1x16x32xf32>
    %440 = vector.shape_cast %439 : vector<1x16x32xf32> to vector<16x32xf32>
    %cst_304 = arith.constant dense<0.000000e+00> : vector<16x32xf32>
    %441 = tpu.matmul %438, %440, %cst_304 {dimension_numbers = #tpu.dot_dimension_numbers<[1], [0], [0], [1], [0, 0, 1, 1], [], []>} : vector<16x16xf32>, vector<16x32xf32>, vector<16x32xf32> -> vector<16x32xf32>
    %442 = arith.addf %426, %441 : vector<16x32xf32>
    %443 = vector.broadcast %383 : vector<16x1xf32> to vector<16x16xf32>
    %444 = arith.subf %367, %443 : vector<16x16xf32>
    %445 = vector.broadcast %411 : vector<16x1xf32> to vector<16x16xf32>
    %446 = arith.mulf %444, %445 : vector<16x16xf32>
    %c2_305 = arith.constant 2 : index
    %c0_306 = arith.constant 0 : index
    %c0_307 = arith.constant 0 : index
    %447 = vector.load %arg4[%c2_305, %c0_306, %c0_307] : memref<4x1x16xf32, #tpu.memory_space<vmem>>, vector<1x1x16xf32>
    %448 = vector.shape_cast %447 : vector<1x1x16xf32> to vector<1x16xf32>
    %449 = vector.broadcast %448 : vector<1x16xf32> to vector<16x16xf32>
    %450 = arith.mulf %446, %449 : vector<16x16xf32>
    %c2_308 = arith.constant 2 : index
    %c0_309 = arith.constant 0 : index
    %c0_310 = arith.constant 0 : index
    %451 = vector.load %arg3[%c2_308, %c0_309, %c0_310] : memref<4x1x16xf32, #tpu.memory_space<vmem>>, vector<1x1x16xf32>
    %452 = vector.shape_cast %451 : vector<1x1x16xf32> to vector<1x16xf32>
    %453 = vector.broadcast %452 : vector<1x16xf32> to vector<16x16xf32>
    %454 = arith.addf %450, %453 : vector<16x16xf32>
    %c2_311 = arith.constant 2 : index
    %c0_312 = arith.constant 0 : index
    %c0_313 = arith.constant 0 : index
    %455 = vector.load %arg6[%c2_311, %c0_312, %c0_313] : memref<4x16x32xf32, #tpu.memory_space<vmem>>, vector<1x16x32xf32>
    %456 = vector.shape_cast %455 : vector<1x16x32xf32> to vector<16x32xf32>
    %cst_314 = arith.constant dense<0.000000e+00> : vector<16x32xf32>
    %457 = tpu.matmul %454, %456, %cst_314 {dimension_numbers = #tpu.dot_dimension_numbers<[1], [0], [0], [1], [0, 0, 1, 1], [], []>} : vector<16x16xf32>, vector<16x32xf32>, vector<16x32xf32> -> vector<16x32xf32>
    %458 = arith.addf %442, %457 : vector<16x32xf32>
    %459 = vector.broadcast %383 : vector<16x1xf32> to vector<16x16xf32>
    %460 = arith.subf %370, %459 : vector<16x16xf32>
    %461 = vector.broadcast %411 : vector<16x1xf32> to vector<16x16xf32>
    %462 = arith.mulf %460, %461 : vector<16x16xf32>
    %c3_315 = arith.constant 3 : index
    %c0_316 = arith.constant 0 : index
    %c0_317 = arith.constant 0 : index
    %463 = vector.load %arg4[%c3_315, %c0_316, %c0_317] : memref<4x1x16xf32, #tpu.memory_space<vmem>>, vector<1x1x16xf32>
    %464 = vector.shape_cast %463 : vector<1x1x16xf32> to vector<1x16xf32>
    %465 = vector.broadcast %464 : vector<1x16xf32> to vector<16x16xf32>
    %466 = arith.mulf %462, %465 : vector<16x16xf32>
    %c3_318 = arith.constant 3 : index
    %c0_319 = arith.constant 0 : index
    %c0_320 = arith.constant 0 : index
    %467 = vector.load %arg3[%c3_318, %c0_319, %c0_320] : memref<4x1x16xf32, #tpu.memory_space<vmem>>, vector<1x1x16xf32>
    %468 = vector.shape_cast %467 : vector<1x1x16xf32> to vector<1x16xf32>
    %469 = vector.broadcast %468 : vector<1x16xf32> to vector<16x16xf32>
    %470 = arith.addf %466, %469 : vector<16x16xf32>
    %c3_321 = arith.constant 3 : index
    %c0_322 = arith.constant 0 : index
    %c0_323 = arith.constant 0 : index
    %471 = vector.load %arg6[%c3_321, %c0_322, %c0_323] : memref<4x16x32xf32, #tpu.memory_space<vmem>>, vector<1x16x32xf32>
    %472 = vector.shape_cast %471 : vector<1x16x32xf32> to vector<16x32xf32>
    %cst_324 = arith.constant dense<0.000000e+00> : vector<16x32xf32>
    %473 = tpu.matmul %470, %472, %cst_324 {dimension_numbers = #tpu.dot_dimension_numbers<[1], [0], [0], [1], [0, 0, 1, 1], [], []>} : vector<16x16xf32>, vector<16x32xf32>, vector<16x32xf32> -> vector<16x32xf32>
    %474 = arith.addf %458, %473 : vector<16x32xf32>
    %c0_325 = arith.constant 0 : index
    %c0_326 = arith.constant 0 : index
    %c0_327 = arith.constant 0 : index
    %475 = vector.load %arg39[%c0_325, %c0_326, %c0_327] : memref<2x1x32xf32, #tpu.memory_space<vmem>>, vector<1x1x32xf32>
    %476 = vector.shape_cast %475 : vector<1x1x32xf32> to vector<1x32xf32>
    %c0_328 = arith.constant 0 : index
    %c0_329 = arith.constant 0 : index
    %c0_330 = arith.constant 0 : index
    %477 = vector.load %arg38[%c0_328, %c0_329, %c0_330] : memref<2x1x32xf32, #tpu.memory_space<vmem>>, vector<1x1x32xf32>
    %478 = vector.shape_cast %477 : vector<1x1x32xf32> to vector<1x32xf32>
    %cst_331 = arith.constant dense<0.000000e+00> : vector<16xf32>
    %479 = vector.multi_reduction <add>, %474, %cst_331 [1] : vector<16x32xf32> to vector<16xf32>
    %480 = vector.shape_cast %479 : vector<16xf32> to vector<16x1xf32>
    %cst_332 = arith.constant 3.200000e+01 : f32
    %481 = vector.broadcast %cst_332 : f32 to vector<16x1xf32>
    %482 = arith.divf %480, %481 : vector<16x1xf32>
    %483 = vector.broadcast %482 : vector<16x1xf32> to vector<16x32xf32>
    %484 = arith.subf %474, %483 : vector<16x32xf32>
    %485 = arith.mulf %484, %484 : vector<16x32xf32>
    %cst_333 = arith.constant dense<0.000000e+00> : vector<16xf32>
    %486 = vector.multi_reduction <add>, %485, %cst_333 [1] : vector<16x32xf32> to vector<16xf32>
    %487 = vector.shape_cast %486 : vector<16xf32> to vector<16x1xf32>
    %cst_334 = arith.constant 3.200000e+01 : f32
    %488 = vector.broadcast %cst_334 : f32 to vector<16x1xf32>
    %489 = arith.divf %487, %488 : vector<16x1xf32>
    %490 = vector.broadcast %482 : vector<16x1xf32> to vector<16x32xf32>
    %491 = arith.subf %474, %490 : vector<16x32xf32>
    %cst_335 = arith.constant 9.99999974E-6 : f32
    %492 = vector.broadcast %cst_335 : f32 to vector<16x1xf32>
    %493 = arith.addf %489, %492 : vector<16x1xf32>
    %494 = math.rsqrt %493 : vector<16x1xf32>
    %495 = vector.broadcast %494 : vector<16x1xf32> to vector<16x32xf32>
    %496 = arith.mulf %491, %495 : vector<16x32xf32>
    %497 = vector.broadcast %476 : vector<1x32xf32> to vector<16x32xf32>
    %498 = arith.mulf %496, %497 : vector<16x32xf32>
    %499 = vector.broadcast %478 : vector<1x32xf32> to vector<16x32xf32>
    %500 = arith.addf %498, %499 : vector<16x32xf32>
    %c0_336 = arith.constant 0 : index
    %c0_337 = arith.constant 0 : index
    %c0_338 = arith.constant 0 : index
    %c0_339 = arith.constant 0 : index
    %501 = vector.load %arg45[%c0_336, %c0_337, %c0_338, %c0_339] : memref<2x4x32x8xf32, #tpu.memory_space<vmem>>, vector<1x1x32x8xf32>
    %502 = vector.shape_cast %501 : vector<1x1x32x8xf32> to vector<32x8xf32>
    %cst_340 = arith.constant dense<0.000000e+00> : vector<16x8xf32>
    %503 = tpu.matmul %500, %502, %cst_340 {dimension_numbers = #tpu.dot_dimension_numbers<[1], [0], [0], [1], [0, 0, 1, 1], [], []>} : vector<16x32xf32>, vector<32x8xf32>, vector<16x8xf32> -> vector<16x8xf32>
    %c0_341 = arith.constant 0 : index
    %c0_342 = arith.constant 0 : index
    %c0_343 = arith.constant 0 : index
    %c0_344 = arith.constant 0 : index
    %504 = vector.load %arg32[%c0_341, %c0_342, %c0_343, %c0_344] : memref<2x4x1x8xf32, #tpu.memory_space<vmem>>, vector<1x1x1x8xf32>
    %505 = vector.shape_cast %504 : vector<1x1x1x8xf32> to vector<1x8xf32>
    %506 = vector.broadcast %505 : vector<1x8xf32> to vector<16x8xf32>
    %507 = arith.addf %503, %506 : vector<16x8xf32>
    %c0_345 = arith.constant 0 : index
    %c0_346 = arith.constant 0 : index
    %c0_347 = arith.constant 0 : index
    %c0_348 = arith.constant 0 : index
    %508 = vector.load %arg44[%c0_345, %c0_346, %c0_347, %c0_348] : memref<2x4x32x8xf32, #tpu.memory_space<vmem>>, vector<1x1x32x8xf32>
    %509 = vector.shape_cast %508 : vector<1x1x32x8xf32> to vector<32x8xf32>
    %cst_349 = arith.constant dense<0.000000e+00> : vector<16x8xf32>
    %510 = tpu.matmul %500, %509, %cst_349 {dimension_numbers = #tpu.dot_dimension_numbers<[1], [0], [0], [1], [0, 0, 1, 1], [], []>} : vector<16x32xf32>, vector<32x8xf32>, vector<16x8xf32> -> vector<16x8xf32>
    %c0_350 = arith.constant 0 : index
    %c0_351 = arith.constant 0 : index
    %c0_352 = arith.constant 0 : index
    %c0_353 = arith.constant 0 : index
    %511 = vector.load %arg31[%c0_350, %c0_351, %c0_352, %c0_353] : memref<2x4x1x8xf32, #tpu.memory_space<vmem>>, vector<1x1x1x8xf32>
    %512 = vector.shape_cast %511 : vector<1x1x1x8xf32> to vector<1x8xf32>
    %513 = vector.broadcast %512 : vector<1x8xf32> to vector<16x8xf32>
    %514 = arith.addf %510, %513 : vector<16x8xf32>
    %c0_354 = arith.constant 0 : index
    %c0_355 = arith.constant 0 : index
    %c0_356 = arith.constant 0 : index
    %c0_357 = arith.constant 0 : index
    %515 = vector.load %arg46[%c0_354, %c0_355, %c0_356, %c0_357] : memref<2x4x32x8xf32, #tpu.memory_space<vmem>>, vector<1x1x32x8xf32>
    %516 = vector.shape_cast %515 : vector<1x1x32x8xf32> to vector<32x8xf32>
    %cst_358 = arith.constant dense<0.000000e+00> : vector<16x8xf32>
    %517 = tpu.matmul %500, %516, %cst_358 {dimension_numbers = #tpu.dot_dimension_numbers<[1], [0], [0], [1], [0, 0, 1, 1], [], []>} : vector<16x32xf32>, vector<32x8xf32>, vector<16x8xf32> -> vector<16x8xf32>
    %c0_359 = arith.constant 0 : index
    %c0_360 = arith.constant 0 : index
    %c0_361 = arith.constant 0 : index
    %c0_362 = arith.constant 0 : index
    %518 = vector.load %arg33[%c0_359, %c0_360, %c0_361, %c0_362] : memref<2x4x1x8xf32, #tpu.memory_space<vmem>>, vector<1x1x1x8xf32>
    %519 = vector.shape_cast %518 : vector<1x1x1x8xf32> to vector<1x8xf32>
    %520 = vector.broadcast %519 : vector<1x8xf32> to vector<16x8xf32>
    %521 = arith.addf %517, %520 : vector<16x8xf32>
    %cst_363 = arith.constant dense<0.000000e+00> : vector<16x16xf32>
    %522 = tpu.matmul %507, %514, %cst_363 {dimension_numbers = #tpu.dot_dimension_numbers<[1], [1], [0], [0], [0, 0, 1, 0], [], []>} : vector<16x8xf32>, vector<16x8xf32>, vector<16x16xf32> -> vector<16x16xf32>
    %c0_364 = arith.constant 0 : index
    %c0_365 = arith.constant 0 : index
    %c0_366 = arith.constant 0 : index
    %c0_367 = arith.constant 0 : index
    %523 = vector.load %arg30[%c0_364, %c0_365, %c0_366, %c0_367] : memref<2x4x16x16xf32, #tpu.memory_space<vmem>>, vector<1x1x16x16xf32>
    %524 = vector.shape_cast %523 : vector<1x1x16x16xf32> to vector<16x16xf32>
    %525 = arith.addf %522, %524 : vector<16x16xf32>
    %cst_368 = arith.constant dense<0xFF800000> : vector<16xf32>
    %526 = vector.multi_reduction <maximumf>, %525, %cst_368 [1] : vector<16x16xf32> to vector<16xf32>
    %527 = vector.shape_cast %526 : vector<16xf32> to vector<16x1xf32>
    %528 = vector.broadcast %527 : vector<16x1xf32> to vector<16x16xf32>
    %529 = arith.subf %525, %528 : vector<16x16xf32>
    %530 = math.exp %529 : vector<16x16xf32>
    %cst_369 = arith.constant dense<0.000000e+00> : vector<16xf32>
    %531 = vector.multi_reduction <add>, %530, %cst_369 [1] : vector<16x16xf32> to vector<16xf32>
    %532 = vector.shape_cast %531 : vector<16xf32> to vector<16x1xf32>
    %533 = tpu.reciprocal %532 {approx = true} : vector<16x1xf32> -> vector<16x1xf32>
    %534 = vector.broadcast %533 : vector<16x1xf32> to vector<16x16xf32>
    %535 = arith.mulf %530, %534 : vector<16x16xf32>
    %cst_370 = arith.constant dense<0.000000e+00> : vector<16x8xf32>
    %536 = tpu.matmul %535, %521, %cst_370 {dimension_numbers = #tpu.dot_dimension_numbers<[1], [0], [0], [1], [0, 0, 1, 1], [], []>} : vector<16x16xf32>, vector<16x8xf32>, vector<16x8xf32> -> vector<16x8xf32>
    %c0_371 = arith.constant 0 : index
    %c0_372 = arith.constant 0 : index
    %c0_373 = arith.constant 0 : index
    %c0_374 = arith.constant 0 : index
    %537 = vector.load %arg43[%c0_371, %c0_372, %c0_373, %c0_374] : memref<2x4x8x32xf32, #tpu.memory_space<vmem>>, vector<1x1x8x32xf32>
    %538 = vector.shape_cast %537 : vector<1x1x8x32xf32> to vector<8x32xf32>
    %cst_375 = arith.constant dense<0.000000e+00> : vector<16x32xf32>
    %539 = tpu.matmul %536, %538, %cst_375 {dimension_numbers = #tpu.dot_dimension_numbers<[1], [0], [0], [1], [0, 0, 1, 1], [], []>} : vector<16x8xf32>, vector<8x32xf32>, vector<16x32xf32> -> vector<16x32xf32>
    %c0_376 = arith.constant 0 : index
    %c1_377 = arith.constant 1 : index
    %c0_378 = arith.constant 0 : index
    %c0_379 = arith.constant 0 : index
    %540 = vector.load %arg45[%c0_376, %c1_377, %c0_378, %c0_379] : memref<2x4x32x8xf32, #tpu.memory_space<vmem>>, vector<1x1x32x8xf32>
    %541 = vector.shape_cast %540 : vector<1x1x32x8xf32> to vector<32x8xf32>
    %cst_380 = arith.constant dense<0.000000e+00> : vector<16x8xf32>
    %542 = tpu.matmul %500, %541, %cst_380 {dimension_numbers = #tpu.dot_dimension_numbers<[1], [0], [0], [1], [0, 0, 1, 1], [], []>} : vector<16x32xf32>, vector<32x8xf32>, vector<16x8xf32> -> vector<16x8xf32>
    %c0_381 = arith.constant 0 : index
    %c1_382 = arith.constant 1 : index
    %c0_383 = arith.constant 0 : index
    %c0_384 = arith.constant 0 : index
    %543 = vector.load %arg32[%c0_381, %c1_382, %c0_383, %c0_384] : memref<2x4x1x8xf32, #tpu.memory_space<vmem>>, vector<1x1x1x8xf32>
    %544 = vector.shape_cast %543 : vector<1x1x1x8xf32> to vector<1x8xf32>
    %545 = vector.broadcast %544 : vector<1x8xf32> to vector<16x8xf32>
    %546 = arith.addf %542, %545 : vector<16x8xf32>
    %c0_385 = arith.constant 0 : index
    %c1_386 = arith.constant 1 : index
    %c0_387 = arith.constant 0 : index
    %c0_388 = arith.constant 0 : index
    %547 = vector.load %arg44[%c0_385, %c1_386, %c0_387, %c0_388] : memref<2x4x32x8xf32, #tpu.memory_space<vmem>>, vector<1x1x32x8xf32>
    %548 = vector.shape_cast %547 : vector<1x1x32x8xf32> to vector<32x8xf32>
    %cst_389 = arith.constant dense<0.000000e+00> : vector<16x8xf32>
    %549 = tpu.matmul %500, %548, %cst_389 {dimension_numbers = #tpu.dot_dimension_numbers<[1], [0], [0], [1], [0, 0, 1, 1], [], []>} : vector<16x32xf32>, vector<32x8xf32>, vector<16x8xf32> -> vector<16x8xf32>
    %c0_390 = arith.constant 0 : index
    %c1_391 = arith.constant 1 : index
    %c0_392 = arith.constant 0 : index
    %c0_393 = arith.constant 0 : index
    %550 = vector.load %arg31[%c0_390, %c1_391, %c0_392, %c0_393] : memref<2x4x1x8xf32, #tpu.memory_space<vmem>>, vector<1x1x1x8xf32>
    %551 = vector.shape_cast %550 : vector<1x1x1x8xf32> to vector<1x8xf32>
    %552 = vector.broadcast %551 : vector<1x8xf32> to vector<16x8xf32>
    %553 = arith.addf %549, %552 : vector<16x8xf32>
    %c0_394 = arith.constant 0 : index
    %c1_395 = arith.constant 1 : index
    %c0_396 = arith.constant 0 : index
    %c0_397 = arith.constant 0 : index
    %554 = vector.load %arg46[%c0_394, %c1_395, %c0_396, %c0_397] : memref<2x4x32x8xf32, #tpu.memory_space<vmem>>, vector<1x1x32x8xf32>
    %555 = vector.shape_cast %554 : vector<1x1x32x8xf32> to vector<32x8xf32>
    %cst_398 = arith.constant dense<0.000000e+00> : vector<16x8xf32>
    %556 = tpu.matmul %500, %555, %cst_398 {dimension_numbers = #tpu.dot_dimension_numbers<[1], [0], [0], [1], [0, 0, 1, 1], [], []>} : vector<16x32xf32>, vector<32x8xf32>, vector<16x8xf32> -> vector<16x8xf32>
    %c0_399 = arith.constant 0 : index
    %c1_400 = arith.constant 1 : index
    %c0_401 = arith.constant 0 : index
    %c0_402 = arith.constant 0 : index
    %557 = vector.load %arg33[%c0_399, %c1_400, %c0_401, %c0_402] : memref<2x4x1x8xf32, #tpu.memory_space<vmem>>, vector<1x1x1x8xf32>
    %558 = vector.shape_cast %557 : vector<1x1x1x8xf32> to vector<1x8xf32>
    %559 = vector.broadcast %558 : vector<1x8xf32> to vector<16x8xf32>
    %560 = arith.addf %556, %559 : vector<16x8xf32>
    %cst_403 = arith.constant dense<0.000000e+00> : vector<16x16xf32>
    %561 = tpu.matmul %546, %553, %cst_403 {dimension_numbers = #tpu.dot_dimension_numbers<[1], [1], [0], [0], [0, 0, 1, 0], [], []>} : vector<16x8xf32>, vector<16x8xf32>, vector<16x16xf32> -> vector<16x16xf32>
    %c0_404 = arith.constant 0 : index
    %c1_405 = arith.constant 1 : index
    %c0_406 = arith.constant 0 : index
    %c0_407 = arith.constant 0 : index
    %562 = vector.load %arg30[%c0_404, %c1_405, %c0_406, %c0_407] : memref<2x4x16x16xf32, #tpu.memory_space<vmem>>, vector<1x1x16x16xf32>
    %563 = vector.shape_cast %562 : vector<1x1x16x16xf32> to vector<16x16xf32>
    %564 = arith.addf %561, %563 : vector<16x16xf32>
    %cst_408 = arith.constant dense<0xFF800000> : vector<16xf32>
    %565 = vector.multi_reduction <maximumf>, %564, %cst_408 [1] : vector<16x16xf32> to vector<16xf32>
    %566 = vector.shape_cast %565 : vector<16xf32> to vector<16x1xf32>
    %567 = vector.broadcast %566 : vector<16x1xf32> to vector<16x16xf32>
    %568 = arith.subf %564, %567 : vector<16x16xf32>
    %569 = math.exp %568 : vector<16x16xf32>
    %cst_409 = arith.constant dense<0.000000e+00> : vector<16xf32>
    %570 = vector.multi_reduction <add>, %569, %cst_409 [1] : vector<16x16xf32> to vector<16xf32>
    %571 = vector.shape_cast %570 : vector<16xf32> to vector<16x1xf32>
    %572 = tpu.reciprocal %571 {approx = true} : vector<16x1xf32> -> vector<16x1xf32>
    %573 = vector.broadcast %572 : vector<16x1xf32> to vector<16x16xf32>
    %574 = arith.mulf %569, %573 : vector<16x16xf32>
    %cst_410 = arith.constant dense<0.000000e+00> : vector<16x8xf32>
    %575 = tpu.matmul %574, %560, %cst_410 {dimension_numbers = #tpu.dot_dimension_numbers<[1], [0], [0], [1], [0, 0, 1, 1], [], []>} : vector<16x16xf32>, vector<16x8xf32>, vector<16x8xf32> -> vector<16x8xf32>
    %c0_411 = arith.constant 0 : index
    %c1_412 = arith.constant 1 : index
    %c0_413 = arith.constant 0 : index
    %c0_414 = arith.constant 0 : index
    %576 = vector.load %arg43[%c0_411, %c1_412, %c0_413, %c0_414] : memref<2x4x8x32xf32, #tpu.memory_space<vmem>>, vector<1x1x8x32xf32>
    %577 = vector.shape_cast %576 : vector<1x1x8x32xf32> to vector<8x32xf32>
    %cst_415 = arith.constant dense<0.000000e+00> : vector<16x32xf32>
    %578 = tpu.matmul %575, %577, %cst_415 {dimension_numbers = #tpu.dot_dimension_numbers<[1], [0], [0], [1], [0, 0, 1, 1], [], []>} : vector<16x8xf32>, vector<8x32xf32>, vector<16x32xf32> -> vector<16x32xf32>
    %579 = arith.addf %539, %578 : vector<16x32xf32>
    %c0_416 = arith.constant 0 : index
    %c2_417 = arith.constant 2 : index
    %c0_418 = arith.constant 0 : index
    %c0_419 = arith.constant 0 : index
    %580 = vector.load %arg45[%c0_416, %c2_417, %c0_418, %c0_419] : memref<2x4x32x8xf32, #tpu.memory_space<vmem>>, vector<1x1x32x8xf32>
    %581 = vector.shape_cast %580 : vector<1x1x32x8xf32> to vector<32x8xf32>
    %cst_420 = arith.constant dense<0.000000e+00> : vector<16x8xf32>
    %582 = tpu.matmul %500, %581, %cst_420 {dimension_numbers = #tpu.dot_dimension_numbers<[1], [0], [0], [1], [0, 0, 1, 1], [], []>} : vector<16x32xf32>, vector<32x8xf32>, vector<16x8xf32> -> vector<16x8xf32>
    %c0_421 = arith.constant 0 : index
    %c2_422 = arith.constant 2 : index
    %c0_423 = arith.constant 0 : index
    %c0_424 = arith.constant 0 : index
    %583 = vector.load %arg32[%c0_421, %c2_422, %c0_423, %c0_424] : memref<2x4x1x8xf32, #tpu.memory_space<vmem>>, vector<1x1x1x8xf32>
    %584 = vector.shape_cast %583 : vector<1x1x1x8xf32> to vector<1x8xf32>
    %585 = vector.broadcast %584 : vector<1x8xf32> to vector<16x8xf32>
    %586 = arith.addf %582, %585 : vector<16x8xf32>
    %c0_425 = arith.constant 0 : index
    %c2_426 = arith.constant 2 : index
    %c0_427 = arith.constant 0 : index
    %c0_428 = arith.constant 0 : index
    %587 = vector.load %arg44[%c0_425, %c2_426, %c0_427, %c0_428] : memref<2x4x32x8xf32, #tpu.memory_space<vmem>>, vector<1x1x32x8xf32>
    %588 = vector.shape_cast %587 : vector<1x1x32x8xf32> to vector<32x8xf32>
    %cst_429 = arith.constant dense<0.000000e+00> : vector<16x8xf32>
    %589 = tpu.matmul %500, %588, %cst_429 {dimension_numbers = #tpu.dot_dimension_numbers<[1], [0], [0], [1], [0, 0, 1, 1], [], []>} : vector<16x32xf32>, vector<32x8xf32>, vector<16x8xf32> -> vector<16x8xf32>
    %c0_430 = arith.constant 0 : index
    %c2_431 = arith.constant 2 : index
    %c0_432 = arith.constant 0 : index
    %c0_433 = arith.constant 0 : index
    %590 = vector.load %arg31[%c0_430, %c2_431, %c0_432, %c0_433] : memref<2x4x1x8xf32, #tpu.memory_space<vmem>>, vector<1x1x1x8xf32>
    %591 = vector.shape_cast %590 : vector<1x1x1x8xf32> to vector<1x8xf32>
    %592 = vector.broadcast %591 : vector<1x8xf32> to vector<16x8xf32>
    %593 = arith.addf %589, %592 : vector<16x8xf32>
    %c0_434 = arith.constant 0 : index
    %c2_435 = arith.constant 2 : index
    %c0_436 = arith.constant 0 : index
    %c0_437 = arith.constant 0 : index
    %594 = vector.load %arg46[%c0_434, %c2_435, %c0_436, %c0_437] : memref<2x4x32x8xf32, #tpu.memory_space<vmem>>, vector<1x1x32x8xf32>
    %595 = vector.shape_cast %594 : vector<1x1x32x8xf32> to vector<32x8xf32>
    %cst_438 = arith.constant dense<0.000000e+00> : vector<16x8xf32>
    %596 = tpu.matmul %500, %595, %cst_438 {dimension_numbers = #tpu.dot_dimension_numbers<[1], [0], [0], [1], [0, 0, 1, 1], [], []>} : vector<16x32xf32>, vector<32x8xf32>, vector<16x8xf32> -> vector<16x8xf32>
    %c0_439 = arith.constant 0 : index
    %c2_440 = arith.constant 2 : index
    %c0_441 = arith.constant 0 : index
    %c0_442 = arith.constant 0 : index
    %597 = vector.load %arg33[%c0_439, %c2_440, %c0_441, %c0_442] : memref<2x4x1x8xf32, #tpu.memory_space<vmem>>, vector<1x1x1x8xf32>
    %598 = vector.shape_cast %597 : vector<1x1x1x8xf32> to vector<1x8xf32>
    %599 = vector.broadcast %598 : vector<1x8xf32> to vector<16x8xf32>
    %600 = arith.addf %596, %599 : vector<16x8xf32>
    %cst_443 = arith.constant dense<0.000000e+00> : vector<16x16xf32>
    %601 = tpu.matmul %586, %593, %cst_443 {dimension_numbers = #tpu.dot_dimension_numbers<[1], [1], [0], [0], [0, 0, 1, 0], [], []>} : vector<16x8xf32>, vector<16x8xf32>, vector<16x16xf32> -> vector<16x16xf32>
    %c0_444 = arith.constant 0 : index
    %c2_445 = arith.constant 2 : index
    %c0_446 = arith.constant 0 : index
    %c0_447 = arith.constant 0 : index
    %602 = vector.load %arg30[%c0_444, %c2_445, %c0_446, %c0_447] : memref<2x4x16x16xf32, #tpu.memory_space<vmem>>, vector<1x1x16x16xf32>
    %603 = vector.shape_cast %602 : vector<1x1x16x16xf32> to vector<16x16xf32>
    %604 = arith.addf %601, %603 : vector<16x16xf32>
    %cst_448 = arith.constant dense<0xFF800000> : vector<16xf32>
    %605 = vector.multi_reduction <maximumf>, %604, %cst_448 [1] : vector<16x16xf32> to vector<16xf32>
    %606 = vector.shape_cast %605 : vector<16xf32> to vector<16x1xf32>
    %607 = vector.broadcast %606 : vector<16x1xf32> to vector<16x16xf32>
    %608 = arith.subf %604, %607 : vector<16x16xf32>
    %609 = math.exp %608 : vector<16x16xf32>
    %cst_449 = arith.constant dense<0.000000e+00> : vector<16xf32>
    %610 = vector.multi_reduction <add>, %609, %cst_449 [1] : vector<16x16xf32> to vector<16xf32>
    %611 = vector.shape_cast %610 : vector<16xf32> to vector<16x1xf32>
    %612 = tpu.reciprocal %611 {approx = true} : vector<16x1xf32> -> vector<16x1xf32>
    %613 = vector.broadcast %612 : vector<16x1xf32> to vector<16x16xf32>
    %614 = arith.mulf %609, %613 : vector<16x16xf32>
    %cst_450 = arith.constant dense<0.000000e+00> : vector<16x8xf32>
    %615 = tpu.matmul %614, %600, %cst_450 {dimension_numbers = #tpu.dot_dimension_numbers<[1], [0], [0], [1], [0, 0, 1, 1], [], []>} : vector<16x16xf32>, vector<16x8xf32>, vector<16x8xf32> -> vector<16x8xf32>
    %c0_451 = arith.constant 0 : index
    %c2_452 = arith.constant 2 : index
    %c0_453 = arith.constant 0 : index
    %c0_454 = arith.constant 0 : index
    %616 = vector.load %arg43[%c0_451, %c2_452, %c0_453, %c0_454] : memref<2x4x8x32xf32, #tpu.memory_space<vmem>>, vector<1x1x8x32xf32>
    %617 = vector.shape_cast %616 : vector<1x1x8x32xf32> to vector<8x32xf32>
    %cst_455 = arith.constant dense<0.000000e+00> : vector<16x32xf32>
    %618 = tpu.matmul %615, %617, %cst_455 {dimension_numbers = #tpu.dot_dimension_numbers<[1], [0], [0], [1], [0, 0, 1, 1], [], []>} : vector<16x8xf32>, vector<8x32xf32>, vector<16x32xf32> -> vector<16x32xf32>
    %619 = arith.addf %579, %618 : vector<16x32xf32>
    %c0_456 = arith.constant 0 : index
    %c3_457 = arith.constant 3 : index
    %c0_458 = arith.constant 0 : index
    %c0_459 = arith.constant 0 : index
    %620 = vector.load %arg45[%c0_456, %c3_457, %c0_458, %c0_459] : memref<2x4x32x8xf32, #tpu.memory_space<vmem>>, vector<1x1x32x8xf32>
    %621 = vector.shape_cast %620 : vector<1x1x32x8xf32> to vector<32x8xf32>
    %cst_460 = arith.constant dense<0.000000e+00> : vector<16x8xf32>
    %622 = tpu.matmul %500, %621, %cst_460 {dimension_numbers = #tpu.dot_dimension_numbers<[1], [0], [0], [1], [0, 0, 1, 1], [], []>} : vector<16x32xf32>, vector<32x8xf32>, vector<16x8xf32> -> vector<16x8xf32>
    %c0_461 = arith.constant 0 : index
    %c3_462 = arith.constant 3 : index
    %c0_463 = arith.constant 0 : index
    %c0_464 = arith.constant 0 : index
    %623 = vector.load %arg32[%c0_461, %c3_462, %c0_463, %c0_464] : memref<2x4x1x8xf32, #tpu.memory_space<vmem>>, vector<1x1x1x8xf32>
    %624 = vector.shape_cast %623 : vector<1x1x1x8xf32> to vector<1x8xf32>
    %625 = vector.broadcast %624 : vector<1x8xf32> to vector<16x8xf32>
    %626 = arith.addf %622, %625 : vector<16x8xf32>
    %c0_465 = arith.constant 0 : index
    %c3_466 = arith.constant 3 : index
    %c0_467 = arith.constant 0 : index
    %c0_468 = arith.constant 0 : index
    %627 = vector.load %arg44[%c0_465, %c3_466, %c0_467, %c0_468] : memref<2x4x32x8xf32, #tpu.memory_space<vmem>>, vector<1x1x32x8xf32>
    %628 = vector.shape_cast %627 : vector<1x1x32x8xf32> to vector<32x8xf32>
    %cst_469 = arith.constant dense<0.000000e+00> : vector<16x8xf32>
    %629 = tpu.matmul %500, %628, %cst_469 {dimension_numbers = #tpu.dot_dimension_numbers<[1], [0], [0], [1], [0, 0, 1, 1], [], []>} : vector<16x32xf32>, vector<32x8xf32>, vector<16x8xf32> -> vector<16x8xf32>
    %c0_470 = arith.constant 0 : index
    %c3_471 = arith.constant 3 : index
    %c0_472 = arith.constant 0 : index
    %c0_473 = arith.constant 0 : index
    %630 = vector.load %arg31[%c0_470, %c3_471, %c0_472, %c0_473] : memref<2x4x1x8xf32, #tpu.memory_space<vmem>>, vector<1x1x1x8xf32>
    %631 = vector.shape_cast %630 : vector<1x1x1x8xf32> to vector<1x8xf32>
    %632 = vector.broadcast %631 : vector<1x8xf32> to vector<16x8xf32>
    %633 = arith.addf %629, %632 : vector<16x8xf32>
    %c0_474 = arith.constant 0 : index
    %c3_475 = arith.constant 3 : index
    %c0_476 = arith.constant 0 : index
    %c0_477 = arith.constant 0 : index
    %634 = vector.load %arg46[%c0_474, %c3_475, %c0_476, %c0_477] : memref<2x4x32x8xf32, #tpu.memory_space<vmem>>, vector<1x1x32x8xf32>
    %635 = vector.shape_cast %634 : vector<1x1x32x8xf32> to vector<32x8xf32>
    %cst_478 = arith.constant dense<0.000000e+00> : vector<16x8xf32>
    %636 = tpu.matmul %500, %635, %cst_478 {dimension_numbers = #tpu.dot_dimension_numbers<[1], [0], [0], [1], [0, 0, 1, 1], [], []>} : vector<16x32xf32>, vector<32x8xf32>, vector<16x8xf32> -> vector<16x8xf32>
    %c0_479 = arith.constant 0 : index
    %c3_480 = arith.constant 3 : index
    %c0_481 = arith.constant 0 : index
    %c0_482 = arith.constant 0 : index
    %637 = vector.load %arg33[%c0_479, %c3_480, %c0_481, %c0_482] : memref<2x4x1x8xf32, #tpu.memory_space<vmem>>, vector<1x1x1x8xf32>
    %638 = vector.shape_cast %637 : vector<1x1x1x8xf32> to vector<1x8xf32>
    %639 = vector.broadcast %638 : vector<1x8xf32> to vector<16x8xf32>
    %640 = arith.addf %636, %639 : vector<16x8xf32>
    %cst_483 = arith.constant dense<0.000000e+00> : vector<16x16xf32>
    %641 = tpu.matmul %626, %633, %cst_483 {dimension_numbers = #tpu.dot_dimension_numbers<[1], [1], [0], [0], [0, 0, 1, 0], [], []>} : vector<16x8xf32>, vector<16x8xf32>, vector<16x16xf32> -> vector<16x16xf32>
    %c0_484 = arith.constant 0 : index
    %c3_485 = arith.constant 3 : index
    %c0_486 = arith.constant 0 : index
    %c0_487 = arith.constant 0 : index
    %642 = vector.load %arg30[%c0_484, %c3_485, %c0_486, %c0_487] : memref<2x4x16x16xf32, #tpu.memory_space<vmem>>, vector<1x1x16x16xf32>
    %643 = vector.shape_cast %642 : vector<1x1x16x16xf32> to vector<16x16xf32>
    %644 = arith.addf %641, %643 : vector<16x16xf32>
    %cst_488 = arith.constant dense<0xFF800000> : vector<16xf32>
    %645 = vector.multi_reduction <maximumf>, %644, %cst_488 [1] : vector<16x16xf32> to vector<16xf32>
    %646 = vector.shape_cast %645 : vector<16xf32> to vector<16x1xf32>
    %647 = vector.broadcast %646 : vector<16x1xf32> to vector<16x16xf32>
    %648 = arith.subf %644, %647 : vector<16x16xf32>
    %649 = math.exp %648 : vector<16x16xf32>
    %cst_489 = arith.constant dense<0.000000e+00> : vector<16xf32>
    %650 = vector.multi_reduction <add>, %649, %cst_489 [1] : vector<16x16xf32> to vector<16xf32>
    %651 = vector.shape_cast %650 : vector<16xf32> to vector<16x1xf32>
    %652 = tpu.reciprocal %651 {approx = true} : vector<16x1xf32> -> vector<16x1xf32>
    %653 = vector.broadcast %652 : vector<16x1xf32> to vector<16x16xf32>
    %654 = arith.mulf %649, %653 : vector<16x16xf32>
    %cst_490 = arith.constant dense<0.000000e+00> : vector<16x8xf32>
    %655 = tpu.matmul %654, %640, %cst_490 {dimension_numbers = #tpu.dot_dimension_numbers<[1], [0], [0], [1], [0, 0, 1, 1], [], []>} : vector<16x16xf32>, vector<16x8xf32>, vector<16x8xf32> -> vector<16x8xf32>
    %c0_491 = arith.constant 0 : index
    %c3_492 = arith.constant 3 : index
    %c0_493 = arith.constant 0 : index
    %c0_494 = arith.constant 0 : index
    %656 = vector.load %arg43[%c0_491, %c3_492, %c0_493, %c0_494] : memref<2x4x8x32xf32, #tpu.memory_space<vmem>>, vector<1x1x8x32xf32>
    %657 = vector.shape_cast %656 : vector<1x1x8x32xf32> to vector<8x32xf32>
    %cst_495 = arith.constant dense<0.000000e+00> : vector<16x32xf32>
    %658 = tpu.matmul %655, %657, %cst_495 {dimension_numbers = #tpu.dot_dimension_numbers<[1], [0], [0], [1], [0, 0, 1, 1], [], []>} : vector<16x8xf32>, vector<8x32xf32>, vector<16x32xf32> -> vector<16x32xf32>
    %659 = arith.addf %619, %658 : vector<16x32xf32>
    %660 = arith.addf %474, %659 : vector<16x32xf32>
    %c0_496 = arith.constant 0 : index
    %c0_497 = arith.constant 0 : index
    %c0_498 = arith.constant 0 : index
    %661 = vector.load %arg42[%c0_496, %c0_497, %c0_498] : memref<2x1x32xf32, #tpu.memory_space<vmem>>, vector<1x1x32xf32>
    %662 = vector.shape_cast %661 : vector<1x1x32xf32> to vector<1x32xf32>
    %663 = vector.broadcast %662 : vector<1x32xf32> to vector<16x32xf32>
    %664 = arith.addf %660, %663 : vector<16x32xf32>
    %c0_499 = arith.constant 0 : index
    %c0_500 = arith.constant 0 : index
    %c0_501 = arith.constant 0 : index
    %665 = vector.load %arg41[%c0_499, %c0_500, %c0_501] : memref<2x1x32xf32, #tpu.memory_space<vmem>>, vector<1x1x32xf32>
    %666 = vector.shape_cast %665 : vector<1x1x32xf32> to vector<1x32xf32>
    %c0_502 = arith.constant 0 : index
    %c0_503 = arith.constant 0 : index
    %c0_504 = arith.constant 0 : index
    %667 = vector.load %arg40[%c0_502, %c0_503, %c0_504] : memref<2x1x32xf32, #tpu.memory_space<vmem>>, vector<1x1x32xf32>
    %668 = vector.shape_cast %667 : vector<1x1x32xf32> to vector<1x32xf32>
    %cst_505 = arith.constant dense<0.000000e+00> : vector<16xf32>
    %669 = vector.multi_reduction <add>, %664, %cst_505 [1] : vector<16x32xf32> to vector<16xf32>
    %670 = vector.shape_cast %669 : vector<16xf32> to vector<16x1xf32>
    %cst_506 = arith.constant 3.200000e+01 : f32
    %671 = vector.broadcast %cst_506 : f32 to vector<16x1xf32>
    %672 = arith.divf %670, %671 : vector<16x1xf32>
    %673 = vector.broadcast %672 : vector<16x1xf32> to vector<16x32xf32>
    %674 = arith.subf %664, %673 : vector<16x32xf32>
    %675 = arith.mulf %674, %674 : vector<16x32xf32>
    %cst_507 = arith.constant dense<0.000000e+00> : vector<16xf32>
    %676 = vector.multi_reduction <add>, %675, %cst_507 [1] : vector<16x32xf32> to vector<16xf32>
    %677 = vector.shape_cast %676 : vector<16xf32> to vector<16x1xf32>
    %cst_508 = arith.constant 3.200000e+01 : f32
    %678 = vector.broadcast %cst_508 : f32 to vector<16x1xf32>
    %679 = arith.divf %677, %678 : vector<16x1xf32>
    %680 = vector.broadcast %672 : vector<16x1xf32> to vector<16x32xf32>
    %681 = arith.subf %664, %680 : vector<16x32xf32>
    %cst_509 = arith.constant 9.99999974E-6 : f32
    %682 = vector.broadcast %cst_509 : f32 to vector<16x1xf32>
    %683 = arith.addf %679, %682 : vector<16x1xf32>
    %684 = math.rsqrt %683 : vector<16x1xf32>
    %685 = vector.broadcast %684 : vector<16x1xf32> to vector<16x32xf32>
    %686 = arith.mulf %681, %685 : vector<16x32xf32>
    %687 = vector.broadcast %666 : vector<1x32xf32> to vector<16x32xf32>
    %688 = arith.mulf %686, %687 : vector<16x32xf32>
    %689 = vector.broadcast %668 : vector<1x32xf32> to vector<16x32xf32>
    %690 = arith.addf %688, %689 : vector<16x32xf32>
    %c0_510 = arith.constant 0 : index
    %c0_511 = arith.constant 0 : index
    %c0_512 = arith.constant 0 : index
    %691 = vector.load %arg35[%c0_510, %c0_511, %c0_512] : memref<2x32x64xf32, #tpu.memory_space<vmem>>, vector<1x32x64xf32>
    %692 = vector.shape_cast %691 : vector<1x32x64xf32> to vector<32x64xf32>
    %cst_513 = arith.constant dense<0.000000e+00> : vector<16x64xf32>
    %693 = tpu.matmul %690, %692, %cst_513 {dimension_numbers = #tpu.dot_dimension_numbers<[1], [0], [0], [1], [0, 0, 1, 1], [], []>} : vector<16x32xf32>, vector<32x64xf32>, vector<16x64xf32> -> vector<16x64xf32>
    %c0_514 = arith.constant 0 : index
    %c0_515 = arith.constant 0 : index
    %c0_516 = arith.constant 0 : index
    %694 = vector.load %arg34[%c0_514, %c0_515, %c0_516] : memref<2x1x64xf32, #tpu.memory_space<vmem>>, vector<1x1x64xf32>
    %695 = vector.shape_cast %694 : vector<1x1x64xf32> to vector<1x64xf32>
    %696 = vector.broadcast %695 : vector<1x64xf32> to vector<16x64xf32>
    %697 = arith.addf %693, %696 : vector<16x64xf32>
    %698 = arith.mulf %697, %697 : vector<16x64xf32>
    %699 = arith.mulf %697, %698 : vector<16x64xf32>
    %cst_517 = arith.constant 4.471500e-02 : f32
    %700 = vector.broadcast %cst_517 : f32 to vector<16x64xf32>
    %701 = arith.mulf %700, %699 : vector<16x64xf32>
    %702 = arith.addf %697, %701 : vector<16x64xf32>
    %cst_518 = arith.constant 0.797884583 : f32
    %703 = vector.broadcast %cst_518 : f32 to vector<16x64xf32>
    %704 = arith.mulf %703, %702 : vector<16x64xf32>
    %705 = math.tanh %704 : vector<16x64xf32>
    %cst_519 = arith.constant 1.000000e+00 : f32
    %706 = vector.broadcast %cst_519 : f32 to vector<16x64xf32>
    %707 = arith.addf %706, %705 : vector<16x64xf32>
    %cst_520 = arith.constant 5.000000e-01 : f32
    %708 = vector.broadcast %cst_520 : f32 to vector<16x64xf32>
    %709 = arith.mulf %708, %707 : vector<16x64xf32>
    %710 = arith.mulf %697, %709 : vector<16x64xf32>
    %c0_521 = arith.constant 0 : index
    %c0_522 = arith.constant 0 : index
    %c0_523 = arith.constant 0 : index
    %711 = vector.load %arg37[%c0_521, %c0_522, %c0_523] : memref<2x64x32xf32, #tpu.memory_space<vmem>>, vector<1x64x32xf32>
    %712 = vector.shape_cast %711 : vector<1x64x32xf32> to vector<64x32xf32>
    %cst_524 = arith.constant dense<0.000000e+00> : vector<16x32xf32>
    %713 = tpu.matmul %710, %712, %cst_524 {dimension_numbers = #tpu.dot_dimension_numbers<[1], [0], [0], [1], [0, 0, 1, 1], [], []>} : vector<16x64xf32>, vector<64x32xf32>, vector<16x32xf32> -> vector<16x32xf32>
    %c0_525 = arith.constant 0 : index
    %c0_526 = arith.constant 0 : index
    %c0_527 = arith.constant 0 : index
    %714 = vector.load %arg36[%c0_525, %c0_526, %c0_527] : memref<2x1x32xf32, #tpu.memory_space<vmem>>, vector<1x1x32xf32>
    %715 = vector.shape_cast %714 : vector<1x1x32xf32> to vector<1x32xf32>
    %716 = vector.broadcast %715 : vector<1x32xf32> to vector<16x32xf32>
    %717 = arith.addf %713, %716 : vector<16x32xf32>
    %718 = arith.addf %664, %717 : vector<16x32xf32>
    %c1_528 = arith.constant 1 : index
    %c0_529 = arith.constant 0 : index
    %c0_530 = arith.constant 0 : index
    %719 = vector.load %arg39[%c1_528, %c0_529, %c0_530] : memref<2x1x32xf32, #tpu.memory_space<vmem>>, vector<1x1x32xf32>
    %720 = vector.shape_cast %719 : vector<1x1x32xf32> to vector<1x32xf32>
    %c1_531 = arith.constant 1 : index
    %c0_532 = arith.constant 0 : index
    %c0_533 = arith.constant 0 : index
    %721 = vector.load %arg38[%c1_531, %c0_532, %c0_533] : memref<2x1x32xf32, #tpu.memory_space<vmem>>, vector<1x1x32xf32>
    %722 = vector.shape_cast %721 : vector<1x1x32xf32> to vector<1x32xf32>
    %cst_534 = arith.constant dense<0.000000e+00> : vector<16xf32>
    %723 = vector.multi_reduction <add>, %718, %cst_534 [1] : vector<16x32xf32> to vector<16xf32>
    %724 = vector.shape_cast %723 : vector<16xf32> to vector<16x1xf32>
    %cst_535 = arith.constant 3.200000e+01 : f32
    %725 = vector.broadcast %cst_535 : f32 to vector<16x1xf32>
    %726 = arith.divf %724, %725 : vector<16x1xf32>
    %727 = vector.broadcast %726 : vector<16x1xf32> to vector<16x32xf32>
    %728 = arith.subf %718, %727 : vector<16x32xf32>
    %729 = arith.mulf %728, %728 : vector<16x32xf32>
    %cst_536 = arith.constant dense<0.000000e+00> : vector<16xf32>
    %730 = vector.multi_reduction <add>, %729, %cst_536 [1] : vector<16x32xf32> to vector<16xf32>
    %731 = vector.shape_cast %730 : vector<16xf32> to vector<16x1xf32>
    %cst_537 = arith.constant 3.200000e+01 : f32
    %732 = vector.broadcast %cst_537 : f32 to vector<16x1xf32>
    %733 = arith.divf %731, %732 : vector<16x1xf32>
    %734 = vector.broadcast %726 : vector<16x1xf32> to vector<16x32xf32>
    %735 = arith.subf %718, %734 : vector<16x32xf32>
    %cst_538 = arith.constant 9.99999974E-6 : f32
    %736 = vector.broadcast %cst_538 : f32 to vector<16x1xf32>
    %737 = arith.addf %733, %736 : vector<16x1xf32>
    %738 = math.rsqrt %737 : vector<16x1xf32>
    %739 = vector.broadcast %738 : vector<16x1xf32> to vector<16x32xf32>
    %740 = arith.mulf %735, %739 : vector<16x32xf32>
    %741 = vector.broadcast %720 : vector<1x32xf32> to vector<16x32xf32>
    %742 = arith.mulf %740, %741 : vector<16x32xf32>
    %743 = vector.broadcast %722 : vector<1x32xf32> to vector<16x32xf32>
    %744 = arith.addf %742, %743 : vector<16x32xf32>
    %c1_539 = arith.constant 1 : index
    %c0_540 = arith.constant 0 : index
    %c0_541 = arith.constant 0 : index
    %c0_542 = arith.constant 0 : index
    %745 = vector.load %arg45[%c1_539, %c0_540, %c0_541, %c0_542] : memref<2x4x32x8xf32, #tpu.memory_space<vmem>>, vector<1x1x32x8xf32>
    %746 = vector.shape_cast %745 : vector<1x1x32x8xf32> to vector<32x8xf32>
    %cst_543 = arith.constant dense<0.000000e+00> : vector<16x8xf32>
    %747 = tpu.matmul %744, %746, %cst_543 {dimension_numbers = #tpu.dot_dimension_numbers<[1], [0], [0], [1], [0, 0, 1, 1], [], []>} : vector<16x32xf32>, vector<32x8xf32>, vector<16x8xf32> -> vector<16x8xf32>
    %c1_544 = arith.constant 1 : index
    %c0_545 = arith.constant 0 : index
    %c0_546 = arith.constant 0 : index
    %c0_547 = arith.constant 0 : index
    %748 = vector.load %arg32[%c1_544, %c0_545, %c0_546, %c0_547] : memref<2x4x1x8xf32, #tpu.memory_space<vmem>>, vector<1x1x1x8xf32>
    %749 = vector.shape_cast %748 : vector<1x1x1x8xf32> to vector<1x8xf32>
    %750 = vector.broadcast %749 : vector<1x8xf32> to vector<16x8xf32>
    %751 = arith.addf %747, %750 : vector<16x8xf32>
    %c1_548 = arith.constant 1 : index
    %c0_549 = arith.constant 0 : index
    %c0_550 = arith.constant 0 : index
    %c0_551 = arith.constant 0 : index
    %752 = vector.load %arg44[%c1_548, %c0_549, %c0_550, %c0_551] : memref<2x4x32x8xf32, #tpu.memory_space<vmem>>, vector<1x1x32x8xf32>
    %753 = vector.shape_cast %752 : vector<1x1x32x8xf32> to vector<32x8xf32>
    %cst_552 = arith.constant dense<0.000000e+00> : vector<16x8xf32>
    %754 = tpu.matmul %744, %753, %cst_552 {dimension_numbers = #tpu.dot_dimension_numbers<[1], [0], [0], [1], [0, 0, 1, 1], [], []>} : vector<16x32xf32>, vector<32x8xf32>, vector<16x8xf32> -> vector<16x8xf32>
    %c1_553 = arith.constant 1 : index
    %c0_554 = arith.constant 0 : index
    %c0_555 = arith.constant 0 : index
    %c0_556 = arith.constant 0 : index
    %755 = vector.load %arg31[%c1_553, %c0_554, %c0_555, %c0_556] : memref<2x4x1x8xf32, #tpu.memory_space<vmem>>, vector<1x1x1x8xf32>
    %756 = vector.shape_cast %755 : vector<1x1x1x8xf32> to vector<1x8xf32>
    %757 = vector.broadcast %756 : vector<1x8xf32> to vector<16x8xf32>
    %758 = arith.addf %754, %757 : vector<16x8xf32>
    %c1_557 = arith.constant 1 : index
    %c0_558 = arith.constant 0 : index
    %c0_559 = arith.constant 0 : index
    %c0_560 = arith.constant 0 : index
    %759 = vector.load %arg46[%c1_557, %c0_558, %c0_559, %c0_560] : memref<2x4x32x8xf32, #tpu.memory_space<vmem>>, vector<1x1x32x8xf32>
    %760 = vector.shape_cast %759 : vector<1x1x32x8xf32> to vector<32x8xf32>
    %cst_561 = arith.constant dense<0.000000e+00> : vector<16x8xf32>
    %761 = tpu.matmul %744, %760, %cst_561 {dimension_numbers = #tpu.dot_dimension_numbers<[1], [0], [0], [1], [0, 0, 1, 1], [], []>} : vector<16x32xf32>, vector<32x8xf32>, vector<16x8xf32> -> vector<16x8xf32>
    %c1_562 = arith.constant 1 : index
    %c0_563 = arith.constant 0 : index
    %c0_564 = arith.constant 0 : index
    %c0_565 = arith.constant 0 : index
    %762 = vector.load %arg33[%c1_562, %c0_563, %c0_564, %c0_565] : memref<2x4x1x8xf32, #tpu.memory_space<vmem>>, vector<1x1x1x8xf32>
    %763 = vector.shape_cast %762 : vector<1x1x1x8xf32> to vector<1x8xf32>
    %764 = vector.broadcast %763 : vector<1x8xf32> to vector<16x8xf32>
    %765 = arith.addf %761, %764 : vector<16x8xf32>
    %cst_566 = arith.constant dense<0.000000e+00> : vector<16x16xf32>
    %766 = tpu.matmul %751, %758, %cst_566 {dimension_numbers = #tpu.dot_dimension_numbers<[1], [1], [0], [0], [0, 0, 1, 0], [], []>} : vector<16x8xf32>, vector<16x8xf32>, vector<16x16xf32> -> vector<16x16xf32>
    %c1_567 = arith.constant 1 : index
    %c0_568 = arith.constant 0 : index
    %c0_569 = arith.constant 0 : index
    %c0_570 = arith.constant 0 : index
    %767 = vector.load %arg30[%c1_567, %c0_568, %c0_569, %c0_570] : memref<2x4x16x16xf32, #tpu.memory_space<vmem>>, vector<1x1x16x16xf32>
    %768 = vector.shape_cast %767 : vector<1x1x16x16xf32> to vector<16x16xf32>
    %769 = arith.addf %766, %768 : vector<16x16xf32>
    %cst_571 = arith.constant dense<0xFF800000> : vector<16xf32>
    %770 = vector.multi_reduction <maximumf>, %769, %cst_571 [1] : vector<16x16xf32> to vector<16xf32>
    %771 = vector.shape_cast %770 : vector<16xf32> to vector<16x1xf32>
    %772 = vector.broadcast %771 : vector<16x1xf32> to vector<16x16xf32>
    %773 = arith.subf %769, %772 : vector<16x16xf32>
    %774 = math.exp %773 : vector<16x16xf32>
    %cst_572 = arith.constant dense<0.000000e+00> : vector<16xf32>
    %775 = vector.multi_reduction <add>, %774, %cst_572 [1] : vector<16x16xf32> to vector<16xf32>
    %776 = vector.shape_cast %775 : vector<16xf32> to vector<16x1xf32>
    %777 = tpu.reciprocal %776 {approx = true} : vector<16x1xf32> -> vector<16x1xf32>
    %778 = vector.broadcast %777 : vector<16x1xf32> to vector<16x16xf32>
    %779 = arith.mulf %774, %778 : vector<16x16xf32>
    %cst_573 = arith.constant dense<0.000000e+00> : vector<16x8xf32>
    %780 = tpu.matmul %779, %765, %cst_573 {dimension_numbers = #tpu.dot_dimension_numbers<[1], [0], [0], [1], [0, 0, 1, 1], [], []>} : vector<16x16xf32>, vector<16x8xf32>, vector<16x8xf32> -> vector<16x8xf32>
    %c1_574 = arith.constant 1 : index
    %c0_575 = arith.constant 0 : index
    %c0_576 = arith.constant 0 : index
    %c0_577 = arith.constant 0 : index
    %781 = vector.load %arg43[%c1_574, %c0_575, %c0_576, %c0_577] : memref<2x4x8x32xf32, #tpu.memory_space<vmem>>, vector<1x1x8x32xf32>
    %782 = vector.shape_cast %781 : vector<1x1x8x32xf32> to vector<8x32xf32>
    %cst_578 = arith.constant dense<0.000000e+00> : vector<16x32xf32>
    %783 = tpu.matmul %780, %782, %cst_578 {dimension_numbers = #tpu.dot_dimension_numbers<[1], [0], [0], [1], [0, 0, 1, 1], [], []>} : vector<16x8xf32>, vector<8x32xf32>, vector<16x32xf32> -> vector<16x32xf32>
    %c1_579 = arith.constant 1 : index
    %c1_580 = arith.constant 1 : index
    %c0_581 = arith.constant 0 : index
    %c0_582 = arith.constant 0 : index
    %784 = vector.load %arg45[%c1_579, %c1_580, %c0_581, %c0_582] : memref<2x4x32x8xf32, #tpu.memory_space<vmem>>, vector<1x1x32x8xf32>
    %785 = vector.shape_cast %784 : vector<1x1x32x8xf32> to vector<32x8xf32>
    %cst_583 = arith.constant dense<0.000000e+00> : vector<16x8xf32>
    %786 = tpu.matmul %744, %785, %cst_583 {dimension_numbers = #tpu.dot_dimension_numbers<[1], [0], [0], [1], [0, 0, 1, 1], [], []>} : vector<16x32xf32>, vector<32x8xf32>, vector<16x8xf32> -> vector<16x8xf32>
    %c1_584 = arith.constant 1 : index
    %c1_585 = arith.constant 1 : index
    %c0_586 = arith.constant 0 : index
    %c0_587 = arith.constant 0 : index
    %787 = vector.load %arg32[%c1_584, %c1_585, %c0_586, %c0_587] : memref<2x4x1x8xf32, #tpu.memory_space<vmem>>, vector<1x1x1x8xf32>
    %788 = vector.shape_cast %787 : vector<1x1x1x8xf32> to vector<1x8xf32>
    %789 = vector.broadcast %788 : vector<1x8xf32> to vector<16x8xf32>
    %790 = arith.addf %786, %789 : vector<16x8xf32>
    %c1_588 = arith.constant 1 : index
    %c1_589 = arith.constant 1 : index
    %c0_590 = arith.constant 0 : index
    %c0_591 = arith.constant 0 : index
    %791 = vector.load %arg44[%c1_588, %c1_589, %c0_590, %c0_591] : memref<2x4x32x8xf32, #tpu.memory_space<vmem>>, vector<1x1x32x8xf32>
    %792 = vector.shape_cast %791 : vector<1x1x32x8xf32> to vector<32x8xf32>
    %cst_592 = arith.constant dense<0.000000e+00> : vector<16x8xf32>
    %793 = tpu.matmul %744, %792, %cst_592 {dimension_numbers = #tpu.dot_dimension_numbers<[1], [0], [0], [1], [0, 0, 1, 1], [], []>} : vector<16x32xf32>, vector<32x8xf32>, vector<16x8xf32> -> vector<16x8xf32>
    %c1_593 = arith.constant 1 : index
    %c1_594 = arith.constant 1 : index
    %c0_595 = arith.constant 0 : index
    %c0_596 = arith.constant 0 : index
    %794 = vector.load %arg31[%c1_593, %c1_594, %c0_595, %c0_596] : memref<2x4x1x8xf32, #tpu.memory_space<vmem>>, vector<1x1x1x8xf32>
    %795 = vector.shape_cast %794 : vector<1x1x1x8xf32> to vector<1x8xf32>
    %796 = vector.broadcast %795 : vector<1x8xf32> to vector<16x8xf32>
    %797 = arith.addf %793, %796 : vector<16x8xf32>
    %c1_597 = arith.constant 1 : index
    %c1_598 = arith.constant 1 : index
    %c0_599 = arith.constant 0 : index
    %c0_600 = arith.constant 0 : index
    %798 = vector.load %arg46[%c1_597, %c1_598, %c0_599, %c0_600] : memref<2x4x32x8xf32, #tpu.memory_space<vmem>>, vector<1x1x32x8xf32>
    %799 = vector.shape_cast %798 : vector<1x1x32x8xf32> to vector<32x8xf32>
    %cst_601 = arith.constant dense<0.000000e+00> : vector<16x8xf32>
    %800 = tpu.matmul %744, %799, %cst_601 {dimension_numbers = #tpu.dot_dimension_numbers<[1], [0], [0], [1], [0, 0, 1, 1], [], []>} : vector<16x32xf32>, vector<32x8xf32>, vector<16x8xf32> -> vector<16x8xf32>
    %c1_602 = arith.constant 1 : index
    %c1_603 = arith.constant 1 : index
    %c0_604 = arith.constant 0 : index
    %c0_605 = arith.constant 0 : index
    %801 = vector.load %arg33[%c1_602, %c1_603, %c0_604, %c0_605] : memref<2x4x1x8xf32, #tpu.memory_space<vmem>>, vector<1x1x1x8xf32>
    %802 = vector.shape_cast %801 : vector<1x1x1x8xf32> to vector<1x8xf32>
    %803 = vector.broadcast %802 : vector<1x8xf32> to vector<16x8xf32>
    %804 = arith.addf %800, %803 : vector<16x8xf32>
    %cst_606 = arith.constant dense<0.000000e+00> : vector<16x16xf32>
    %805 = tpu.matmul %790, %797, %cst_606 {dimension_numbers = #tpu.dot_dimension_numbers<[1], [1], [0], [0], [0, 0, 1, 0], [], []>} : vector<16x8xf32>, vector<16x8xf32>, vector<16x16xf32> -> vector<16x16xf32>
    %c1_607 = arith.constant 1 : index
    %c1_608 = arith.constant 1 : index
    %c0_609 = arith.constant 0 : index
    %c0_610 = arith.constant 0 : index
    %806 = vector.load %arg30[%c1_607, %c1_608, %c0_609, %c0_610] : memref<2x4x16x16xf32, #tpu.memory_space<vmem>>, vector<1x1x16x16xf32>
    %807 = vector.shape_cast %806 : vector<1x1x16x16xf32> to vector<16x16xf32>
    %808 = arith.addf %805, %807 : vector<16x16xf32>
    %cst_611 = arith.constant dense<0xFF800000> : vector<16xf32>
    %809 = vector.multi_reduction <maximumf>, %808, %cst_611 [1] : vector<16x16xf32> to vector<16xf32>
    %810 = vector.shape_cast %809 : vector<16xf32> to vector<16x1xf32>
    %811 = vector.broadcast %810 : vector<16x1xf32> to vector<16x16xf32>
    %812 = arith.subf %808, %811 : vector<16x16xf32>
    %813 = math.exp %812 : vector<16x16xf32>
    %cst_612 = arith.constant dense<0.000000e+00> : vector<16xf32>
    %814 = vector.multi_reduction <add>, %813, %cst_612 [1] : vector<16x16xf32> to vector<16xf32>
    %815 = vector.shape_cast %814 : vector<16xf32> to vector<16x1xf32>
    %816 = tpu.reciprocal %815 {approx = true} : vector<16x1xf32> -> vector<16x1xf32>
    %817 = vector.broadcast %816 : vector<16x1xf32> to vector<16x16xf32>
    %818 = arith.mulf %813, %817 : vector<16x16xf32>
    %cst_613 = arith.constant dense<0.000000e+00> : vector<16x8xf32>
    %819 = tpu.matmul %818, %804, %cst_613 {dimension_numbers = #tpu.dot_dimension_numbers<[1], [0], [0], [1], [0, 0, 1, 1], [], []>} : vector<16x16xf32>, vector<16x8xf32>, vector<16x8xf32> -> vector<16x8xf32>
    %c1_614 = arith.constant 1 : index
    %c1_615 = arith.constant 1 : index
    %c0_616 = arith.constant 0 : index
    %c0_617 = arith.constant 0 : index
    %820 = vector.load %arg43[%c1_614, %c1_615, %c0_616, %c0_617] : memref<2x4x8x32xf32, #tpu.memory_space<vmem>>, vector<1x1x8x32xf32>
    %821 = vector.shape_cast %820 : vector<1x1x8x32xf32> to vector<8x32xf32>
    %cst_618 = arith.constant dense<0.000000e+00> : vector<16x32xf32>
    %822 = tpu.matmul %819, %821, %cst_618 {dimension_numbers = #tpu.dot_dimension_numbers<[1], [0], [0], [1], [0, 0, 1, 1], [], []>} : vector<16x8xf32>, vector<8x32xf32>, vector<16x32xf32> -> vector<16x32xf32>
    %823 = arith.addf %783, %822 : vector<16x32xf32>
    %c1_619 = arith.constant 1 : index
    %c2_620 = arith.constant 2 : index
    %c0_621 = arith.constant 0 : index
    %c0_622 = arith.constant 0 : index
    %824 = vector.load %arg45[%c1_619, %c2_620, %c0_621, %c0_622] : memref<2x4x32x8xf32, #tpu.memory_space<vmem>>, vector<1x1x32x8xf32>
    %825 = vector.shape_cast %824 : vector<1x1x32x8xf32> to vector<32x8xf32>
    %cst_623 = arith.constant dense<0.000000e+00> : vector<16x8xf32>
    %826 = tpu.matmul %744, %825, %cst_623 {dimension_numbers = #tpu.dot_dimension_numbers<[1], [0], [0], [1], [0, 0, 1, 1], [], []>} : vector<16x32xf32>, vector<32x8xf32>, vector<16x8xf32> -> vector<16x8xf32>
    %c1_624 = arith.constant 1 : index
    %c2_625 = arith.constant 2 : index
    %c0_626 = arith.constant 0 : index
    %c0_627 = arith.constant 0 : index
    %827 = vector.load %arg32[%c1_624, %c2_625, %c0_626, %c0_627] : memref<2x4x1x8xf32, #tpu.memory_space<vmem>>, vector<1x1x1x8xf32>
    %828 = vector.shape_cast %827 : vector<1x1x1x8xf32> to vector<1x8xf32>
    %829 = vector.broadcast %828 : vector<1x8xf32> to vector<16x8xf32>
    %830 = arith.addf %826, %829 : vector<16x8xf32>
    %c1_628 = arith.constant 1 : index
    %c2_629 = arith.constant 2 : index
    %c0_630 = arith.constant 0 : index
    %c0_631 = arith.constant 0 : index
    %831 = vector.load %arg44[%c1_628, %c2_629, %c0_630, %c0_631] : memref<2x4x32x8xf32, #tpu.memory_space<vmem>>, vector<1x1x32x8xf32>
    %832 = vector.shape_cast %831 : vector<1x1x32x8xf32> to vector<32x8xf32>
    %cst_632 = arith.constant dense<0.000000e+00> : vector<16x8xf32>
    %833 = tpu.matmul %744, %832, %cst_632 {dimension_numbers = #tpu.dot_dimension_numbers<[1], [0], [0], [1], [0, 0, 1, 1], [], []>} : vector<16x32xf32>, vector<32x8xf32>, vector<16x8xf32> -> vector<16x8xf32>
    %c1_633 = arith.constant 1 : index
    %c2_634 = arith.constant 2 : index
    %c0_635 = arith.constant 0 : index
    %c0_636 = arith.constant 0 : index
    %834 = vector.load %arg31[%c1_633, %c2_634, %c0_635, %c0_636] : memref<2x4x1x8xf32, #tpu.memory_space<vmem>>, vector<1x1x1x8xf32>
    %835 = vector.shape_cast %834 : vector<1x1x1x8xf32> to vector<1x8xf32>
    %836 = vector.broadcast %835 : vector<1x8xf32> to vector<16x8xf32>
    %837 = arith.addf %833, %836 : vector<16x8xf32>
    %c1_637 = arith.constant 1 : index
    %c2_638 = arith.constant 2 : index
    %c0_639 = arith.constant 0 : index
    %c0_640 = arith.constant 0 : index
    %838 = vector.load %arg46[%c1_637, %c2_638, %c0_639, %c0_640] : memref<2x4x32x8xf32, #tpu.memory_space<vmem>>, vector<1x1x32x8xf32>
    %839 = vector.shape_cast %838 : vector<1x1x32x8xf32> to vector<32x8xf32>
    %cst_641 = arith.constant dense<0.000000e+00> : vector<16x8xf32>
    %840 = tpu.matmul %744, %839, %cst_641 {dimension_numbers = #tpu.dot_dimension_numbers<[1], [0], [0], [1], [0, 0, 1, 1], [], []>} : vector<16x32xf32>, vector<32x8xf32>, vector<16x8xf32> -> vector<16x8xf32>
    %c1_642 = arith.constant 1 : index
    %c2_643 = arith.constant 2 : index
    %c0_644 = arith.constant 0 : index
    %c0_645 = arith.constant 0 : index
    %841 = vector.load %arg33[%c1_642, %c2_643, %c0_644, %c0_645] : memref<2x4x1x8xf32, #tpu.memory_space<vmem>>, vector<1x1x1x8xf32>
    %842 = vector.shape_cast %841 : vector<1x1x1x8xf32> to vector<1x8xf32>
    %843 = vector.broadcast %842 : vector<1x8xf32> to vector<16x8xf32>
    %844 = arith.addf %840, %843 : vector<16x8xf32>
    %cst_646 = arith.constant dense<0.000000e+00> : vector<16x16xf32>
    %845 = tpu.matmul %830, %837, %cst_646 {dimension_numbers = #tpu.dot_dimension_numbers<[1], [1], [0], [0], [0, 0, 1, 0], [], []>} : vector<16x8xf32>, vector<16x8xf32>, vector<16x16xf32> -> vector<16x16xf32>
    %c1_647 = arith.constant 1 : index
    %c2_648 = arith.constant 2 : index
    %c0_649 = arith.constant 0 : index
    %c0_650 = arith.constant 0 : index
    %846 = vector.load %arg30[%c1_647, %c2_648, %c0_649, %c0_650] : memref<2x4x16x16xf32, #tpu.memory_space<vmem>>, vector<1x1x16x16xf32>
    %847 = vector.shape_cast %846 : vector<1x1x16x16xf32> to vector<16x16xf32>
    %848 = arith.addf %845, %847 : vector<16x16xf32>
    %cst_651 = arith.constant dense<0xFF800000> : vector<16xf32>
    %849 = vector.multi_reduction <maximumf>, %848, %cst_651 [1] : vector<16x16xf32> to vector<16xf32>
    %850 = vector.shape_cast %849 : vector<16xf32> to vector<16x1xf32>
    %851 = vector.broadcast %850 : vector<16x1xf32> to vector<16x16xf32>
    %852 = arith.subf %848, %851 : vector<16x16xf32>
    %853 = math.exp %852 : vector<16x16xf32>
    %cst_652 = arith.constant dense<0.000000e+00> : vector<16xf32>
    %854 = vector.multi_reduction <add>, %853, %cst_652 [1] : vector<16x16xf32> to vector<16xf32>
    %855 = vector.shape_cast %854 : vector<16xf32> to vector<16x1xf32>
    %856 = tpu.reciprocal %855 {approx = true} : vector<16x1xf32> -> vector<16x1xf32>
    %857 = vector.broadcast %856 : vector<16x1xf32> to vector<16x16xf32>
    %858 = arith.mulf %853, %857 : vector<16x16xf32>
    %cst_653 = arith.constant dense<0.000000e+00> : vector<16x8xf32>
    %859 = tpu.matmul %858, %844, %cst_653 {dimension_numbers = #tpu.dot_dimension_numbers<[1], [0], [0], [1], [0, 0, 1, 1], [], []>} : vector<16x16xf32>, vector<16x8xf32>, vector<16x8xf32> -> vector<16x8xf32>
    %c1_654 = arith.constant 1 : index
    %c2_655 = arith.constant 2 : index
    %c0_656 = arith.constant 0 : index
    %c0_657 = arith.constant 0 : index
    %860 = vector.load %arg43[%c1_654, %c2_655, %c0_656, %c0_657] : memref<2x4x8x32xf32, #tpu.memory_space<vmem>>, vector<1x1x8x32xf32>
    %861 = vector.shape_cast %860 : vector<1x1x8x32xf32> to vector<8x32xf32>
    %cst_658 = arith.constant dense<0.000000e+00> : vector<16x32xf32>
    %862 = tpu.matmul %859, %861, %cst_658 {dimension_numbers = #tpu.dot_dimension_numbers<[1], [0], [0], [1], [0, 0, 1, 1], [], []>} : vector<16x8xf32>, vector<8x32xf32>, vector<16x32xf32> -> vector<16x32xf32>
    %863 = arith.addf %823, %862 : vector<16x32xf32>
    %c1_659 = arith.constant 1 : index
    %c3_660 = arith.constant 3 : index
    %c0_661 = arith.constant 0 : index
    %c0_662 = arith.constant 0 : index
    %864 = vector.load %arg45[%c1_659, %c3_660, %c0_661, %c0_662] : memref<2x4x32x8xf32, #tpu.memory_space<vmem>>, vector<1x1x32x8xf32>
    %865 = vector.shape_cast %864 : vector<1x1x32x8xf32> to vector<32x8xf32>
    %cst_663 = arith.constant dense<0.000000e+00> : vector<16x8xf32>
    %866 = tpu.matmul %744, %865, %cst_663 {dimension_numbers = #tpu.dot_dimension_numbers<[1], [0], [0], [1], [0, 0, 1, 1], [], []>} : vector<16x32xf32>, vector<32x8xf32>, vector<16x8xf32> -> vector<16x8xf32>
    %c1_664 = arith.constant 1 : index
    %c3_665 = arith.constant 3 : index
    %c0_666 = arith.constant 0 : index
    %c0_667 = arith.constant 0 : index
    %867 = vector.load %arg32[%c1_664, %c3_665, %c0_666, %c0_667] : memref<2x4x1x8xf32, #tpu.memory_space<vmem>>, vector<1x1x1x8xf32>
    %868 = vector.shape_cast %867 : vector<1x1x1x8xf32> to vector<1x8xf32>
    %869 = vector.broadcast %868 : vector<1x8xf32> to vector<16x8xf32>
    %870 = arith.addf %866, %869 : vector<16x8xf32>
    %c1_668 = arith.constant 1 : index
    %c3_669 = arith.constant 3 : index
    %c0_670 = arith.constant 0 : index
    %c0_671 = arith.constant 0 : index
    %871 = vector.load %arg44[%c1_668, %c3_669, %c0_670, %c0_671] : memref<2x4x32x8xf32, #tpu.memory_space<vmem>>, vector<1x1x32x8xf32>
    %872 = vector.shape_cast %871 : vector<1x1x32x8xf32> to vector<32x8xf32>
    %cst_672 = arith.constant dense<0.000000e+00> : vector<16x8xf32>
    %873 = tpu.matmul %744, %872, %cst_672 {dimension_numbers = #tpu.dot_dimension_numbers<[1], [0], [0], [1], [0, 0, 1, 1], [], []>} : vector<16x32xf32>, vector<32x8xf32>, vector<16x8xf32> -> vector<16x8xf32>
    %c1_673 = arith.constant 1 : index
    %c3_674 = arith.constant 3 : index
    %c0_675 = arith.constant 0 : index
    %c0_676 = arith.constant 0 : index
    %874 = vector.load %arg31[%c1_673, %c3_674, %c0_675, %c0_676] : memref<2x4x1x8xf32, #tpu.memory_space<vmem>>, vector<1x1x1x8xf32>
    %875 = vector.shape_cast %874 : vector<1x1x1x8xf32> to vector<1x8xf32>
    %876 = vector.broadcast %875 : vector<1x8xf32> to vector<16x8xf32>
    %877 = arith.addf %873, %876 : vector<16x8xf32>
    %c1_677 = arith.constant 1 : index
    %c3_678 = arith.constant 3 : index
    %c0_679 = arith.constant 0 : index
    %c0_680 = arith.constant 0 : index
    %878 = vector.load %arg46[%c1_677, %c3_678, %c0_679, %c0_680] : memref<2x4x32x8xf32, #tpu.memory_space<vmem>>, vector<1x1x32x8xf32>
    %879 = vector.shape_cast %878 : vector<1x1x32x8xf32> to vector<32x8xf32>
    %cst_681 = arith.constant dense<0.000000e+00> : vector<16x8xf32>
    %880 = tpu.matmul %744, %879, %cst_681 {dimension_numbers = #tpu.dot_dimension_numbers<[1], [0], [0], [1], [0, 0, 1, 1], [], []>} : vector<16x32xf32>, vector<32x8xf32>, vector<16x8xf32> -> vector<16x8xf32>
    %c1_682 = arith.constant 1 : index
    %c3_683 = arith.constant 3 : index
    %c0_684 = arith.constant 0 : index
    %c0_685 = arith.constant 0 : index
    %881 = vector.load %arg33[%c1_682, %c3_683, %c0_684, %c0_685] : memref<2x4x1x8xf32, #tpu.memory_space<vmem>>, vector<1x1x1x8xf32>
    %882 = vector.shape_cast %881 : vector<1x1x1x8xf32> to vector<1x8xf32>
    %883 = vector.broadcast %882 : vector<1x8xf32> to vector<16x8xf32>
    %884 = arith.addf %880, %883 : vector<16x8xf32>
    %cst_686 = arith.constant dense<0.000000e+00> : vector<16x16xf32>
    %885 = tpu.matmul %870, %877, %cst_686 {dimension_numbers = #tpu.dot_dimension_numbers<[1], [1], [0], [0], [0, 0, 1, 0], [], []>} : vector<16x8xf32>, vector<16x8xf32>, vector<16x16xf32> -> vector<16x16xf32>
    %c1_687 = arith.constant 1 : index
    %c3_688 = arith.constant 3 : index
    %c0_689 = arith.constant 0 : index
    %c0_690 = arith.constant 0 : index
    %886 = vector.load %arg30[%c1_687, %c3_688, %c0_689, %c0_690] : memref<2x4x16x16xf32, #tpu.memory_space<vmem>>, vector<1x1x16x16xf32>
    %887 = vector.shape_cast %886 : vector<1x1x16x16xf32> to vector<16x16xf32>
    %888 = arith.addf %885, %887 : vector<16x16xf32>
    %cst_691 = arith.constant dense<0xFF800000> : vector<16xf32>
    %889 = vector.multi_reduction <maximumf>, %888, %cst_691 [1] : vector<16x16xf32> to vector<16xf32>
    %890 = vector.shape_cast %889 : vector<16xf32> to vector<16x1xf32>
    %891 = vector.broadcast %890 : vector<16x1xf32> to vector<16x16xf32>
    %892 = arith.subf %888, %891 : vector<16x16xf32>
    %893 = math.exp %892 : vector<16x16xf32>
    %cst_692 = arith.constant dense<0.000000e+00> : vector<16xf32>
    %894 = vector.multi_reduction <add>, %893, %cst_692 [1] : vector<16x16xf32> to vector<16xf32>
    %895 = vector.shape_cast %894 : vector<16xf32> to vector<16x1xf32>
    %896 = tpu.reciprocal %895 {approx = true} : vector<16x1xf32> -> vector<16x1xf32>
    %897 = vector.broadcast %896 : vector<16x1xf32> to vector<16x16xf32>
    %898 = arith.mulf %893, %897 : vector<16x16xf32>
    %cst_693 = arith.constant dense<0.000000e+00> : vector<16x8xf32>
    %899 = tpu.matmul %898, %884, %cst_693 {dimension_numbers = #tpu.dot_dimension_numbers<[1], [0], [0], [1], [0, 0, 1, 1], [], []>} : vector<16x16xf32>, vector<16x8xf32>, vector<16x8xf32> -> vector<16x8xf32>
    %c1_694 = arith.constant 1 : index
    %c3_695 = arith.constant 3 : index
    %c0_696 = arith.constant 0 : index
    %c0_697 = arith.constant 0 : index
    %900 = vector.load %arg43[%c1_694, %c3_695, %c0_696, %c0_697] : memref<2x4x8x32xf32, #tpu.memory_space<vmem>>, vector<1x1x8x32xf32>
    %901 = vector.shape_cast %900 : vector<1x1x8x32xf32> to vector<8x32xf32>
    %cst_698 = arith.constant dense<0.000000e+00> : vector<16x32xf32>
    %902 = tpu.matmul %899, %901, %cst_698 {dimension_numbers = #tpu.dot_dimension_numbers<[1], [0], [0], [1], [0, 0, 1, 1], [], []>} : vector<16x8xf32>, vector<8x32xf32>, vector<16x32xf32> -> vector<16x32xf32>
    %903 = arith.addf %863, %902 : vector<16x32xf32>
    %904 = arith.addf %718, %903 : vector<16x32xf32>
    %c1_699 = arith.constant 1 : index
    %c0_700 = arith.constant 0 : index
    %c0_701 = arith.constant 0 : index
    %905 = vector.load %arg42[%c1_699, %c0_700, %c0_701] : memref<2x1x32xf32, #tpu.memory_space<vmem>>, vector<1x1x32xf32>
    %906 = vector.shape_cast %905 : vector<1x1x32xf32> to vector<1x32xf32>
    %907 = vector.broadcast %906 : vector<1x32xf32> to vector<16x32xf32>
    %908 = arith.addf %904, %907 : vector<16x32xf32>
    %c1_702 = arith.constant 1 : index
    %c0_703 = arith.constant 0 : index
    %c0_704 = arith.constant 0 : index
    %909 = vector.load %arg41[%c1_702, %c0_703, %c0_704] : memref<2x1x32xf32, #tpu.memory_space<vmem>>, vector<1x1x32xf32>
    %910 = vector.shape_cast %909 : vector<1x1x32xf32> to vector<1x32xf32>
    %c1_705 = arith.constant 1 : index
    %c0_706 = arith.constant 0 : index
    %c0_707 = arith.constant 0 : index
    %911 = vector.load %arg40[%c1_705, %c0_706, %c0_707] : memref<2x1x32xf32, #tpu.memory_space<vmem>>, vector<1x1x32xf32>
    %912 = vector.shape_cast %911 : vector<1x1x32xf32> to vector<1x32xf32>
    %cst_708 = arith.constant dense<0.000000e+00> : vector<16xf32>
    %913 = vector.multi_reduction <add>, %908, %cst_708 [1] : vector<16x32xf32> to vector<16xf32>
    %914 = vector.shape_cast %913 : vector<16xf32> to vector<16x1xf32>
    %cst_709 = arith.constant 3.200000e+01 : f32
    %915 = vector.broadcast %cst_709 : f32 to vector<16x1xf32>
    %916 = arith.divf %914, %915 : vector<16x1xf32>
    %917 = vector.broadcast %916 : vector<16x1xf32> to vector<16x32xf32>
    %918 = arith.subf %908, %917 : vector<16x32xf32>
    %919 = arith.mulf %918, %918 : vector<16x32xf32>
    %cst_710 = arith.constant dense<0.000000e+00> : vector<16xf32>
    %920 = vector.multi_reduction <add>, %919, %cst_710 [1] : vector<16x32xf32> to vector<16xf32>
    %921 = vector.shape_cast %920 : vector<16xf32> to vector<16x1xf32>
    %cst_711 = arith.constant 3.200000e+01 : f32
    %922 = vector.broadcast %cst_711 : f32 to vector<16x1xf32>
    %923 = arith.divf %921, %922 : vector<16x1xf32>
    %924 = vector.broadcast %916 : vector<16x1xf32> to vector<16x32xf32>
    %925 = arith.subf %908, %924 : vector<16x32xf32>
    %cst_712 = arith.constant 9.99999974E-6 : f32
    %926 = vector.broadcast %cst_712 : f32 to vector<16x1xf32>
    %927 = arith.addf %923, %926 : vector<16x1xf32>
    %928 = math.rsqrt %927 : vector<16x1xf32>
    %929 = vector.broadcast %928 : vector<16x1xf32> to vector<16x32xf32>
    %930 = arith.mulf %925, %929 : vector<16x32xf32>
    %931 = vector.broadcast %910 : vector<1x32xf32> to vector<16x32xf32>
    %932 = arith.mulf %930, %931 : vector<16x32xf32>
    %933 = vector.broadcast %912 : vector<1x32xf32> to vector<16x32xf32>
    %934 = arith.addf %932, %933 : vector<16x32xf32>
    %c1_713 = arith.constant 1 : index
    %c0_714 = arith.constant 0 : index
    %c0_715 = arith.constant 0 : index
    %935 = vector.load %arg35[%c1_713, %c0_714, %c0_715] : memref<2x32x64xf32, #tpu.memory_space<vmem>>, vector<1x32x64xf32>
    %936 = vector.shape_cast %935 : vector<1x32x64xf32> to vector<32x64xf32>
    %cst_716 = arith.constant dense<0.000000e+00> : vector<16x64xf32>
    %937 = tpu.matmul %934, %936, %cst_716 {dimension_numbers = #tpu.dot_dimension_numbers<[1], [0], [0], [1], [0, 0, 1, 1], [], []>} : vector<16x32xf32>, vector<32x64xf32>, vector<16x64xf32> -> vector<16x64xf32>
    %c1_717 = arith.constant 1 : index
    %c0_718 = arith.constant 0 : index
    %c0_719 = arith.constant 0 : index
    %938 = vector.load %arg34[%c1_717, %c0_718, %c0_719] : memref<2x1x64xf32, #tpu.memory_space<vmem>>, vector<1x1x64xf32>
    %939 = vector.shape_cast %938 : vector<1x1x64xf32> to vector<1x64xf32>
    %940 = vector.broadcast %939 : vector<1x64xf32> to vector<16x64xf32>
    %941 = arith.addf %937, %940 : vector<16x64xf32>
    %942 = arith.mulf %941, %941 : vector<16x64xf32>
    %943 = arith.mulf %941, %942 : vector<16x64xf32>
    %cst_720 = arith.constant 4.471500e-02 : f32
    %944 = vector.broadcast %cst_720 : f32 to vector<16x64xf32>
    %945 = arith.mulf %944, %943 : vector<16x64xf32>
    %946 = arith.addf %941, %945 : vector<16x64xf32>
    %cst_721 = arith.constant 0.797884583 : f32
    %947 = vector.broadcast %cst_721 : f32 to vector<16x64xf32>
    %948 = arith.mulf %947, %946 : vector<16x64xf32>
    %949 = math.tanh %948 : vector<16x64xf32>
    %cst_722 = arith.constant 1.000000e+00 : f32
    %950 = vector.broadcast %cst_722 : f32 to vector<16x64xf32>
    %951 = arith.addf %950, %949 : vector<16x64xf32>
    %cst_723 = arith.constant 5.000000e-01 : f32
    %952 = vector.broadcast %cst_723 : f32 to vector<16x64xf32>
    %953 = arith.mulf %952, %951 : vector<16x64xf32>
    %954 = arith.mulf %941, %953 : vector<16x64xf32>
    %c1_724 = arith.constant 1 : index
    %c0_725 = arith.constant 0 : index
    %c0_726 = arith.constant 0 : index
    %955 = vector.load %arg37[%c1_724, %c0_725, %c0_726] : memref<2x64x32xf32, #tpu.memory_space<vmem>>, vector<1x64x32xf32>
    %956 = vector.shape_cast %955 : vector<1x64x32xf32> to vector<64x32xf32>
    %cst_727 = arith.constant dense<0.000000e+00> : vector<16x32xf32>
    %957 = tpu.matmul %954, %956, %cst_727 {dimension_numbers = #tpu.dot_dimension_numbers<[1], [0], [0], [1], [0, 0, 1, 1], [], []>} : vector<16x64xf32>, vector<64x32xf32>, vector<16x32xf32> -> vector<16x32xf32>
    %c1_728 = arith.constant 1 : index
    %c0_729 = arith.constant 0 : index
    %c0_730 = arith.constant 0 : index
    %958 = vector.load %arg36[%c1_728, %c0_729, %c0_730] : memref<2x1x32xf32, #tpu.memory_space<vmem>>, vector<1x1x32xf32>
    %959 = vector.shape_cast %958 : vector<1x1x32xf32> to vector<1x32xf32>
    %960 = vector.broadcast %959 : vector<1x32xf32> to vector<16x32xf32>
    %961 = arith.addf %957, %960 : vector<16x32xf32>
    %962 = arith.addf %908, %961 : vector<16x32xf32>
    %c0_731 = arith.constant 0 : index
    %c0_732 = arith.constant 0 : index
    %963 = vector.load %arg8[%c0_731, %c0_732] : memref<1x32xf32, #tpu.memory_space<vmem>>, vector<1x32xf32>
    %c0_733 = arith.constant 0 : index
    %c0_734 = arith.constant 0 : index
    %964 = vector.load %arg7[%c0_733, %c0_734] : memref<1x32xf32, #tpu.memory_space<vmem>>, vector<1x32xf32>
    %cst_735 = arith.constant dense<0.000000e+00> : vector<16xf32>
    %965 = vector.multi_reduction <add>, %962, %cst_735 [1] : vector<16x32xf32> to vector<16xf32>
    %966 = vector.shape_cast %965 : vector<16xf32> to vector<16x1xf32>
    %cst_736 = arith.constant 3.200000e+01 : f32
    %967 = vector.broadcast %cst_736 : f32 to vector<16x1xf32>
    %968 = arith.divf %966, %967 : vector<16x1xf32>
    %969 = vector.broadcast %968 : vector<16x1xf32> to vector<16x32xf32>
    %970 = arith.subf %962, %969 : vector<16x32xf32>
    %971 = arith.mulf %970, %970 : vector<16x32xf32>
    %cst_737 = arith.constant dense<0.000000e+00> : vector<16xf32>
    %972 = vector.multi_reduction <add>, %971, %cst_737 [1] : vector<16x32xf32> to vector<16xf32>
    %973 = vector.shape_cast %972 : vector<16xf32> to vector<16x1xf32>
    %cst_738 = arith.constant 3.200000e+01 : f32
    %974 = vector.broadcast %cst_738 : f32 to vector<16x1xf32>
    %975 = arith.divf %973, %974 : vector<16x1xf32>
    %976 = vector.broadcast %968 : vector<16x1xf32> to vector<16x32xf32>
    %977 = arith.subf %962, %976 : vector<16x32xf32>
    %cst_739 = arith.constant 9.99999974E-6 : f32
    %978 = vector.broadcast %cst_739 : f32 to vector<16x1xf32>
    %979 = arith.addf %975, %978 : vector<16x1xf32>
    %980 = math.rsqrt %979 : vector<16x1xf32>
    %981 = vector.broadcast %980 : vector<16x1xf32> to vector<16x32xf32>
    %982 = arith.mulf %977, %981 : vector<16x32xf32>
    %983 = vector.broadcast %963 : vector<1x32xf32> to vector<16x32xf32>
    %984 = arith.mulf %982, %983 : vector<16x32xf32>
    %985 = vector.broadcast %964 : vector<1x32xf32> to vector<16x32xf32>
    %986 = arith.addf %984, %985 : vector<16x32xf32>
    %cst_740 = arith.constant dense<0.000000e+00> : vector<32xf32>
    %987 = vector.multi_reduction <add>, %986, %cst_740 [0] : vector<16x32xf32> to vector<32xf32>
    %988 = vector.shape_cast %987 : vector<32xf32> to vector<1x32xf32>
    %cst_741 = arith.constant 1.600000e+01 : f32
    %989 = vector.broadcast %cst_741 : f32 to vector<1x32xf32>
    %990 = arith.divf %988, %989 : vector<1x32xf32>
    %c0_742 = arith.constant 0 : index
    %c0_743 = arith.constant 0 : index
    %991 = vector.load %arg47[%c0_742, %c0_743] : memref<32x32xf32, #tpu.memory_space<vmem>>, vector<32x32xf32>
    %cst_744 = arith.constant dense<0.000000e+00> : vector<1x32xf32>
    %992 = tpu.matmul %990, %991, %cst_744 {dimension_numbers = #tpu.dot_dimension_numbers<[1], [0], [0], [1], [0, 0, 1, 1], [], []>} : vector<1x32xf32>, vector<32x32xf32>, vector<1x32xf32> -> vector<1x32xf32>
    %c0_745 = arith.constant 0 : index
    %c0_746 = arith.constant 0 : index
    %993 = vector.load %arg2[%c0_745, %c0_746] : memref<1x32xf32, #tpu.memory_space<vmem>>, vector<1x32xf32>
    %994 = arith.addf %992, %993 : vector<1x32xf32>
    %c0_747 = arith.constant 0 : index
    %c0_748 = arith.constant 0 : index
    %c0_749 = arith.constant 0 : index
    %995 = vector.load %arg48[%c0_747, %c0_748, %c0_749] : memref<1x1x32xf32, #tpu.memory_space<vmem>>, vector<1x1x32xf32>
    %996 = vector.shape_cast %995 : vector<1x1x32xf32> to vector<1x32xf32>
    %997 = vector.shape_cast %994 : vector<1x32xf32> to vector<1x1x32xf32>
    tpu.vector_store %arg48[%c0_747, %c0_748, %c0_749], %997 {strides = array<i32>} : memref<1x1x32xf32, #tpu.memory_space<vmem>>, vector<1x1x32xf32>,
    return
  }
  func.func @transform_0(%arg0: i32) -> (i32, i32, i32) {
    %c0_i32 = arith.constant 0 : i32
    %c0_i32_0 = arith.constant 0 : i32
    %c0_i32_1 = arith.constant 0 : i32
    return %arg0, %c0_i32, %c0_i32_0 : i32, i32, i32
  }
  func.func @transform_1(%arg0: i32) -> (i32, i32) {
    %c0_i32 = arith.constant 0 : i32
    %c0_i32_0 = arith.constant 0 : i32
    %c0_i32_1 = arith.constant 0 : i32
    return %c0_i32, %c0_i32_0 : i32, i32
  }
  func.func @transform_2(%arg0: i32) -> (i32, i32, i32) {
    %c0_i32 = arith.constant 0 : i32
    %c0_i32_0 = arith.constant 0 : i32
    %c0_i32_1 = arith.constant 0 : i32
    %c0_i32_2 = arith.constant 0 : i32
    return %c0_i32, %c0_i32_0, %c0_i32_1 : i32, i32, i32
  }
  func.func @transform_3(%arg0: i32) -> (i32, i32, i32) {
    %c0_i32 = arith.constant 0 : i32
    %c0_i32_0 = arith.constant 0 : i32
    %c0_i32_1 = arith.constant 0 : i32
    %c0_i32_2 = arith.constant 0 : i32
    return %c0_i32, %c0_i32_0, %c0_i32_1 : i32, i32, i32
  }
  func.func @transform_4(%arg0: i32) -> (i32, i32, i32) {
    %c0_i32 = arith.constant 0 : i32
    %c0_i32_0 = arith.constant 0 : i32
    %c0_i32_1 = arith.constant 0 : i32
    %c0_i32_2 = arith.constant 0 : i32
    return %c0_i32, %c0_i32_0, %c0_i32_1 : i32, i32, i32
  }
  func.func @transform_5(%arg0: i32) -> (i32, i32, i32) {
    %c0_i32 = arith.constant 0 : i32
    %c0_i32_0 = arith.constant 0 : i32
    %c0_i32_1 = arith.constant 0 : i32
    %c0_i32_2 = arith.constant 0 : i32
    return %c0_i32, %c0_i32_0, %c0_i32_1 : i32, i32, i32
  }
  func.func @transform_6(%arg0: i32) -> (i32, i32) {
    %c0_i32 = arith.constant 0 : i32
    %c0_i32_0 = arith.constant 0 : i32
    %c0_i32_1 = arith.constant 0 : i32
    return %c0_i32, %c0_i32_0 : i32, i32
  }
  func.func @transform_7(%arg0: i32) -> (i32, i32) {
    %c0_i32 = arith.constant 0 : i32
    %c0_i32_0 = arith.constant 0 : i32
    %c0_i32_1 = arith.constant 0 : i32
    return %c0_i32, %c0_i32_0 : i32, i32
  }
  func.func @transform_8(%arg0: i32) -> (i32, i32) {
    %c0_i32 = arith.constant 0 : i32
    %c0_i32_0 = arith.constant 0 : i32
    %c0_i32_1 = arith.constant 0 : i32
    return %c0_i32, %c0_i32_0 : i32, i32
  }
  func.func @transform_9(%arg0: i32) -> (i32, i32) {
    %c0_i32 = arith.constant 0 : i32
    %c0_i32_0 = arith.constant 0 : i32
    %c0_i32_1 = arith.constant 0 : i32
    return %c0_i32, %c0_i32_0 : i32, i32
  }
  func.func @transform_10(%arg0: i32) -> (i32, i32) {
    %c0_i32 = arith.constant 0 : i32
    %c0_i32_0 = arith.constant 0 : i32
    %c0_i32_1 = arith.constant 0 : i32
    return %c0_i32, %c0_i32_0 : i32, i32
  }
  func.func @transform_11(%arg0: i32) -> (i32, i32) {
    %c0_i32 = arith.constant 0 : i32
    %c0_i32_0 = arith.constant 0 : i32
    %c0_i32_1 = arith.constant 0 : i32
    return %c0_i32, %c0_i32_0 : i32, i32
  }
  func.func @transform_12(%arg0: i32) -> (i32, i32, i32, i32) {
    %c0_i32 = arith.constant 0 : i32
    %c0_i32_0 = arith.constant 0 : i32
    %c0_i32_1 = arith.constant 0 : i32
    %c0_i32_2 = arith.constant 0 : i32
    %c0_i32_3 = arith.constant 0 : i32
    return %c0_i32, %c0_i32_0, %c0_i32_1, %c0_i32_2 : i32, i32, i32, i32
  }
  func.func @transform_13(%arg0: i32) -> (i32, i32, i32, i32) {
    %c0_i32 = arith.constant 0 : i32
    %c0_i32_0 = arith.constant 0 : i32
    %c0_i32_1 = arith.constant 0 : i32
    %c0_i32_2 = arith.constant 0 : i32
    %c0_i32_3 = arith.constant 0 : i32
    return %c0_i32, %c0_i32_0, %c0_i32_1, %c0_i32_2 : i32, i32, i32, i32
  }
  func.func @transform_14(%arg0: i32) -> (i32, i32, i32, i32) {
    %c0_i32 = arith.constant 0 : i32
    %c0_i32_0 = arith.constant 0 : i32
    %c0_i32_1 = arith.constant 0 : i32
    %c0_i32_2 = arith.constant 0 : i32
    %c0_i32_3 = arith.constant 0 : i32
    return %c0_i32, %c0_i32_0, %c0_i32_1, %c0_i32_2 : i32, i32, i32, i32
  }
  func.func @transform_15(%arg0: i32) -> (i32, i32, i32, i32) {
    %c0_i32 = arith.constant 0 : i32
    %c0_i32_0 = arith.constant 0 : i32
    %c0_i32_1 = arith.constant 0 : i32
    %c0_i32_2 = arith.constant 0 : i32
    %c0_i32_3 = arith.constant 0 : i32
    return %c0_i32, %c0_i32_0, %c0_i32_1, %c0_i32_2 : i32, i32, i32, i32
  }
  func.func @transform_16(%arg0: i32) -> (i32, i32, i32) {
    %c0_i32 = arith.constant 0 : i32
    %c0_i32_0 = arith.constant 0 : i32
    %c0_i32_1 = arith.constant 0 : i32
    %c0_i32_2 = arith.constant 0 : i32
    return %c0_i32, %c0_i32_0, %c0_i32_1 : i32, i32, i32
  }
  func.func @transform_17(%arg0: i32) -> (i32, i32, i32) {
    %c0_i32 = arith.constant 0 : i32
    %c0_i32_0 = arith.constant 0 : i32
    %c0_i32_1 = arith.constant 0 : i32
    %c0_i32_2 = arith.constant 0 : i32
    return %c0_i32, %c0_i32_0, %c0_i32_1 : i32, i32, i32
  }
  func.func @transform_18(%arg0: i32) -> (i32, i32, i32) {
    %c0_i32 = arith.constant 0 : i32
    %c0_i32_0 = arith.constant 0 : i32
    %c0_i32_1 = arith.constant 0 : i32
    %c0_i32_2 = arith.constant 0 : i32
    return %c0_i32, %c0_i32_0, %c0_i32_1 : i32, i32, i32
  }
  func.func @transform_19(%arg0: i32) -> (i32, i32, i32) {
    %c0_i32 = arith.constant 0 : i32
    %c0_i32_0 = arith.constant 0 : i32
    %c0_i32_1 = arith.constant 0 : i32
    %c0_i32_2 = arith.constant 0 : i32
    return %c0_i32, %c0_i32_0, %c0_i32_1 : i32, i32, i32
  }
  func.func @transform_20(%arg0: i32) -> (i32, i32, i32) {
    %c0_i32 = arith.constant 0 : i32
    %c0_i32_0 = arith.constant 0 : i32
    %c0_i32_1 = arith.constant 0 : i32
    %c0_i32_2 = arith.constant 0 : i32
    return %c0_i32, %c0_i32_0, %c0_i32_1 : i32, i32, i32
  }
  func.func @transform_21(%arg0: i32) -> (i32, i32, i32) {
    %c0_i32 = arith.constant 0 : i32
    %c0_i32_0 = arith.constant 0 : i32
    %c0_i32_1 = arith.constant 0 : i32
    %c0_i32_2 = arith.constant 0 : i32
    return %c0_i32, %c0_i32_0, %c0_i32_1 : i32, i32, i32
  }
  func.func @transform_22(%arg0: i32) -> (i32, i32, i32) {
    %c0_i32 = arith.constant 0 : i32
    %c0_i32_0 = arith.constant 0 : i32
    %c0_i32_1 = arith.constant 0 : i32
    %c0_i32_2 = arith.constant 0 : i32
    return %c0_i32, %c0_i32_0, %c0_i32_1 : i32, i32, i32
  }
  func.func @transform_23(%arg0: i32) -> (i32, i32, i32) {
    %c0_i32 = arith.constant 0 : i32
    %c0_i32_0 = arith.constant 0 : i32
    %c0_i32_1 = arith.constant 0 : i32
    %c0_i32_2 = arith.constant 0 : i32
    return %c0_i32, %c0_i32_0, %c0_i32_1 : i32, i32, i32
  }
  func.func @transform_24(%arg0: i32) -> (i32, i32, i32) {
    %c0_i32 = arith.constant 0 : i32
    %c0_i32_0 = arith.constant 0 : i32
    %c0_i32_1 = arith.constant 0 : i32
    %c0_i32_2 = arith.constant 0 : i32
    return %c0_i32, %c0_i32_0, %c0_i32_1 : i32, i32, i32
  }
  func.func @transform_25(%arg0: i32) -> (i32, i32, i32, i32) {
    %c0_i32 = arith.constant 0 : i32
    %c0_i32_0 = arith.constant 0 : i32
    %c0_i32_1 = arith.constant 0 : i32
    %c0_i32_2 = arith.constant 0 : i32
    %c0_i32_3 = arith.constant 0 : i32
    return %c0_i32, %c0_i32_0, %c0_i32_1, %c0_i32_2 : i32, i32, i32, i32
  }
  func.func @transform_26(%arg0: i32) -> (i32, i32, i32, i32) {
    %c0_i32 = arith.constant 0 : i32
    %c0_i32_0 = arith.constant 0 : i32
    %c0_i32_1 = arith.constant 0 : i32
    %c0_i32_2 = arith.constant 0 : i32
    %c0_i32_3 = arith.constant 0 : i32
    return %c0_i32, %c0_i32_0, %c0_i32_1, %c0_i32_2 : i32, i32, i32, i32
  }
  func.func @transform_27(%arg0: i32) -> (i32, i32, i32, i32) {
    %c0_i32 = arith.constant 0 : i32
    %c0_i32_0 = arith.constant 0 : i32
    %c0_i32_1 = arith.constant 0 : i32
    %c0_i32_2 = arith.constant 0 : i32
    %c0_i32_3 = arith.constant 0 : i32
    return %c0_i32, %c0_i32_0, %c0_i32_1, %c0_i32_2 : i32, i32, i32, i32
  }
  func.func @transform_28(%arg0: i32) -> (i32, i32, i32, i32) {
    %c0_i32 = arith.constant 0 : i32
    %c0_i32_0 = arith.constant 0 : i32
    %c0_i32_1 = arith.constant 0 : i32
    %c0_i32_2 = arith.constant 0 : i32
    %c0_i32_3 = arith.constant 0 : i32
    return %c0_i32, %c0_i32_0, %c0_i32_1, %c0_i32_2 : i32, i32, i32, i32
  }
  func.func @transform_29(%arg0: i32) -> (i32, i32, i32, i32) {
    %c0_i32 = arith.constant 0 : i32
    %c0_i32_0 = arith.constant 0 : i32
    %c0_i32_1 = arith.constant 0 : i32
    %c0_i32_2 = arith.constant 0 : i32
    %c0_i32_3 = arith.constant 0 : i32
    return %c0_i32, %c0_i32_0, %c0_i32_1, %c0_i32_2 : i32, i32, i32, i32
  }
  func.func @transform_30(%arg0: i32) -> (i32, i32, i32, i32) {
    %c0_i32 = arith.constant 0 : i32
    %c0_i32_0 = arith.constant 0 : i32
    %c0_i32_1 = arith.constant 0 : i32
    %c0_i32_2 = arith.constant 0 : i32
    %c0_i32_3 = arith.constant 0 : i32
    return %c0_i32, %c0_i32_0, %c0_i32_1, %c0_i32_2 : i32, i32, i32, i32
  }
  func.func @transform_31(%arg0: i32) -> (i32, i32, i32, i32) {
    %c0_i32 = arith.constant 0 : i32
    %c0_i32_0 = arith.constant 0 : i32
    %c0_i32_1 = arith.constant 0 : i32
    %c0_i32_2 = arith.constant 0 : i32
    %c0_i32_3 = arith.constant 0 : i32
    return %c0_i32, %c0_i32_0, %c0_i32_1, %c0_i32_2 : i32, i32, i32, i32
  }
  func.func @transform_32(%arg0: i32) -> (i32, i32, i32, i32) {
    %c0_i32 = arith.constant 0 : i32
    %c0_i32_0 = arith.constant 0 : i32
    %c0_i32_1 = arith.constant 0 : i32
    %c0_i32_2 = arith.constant 0 : i32
    %c0_i32_3 = arith.constant 0 : i32
    return %c0_i32, %c0_i32_0, %c0_i32_1, %c0_i32_2 : i32, i32, i32, i32
  }
  func.func @transform_33(%arg0: i32) -> (i32, i32, i32) {
    %c0_i32 = arith.constant 0 : i32
    %c0_i32_0 = arith.constant 0 : i32
    %c0_i32_1 = arith.constant 0 : i32
    %c0_i32_2 = arith.constant 0 : i32
    return %c0_i32, %c0_i32_0, %c0_i32_1 : i32, i32, i32
  }
  func.func @transform_34(%arg0: i32) -> (i32, i32, i32) {
    %c0_i32 = arith.constant 0 : i32
    %c0_i32_0 = arith.constant 0 : i32
    %c0_i32_1 = arith.constant 0 : i32
    %c0_i32_2 = arith.constant 0 : i32
    return %c0_i32, %c0_i32_0, %c0_i32_1 : i32, i32, i32
  }
  func.func @transform_35(%arg0: i32) -> (i32, i32, i32) {
    %c0_i32 = arith.constant 0 : i32
    %c0_i32_0 = arith.constant 0 : i32
    %c0_i32_1 = arith.constant 0 : i32
    %c0_i32_2 = arith.constant 0 : i32
    return %c0_i32, %c0_i32_0, %c0_i32_1 : i32, i32, i32
  }
  func.func @transform_36(%arg0: i32) -> (i32, i32, i32) {
    %c0_i32 = arith.constant 0 : i32
    %c0_i32_0 = arith.constant 0 : i32
    %c0_i32_1 = arith.constant 0 : i32
    %c0_i32_2 = arith.constant 0 : i32
    return %c0_i32, %c0_i32_0, %c0_i32_1 : i32, i32, i32
  }
  func.func @transform_37(%arg0: i32) -> (i32, i32, i32) {
    %c0_i32 = arith.constant 0 : i32
    %c0_i32_0 = arith.constant 0 : i32
    %c0_i32_1 = arith.constant 0 : i32
    %c0_i32_2 = arith.constant 0 : i32
    return %c0_i32, %c0_i32_0, %c0_i32_1 : i32, i32, i32
  }
  func.func @transform_38(%arg0: i32) -> (i32, i32, i32) {
    %c0_i32 = arith.constant 0 : i32
    %c0_i32_0 = arith.constant 0 : i32
    %c0_i32_1 = arith.constant 0 : i32
    %c0_i32_2 = arith.constant 0 : i32
    return %c0_i32, %c0_i32_0, %c0_i32_1 : i32, i32, i32
  }
  func.func @transform_39(%arg0: i32) -> (i32, i32, i32) {
    %c0_i32 = arith.constant 0 : i32
    %c0_i32_0 = arith.constant 0 : i32
    %c0_i32_1 = arith.constant 0 : i32
    %c0_i32_2 = arith.constant 0 : i32
    return %c0_i32, %c0_i32_0, %c0_i32_1 : i32, i32, i32
  }
  func.func @transform_40(%arg0: i32) -> (i32, i32, i32) {
    %c0_i32 = arith.constant 0 : i32
    %c0_i32_0 = arith.constant 0 : i32
    %c0_i32_1 = arith.constant 0 : i32
    %c0_i32_2 = arith.constant 0 : i32
    return %c0_i32, %c0_i32_0, %c0_i32_1 : i32, i32, i32
  }
  func.func @transform_41(%arg0: i32) -> (i32, i32, i32) {
    %c0_i32 = arith.constant 0 : i32
    %c0_i32_0 = arith.constant 0 : i32
    %c0_i32_1 = arith.constant 0 : i32
    %c0_i32_2 = arith.constant 0 : i32
    return %c0_i32, %c0_i32_0, %c0_i32_1 : i32, i32, i32
  }
  func.func @transform_42(%arg0: i32) -> (i32, i32, i32, i32) {
    %c0_i32 = arith.constant 0 : i32
    %c0_i32_0 = arith.constant 0 : i32
    %c0_i32_1 = arith.constant 0 : i32
    %c0_i32_2 = arith.constant 0 : i32
    %c0_i32_3 = arith.constant 0 : i32
    return %c0_i32, %c0_i32_0, %c0_i32_1, %c0_i32_2 : i32, i32, i32, i32
  }
  func.func @transform_43(%arg0: i32) -> (i32, i32, i32, i32) {
    %c0_i32 = arith.constant 0 : i32
    %c0_i32_0 = arith.constant 0 : i32
    %c0_i32_1 = arith.constant 0 : i32
    %c0_i32_2 = arith.constant 0 : i32
    %c0_i32_3 = arith.constant 0 : i32
    return %c0_i32, %c0_i32_0, %c0_i32_1, %c0_i32_2 : i32, i32, i32, i32
  }
  func.func @transform_44(%arg0: i32) -> (i32, i32, i32, i32) {
    %c0_i32 = arith.constant 0 : i32
    %c0_i32_0 = arith.constant 0 : i32
    %c0_i32_1 = arith.constant 0 : i32
    %c0_i32_2 = arith.constant 0 : i32
    %c0_i32_3 = arith.constant 0 : i32
    return %c0_i32, %c0_i32_0, %c0_i32_1, %c0_i32_2 : i32, i32, i32, i32
  }
  func.func @transform_45(%arg0: i32) -> (i32, i32, i32, i32) {
    %c0_i32 = arith.constant 0 : i32
    %c0_i32_0 = arith.constant 0 : i32
    %c0_i32_1 = arith.constant 0 : i32
    %c0_i32_2 = arith.constant 0 : i32
    %c0_i32_3 = arith.constant 0 : i32
    return %c0_i32, %c0_i32_0, %c0_i32_1, %c0_i32_2 : i32, i32, i32, i32
  }
  func.func @transform_46(%arg0: i32) -> (i32, i32) {
    %c0_i32 = arith.constant 0 : i32
    %c0_i32_0 = arith.constant 0 : i32
    %c0_i32_1 = arith.constant 0 : i32
    return %c0_i32, %c0_i32_0 : i32, i32
  }
  func.func @transform_47(%arg0: i32) -> (i32, i32, i32) {
    %c0_i32 = arith.constant 0 : i32
    %c0_i32_0 = arith.constant 0 : i32
    %c0_i32_1 = arith.constant 0 : i32
    return %arg0, %c0_i32, %c0_i32_0 : i32, i32, i32
  }
}

</mosaic_0001>

<bundles_post_ra>
// kernel: swin_forward.1
= control target key start
LH: loop header
LB: loop body
LE: loop exit
PB: predicated region body
PF: predicated region fallthrough
CT: control target
= control target key end

     0   :  { %s16619_s6 = smov 1   ;;  %s16620_s10 = smov 2   ;;  %s18988_s0 = inlined_call_operand.smem [shape: u32[48], index: -1, kind: input, shape index: {}] }
   0x1   :  { %s16685_s5 = sld [smem:[%s18988_s0]]   ;;  %s16621_s14 = smov 3  }
   0x2   :  { %s16690_s9 = sld [smem:[%s18988_s0 + %s16619_s6]]   ;;  %s16622_s18 = smov 4  }
   0x3   :  { %s16695_s13 = sld [smem:[%s18988_s0 + %s16620_s10]]   ;;  %s16623_s22 = smov 5  }
   0x4   :  { %s16700_s17 = sld [smem:[%s18988_s0 + %s16621_s14]]   ;;  %s16624_s26 = smov 6  }
   0x5   :  { %s16705_s21 = sld [smem:[%s18988_s0 + %s16622_s18]]   ;;  %s16625_s30 = smov 7  }
   0x6   :  { %s16710_s25 = sld [smem:[%s18988_s0 + %s16623_s22]]   ;;  %s16626_s4 = smov 8  }
   0x7   :  { %19056 = sst [smem:[#allocation19_spill]] %s16685_s5  ;;  %s16627_s10 = smov 9  }
   0x8   :  { %19057 = sst [smem:[#allocation20_spill]] %s16690_s9  ;;  %s16628_s15 = smov 10  }
   0x9   :  { %19058 = sst [smem:[#allocation21_spill]] %s16695_s13  ;;  %s16629_s20 = smov 11  }
   0xa   :  { %19059 = sst [smem:[#allocation22_spill]] %s16700_s17  ;;  %s16631_s1 = smov 13  }
   0xb   :  { %19060 = sst [smem:[#allocation23_spill]] %s16705_s21  ;;  %s16632_s7 = smov 14  }
   0xc   :  { %19061 = sst [smem:[#allocation24_spill]] %s16710_s25  ;;  %s16634_s22 = smov 16  }
   0xd   :  { %s16715_s29 = sld [smem:[%s18988_s0 + %s16624_s26]]   ;;  %s16630_s26 = smov 12  }
   0xe   :  { %s16720_s3 = sld [smem:[%s18988_s0 + %s16625_s30]]   ;;  %s16635_s28 = smov 17  }
   0xf   :  { %s16725_s8 = sld [smem:[%s18988_s0 + %s16626_s4]]  }
  0x10   :  { %s16730_s14 = sld [smem:[%s18988_s0 + %s16627_s10]]  }
  0x11   :  { %s16735_s19 = sld [smem:[%s18988_s0 + %s16628_s15]]   ;;  %s16633_s15 = smov 15  }
  0x12   :  { %s16740_s24 = sld [smem:[%s18988_s0 + %s16629_s20]]  }
  0x13   :  { %19062 = sst [smem:[#allocation25_spill]] %s16715_s29 }
  0x14   :  { %19063 = sst [smem:[#allocation26_spill]] %s16720_s3 }
  0x15   :  { %19064 = sst [smem:[#allocation27_spill]] %s16725_s8 }
  0x16   :  { %19065 = sst [smem:[#allocation28_spill]] %s16730_s14 }
  0x17   :  { %s16745_s30 = sld [smem:[%s18988_s0 + %s16630_s26]]  }
  0x18   :  { %s16750_s6 = sld [smem:[%s18988_s0 + %s16631_s1]]  }
  0x19   :  { %s16755_s12 = sld [smem:[%s18988_s0 + %s16632_s7]]   ;;  %s16636_s7 = smov 18  }
  0x1a   :  { %s16760_s20 = sld [smem:[%s18988_s0 + %s16633_s15]]   ;;  %s16637_s15 = smov 19  }
  0x1b   :  { %s16765_s27 = sld [smem:[%s18988_s0 + %s16634_s22]]   ;;  %s16638_s22 = smov 20  }
  0x1c   :  { %s16770_s4 = sld [smem:[%s18988_s0 + %s16635_s28]]   ;;  %s16639_s28 = smov 21  }
  0x1d   :  { %19066 = sst [smem:[#allocation29_spill]] %s16745_s30 }
  0x1e   :  { %19067 = sst [smem:[#allocation30_spill]] %s16750_s6 }
  0x1f   :  { %19068 = sst [smem:[#allocation31_spill]] %s16755_s12 }
  0x20   :  { %19069 = sst [smem:[#allocation32_spill]] %s16760_s20 }
  0x21   :  { %19070 = sst [smem:[#allocation33_spill]] %s16765_s27 }
  0x22   :  { %19071 = sst [smem:[#allocation34_spill]] %s16770_s4 }
  0x23   :  { %s16775_s13 = sld [smem:[%s18988_s0 + %s16636_s7]]   ;;  %s16640_s7 = smov 22  }
  0x24   :  { %s16780_s17 = sld [smem:[%s18988_s0 + %s16637_s15]]   ;;  %s16641_s15 = smov 23  }
  0x25   :  { %s16785_s25 = sld [smem:[%s18988_s0 + %s16638_s22]]   ;;  %s16642_s22 = smov 24  }
  0x26   :  { %s16790_s21 = sld [smem:[%s18988_s0 + %s16639_s28]]   ;;  %s16643_s28 = smov 25  }
  0x27   :  { %s16800_s27 = sld [smem:[%s18988_s0 + %s16641_s15]]   ;;  %s16645_s15 = smov 27  }
  0x28   :  { %s16810_s4 = sld [smem:[%s18988_s0 + %s16643_s28]]   ;;  %s16647_s28 = smov 29  }
  0x29   :  { %19072 = sst [smem:[#allocation35_spill]] %s16775_s13 }
  0x2a   :  { %19073 = sst [smem:[#allocation36_spill]] %s16780_s17 }
  0x2b   :  { %s16795_s13 = sld [smem:[%s18988_s0 + %s16640_s7]]   ;;  %s16644_s7 = smov 26  }
  0x2c   :  { %s16805_s17 = sld [smem:[%s18988_s0 + %s16642_s22]]   ;;  %s16646_s22 = smov 28  }
  0x2d   :  { %19075 = sst [smem:[#allocation38_spill]] %s16800_s27 }
  0x2e   :  { %19077 = sst [smem:[#allocation40_spill]] %s16810_s4 }
  0x2f   :  { %s16820_s27 = sld [smem:[%s18988_s0 + %s16645_s15]]   ;;  %s16649_s15 = smov 31  }
  0x30   :  { %s16830_s4 = sld [smem:[%s18988_s0 + %s16647_s28]]   ;;  %s16651_s28 = smov 33  }
  0x31   :  { %19074 = sst [smem:[#allocation37_spill]] %s16795_s13 }
  0x32   :  { %19076 = sst [smem:[#allocation39_spill]] %s16805_s17 }
  0x33   :  { %s16815_s13 = sld [smem:[%s18988_s0 + %s16644_s7]]   ;;  %s16648_s7 = smov 30  }
  0x34   :  { %s16825_s17 = sld [smem:[%s18988_s0 + %s16646_s22]]   ;;  %s16650_s22 = smov 32  }
  0x35   :  { %s16835_s30 = sld [smem:[%s18988_s0 + %s16648_s7]]   ;;  %s16652_s7 = smov 34  }
  0x36   :  { %19080 = sst [smem:[#allocation43_spill]] %s16830_s4 }
  0x37   :  { %s16840_s20 = sld [smem:[%s18988_s0 + %s16649_s15]]   ;;  %s16653_s15 = smov 35  }
  0x38   :  { %s16845_s12 = sld [smem:[%s18988_s0 + %s16650_s22]]   ;;  %s16654_s22 = smov 36  }
  0x39   :  { %19078 = sst [smem:[#allocation41_spill]] %s16815_s13 }
  0x3a   :  { %19079 = sst [smem:[#allocation42_spill]] %s16825_s17 }
  0x3b   :  { %19081 = sst [smem:[#allocation44_spill]] %s16835_s30 }
  0x3c   :  { %s16850_s4 = sld [smem:[%s18988_s0 + %s16651_s28]]   ;;  %s16655_s28 = smov 37  }
  0x3d   :  { %19082 = sst [smem:[#allocation45_spill]] %s16840_s20 }
  0x3e   :  { %19083 = sst [smem:[#allocation46_spill]] %s16845_s12 }
  0x3f   :  { %s16855_s30 = sld [smem:[%s18988_s0 + %s16652_s7]]   ;;  %s16656_s7 = smov 38  }
  0x40   :  { %s16860_s20 = sld [smem:[%s18988_s0 + %s16653_s15]]   ;;  %s16657_s15 = smov 39  }
  0x41   :  { %s16865_s12 = sld [smem:[%s18988_s0 + %s16654_s22]]   ;;  %s16658_s22 = smov 40  }
  0x42   :  { %19084 = sst [smem:[#allocation47_spill]] %s16850_s4 }
  0x43   :  { %s16870_s4 = sld [smem:[%s18988_s0 + %s16655_s28]]   ;;  %s16659_s28 = smov 41  }
  0x45   :  { %19085 = sst [smem:[#allocation48_spill]] %s16855_s30 }
  0x46   :  { %19086 = sst [smem:[#allocation49_spill]] %s16860_s20 }
  0x47   :  { %19087 = sst [smem:[#allocation50_spill]] %s16865_s12 }
  0x48   :  { %s16875_s30 = sld [smem:[%s18988_s0 + %s16656_s7]]   ;;  %s16660_s7 = smov 42  }
  0x49   :  { %19088 = sst [smem:[#allocation51_spill]] %s16870_s4 }
  0x4a   :  { %s16880_s20 = sld [smem:[%s18988_s0 + %s16657_s15]]   ;;  %s16661_s15 = smov 43  }
  0x4b   :  { %s16885_s12 = sld [smem:[%s18988_s0 + %s16658_s22]]   ;;  %s16662_s22 = smov 44  }
  0x4c   :  { %s16890_s4 = sld [smem:[%s18988_s0 + %s16659_s28]]   ;;  %s16663_s28 = smov 45  }
  0x4e   :  { %19089 = sst [smem:[#allocation52_spill]] %s16875_s30 }
  0x4f   :  { %s16895_s30 = sld [smem:[%s18988_s0 + %s16660_s7]]   ;;  %s16664_s7 = smov 46  }
  0x50   :  { %19090 = sst [smem:[#allocation53_spill]] %s16880_s20 }
  0x51   :  { %19091 = sst [smem:[#allocation54_spill]] %s16885_s12 }
  0x52   :  { %19092 = sst [smem:[#allocation55_spill]] %s16890_s4 }
  0x53   :  { %s16900_s20 = sld [smem:[%s18988_s0 + %s16661_s15]]   ;;  %s16665_s15 = smov 47  }
  0x54   :  { %s16905_s12 = sld [smem:[%s18988_s0 + %s16662_s22]]  }
  0x55   :  { %19093 = sst [smem:[#allocation56_spill]] %s16895_s30 }
  0x56   :  { %s16910_s4 = sld [smem:[%s18988_s0 + %s16663_s28]]  }
  0x57   :  { %s16915_s30 = sld [smem:[%s18988_s0 + %s16664_s7]]  }
  0x59   :  { %19094 = sst [smem:[#allocation57_spill]] %s16900_s20 }
  0x5a   :  { %s16920_s20 = sld [smem:[%s18988_s0 + %s16665_s15]]  }
  0x5c   :  { %19095 = sst [smem:[#allocation58_spill]] %s16910_s4 }
  0x5d   :  { %100 = vsyncpa [#allocation3], 0 }
  0x5e   :  { %101 = vsyncpa [#allocation6], 0 }
  0x5f   :  { %102 = vsyncpa [#allocation9], 0 }
  0x60   :  { %103 = vsyncpa [#allocation12], 0 }
  0x61   :  { %104 = vsyncpa [#allocation4], 0 }
  0x62   :  { %106 = vsyncpa [#allocation4 + $0x1], 0  ;;  %s16922_s22 = smov 0   ;;  %s16924_s23 = smov 0  }
  0x63   :  { %s16926_s26 = smov 0   ;;  %s16928_s28 = smov 0  }
  0x64 LB: > { %s19096_s4 = sld [smem:[#allocation58_spill]]  ;;  %s19098_s14 = sld [smem:[#allocation28_spill]]  ;;  %s16605_s22 = sphi %s16922_s22, %s19183_s22   ;;  %s16617_s28 = sphi %s16928_s28, %s19180_s28   ;;  %s16613_s26 = sphi %s16926_s26, %s19182_s26   ;;  %s16609_s23 = sphi %s16924_s23, %s19184_s23  }
  0x65   : > { %s19097_s17 = sld [smem:[#allocation42_spill]]  ;;  %s19099_s13 = sld [smem:[#allocation41_spill]] }
  0x66   : > { %s19100_s9 = sld [smem:[#allocation20_spill]]  ;;  %s19101_s6 = sld [smem:[#allocation30_spill]] }
  0x67   : > { %s19102_s3 = sld [smem:[#allocation26_spill]]  ;;  %s19103_s29 = sld [smem:[#allocation25_spill]] }
  0x68   : > { %s19104_s8 = sld [smem:[#allocation27_spill]]  ;;  %19105 = sst [smem:[#allocation59_spill]] %s16605_s22 }
  0x69   : > { %19106 = sst [smem:[#allocation60_spill]] %s16613_s26  ;;  %s16943_s0 = sadd.s32 4294967295, %s16617_s28  }
  0x6a   : > { %s12659_s1 = sadd.s32 4294967294, %s16617_s28   ;;  %s16947_s2 = sadd.s32 1, %s16617_s28  }
  0x6b   : > { %19107 = sst [smem:[#allocation61_spill]] %s16947_s2  ;;  %s1111_s7 = sadd.s32 1, %s16613_s26 }
  0x6c   : > { %s1108_s10 = ssub.s32 %s16617_s28, %s16947_s2  ;;  %p1121_p0 = scmp.ne.s32.totalorder %s16613_s26, %s16609_s23 }
  0x6d   : > { %p1109_p1 = scmp.eq.s32.totalorder %s1108_s10, 0  ;;  %p1122_p2 = scmp.eq.s32.totalorder %s16943_s0, 1 }
  0x6e   : > { %p1127_p3 = scmp.ne.s32.totalorder %s16609_s23, %s16605_s22  ;;  %p1128_p4 = scmp.eq.s32.totalorder %s12659_s1, 1 }
  0x6f   : > { %s16958_s11 = scalar_select %p1109_p1, %s16613_s26, %s1111_s7  }
  0x70   : > { %p16960_p5 = por %p1122_p2, %p1121_p0  ;;  %p16964_p6 = por %p1128_p4, %p1127_p3 }
  0x71   : > { %19108 = sst [smem:[#allocation62_spill]] %s16958_s11  ;;  %p12660_p7 = scmp.ge.s32.totalorder %s16617_s28, 1 }
  0x72   : > { %s19109_s15 = scalar_select %p16960_p5, 1, 0 }
  0x73   : > { %s19110_s16 = scalar_select %p16964_p6, 1, 0 }
  0x74   : > { %p1135_p8 = scmp.lt.s32.totalorder %s16617_s28, 3  ;;  %p19024_p9 = scmp.eq.s32.totalorder %s16943_s0, 0 }
  0x75   : > { %19111 = sst [smem:[#allocation63_spill]] %s19110_s16  ;;  %s16666_s1 = smov [#allocation5]  }
  0x76   : > { %p16971_p10 = pnand %p12660_p7, %p1135_p8  ;;  %s1171_s7 = sshll.u32 %s16666_s1, 4  ;;  %s1172_s7 = int_to_ptr.vmem [resolvable:$true] %s1171_s7 }
  0x77   : > { %s16667_s10 = smov [#allocation8]   ;;  %s16668_s2 = smov [#allocation2]  }
  0x78   : > { %s19112_s18 = scalar_select %p16971_p10, 1, 0 }
  0x79   : > { %p15910_p11 = pneg %p16971_p10  ;;  %s1193_s11 = sshll.u32 %s16667_s10, 4  ;;  %s16983_s11 = int_to_ptr.vmem [resolvable:$true] %s1193_s11 }
  0x7a   : > { %s1148_s16 = sshll.u32 %s16668_s2, 4  ;;  %s16371_s22 = scalar_lea.hbm %s19103_s29, 16  ;;  %s16985_s16 = int_to_ptr.vmem [resolvable:$true] %s1148_s16 }
  0x7b   : > { %p16979_p12 = pnand %p19024_p9, %p15910_p11  ;;  %p16372_p13 = scmp.ne.s32.totalorder %s19103_s29, %s16371_s22 }
  0x7c   : > { %p16378_p3 = scmp.lt.u32.totalorder %s16371_s22, %s19103_s29 }
  0x7d   : > { %p16991_p0 = pneg %p16979_p12 }
  0x7f   : > { %p16374_p1 = pnand %p16991_p0, %p16372_p13 }
  0x81   : > { %p16375_p2 = pneg %p16374_p1 }
  0x83   : > { %p16380_p4 = pnand %p16378_p3, %p16375_p2 }
  0x85   : > { %16383 = shalt.err (!%p16380_p4)
}
  0x86   : > { %s16384_s10 = scalar_lea.vmem %s1172_s7, 16  ;;  %s16391_s2 = scalar_lea.vmem %s1172_s7, 32 }
  0x87   : > { %p16385_p7 = scmp.ne.s32.totalorder %s1172_s7, %s16384_s10  ;;  %p16392_p9 = scmp.lt.s32.totalorder %s1172_s7, %s1172_s7 }
  0x88   : > { %p16393_p6 = scmp.lt.s32.totalorder %s16391_s2, %s16384_s10 }
  0x89   : > { %p16387_p8 = pnand %p16385_p7, %p16991_p0 }
  0x8a   : > { %p16394_p5 = por %p16393_p6, %p16392_p9 }
  0x8b   : > { %p16388_p11 = pneg %p16387_p8 }
  0x8d   : > { %p16395_p10 = pnand %p16394_p5, %p16388_p11 }
  0x8f   : > { %16398 = shalt.err (!%p16395_p10)
}
  0x90   : > { %15916 = dma.hbm_to_vmem [thread:$0]  (!%p16979_p12), %s19103_s29, 16, %s1172_s7, [#allocation6]  }
  0x91   : > { %s16399_s22 = scalar_lea.hbm %s19104_s8, 16 }
  0x92   : > { %p16400_p13 = scmp.ne.s32.totalorder %s19104_s8, %s16399_s22  ;;  %p16406_p3 = scmp.lt.u32.totalorder %s16399_s22, %s19104_s8 }
  0x94   : > { %p16402_p1 = pnand %p16400_p13, %p16991_p0 }
  0x96   : > { %p16403_p2 = pneg %p16402_p1 }
  0x98   : > { %p16408_p4 = pnand %p16406_p3, %p16403_p2 }
  0x9a   : > { %16411 = shalt.err (!%p16408_p4)
}
  0x9b   : > { %s16412_s10 = scalar_lea.vmem %s16983_s11, 16  ;;  %s16419_s2 = scalar_lea.vmem %s16983_s11, 32 }
  0x9c   : > { %p16413_p5 = scmp.ne.s32.totalorder %s16983_s11, %s16412_s10  ;;  %p16420_p10 = scmp.lt.s32.totalorder %s16983_s11, %s16983_s11 }
  0x9d   : > { %p16421_p7 = scmp.lt.s32.totalorder %s16419_s2, %s16412_s10 }
  0x9e   : > { %p16415_p6 = pnand %p16413_p5, %p16991_p0 }
  0x9f   : > { %p16422_p8 = por %p16421_p7, %p16420_p10 }
  0xa0   : > { %p16416_p9 = pneg %p16415_p6 }
  0xa2   : > { %p16423_p11 = pnand %p16422_p8, %p16416_p9 }
  0xa4   : > { %16426 = shalt.err (!%p16423_p11)
}
  0xa5   : > { %15922 = dma.hbm_to_vmem [thread:$0]  (!%p16979_p12), %s19104_s8, 16, %s16983_s11, [#allocation9]  }
  0xa6   : > { %s16427_s7 = scalar_lea.hbm %s19100_s9, 16 }
  0xa7   : > { %p16428_p13 = scmp.ne.s32.totalorder %s19100_s9, %s16427_s7  ;;  %p16434_p3 = scmp.lt.u32.totalorder %s16427_s7, %s19100_s9 }
  0xa9   : > { %p16430_p1 = pnand %p16428_p13, %p16991_p0 }
  0xab   : > { %p16431_p2 = pneg %p16430_p1 }
  0xad   : > { %p16436_p4 = pnand %p16434_p3, %p16431_p2 }
  0xaf   : > { %16439 = shalt.err (!%p16436_p4)
}
  0xb0   : > { %s16440_s22 = scalar_lea.vmem %s16985_s16, 16  ;;  %s16447_s10 = scalar_lea.vmem %s16985_s16, 32 }
  0xb1   : > { %p16441_p5 = scmp.ne.s32.totalorder %s16985_s16, %s16440_s22  ;;  %p16448_p10 = scmp.lt.s32.totalorder %s16985_s16, %s16985_s16 }
  0xb2   : > { %p16449_p7 = scmp.lt.s32.totalorder %s16447_s10, %s16440_s22 }
  0xb3   : > { %p16443_p6 = pnand %p16441_p5, %p16991_p0 }
  0xb4   : > { %p16450_p8 = por %p16449_p7, %p16448_p10 }
  0xb5   : > { %p16444_p9 = pneg %p16443_p6 }
  0xb7   : > { %p16451_p11 = pnand %p16450_p8, %p16444_p9 }
  0xb9   : > { %16454 = shalt.err (!%p16451_p11)
}
  0xba   : > { %15913 = dma.hbm_to_vmem [thread:$0]  (!%p16979_p12), %s19100_s9, 16, %s16985_s16, [#allocation3]  }
  0xbb   : > { %s16669_s11 = smov [#allocation7]   ;;  %s16670_s7 = smov [#allocation10]  }
  0xbc   : > { %s1182_s2 = sshll.u32 %s16669_s11, 4  ;;  %s1204_s8 = sshll.u32 %s16670_s7, 4  ;;  %s1183_s2 = int_to_ptr.vmem [resolvable:$true] %s1182_s2  ;;  %s1205_s8 = int_to_ptr.vmem [resolvable:$true] %s1204_s8 }
  0xbd   : > { %s16455_s29 = scalar_lea.hbm %s19102_s3, 16 }
  0xbe   : > { %p16456_p13 = scmp.ne.s32.totalorder %s19102_s3, %s16455_s29  ;;  %p16462_p3 = scmp.lt.u32.totalorder %s16455_s29, %s19102_s3 }
  0xc0   : > { %p16458_p1 = pnand %p16456_p13, %p16991_p0 }
  0xc2   : > { %p16459_p2 = pneg %p16458_p1 }
  0xc4   : > { %p16464_p4 = pnand %p16462_p3, %p16459_p2 }
  0xc6   : > { %16467 = shalt.err (!%p16464_p4)
}
  0xc7   : > { %s16468_s22 = scalar_lea.vmem %s1183_s2, 16  ;;  %s16475_s16 = scalar_lea.vmem %s1183_s2, 32 }
  0xc8   : > { %p16469_p5 = scmp.ne.s32.totalorder %s1183_s2, %s16468_s22  ;;  %p16476_p10 = scmp.lt.s32.totalorder %s1183_s2, %s1183_s2 }
  0xc9   : > { %p16477_p7 = scmp.lt.s32.totalorder %s16475_s16, %s16468_s22 }
  0xca   : > { %p16471_p6 = pnand %p16469_p5, %p16991_p0 }
  0xcb   : > { %p16478_p8 = por %p16477_p7, %p16476_p10 }
  0xcc   : > { %p16472_p9 = pneg %p16471_p6 }
  0xce   : > { %p16479_p11 = pnand %p16478_p8, %p16472_p9 }
  0xd0   : > { %16482 = shalt.err (!%p16479_p11)
}
  0xd1   : > { %15919 = dma.hbm_to_vmem [thread:$0]  (!%p16979_p12), %s19102_s3, 16, %s1183_s2, [#allocation6]  }
  0xd2   : > { %s16483_s29 = scalar_lea.hbm %s19098_s14, 16 }
  0xd3   : > { %p16484_p13 = scmp.ne.s32.totalorder %s19098_s14, %s16483_s29  ;;  %p16490_p3 = scmp.lt.u32.totalorder %s16483_s29, %s19098_s14 }
  0xd5   : > { %p16486_p1 = pnand %p16484_p13, %p16991_p0 }
  0xd7   : > { %p16487_p2 = pneg %p16486_p1 }
  0xd9   : > { %p16492_p4 = pnand %p16490_p3, %p16487_p2 }
  0xdb   : > { %16495 = shalt.err (!%p16492_p4)
}
  0xdc   : > { %s16496_s10 = scalar_lea.vmem %s1205_s8, 16  ;;  %s16503_s11 = scalar_lea.vmem %s1205_s8, 32 }
  0xdd   : > { %p16497_p5 = scmp.ne.s32.totalorder %s1205_s8, %s16496_s10  ;;  %p16504_p10 = scmp.lt.s32.totalorder %s1205_s8, %s1205_s8 }
  0xde   : > { %p16505_p7 = scmp.lt.s32.totalorder %s16503_s11, %s16496_s10 }
  0xdf   : > { %p16499_p6 = pnand %p16497_p5, %p16991_p0 }
  0xe0   : > { %p16506_p8 = por %p16505_p7, %p16504_p10 }
  0xe1   : > { %p16500_p9 = pneg %p16499_p6 }
  0xe3   : > { %p16507_p11 = pnand %p16506_p8, %p16500_p9 }
  0xe5   : > { %16510 = shalt.err (!%p16507_p11)
}
  0xe6   : > { %15925 = dma.hbm_to_vmem [thread:$0]  (!%p16979_p12), %s19098_s14, 16, %s1205_s8, [#allocation9]  }
  0xe7   : > { %s16671_s2 = smov [#allocation11]   ;;  %s16511_s22 = scalar_lea.hbm %s16735_s19, 16 }
  0xe8   : > { %s1215_s7 = sshll.u32 %s16671_s2, 4  ;;  %p16512_p13 = scmp.ne.s32.totalorder %s16735_s19, %s16511_s22  ;;  %s1216_s7 = int_to_ptr.vmem [resolvable:$true] %s1215_s7 }
  0xe9   : > { %p16518_p3 = scmp.lt.u32.totalorder %s16511_s22, %s16735_s19 }
  0xea   : > { %p16514_p1 = pnand %p16512_p13, %p16991_p0 }
  0xec   : > { %p16515_p2 = pneg %p16514_p1 }
  0xee   : > { %p16520_p4 = pnand %p16518_p3, %p16515_p2 }
  0xf0   : > { %16523 = shalt.err (!%p16520_p4)
}
  0xf1   : > { %s16524_s16 = scalar_lea.vmem %s1216_s7, 16  ;;  %s16531_s29 = scalar_lea.vmem %s1216_s7, 32 }
  0xf2   : > { %p16525_p5 = scmp.ne.s32.totalorder %s1216_s7, %s16524_s16  ;;  %p16532_p10 = scmp.lt.s32.totalorder %s1216_s7, %s1216_s7 }
  0xf3   : > { %p16533_p7 = scmp.lt.s32.totalorder %s16531_s29, %s16524_s16 }
  0xf4   : > { %p16527_p6 = pnand %p16525_p5, %p16991_p0 }
  0xf5   : > { %p16534_p8 = por %p16533_p7, %p16532_p10 }
  0xf6   : > { %p16528_p9 = pneg %p16527_p6 }
  0xf8   : > { %p16535_p11 = pnand %p16534_p8, %p16528_p9 }
  0xfa   : > { %16538 = shalt.err (!%p16535_p11)
}
  0xfb   : > { %15928 = dma.hbm_to_vmem [thread:$0]  (!%p16979_p12), %s16735_s19, 16, %s1216_s7, [#allocation12]  }
  0xfc   : > { %p19115_p13 = scmp.ne.s32.totalorder %s19112_s18, 0 }
  0xfd   : > { %p19116_p1 = scmp.eq.s32.totalorder (!%p19115_p13), %s16943_s0, 0 }
  0xfe   : > { %1344 = sbr.rel (%p19115_p13) target bundleno = 18345 (0x47a9), region = 208 }
 0x105   : > { %16584 = dma.done.wait (%p19116_p1), [#allocation3], 16   ;;  %p19117_p2 = pmov %p19116_p1 }
 0x106   : > { %p19118_p0 = pmov %p19116_p1 }
 0x107   : > { %16586 = vsyncadd (%p19117_p2), [#allocation3], 4294967280 }
 0x108   : > { %16588 = dma.done.wait (%p19118_p0), [#allocation6], 32   ;;  %p19119_p3 = pmov %p19118_p0 }
 0x109   : > { %p19120_p4 = pmov %p19118_p0 }
 0x10a   : > { %16590 = vsyncadd (%p19119_p3), [#allocation6], 4294967264 }
 0x10b   : > { %16592 = dma.done.wait (%p19120_p4), [#allocation9], 32   ;;  %p19121_p12 = pmov %p19118_p0 }
 0x10c   : > { %p19122_p5 = pmov %p19118_p0 }
 0x10d   : > { %16594 = vsyncadd (%p19121_p12), [#allocation9], 4294967264 }
 0x10e   : > { %16596 = dma.done.wait (%p19122_p5), [#allocation12], 16   ;;  %p19123_p6 = pmov %p19118_p0 }
 0x10f   : > { %s19124_s5 = sld [smem:[#allocation19_spill]]  ;;  %p1475_p9 = scmp.lt.s32.totalorder %s16943_s0, 1  ;;  %vm1522_vm0 = vcmask 1043456   ;;  %vm1497_vm1 = vcmask 97280   ;;  %vm16672_vm2 = vmmov 1   ;;  %v1488_v0 = vld [vmem:[%s16740_s24] sm:$0xff] }
 0x110   : > { %16598 = vsyncadd (%p19123_p6), [#allocation12], 4294967280  ;;  %v1489_v1 = vld [vmem:[%s16740_s24 + $0x8] sm:$0xf]  ;;  %v12677_v11 = vld [vmem:[#allocation8] ss:$0 sm:$0xff] }
 0x111   : > { %s1476_s8 = scalar_select %p1475_p9, %s16943_s0, 1  ;;  %vm15205_vm3 = vmpackc.low %vm1522_vm0, %vm16672_vm2  ;;  %v15204_v3 = vpack.c.bf16 %v1489_v1, %v1488_v0  ;;  %vm1633_vm4 = vcmask 130048   ;;  %vm2275_vm5 = vcmask 64512   ;;  %vm2429_vm7 = vcmask 523264  }
 0x112   : > { %s19125_s1 = sld [smem:[#allocation31_spill]]  ;;  %vm17325_vm6 = vmpackc.low %vm2275_vm5, %vm2275_vm5  ;;  %s19128_s10 = sld [smem:[#allocation32_spill]]  ;;  %vm4013_vm8 = vcmask 261120   ;;  %vm16674_vm9 = vmmov 0   ;;  %vm12482_vm10 = vcmask 253952  }
 0x113   : > { %s13389_s26 = sshll.u32 %s1476_s8, 6  ;;  %15206 = vmatprep.subr.msk.bf16.mxu0 %vm15205_vm3, %v15204_v3  ;;  %15848 = vmatprep.subr.msk.bf16.mxu1 %vm15205_vm3, %v15204_v3  ;;  %s19129_s11 = sld [smem:[#allocation29_spill]] }
 0x114   : > { %15209 = vmatpush3.bf16.msk.msra.mxu0 %vm15205_vm3, %v15204_v3  ;;  %15849 = vmatpush3.bf16.msk.msra.mxu1 %vm15205_vm3, %v15204_v3  ;;  %s19130_s2 = sld [smem:[#allocation40_spill]]  ;;  %s19131_s7 = sld [smem:[#allocation39_spill]] }
 0x115   : > { %s1479_s18 = scalar_lea.vmem %s19124_s5, %s13389_s26  ;;  %s19132_s22 = sld [smem:[#allocation34_spill]] }
 0x116   : > { %v1480_v2 = vld [vmem:[%s1479_s18] sm:$0xff]  ;;  %v1486_v4 = vld [vmem:[%s1479_s18 + $0x30] sm:$0xff]  ;;  %v1481_v5 = vld [vmem:[%s1479_s18 + $0x8] sm:$0xff]  ;;  %s19134_s29 = sld [smem:[#allocation38_spill]]  ;;  %s19135_s8 = sld [smem:[#allocation37_spill]] }
 0x117   : > { %14057 = vmatprep.mubr.msk.f32.mxu0 %vm1497_vm1, %v1480_v2  ;;  %v1487_v6 = vld [vmem:[%s1479_s18 + $0x38] sm:$0xff]  ;;  %v1482_v7 = vld [vmem:[%s1479_s18 + $0x10] sm:$0xff]  ;;  %14066 = vmatprep.mubr.msk.f32.mxu1 %vm1497_vm1, %v1486_v4  ;;  %v1484_v9 = vld [vmem:[%s1479_s18 + $0x20] sm:$0xff]  ;;  %s19136_s26 = sld [smem:[#allocation36_spill]]  ;;  %s19170_s14 = sld [smem:[#allocation53_spill]] }
 0x118   : > { %14058 = vmatmul.mubr.msk.f32.vlgmr.msra.gmra.mrb[0].mxu0 %vm1497_vm1, %v1481_v5  ;;  %14067 = vmatmul.mubr.msk.f32.vlgmr.msra.gmra.mrb[0].mxu1 %vm1497_vm1, %v1487_v6  ;;  %v1483_v8 = vld [vmem:[%s1479_s18 + $0x18] sm:$0xff]  ;;  %v1485_v10 = vld [vmem:[%s1479_s18 + $0x28] sm:$0xff]  ;;  %p19176_p7 = scmp.ne.s32.totalorder %s19109_s15, 0 }
 0x119   : > { %14060 = vmatprep.mubr.msk.f32.mxu0 %vm1497_vm1, %v1482_v7 }
 0x11b   : > { %s19133_s16 = smov %s19132_s22 }
 0x11c   : > { %14061 = vmatmul.mubr.msk.f32.gmra.mrb[2].mxu0 %vm1497_vm1, %v1483_v8 }
 0x11d   : > { %14063 = vmatprep.mubr.msk.f32.mxu0 %vm1497_vm1, %v1484_v9  ;;  %s19137_s18 = smov %s19136_s26 }
 0x120   : > { %14064 = vmatmul.mubr.msk.f32.gmra.mrb[4].mxu0 %vm1497_vm1, %v1485_v10 }
 0x1eb   : > { %v14059_v12 = vpop.f32.mrb[0].mxu0  ;;  %v14068_v13 = vpop.f32.mrb[0].mxu1 }
 0x1ec   : > { %v1592_v14 = vpop.f32.mrb[1].mxu0  ;;  %v1622_v15 = vpop.f32.mrb[1].mxu1  ;;  %v1598_v17 = vadd.f32 %v14059_v12, %v12677_v11  ;;  %v1628_v32 = vadd.f32 %v14068_v13, %v12677_v11 }
 0x1ed   : > { %v1593_v16 = vadd.f32 %v12677_v11, %v1592_v14  ;;  %v1623_v29 = vadd.f32 %v12677_v11, %v1622_v15 }
 0x1ee   : > { %v1637_v25 = vsel %vm1633_vm4, %v1598_v17, 0.0  ;;  %v1655_v35 = vsel %vm1633_vm4, %v1628_v32, 0.0 }
 0x1ef   : > { %v14062_v18 = vpop.f32.mrb[2].mxu0  ;;  %v1634_v19 = vsel %vm1633_vm4, %v1593_v16, 0.0  ;;  %v1652_v34 = vsel %vm1633_vm4, %v1623_v29, 0.0 }
 0x1f0   : > { %v1602_v20 = vpop.f32.mrb[3].mxu0  ;;  %1635 = vadd.xlane.f32.xlu0 %v1634_v19  ;;  %v1608_v21 = vadd.f32 %v14062_v18, %v12677_v11 }
 0x1f1   : > { %v1603_v22 = vadd.f32 %v12677_v11, %v1602_v20 }
 0x1f2   : > { %v1643_v30 = vsel %vm1633_vm4, %v1608_v21, 0.0 }
 0x1f3   : > { %v14065_v23 = vpop.f32.mrb[4].mxu0  ;;  %v1640_v24 = vsel %vm1633_vm4, %v1603_v22, 0.0 }
 0x1f4   : > { %v1612_v26 = vpop.f32.mrb[5].mxu0  ;;  %1641 = vadd.xlane.f32.xlu1 %v1640_v24  ;;  %1638 = vadd.xlane.f32.xlu0 %v1637_v25  ;;  %v1618_v27 = vadd.f32 %v14065_v23, %v12677_v11 }
 0x1f5   : > { %v1613_v28 = vadd.f32 %v12677_v11, %v1612_v26 }
 0x1f6   : > { %v1649_v33 = vsel %vm1633_vm4, %v1618_v27, 0.0 }
 0x1f7   : > { %v1646_v31 = vsel %vm1633_vm4, %v1613_v28, 0.0 }
 0x1f8   : > { %1644 = vadd.xlane.f32.xlu1 %v1643_v30  ;;  %1647 = vadd.xlane.f32.xlu0 %v1646_v31 }
 0x1fc   : > { %1650 = vadd.xlane.f32.xlu1 %v1649_v33  ;;  %1653 = vadd.xlane.f32.xlu0 %v1652_v34  ;;  %v12687_v34 = vld [vmem:[#allocation11] ss:$0 sm:$0xff] }
 0x200   : > { %1656 = vadd.xlane.f32.xlu1 %v1655_v35 }
 0x27d   : > { %v1636_v36 = vpop.xlane.xlu0 %1635 }
 0x27e   : > { %v1659_v37 = vmul.f32 0.0625, %v1636_v36 }
 0x280   : > { %v17104_v38 = vsub.f32 %v1593_v16, %v1659_v37 }
 0x281   : > { %v1642_v39 = vpop.xlane.xlu1 %1641  ;;  %v1639_v40 = vpop.xlane.xlu0 %1638 }
 0x282   : > { %v1661_v41 = vmul.f32 0.0625, %v1642_v39  ;;  %v1660_v42 = vmul.f32 0.0625, %v1639_v40  ;;  %v1675_v43 = vmul.f32 %v17104_v38, %v17104_v38  ;;  %v12688_v39 = vld [vmem:[#allocation10] ss:$0 sm:$0xff] }
 0x284   : > { %v17108_v44 = vsub.f32 %v1603_v22, %v1661_v41  ;;  %v17110_v45 = vsub.f32 %v1598_v17, %v1660_v42  ;;  %v1683_v46 = vsel %vm1633_vm4, %v1675_v43, 0.0 }
 0x285   : > { %v1645_v47 = vpop.xlane.xlu1 %1644  ;;  %1684 = vadd.xlane.f32.xlu0 %v1683_v46  ;;  %v1648_v48 = vpop.xlane.xlu0 %1647 }
 0x286   : > { %v1662_v49 = vmul.f32 0.0625, %v1645_v47  ;;  %v1663_v50 = vmul.f32 0.0625, %v1648_v48  ;;  %v1677_v51 = vmul.f32 %v17108_v44, %v17108_v44  ;;  %v1676_v52 = vmul.f32 %v17110_v45, %v17110_v45 }
 0x288   : > { %v17117_v53 = vsub.f32 %v1608_v21, %v1662_v49  ;;  %v17119_v54 = vsub.f32 %v1613_v28, %v1663_v50  ;;  %v1689_v55 = vsel %vm1633_vm4, %v1677_v51, 0.0  ;;  %v1686_v56 = vsel %vm1633_vm4, %v1676_v52, 0.0 }
 0x289   : > { %v1651_v57 = vpop.xlane.xlu1 %1650  ;;  %1690 = vadd.xlane.f32.xlu0 %v1689_v55  ;;  %1687 = vadd.xlane.f32.xlu1 %v1686_v56  ;;  %v1654_v58 = vpop.xlane.xlu0 %1653 }
 0x28a   : > { %v1664_v59 = vmul.f32 0.0625, %v1651_v57  ;;  %v1665_v60 = vmul.f32 0.0625, %v1654_v58  ;;  %v1678_v61 = vmul.f32 %v17117_v53, %v17117_v53  ;;  %v1679_v62 = vmul.f32 %v17119_v54, %v17119_v54 }
 0x28c   : > { %v17127_v63 = vsub.f32 %v1618_v27, %v1664_v59  ;;  %v17129_v0 = vsub.f32 %v1623_v29, %v1665_v60  ;;  %v1692_v1 = vsel %vm1633_vm4, %v1678_v61, 0.0  ;;  %v1695_v2 = vsel %vm1633_vm4, %v1679_v62, 0.0 }
 0x28d   : > { %v1657_v3 = vpop.xlane.xlu1 %1656  ;;  %1693 = vadd.xlane.f32.xlu1 %v1692_v1  ;;  %1696 = vadd.xlane.f32.xlu0 %v1695_v2 }
 0x28e   : > { %v1666_v4 = vmul.f32 0.0625, %v1657_v3  ;;  %v1680_v5 = vmul.f32 %v17127_v63, %v17127_v63  ;;  %v1681_v6 = vmul.f32 %v17129_v0, %v17129_v0 }
 0x290   : > { %v17137_v7 = vsub.f32 %v1628_v32, %v1666_v4  ;;  %v1698_v8 = vsel %vm1633_vm4, %v1680_v5, 0.0  ;;  %v1701_v9 = vsel %vm1633_vm4, %v1681_v6, 0.0 }
 0x291   : > { %1699 = vadd.xlane.f32.xlu1 %v1698_v8  ;;  %1702 = vadd.xlane.f32.xlu0 %v1701_v9 }
 0x292   : > { %v1682_v10 = vmul.f32 %v17137_v7, %v17137_v7 }
 0x294   : > { %v1704_v11 = vsel %vm1633_vm4, %v1682_v10, 0.0 }
 0x295   : > { %1705 = vadd.xlane.f32.xlu1 %v1704_v11 }
 0x312   : > { %v1685_v12 = vpop.xlane.xlu0 %1684 }
 0x313   : > { %v1707_v13 = vmul.f32 0.0625, %v1685_v12 }
 0x315   : > { %v1715_v14 = vadd.f32 1e-05, %v1707_v13 }
 0x316   : > { %v1688_v15 = vpop.xlane.xlu1 %1687  ;;  %v1691_v16 = vpop.xlane.xlu0 %1690 }
 0x317   : > { %16035 = vrsqrt.f32 %v1715_v14  ;;  %v1708_v17 = vmul.f32 0.0625, %v1688_v15  ;;  %v1709_v18 = vmul.f32 0.0625, %v1691_v16 }
 0x319   : > { %v1716_v19 = vadd.f32 1e-05, %v1708_v17  ;;  %v1717_v20 = vadd.f32 1e-05, %v1709_v18 }
 0x31a   : > { %v1694_v21 = vpop.xlane.xlu1 %1693  ;;  %v1697_v22 = vpop.xlane.xlu0 %1696 }
 0x31b   : > { %16037 = vrsqrt.f32 %v1716_v19  ;;  %v1710_v23 = vmul.f32 0.0625, %v1694_v21  ;;  %v1711_v24 = vmul.f32 0.0625, %v1697_v22 }
 0x31c   : > { %16039 = vrsqrt.f32 %v1717_v20 }
 0x31d   : > { %v1718_v25 = vadd.f32 1e-05, %v1710_v23  ;;  %v1719_v26 = vadd.f32 1e-05, %v1711_v24 }
 0x31e   : > { %v1700_v27 = vpop.xlane.xlu1 %1699  ;;  %v1703_v28 = vpop.xlane.xlu0 %1702 }
 0x31f   : > { %16041 = vrsqrt.f32 %v1718_v25  ;;  %v1712_v29 = vmul.f32 0.0625, %v1700_v27  ;;  %v1713_v30 = vmul.f32 0.0625, %v1703_v28 }
 0x320   : > { %16043 = vrsqrt.f32 %v1719_v26 }
 0x321   : > { %v16036_v31 = vpop.eup %16035  ;;  %v1720_v32 = vadd.f32 1e-05, %v1712_v29  ;;  %v1721_v33 = vadd.f32 1e-05, %v1713_v30 }
 0x322   : > { %v1706_v35 = vpop.xlane.xlu1 %1705  ;;  %v1731_v36 = vmul.f32 %v16036_v31, %v17104_v38 }
 0x323   : > { %16045 = vrsqrt.f32 %v1720_v32  ;;  %v1714_v37 = vmul.f32 0.0625, %v1706_v35 }
 0x324   : > { %16047 = vrsqrt.f32 %v1721_v33  ;;  %v1745_v40 = vmul.f32 %v12687_v34, %v1731_v36 }
 0x325   : > { %v16038_v41 = vpop.eup %16037  ;;  %v1722_v42 = vadd.f32 1e-05, %v1714_v37 }
 0x326   : > { %v16040_v43 = vpop.eup %16039  ;;  %v17145_v46 = vadd.f32 %v12688_v39, %v1745_v40  ;;  %v1732_v47 = vmul.f32 %v16038_v41, %v17110_v45 }
 0x327   : > { %16049 = vrsqrt.f32 %v1722_v42  ;;  %v1733_v48 = vmul.f32 %v16040_v43, %v17108_v44 }
 0x328   : > { %v1769_v49 = vsel %vm1633_vm4, %v17145_v46, 0.0  ;;  %v1746_v50 = vmul.f32 %v12687_v34, %v1732_v47 }
 0x329   : > { %v16042_v38 = vpop.eup %16041  ;;  %1770 = vadd.xlane.f32.xlu0 %v1769_v49  ;;  %v1747_v51 = vmul.f32 %v12687_v34, %v1733_v48 }
 0x32a   : > { %v16044_v52 = vpop.eup %16043  ;;  %v17151_v55 = vadd.f32 %v12688_v39, %v1746_v50  ;;  %v1734_v56 = vmul.f32 %v16042_v38, %v17117_v53 }
 0x32b   : > { %v17154_v57 = vadd.f32 %v12688_v39, %v1747_v51  ;;  %v1735_v58 = vmul.f32 %v16044_v52, %v17119_v54 }
 0x32c   : > { %v1772_v45 = vsel %vm1633_vm4, %v17151_v55, 0.0  ;;  %v1748_v44 = vmul.f32 %v12687_v34, %v1734_v56 }
 0x32d   : > { %v16046_v59 = vpop.eup %16045  ;;  %1773 = vadd.xlane.f32.xlu1 %v1772_v45  ;;  %v1775_v60 = vsel %vm1633_vm4, %v17154_v57, 0.0  ;;  %v1749_v61 = vmul.f32 %v12687_v34, %v1735_v58 }
 0x32e   : > { %v16048_v62 = vpop.eup %16047  ;;  %1776 = vadd.xlane.f32.xlu0 %v1775_v60  ;;  %v17161_v1 = vadd.f32 %v12688_v39, %v1748_v44  ;;  %v1736_v53 = vmul.f32 %v16046_v59, %v17127_v63  ;;  %v2039_v59 = vld [vmem:[%s19099_s13] sm:$0xff]  ;;  %v2040_v60 = vld [vmem:[%s19099_s13 + $0x8] sm:$0xff] }
 0x32f   : > { %v17164_v2 = vadd.f32 %v12688_v39, %v1749_v61  ;;  %v1737_v54 = vmul.f32 %v16048_v62, %v17129_v0  ;;  %v1901_v61 = vld [vmem:[%s16820_s27] sm:$0xff]  ;;  %v15214_v62 = vpack.c.bf16 %v2040_v60, %v2039_v59 }
 0x330   : > { %v1778_v3 = vsel %vm1633_vm4, %v17161_v1, 0.0  ;;  %v1750_v4 = vmul.f32 %v12687_v34, %v1736_v53  ;;  %v1902_v53 = vld [vmem:[%s16820_s27 + $0x8] sm:$0xff] }
 0x331   : > { %v16050_v5 = vpop.eup %16049  ;;  %1779 = vadd.xlane.f32.xlu1 %v1778_v3  ;;  %v1781_v6 = vsel %vm1633_vm4, %v17164_v2, 0.0  ;;  %v1751_v8 = vmul.f32 %v12687_v34, %v1737_v54  ;;  %v15210_v54 = vpack.c.bf16 %v1902_v53, %v1901_v61  ;;  %15215 = vmatprep.subr.bf16.mxu0 %v15214_v62  ;;  %v2153_v3 = vld [vmem:[%s19097_s17] sm:$0xff] }
 0x332   : > { %1782 = vadd.xlane.f32.xlu0 %v1781_v6  ;;  %v17171_v9 = vadd.f32 %v12688_v39, %v1750_v4  ;;  %v1738_v10 = vmul.f32 %v16050_v5, %v17137_v7  ;;  %15217 = vmatpush3.bf16.msra.mxu0 %v15214_v62  ;;  %v2154_v4 = vld [vmem:[%s19097_s17 + $0x8] sm:$0xff] }
 0x333   : > { %v17174_v63 = vadd.f32 %v12688_v39, %v1751_v8  ;;  %15211 = vmatprep.subr.bf16.mxu1 %v15210_v54  ;;  %v17238_v5 = vpack.c.bf16 %v2154_v4, %v2153_v3 }
 0x334   : > { %v1784_v0 = vsel %vm1633_vm4, %v17171_v9, 0.0  ;;  %v1752_v11 = vmul.f32 %v12687_v34, %v1738_v10  ;;  %15213 = vmatpush3.bf16.msra.mxu1 %v15210_v54 }
 0x335   : > { %1785 = vadd.xlane.f32.xlu1 %v1784_v0  ;;  %v1787_v12 = vsel %vm1633_vm4, %v17174_v63, 0.0  ;;  %15219 = vmatprep.subr.bf16.mxu1 %v17238_v5 }
 0x336   : > { %1788 = vadd.xlane.f32.xlu0 %v1787_v12  ;;  %v17180_v13 = vadd.f32 %v12688_v39, %v1752_v11 }
 0x338   : > { %v1790_v14 = vsel %vm1633_vm4, %v17180_v13, 0.0 }
 0x339   : > { %1791 = vadd.xlane.f32.xlu1 %v1790_v14 }
 0x3b6   : > { %v1771_v15 = vpop.xlane.xlu0 %1770 }
 0x3b7   : > { %v1793_v16 = vmul.f32 0.0625, %v1771_v15 }
 0x3b9   : > { %v17185_v7 = vsub.f32 %v17145_v46, %v1793_v16 }
 0x3ba   : > { %v1774_v17 = vpop.xlane.xlu1 %1773 }
 0x3bb   : > { %v1794_v18 = vmul.f32 0.0625, %v1774_v17  ;;  %v1777_v19 = vpop.xlane.xlu0 %1776  ;;  %v1809_v20 = vmul.f32 %v17185_v7, %v17185_v7 }
 0x3bc   : > { %v1795_v21 = vmul.f32 0.0625, %v1777_v19 }
 0x3bd   : > { %v17190_v22 = vsub.f32 %v17151_v55, %v1794_v18  ;;  %v1817_v23 = vsel %vm1633_vm4, %v1809_v20, 0.0 }
 0x3be   : > { %v17194_v24 = vsub.f32 %v17154_v57, %v1795_v21  ;;  %v1780_v25 = vpop.xlane.xlu1 %1779  ;;  %1818 = vadd.xlane.f32.xlu0 %v1817_v23 }
 0x3bf   : > { %v1796_v26 = vmul.f32 0.0625, %v1780_v25  ;;  %v1783_v27 = vpop.xlane.xlu0 %1782  ;;  %v1810_v28 = vmul.f32 %v17190_v22, %v17190_v22 }
 0x3c0   : > { %v1797_v29 = vmul.f32 0.0625, %v1783_v27  ;;  %v1811_v30 = vmul.f32 %v17194_v24, %v17194_v24 }
 0x3c1   : > { %v17201_v31 = vsub.f32 %v17161_v1, %v1796_v26  ;;  %v1820_v32 = vsel %vm1633_vm4, %v1810_v28, 0.0 }
 0x3c2   : > { %v17205_v33 = vsub.f32 %v17164_v2, %v1797_v29  ;;  %1821 = vadd.xlane.f32.xlu1 %v1820_v32  ;;  %v1786_v34 = vpop.xlane.xlu1 %1785  ;;  %v1823_v35 = vsel %vm1633_vm4, %v1811_v30, 0.0  ;;  %v12689_v30 = vld [vmem:[%s16790_s21] ss:$0 sm:$0xff] }
 0x3c3   : > { %v1798_v36 = vmul.f32 0.0625, %v1786_v34  ;;  %1824 = vadd.xlane.f32.xlu0 %v1823_v35  ;;  %v1789_v37 = vpop.xlane.xlu0 %1788  ;;  %v1812_v39 = vmul.f32 %v17201_v31, %v17201_v31 }
 0x3c4   : > { %v1799_v40 = vmul.f32 0.0625, %v1789_v37  ;;  %v1813_v41 = vmul.f32 %v17205_v33, %v17205_v33 }
 0x3c5   : > { %v17213_v42 = vsub.f32 %v17171_v9, %v1798_v36  ;;  %v1826_v43 = vsel %vm1633_vm4, %v1812_v39, 0.0  ;;  %v12690_v39 = vld [vmem:[%s16785_s25] ss:$0 sm:$0xff] }
 0x3c6   : > { %v17217_v47 = vsub.f32 %v17174_v63, %v1799_v40  ;;  %1827 = vadd.xlane.f32.xlu1 %v1826_v43  ;;  %v1792_v48 = vpop.xlane.xlu1 %1791  ;;  %v1829_v49 = vsel %vm1633_vm4, %v1813_v41, 0.0 }
 0x3c7   : > { %v1800_v50 = vmul.f32 0.0625, %v1792_v48  ;;  %1830 = vadd.xlane.f32.xlu0 %v1829_v49  ;;  %v1814_v38 = vmul.f32 %v17213_v42, %v17213_v42 }
 0x3c8   : > { %v1815_v51 = vmul.f32 %v17217_v47, %v17217_v47 }
 0x3c9   : > { %v17225_v52 = vsub.f32 %v17180_v13, %v1800_v50  ;;  %v1832_v56 = vsel %vm1633_vm4, %v1814_v38, 0.0 }
 0x3ca   : > { %1833 = vadd.xlane.f32.xlu1 %v1832_v56  ;;  %v1835_v58 = vsel %vm1633_vm4, %v1815_v51, 0.0 }
 0x3cb   : > { %1836 = vadd.xlane.f32.xlu0 %v1835_v58  ;;  %v1816_v45 = vmul.f32 %v17225_v52, %v17225_v52 }
 0x3cd   : > { %v1838_v44 = vsel %vm1633_vm4, %v1816_v45, 0.0 }
 0x3ce   : > { %1839 = vadd.xlane.f32.xlu1 %v1838_v44 }
 0x44b   : > { %v1819_v6 = vpop.xlane.xlu0 %1818 }
 0x44c   : > { %v1841_v8 = vmul.f32 0.0625, %v1819_v6 }
 0x44e   : > { %v1849_v10 = vadd.f32 1e-05, %v1841_v8 }
 0x44f   : > { %v1822_v0 = vpop.xlane.xlu1 %1821 }
 0x450   : > { %16051 = vrsqrt.f32 %v1849_v10  ;;  %v1842_v11 = vmul.f32 0.0625, %v1822_v0  ;;  %v1825_v12 = vpop.xlane.xlu0 %1824  ;;  %v12700_v10 = vld [vmem:[%s19101_s6] ss:$0 sm:$0xff] }
 0x451   : > { %v1843_v14 = vmul.f32 0.0625, %v1825_v12  ;;  %v17318_v0 = vld [vmem:[%s19125_s1] ss:$0 sm:$0xff] }
 0x452   : > { %v1850_v15 = vadd.f32 1e-05, %v1842_v11 }
 0x453   : > { %v1851_v16 = vadd.f32 1e-05, %v1843_v14  ;;  %v1828_v17 = vpop.xlane.xlu1 %1827 }
 0x454   : > { %16053 = vrsqrt.f32 %v1850_v15  ;;  %v1844_v18 = vmul.f32 0.0625, %v1828_v17  ;;  %v1831_v19 = vpop.xlane.xlu0 %1830 }
 0x455   : > { %16055 = vrsqrt.f32 %v1851_v16  ;;  %v1845_v20 = vmul.f32 0.0625, %v1831_v19 }
 0x456   : > { %v1852_v21 = vadd.f32 1e-05, %v1844_v18 }
 0x457   : > { %v1853_v23 = vadd.f32 1e-05, %v1845_v20  ;;  %v1834_v25 = vpop.xlane.xlu1 %1833 }
 0x458   : > { %16057 = vrsqrt.f32 %v1852_v21  ;;  %v1846_v26 = vmul.f32 0.0625, %v1834_v25  ;;  %v1837_v27 = vpop.xlane.xlu0 %1836 }
 0x459   : > { %16059 = vrsqrt.f32 %v1853_v23  ;;  %v1847_v28 = vmul.f32 0.0625, %v1837_v27 }
 0x45a   : > { %v16052_v29 = vpop.eup %16051  ;;  %v1854_v32 = vadd.f32 1e-05, %v1846_v26 }
 0x45b   : > { %v1865_v34 = vmul.f32 %v16052_v29, %v17185_v7  ;;  %v1855_v35 = vadd.f32 1e-05, %v1847_v28  ;;  %v1840_v36 = vpop.xlane.xlu1 %1839 }
 0x45c   : > { %16061 = vrsqrt.f32 %v1854_v32  ;;  %v1848_v37 = vmul.f32 0.0625, %v1840_v36 }
 0x45d   : > { %v1879_v40 = vmul.f32 %v12689_v30, %v1865_v34  ;;  %16063 = vrsqrt.f32 %v1855_v35 }
 0x45e   : > { %v16054_v41 = vpop.eup %16053  ;;  %v1856_v43 = vadd.f32 1e-05, %v1848_v37 }
 0x45f   : > { %v16056_v48 = vpop.eup %16055  ;;  %v1866_v49 = vmul.f32 %v16054_v41, %v17190_v22  ;;  %v17245_v50 = vadd.f32 %v12690_v39, %v1879_v40 }
 0x460   : > { %v1867_v38 = vmul.f32 %v16056_v48, %v17194_v24  ;;  %16065 = vrsqrt.f32 %v1856_v43 }
 0x461   : > { %v1880_v51 = vmul.f32 %v12689_v30, %v1866_v49  ;;  %14073 = vmatprep.mubr.msk.f32.mxu1 %vm1633_vm4, %v17245_v50  ;;  %14089 = vmatprep.mubr.msk.f32.mxu0 %vm1633_vm4, %v17245_v50 }
 0x462   : > { %v16058_v7 = vpop.eup %16057  ;;  %v1881_v56 = vmul.f32 %v12689_v30, %v1867_v38 }
 0x463   : > { %v16060_v58 = vpop.eup %16059  ;;  %v1868_v45 = vmul.f32 %v16058_v7, %v17201_v31  ;;  %v17253_v44 = vadd.f32 %v12690_v39, %v1880_v51  ;;  %v12709_v51 = vld [vmem:[%s19128_s10] ss:$0 sm:$0xff] }
 0x464   : > { %v1869_v22 = vmul.f32 %v16060_v58, %v17205_v33  ;;  %v17256_v59 = vadd.f32 %v12690_v39, %v1881_v56 }
 0x465   : > { %v1882_v24 = vmul.f32 %v12689_v30, %v1868_v45  ;;  %14074 = vmatmul.mubr.msk.f32.vlgmr.msra.gmra.mrb[2].mxu1 %vm1633_vm4, %v17253_v44  ;;  %14090 = vmatmul.mubr.msk.f32.vlgmr.msra.gmra.mrb[6].mxu0 %vm1633_vm4, %v17253_v44 }
 0x466   : > { %v16062_v60 = vpop.eup %16061  ;;  %v1883_v61 = vmul.f32 %v12689_v30, %v1869_v22  ;;  %14076 = vmatprep.mubr.msk.f32.mxu1 %vm1633_vm4, %v17256_v59  ;;  %14092 = vmatprep.mubr.msk.f32.mxu0 %vm1633_vm4, %v17256_v59 }
 0x467   : > { %v16064_v31 = vpop.eup %16063  ;;  %v1870_v33 = vmul.f32 %v16062_v60, %v17213_v42  ;;  %v17267_v62 = vadd.f32 %v12690_v39, %v1882_v24  ;;  %15221 = vmatpush3.bf16.msra.mxu1 %v17238_v5 }
 0x468   : > { %v1871_v53 = vmul.f32 %v16064_v31, %v17217_v47  ;;  %v17271_v54 = vadd.f32 %v12690_v39, %v1883_v61 }
 0x469   : > { %v1884_v3 = vmul.f32 %v12689_v30, %v1870_v33  ;;  %14077 = vmatmul.mubr.msk.f32.gmra.mrb[4].mxu1 %vm1633_vm4, %v17267_v62  ;;  %14093 = vmatmul.mubr.msk.f32.gmra.mrb[8].mxu0 %vm1633_vm4, %v17267_v62 }
 0x46a   : > { %v16066_v4 = vpop.eup %16065  ;;  %v1885_v6 = vmul.f32 %v12689_v30, %v1871_v53  ;;  %14079 = vmatprep.mubr.msk.f32.mxu1 %vm1633_vm4, %v17271_v54  ;;  %14095 = vmatprep.mubr.msk.f32.mxu0 %vm1633_vm4, %v17271_v54 }
 0x46b   : > { %v1872_v42 = vmul.f32 %v16066_v4, %v17225_v52  ;;  %v17282_v47 = vadd.f32 %v12690_v39, %v1884_v3 }
 0x46c   : > { %v17284_v5 = vadd.f32 %v12690_v39, %v1885_v6 }
 0x46d   : > { %v1886_v8 = vmul.f32 %v12689_v30, %v1872_v42  ;;  %14080 = vmatmul.mubr.msk.f32.gmra.mrb[6].mxu1 %vm1633_vm4, %v17282_v47  ;;  %14096 = vmatmul.mubr.msk.f32.gmra.mrb[10].mxu0 %vm1633_vm4, %v17282_v47  ;;  %v12754_v42 = vld [vmem:[%s19099_s13 + $0x10] sm:$0xff] }
 0x46e   : > { %14082 = vmatprep.mubr.msk.f32.mxu1 %vm1633_vm4, %v17284_v5  ;;  %14098 = vmatprep.mubr.msk.f32.mxu0 %vm1633_vm4, %v17284_v5 }
 0x46f   : > { %v17294_v52 = vadd.f32 %v12690_v39, %v1886_v8  ;;  %v12755_v8 = vld [vmem:[%s19099_s13 + $0x18] sm:$0xff] }
 0x471   : > { %14083 = vmatmul.mubr.msk.f32.gmra.mrb[8].mxu1 %vm1633_vm4, %v17294_v52  ;;  %14099 = vmatmul.mubr.msk.f32.gmra.mrb[12].mxu0 %vm1633_vm4, %v17294_v52 }
 0x472   : > { %14105 = vmatprep.mubr.msk.f32.mxu1 %vm1633_vm4, %v17245_v50 }
 0x475   : > { %14106 = vmatmul.mubr.msk.f32.vlgmr.msra.gmra.mrb[10].mxu1 %vm1633_vm4, %v17253_v44 }
 0x476   : > { %14108 = vmatprep.mubr.msk.f32.mxu1 %vm1633_vm4, %v17256_v59 }
 0x479   : > { %14109 = vmatmul.mubr.msk.f32.gmra.mrb[12].mxu1 %vm1633_vm4, %v17267_v62 }
 0x47a   : > { %14111 = vmatprep.mubr.msk.f32.mxu1 %vm1633_vm4, %v17271_v54 }
 0x47d   : > { %14112 = vmatmul.mubr.msk.f32.gmra.mrb[14].mxu1 %vm1633_vm4, %v17282_v47 }
 0x47e   : > { %14114 = vmatprep.mubr.msk.f32.mxu1 %vm1633_vm4, %v17284_v5 }
 0x481   : > { %14115 = vmatmul.mubr.msk.f32.gmra.mrb[16].mxu1 %vm1633_vm4, %v17294_v52 }
 0x538   : > { %v17320_v11 = vpop.f32.mrb[2].mxu1  ;;  %v14091_v12 = vpop.f32.mrb[6].mxu0 }
 0x539   : > { %v2120_v14 = vadd.f32 %v14091_v12, %v12700_v10  ;;  %v2000_v15 = vpop.f32.mrb[3].mxu1  ;;  %v2114_v16 = vpop.f32.mrb[7].mxu0 }
 0x53a   : > { %v2001_v17 = vadd.f32 %v17318_v0, %v2000_v15  ;;  %v2115_v18 = vadd.f32 %v12700_v10, %v2114_v16  ;;  %v15266_v15 = vpack.c.bf16 %v12755_v8, %v12754_v42  ;;  %v12757_v42 = vld [vmem:[%s19101_s6 + $0x1] ss:$0 sm:$0xff] }
 0x53c   : > { %v15222_v20 = vpack.c.bf16 %v2120_v14, %v2115_v18  ;;  %v17329_v21 = vpop.f32.mrb[4].mxu1  ;;  %v14094_v23 = vpop.f32.mrb[8].mxu0  ;;  %14133 = vmatprep.mubr.msk.f32.mxu0 %vm2275_vm5, %v2001_v17 }
 0x53d   : > { %v2130_v25 = vadd.f32 %v14094_v23, %v12700_v10  ;;  %v2010_v26 = vpop.f32.mrb[5].mxu1  ;;  %v2124_v27 = vpop.f32.mrb[9].mxu0  ;;  %v2006_v23 = vadd.f32 %v17320_v11, %v17318_v0 }
 0x53e   : > { %v2125_v28 = vadd.f32 %v12700_v10, %v2124_v27  ;;  %15224 = vmatprep.subr.msk.bf16.mxu0 %vm17325_vm6, %v15222_v20  ;;  %v2016_v27 = vadd.f32 %v17329_v21, %v17318_v0  ;;  %v2267_v21 = vld [vmem:[%s19129_s11] sm:$0xff] }
 0x53f   : > { %15227 = vmatpush3.bf16.xpose.msk.msra.mxu0 %vm17325_vm6, %v15222_v20 }
 0x540   : > { %v15228_v29 = vpack.c.bf16 %v2130_v25, %v2125_v28  ;;  %v14081_v30 = vpop.f32.mrb[6].mxu1  ;;  %v14097_v32 = vpop.f32.mrb[10].mxu0  ;;  %v2011_v25 = vadd.f32 %v17318_v0, %v2010_v26 }
 0x541   : > { %v2140_v34 = vadd.f32 %v14097_v32, %v12700_v10  ;;  %v2020_v35 = vpop.f32.mrb[7].mxu1  ;;  %v2134_v36 = vpop.f32.mrb[11].mxu0  ;;  %v2026_v11 = vadd.f32 %v14081_v30, %v17318_v0 }
 0x542   : > { %v2135_v37 = vadd.f32 %v12700_v10, %v2134_v36  ;;  %15230 = vmatprep.subr.msk.bf16.mxu0 %vm17325_vm6, %v15228_v29  ;;  %v2021_v28 = vadd.f32 %v17318_v0, %v2020_v35  ;;  %v2270_v36 = vld [vmem:[%s19129_s11 + $0x18] sm:$0xff] }
 0x544   : > { %v15234_v39 = vpack.c.bf16 %v2140_v34, %v2135_v37  ;;  %v14084_v40 = vpop.f32.mrb[8].mxu1  ;;  %v14100_v41 = vpop.f32.mrb[12].mxu0 }
 0x545   : > { %v2150_v43 = vadd.f32 %v14100_v41, %v12700_v10  ;;  %v2030_v48 = vpop.f32.mrb[9].mxu1  ;;  %v2144_v49 = vpop.f32.mrb[13].mxu0 }
 0x546   : > { %v2145_v38 = vadd.f32 %v12700_v10, %v2144_v49  ;;  %v2031_v26 = vadd.f32 %v17318_v0, %v2030_v48 }
 0x547   : > { %15233 = vmatpush3.bf16.xpose.msk.msra.mxu0 %vm17325_vm6, %v15228_v29  ;;  %v2036_v29 = vadd.f32 %v14084_v40, %v17318_v0  ;;  %v2268_v0 = vld [vmem:[%s19129_s11 + $0x8] sm:$0xff] }
 0x548   : > { %v15240_v7 = vpack.c.bf16 %v2150_v43, %v2145_v38  ;;  %v14107_v56 = vpop.f32.mrb[10].mxu1  ;;  %15236 = vmatprep.subr.msk.bf16.mxu0 %vm17325_vm6, %v15234_v39  ;;  %v2272_v38 = vld [vmem:[%s19129_s11 + $0x28] sm:$0xff] }
 0x549   : > { %v2234_v58 = vadd.f32 %v14107_v56, %v12709_v51  ;;  %v2228_v45 = vpop.f32.mrb[11].mxu1 }
 0x54a   : > { %v2229_v22 = vadd.f32 %v12709_v51, %v2228_v45 }
 0x54c   : > { %v15246_v24 = vpack.c.bf16 %v2234_v58, %v2229_v22  ;;  %v14110_v60 = vpop.f32.mrb[12].mxu1 }
 0x54d   : > { %v2244_v61 = vadd.f32 %v14110_v60, %v12709_v51  ;;  %v2238_v31 = vpop.f32.mrb[13].mxu1  ;;  %v2274_v60 = vld [vmem:[%s19129_s11 + $0x38] sm:$0xff] }
 0x54e   : > { %v2239_v33 = vadd.f32 %v12709_v51, %v2238_v31  ;;  %15247 = vmatprep.subr.bf16.mxu1 %v15246_v24  ;;  %v2273_v31 = vld [vmem:[%s19129_s11 + $0x30] sm:$0xff] }
 0x54f   : > { %15239 = vmatpush3.bf16.xpose.msk.msra.mxu0 %vm17325_vm6, %v15234_v39  ;;  %15249 = vmatpush3.bf16.msra.mxu1 %v15246_v24  ;;  %v2269_v39 = vld [vmem:[%s19129_s11 + $0x10] sm:$0xff] }
 0x550   : > { %v15250_v53 = vpack.c.bf16 %v2244_v61, %v2239_v33  ;;  %v14113_v3 = vpop.f32.mrb[14].mxu1  ;;  %15242 = vmatprep.subr.msk.bf16.mxu0 %vm17325_vm6, %v15240_v7 }
 0x551   : > { %v2254_v4 = vadd.f32 %v14113_v3, %v12709_v51  ;;  %v2248_v6 = vpop.f32.mrb[15].mxu1 }
 0x552   : > { %v2249_v10 = vadd.f32 %v12709_v51, %v2248_v6  ;;  %15251 = vmatprep.subr.bf16.mxu1 %v15250_v53 }
 0x553   : > { %15253 = vmatpush3.bf16.msra.mxu1 %v15250_v53 }
 0x554   : > { %v15254_v12 = vpack.c.bf16 %v2254_v4, %v2249_v10  ;;  %v14116_v14 = vpop.f32.mrb[16].mxu1 }
 0x555   : > { %v2264_v16 = vadd.f32 %v14116_v14, %v12709_v51  ;;  %v2258_v17 = vpop.f32.mrb[17].mxu1 }
 0x556   : > { %v2259_v18 = vadd.f32 %v12709_v51, %v2258_v17  ;;  %15255 = vmatprep.subr.bf16.mxu1 %v15254_v12 }
 0x557   : > { %15245 = vmatpush3.bf16.xpose.msk.msra.mxu0 %vm17325_vm6, %v15240_v7  ;;  %15257 = vmatpush3.bf16.msra.mxu1 %v15254_v12  ;;  %v2271_v7 = vld [vmem:[%s19129_s11 + $0x20] sm:$0xff] }
 0x558   : > { %v15258_v20 = vpack.c.bf16 %v2264_v16, %v2259_v18  ;;  %15267 = vmatprep.subr.bf16.mxu0 %v15266_v15 }
 0x55a   : > { %15259 = vmatprep.subr.bf16.mxu1 %v15258_v20 }
 0x55b   : > { %15261 = vmatpush3.bf16.msra.mxu1 %v15258_v20 }
 0x55e   : > { %14134 = vmatmul.mubr.msk.f32.vlgmr.msra.gmra.mrb[14].mxu0 %vm2275_vm5, %v2006_v23 }
 0x55f   : > { %14136 = vmatprep.mubr.msk.f32.mxu0 %vm2275_vm5, %v2011_v25  ;;  %15269 = vmatpush3.bf16.msra.mxu0 %v15266_v15 }
 0x562   : > { %14137 = vmatmul.mubr.msk.f32.gmra.mrb[16].mxu0 %vm2275_vm5, %v2016_v27 }
 0x563   : > { %14139 = vmatprep.mubr.msk.f32.mxu0 %vm2275_vm5, %v2021_v28 }
 0x566   : > { %14140 = vmatmul.mubr.msk.f32.gmra.mrb[18].mxu0 %vm2275_vm5, %v2026_v11 }
 0x567   : > { %14142 = vmatprep.mubr.msk.f32.mxu0 %vm2275_vm5, %v2031_v26 }
 0x56a   : > { %14143 = vmatmul.mubr.msk.f32.gmra.mrb[20].mxu0 %vm2275_vm5, %v2036_v29 }
 0x56b   : > { %14193 = vmatprep.mubr.msk.f32.mxu0 %vm1633_vm4, %v17245_v50 }
 0x56e   : > { %14194 = vmatmul.mubr.msk.f32.vlgmr.msra.gmra.mrb[22].mxu0 %vm1633_vm4, %v17253_v44 }
 0x56f   : > { %14196 = vmatprep.mubr.msk.f32.mxu0 %vm1633_vm4, %v17256_v59 }
 0x572   : > { %14197 = vmatmul.mubr.msk.f32.gmra.mrb[24].mxu0 %vm1633_vm4, %v17267_v62 }
 0x573   : > { %14199 = vmatprep.mubr.msk.f32.mxu0 %vm1633_vm4, %v17271_v54 }
 0x576   : > { %14200 = vmatmul.mubr.msk.f32.gmra.mrb[26].mxu0 %vm1633_vm4, %v17282_v47 }
 0x577   : > { %14202 = vmatprep.mubr.msk.f32.mxu0 %vm1633_vm4, %v17284_v5 }
 0x57a   : > { %14203 = vmatmul.mubr.msk.f32.gmra.mrb[28].mxu0 %vm1633_vm4, %v17294_v52 }
 0x631   : > { %v14135_v30 = vpop.f32.mrb[14].mxu0 }
 0x632   : > { %v17385_v32 = vadd.f32 %v14135_v30, %v2268_v0  ;;  %v2390_v34 = vpop.f32.mrb[15].mxu0 }
 0x633   : > { %v17387_v35 = vadd.f32 %v2390_v34, %v2267_v21 }
 0x634   : > { %v2433_v37 = vsel %vm2429_vm7, %v17385_v32, -inf }
 0x635   : > { %2434 = vmax.xlane.f32.xlu1 %v2433_v37  ;;  %v14138_v40 = vpop.f32.mrb[16].mxu0  ;;  %v2430_v41 = vsel %vm2429_vm7, %v17387_v35, -inf }
 0x636   : > { %v17395_v43 = vadd.f32 %v14138_v40, %v2270_v36  ;;  %v2400_v48 = vpop.f32.mrb[17].mxu0  ;;  %2431 = vmax.xlane.f32.xlu0 %v2430_v41 }
 0x637   : > { %v17397_v49 = vadd.f32 %v2400_v48, %v2269_v39 }
 0x638   : > { %v2439_v51 = vsel %vm2429_vm7, %v17395_v43, -inf }
 0x639   : > { %2440 = vmax.xlane.f32.xlu1 %v2439_v51  ;;  %v14141_v56 = vpop.f32.mrb[18].mxu0  ;;  %v2436_v58 = vsel %vm2429_vm7, %v17397_v49, -inf }
 0x63a   : > { %v17405_v45 = vadd.f32 %v14141_v56, %v2272_v38  ;;  %v2410_v22 = vpop.f32.mrb[19].mxu0  ;;  %2437 = vmax.xlane.f32.xlu0 %v2436_v58 }
 0x63b   : > { %v17407_v24 = vadd.f32 %v2410_v22, %v2271_v7 }
 0x63c   : > { %v2445_v61 = vsel %vm2429_vm7, %v17405_v45, -inf }
 0x63d   : > { %2446 = vmax.xlane.f32.xlu1 %v2445_v61  ;;  %v14144_v33 = vpop.f32.mrb[20].mxu0  ;;  %v2442_v53 = vsel %vm2429_vm7, %v17407_v24, -inf }
 0x63e   : > { %v17415_v3 = vadd.f32 %v14144_v33, %v2274_v60  ;;  %2443 = vmax.xlane.f32.xlu0 %v2442_v53  ;;  %v2420_v4 = vpop.f32.mrb[21].mxu0 }
 0x63f   : > { %v17417_v6 = vadd.f32 %v2420_v4, %v2273_v31 }
 0x640   : > { %v2451_v8 = vsel %vm2429_vm7, %v17415_v3, -inf }
 0x641   : > { %2452 = vmax.xlane.f32.xlu1 %v2451_v8  ;;  %v14195_v10 = vpop.f32.mrb[22].mxu0  ;;  %v2448_v12 = vsel %vm2429_vm7, %v17417_v6, -inf }
 0x642   : > { %v2847_v14 = vadd.f32 %v14195_v10, %v12757_v42  ;;  %v2841_v15 = vpop.f32.mrb[23].mxu0  ;;  %2449 = vmax.xlane.f32.xlu0 %v2448_v12 }
 0x643   : > { %v2842_v16 = vadd.f32 %v12757_v42, %v2841_v15 }
 0x645   : > { %v15274_v17 = vpack.c.bf16 %v2847_v14, %v2842_v16  ;;  %v14198_v18 = vpop.f32.mrb[24].mxu0 }
 0x646   : > { %v2857_v20 = vadd.f32 %v14198_v18, %v12757_v42  ;;  %v2851_v23 = vpop.f32.mrb[25].mxu0 }
 0x647   : > { %v2852_v25 = vadd.f32 %v12757_v42, %v2851_v23  ;;  %15276 = vmatprep.subr.msk.bf16.mxu0 %vm17325_vm6, %v15274_v17 }
 0x648   : > { %15279 = vmatpush3.bf16.xpose.msk.msra.mxu0 %vm17325_vm6, %v15274_v17 }
 0x649   : > { %v15280_v27 = vpack.c.bf16 %v2857_v20, %v2852_v25  ;;  %v14201_v28 = vpop.f32.mrb[26].mxu0 }
 0x64a   : > { %v2867_v11 = vadd.f32 %v14201_v28, %v12757_v42  ;;  %v2861_v26 = vpop.f32.mrb[27].mxu0 }
 0x64b   : > { %v2862_v29 = vadd.f32 %v12757_v42, %v2861_v26  ;;  %15282 = vmatprep.subr.msk.bf16.mxu0 %vm17325_vm6, %v15280_v27 }
 0x64d   : > { %v15286_v0 = vpack.c.bf16 %v2867_v11, %v2862_v29  ;;  %v14204_v21 = vpop.f32.mrb[28].mxu0  ;;  %v12742_v29 = vld [vmem:[%s16820_s27 + $0x10] sm:$0xff] }
 0x64e   : > { %v2877_v30 = vadd.f32 %v14204_v21, %v12757_v42  ;;  %v2871_v34 = vpop.f32.mrb[29].mxu0 }
 0x64f   : > { %v2872_v36 = vadd.f32 %v12757_v42, %v2871_v34 }
 0x650   : > { %15285 = vmatpush3.bf16.xpose.msk.msra.mxu0 %vm17325_vm6, %v15280_v27 }
 0x651   : > { %v15292_v37 = vpack.c.bf16 %v2877_v30, %v2872_v36  ;;  %15288 = vmatprep.subr.msk.bf16.mxu0 %vm17325_vm6, %v15286_v0 }
 0x658   : > { %15291 = vmatpush3.bf16.xpose.msk.msra.mxu0 %vm17325_vm6, %v15286_v0  ;;  %v12743_v0 = vld [vmem:[%s16820_s27 + $0x18] sm:$0xff] }
 0x659   : > { %15294 = vmatprep.subr.msk.bf16.mxu0 %vm17325_vm6, %v15292_v37  ;;  %v15262_v21 = vpack.c.bf16 %v12743_v0, %v12742_v29 }
 0x65b   : > { %15263 = vmatprep.subr.bf16.mxu1 %v15262_v21 }
 0x660   : > { %15297 = vmatpush3.bf16.xpose.msk.msra.mxu0 %vm17325_vm6, %v15292_v37 }
 0x6c2   : > { %v2435_v39 = vpop.xlane.xlu1 %2434 }
 0x6c3   : > { %v2455_v40 = vsub.f32 %v17385_v32, %v2435_v39  ;;  %v2432_v41 = vpop.xlane.xlu0 %2431 }
 0x6c4   : > { %v2454_v48 = vsub.f32 %v17387_v35, %v2432_v41 }
 0x6c5   : > { %v2464_v38 = vmul.f32 1.442695, %v2455_v40 }
 0x6c6   : > { %v2462_v51 = vmul.f32 1.442695, %v2454_v48  ;;  %v2441_v7 = vpop.xlane.xlu1 %2440  ;;  %v12766_v48 = vld [vmem:[%s19097_s17 + $0x10] sm:$0xff] }
 0x6c7   : > { %16067 = vpow2.f32 %v2464_v38  ;;  %v2457_v56 = vsub.f32 %v17395_v43, %v2441_v7  ;;  %v2438_v58 = vpop.xlane.xlu0 %2437  ;;  %v12767_v38 = vld [vmem:[%s19097_s17 + $0x18] sm:$0xff] }
 0x6c8   : > { %16069 = vpow2.f32 %v2462_v51  ;;  %v2456_v22 = vsub.f32 %v17397_v49, %v2438_v58 }
 0x6c9   : > { %v2468_v60 = vmul.f32 1.442695, %v2457_v56 }
 0x6ca   : > { %v2466_v61 = vmul.f32 1.442695, %v2456_v22  ;;  %v2447_v31 = vpop.xlane.xlu1 %2446 }
 0x6cb   : > { %16071 = vpow2.f32 %v2468_v60  ;;  %v2459_v33 = vsub.f32 %v17405_v45, %v2447_v31  ;;  %v2444_v32 = vpop.xlane.xlu0 %2443  ;;  %v15270_v60 = vpack.c.bf16 %v12767_v38, %v12766_v48 }
 0x6cc   : > { %16073 = vpow2.f32 %v2466_v61  ;;  %v2458_v35 = vsub.f32 %v17407_v24, %v2444_v32 }
 0x6cd   : > { %v2472_v53 = vmul.f32 1.442695, %v2459_v33 }
 0x6ce   : > { %v2470_v4 = vmul.f32 1.442695, %v2458_v35  ;;  %v2453_v42 = vpop.xlane.xlu1 %2452 }
 0x6cf   : > { %16075 = vpow2.f32 %v2472_v53  ;;  %v2461_v43 = vsub.f32 %v17415_v3, %v2453_v42  ;;  %v2450_v8 = vpop.xlane.xlu0 %2449 }
 0x6d0   : > { %16077 = vpow2.f32 %v2470_v4  ;;  %v2460_v49 = vsub.f32 %v17417_v6, %v2450_v8 }
 0x6d1   : > { %v16068_v10 = vpop.eup %16067  ;;  %v2476_v12 = vmul.f32 1.442695, %v2461_v43 }
 0x6d2   : > { %v16070_v14 = vpop.eup %16069  ;;  %v2474_v15 = vmul.f32 1.442695, %v2460_v49  ;;  %v2481_v45 = vsel %vm2429_vm7, %v16068_v10, 0.0 }
 0x6d3   : > { %16079 = vpow2.f32 %v2476_v12  ;;  %2482 = vadd.xlane.f32.xlu1 %v2481_v45  ;;  %v2478_v24 = vsel %vm2429_vm7, %v16070_v14, 0.0 }
 0x6d4   : > { %16081 = vpow2.f32 %v2474_v15  ;;  %2479 = vadd.xlane.f32.xlu0 %v2478_v24 }
 0x6d5   : > { %v16072_v16 = vpop.eup %16071 }
 0x6d6   : > { %v16074_v17 = vpop.eup %16073  ;;  %v2487_v3 = vsel %vm2429_vm7, %v16072_v16, 0.0 }
 0x6d7   : > { %2488 = vadd.xlane.f32.xlu1 %v2487_v3  ;;  %v2484_v6 = vsel %vm2429_vm7, %v16074_v17, 0.0 }
 0x6d8   : > { %2485 = vadd.xlane.f32.xlu0 %v2484_v6 }
 0x6d9   : > { %v16076_v18 = vpop.eup %16075 }
 0x6da   : > { %v16078_v20 = vpop.eup %16077  ;;  %v2493_v23 = vsel %vm2429_vm7, %v16076_v18, 0.0 }
 0x6db   : > { %2494 = vadd.xlane.f32.xlu1 %v2493_v23  ;;  %v2490_v25 = vsel %vm2429_vm7, %v16078_v20, 0.0 }
 0x6dc   : > { %2491 = vadd.xlane.f32.xlu0 %v2490_v25 }
 0x6dd   : > { %v16080_v27 = vpop.eup %16079 }
 0x6de   : > { %v16082_v28 = vpop.eup %16081  ;;  %v2499_v11 = vsel %vm2429_vm7, %v16080_v27, 0.0 }
 0x6df   : > { %2500 = vadd.xlane.f32.xlu1 %v2499_v11  ;;  %v2496_v26 = vsel %vm2429_vm7, %v16082_v28, 0.0 }
 0x6e0   : > { %2497 = vadd.xlane.f32.xlu0 %v2496_v26  ;;  %v12769_v26 = vld [vmem:[%s19128_s10 + $0x1] ss:$0 sm:$0xff] }
 0x760   : > { %v2483_v30 = vpop.xlane.xlu1 %2482 }
 0x761   : > { %16083 = vrcp.f32 %v2483_v30  ;;  %v2480_v34 = vpop.xlane.xlu0 %2479 }
 0x762   : > { %16085 = vrcp.f32 %v2480_v34 }
 0x764   : > { %v2489_v36 = vpop.xlane.xlu1 %2488 }
 0x765   : > { %16087 = vrcp.f32 %v2489_v36  ;;  %v2486_v37 = vpop.xlane.xlu0 %2485 }
 0x766   : > { %16089 = vrcp.f32 %v2486_v37 }
 0x768   : > { %v2495_v39 = vpop.xlane.xlu1 %2494 }
 0x769   : > { %16091 = vrcp.f32 %v2495_v39  ;;  %v2492_v40 = vpop.xlane.xlu0 %2491 }
 0x76a   : > { %16093 = vrcp.f32 %v2492_v40 }
 0x76b   : > { %v16084_v41 = vpop.eup %16083 }
 0x76c   : > { %v16086_v51 = vpop.eup %16085  ;;  %v2501_v7 = vpop.xlane.xlu1 %2500  ;;  %v2511_v22 = vmul.f32 %v16084_v41, %v16068_v10 }
 0x76d   : > { %16095 = vrcp.f32 %v2501_v7  ;;  %v2498_v56 = vpop.xlane.xlu0 %2497  ;;  %v2510_v58 = vmul.f32 %v16086_v51, %v16070_v14 }
 0x76e   : > { %16097 = vrcp.f32 %v2498_v56 }
 0x76f   : > { %v16088_v61 = vpop.eup %16087  ;;  %14161 = vmatprep.mubr.msk.f32.mxu1 %vm2429_vm7, %v2510_v58 }
 0x770   : > { %v16090_v31 = vpop.eup %16089  ;;  %14162 = vmatmul.mubr.msk.f32.vlgmr.msra.gmra.mrb[18].mxu1 %vm2429_vm7, %v2511_v22  ;;  %v2513_v32 = vmul.f32 %v16088_v61, %v16072_v16 }
 0x771   : > { %15265 = vmatpush3.bf16.msra.mxu1 %v15262_v21  ;;  %v2512_v33 = vmul.f32 %v16090_v31, %v16074_v17 }
 0x772   : > { %15271 = vmatprep.subr.bf16.mxu1 %v15270_v60 }
 0x773   : > { %v16092_v35 = vpop.eup %16091  ;;  %14164 = vmatprep.mubr.msk.f32.mxu1 %vm2429_vm7, %v2512_v33 }
 0x774   : > { %v16094_v53 = vpop.eup %16093  ;;  %14165 = vmatmul.mubr.msk.f32.gmra.mrb[20].mxu1 %vm2429_vm7, %v2513_v32  ;;  %v2515_v42 = vmul.f32 %v16092_v35, %v16076_v18  ;;  %v12779_v32 = vld [vmem:[%s19129_s11 + $0x48] sm:$0xff]  ;;  %v12778_v35 = vld [vmem:[%s19129_s11 + $0x40] sm:$0xff] }
 0x775   : > { %v2514_v4 = vmul.f32 %v16094_v53, %v16078_v20 }
 0x777   : > { %v16096_v43 = vpop.eup %16095  ;;  %14167 = vmatprep.mubr.msk.f32.mxu1 %vm2429_vm7, %v2514_v4 }
 0x778   : > { %v16098_v8 = vpop.eup %16097  ;;  %14168 = vmatmul.mubr.msk.f32.gmra.mrb[22].mxu1 %vm2429_vm7, %v2515_v42  ;;  %v2517_v10 = vmul.f32 %v16096_v43, %v16080_v27 }
 0x779   : > { %v2516_v49 = vmul.f32 %v16098_v8, %v16082_v28  ;;  %v12781_v8 = vld [vmem:[%s19129_s11 + $0x58] sm:$0xff] }
 0x77b   : > { %14170 = vmatprep.mubr.msk.f32.mxu1 %vm2429_vm7, %v2516_v49 }
 0x77c   : > { %14171 = vmatmul.mubr.msk.f32.gmra.mrb[24].mxu1 %vm2429_vm7, %v2517_v10  ;;  %v12780_v10 = vld [vmem:[%s19129_s11 + $0x50] sm:$0xff] }
 0x77d   : > { %14177 = vmatprep.mubr.msk.f32.mxu1 %vm1633_vm4, %v17245_v50 }
 0x780   : > { %14178 = vmatmul.mubr.msk.f32.vlgmr.msra.gmra.mrb[26].mxu1 %vm1633_vm4, %v17253_v44 }
 0x781   : > { %14180 = vmatprep.mubr.msk.f32.mxu1 %vm1633_vm4, %v17256_v59  ;;  %15273 = vmatpush3.bf16.msra.mxu1 %v15270_v60 }
 0x784   : > { %14181 = vmatmul.mubr.msk.f32.gmra.mrb[28].mxu1 %vm1633_vm4, %v17267_v62 }
 0x785   : > { %14183 = vmatprep.mubr.msk.f32.mxu1 %vm1633_vm4, %v17271_v54 }
 0x788   : > { %14184 = vmatmul.mubr.msk.f32.gmra.mrb[30].mxu1 %vm1633_vm4, %v17282_v47 }
 0x789   : > { %14186 = vmatprep.mubr.msk.f32.mxu1 %vm1633_vm4, %v17284_v5 }
 0x78c   : > { %14187 = vmatmul.mubr.msk.f32.gmra.mrb[32].mxu1 %vm1633_vm4, %v17294_v52 }
 0x78d   : > { %14209 = vmatprep.mubr.msk.f32.mxu1 %vm1633_vm4, %v17245_v50 }
 0x790   : > { %14210 = vmatmul.mubr.msk.f32.vlgmr.msra.gmra.mrb[34].mxu1 %vm1633_vm4, %v17253_v44 }
 0x791   : > { %14212 = vmatprep.mubr.msk.f32.mxu1 %vm1633_vm4, %v17256_v59 }
 0x794   : > { %14213 = vmatmul.mubr.msk.f32.gmra.mrb[36].mxu1 %vm1633_vm4, %v17267_v62 }
 0x795   : > { %14215 = vmatprep.mubr.msk.f32.mxu1 %vm1633_vm4, %v17271_v54 }
 0x798   : > { %14216 = vmatmul.mubr.msk.f32.gmra.mrb[38].mxu1 %vm1633_vm4, %v17282_v47 }
 0x799   : > { %14218 = vmatprep.mubr.msk.f32.mxu1 %vm1633_vm4, %v17284_v5  ;;  %v12745_v5 = vld [vmem:[%s19125_s1 + $0x1] ss:$0 sm:$0xff] }
 0x79c   : > { %14219 = vmatmul.mubr.msk.f32.gmra.mrb[40].mxu1 %vm1633_vm4, %v17294_v52 }
 0x843   : > { %v17500_v50 = vpop.f32.mrb[18].mxu1 }
 0x844   : > { %v17502_v44 = vpop.f32.mrb[19].mxu1 }
 0x847   : > { %v17504_v59 = vpop.f32.mrb[20].mxu1 }
 0x848   : > { %v17506_v12 = vpop.f32.mrb[21].mxu1 }
 0x84b   : > { %v17508_v62 = vpop.f32.mrb[22].mxu1 }
 0x84c   : > { %v17510_v54 = vpop.f32.mrb[23].mxu1 }
 0x84f   : > { %v17512_v14 = vpop.f32.mrb[24].mxu1 }
 0x850   : > { %v17514_v47 = vpop.f32.mrb[25].mxu1 }
 0x853   : > { %v14179_v15 = vpop.f32.mrb[26].mxu1 }
 0x854   : > { %v2725_v45 = vpop.f32.mrb[27].mxu1  ;;  %v2731_v24 = vadd.f32 %v14179_v15, %v12745_v5 }
 0x855   : > { %v2726_v52 = vadd.f32 %v12745_v5, %v2725_v45 }
 0x857   : > { %v14182_v16 = vpop.f32.mrb[28].mxu1  ;;  %14237 = vmatprep.mubr.msk.f32.mxu0 %vm2275_vm5, %v2726_v52 }
 0x858   : > { %v2735_v17 = vpop.f32.mrb[29].mxu1  ;;  %14238 = vmatmul.mubr.msk.f32.vlgmr.msra.gmra.mrb[30].mxu0 %vm2275_vm5, %v2731_v24  ;;  %v2741_v6 = vadd.f32 %v14182_v16, %v12745_v5  ;;  %v12783_v16 = vld [vmem:[%s19129_s11 + $0x68] sm:$0xff] }
 0x859   : > { %v2736_v3 = vadd.f32 %v12745_v5, %v2735_v17 }
 0x85b   : > { %v14185_v18 = vpop.f32.mrb[30].mxu1  ;;  %14240 = vmatprep.mubr.msk.f32.mxu0 %vm2275_vm5, %v2736_v3  ;;  %v12782_v3 = vld [vmem:[%s19129_s11 + $0x60] sm:$0xff] }
 0x85c   : > { %v2745_v20 = vpop.f32.mrb[31].mxu1  ;;  %14241 = vmatmul.mubr.msk.f32.gmra.mrb[32].mxu0 %vm2275_vm5, %v2741_v6  ;;  %v2751_v25 = vadd.f32 %v14185_v18, %v12745_v5 }
 0x85d   : > { %v2746_v23 = vadd.f32 %v12745_v5, %v2745_v20 }
 0x85f   : > { %v14188_v27 = vpop.f32.mrb[32].mxu1  ;;  %14243 = vmatprep.mubr.msk.f32.mxu0 %vm2275_vm5, %v2746_v23 }
 0x860   : > { %v2755_v28 = vpop.f32.mrb[33].mxu1  ;;  %14244 = vmatmul.mubr.msk.f32.gmra.mrb[34].mxu0 %vm2275_vm5, %v2751_v25  ;;  %v2761_v29 = vadd.f32 %v14188_v27, %v12745_v5  ;;  %v12785_v27 = vld [vmem:[%s19129_s11 + $0x78] sm:$0xff] }
 0x861   : > { %v2756_v11 = vadd.f32 %v12745_v5, %v2755_v28 }
 0x863   : > { %v14211_v0 = vpop.f32.mrb[34].mxu1  ;;  %14246 = vmatprep.mubr.msk.f32.mxu0 %vm2275_vm5, %v2756_v11  ;;  %v12784_v11 = vld [vmem:[%s19129_s11 + $0x70] sm:$0xff] }
 0x864   : > { %v2963_v21 = vadd.f32 %v14211_v0, %v12769_v26  ;;  %v2957_v30 = vpop.f32.mrb[35].mxu1  ;;  %14247 = vmatmul.mubr.msk.f32.gmra.mrb[36].mxu0 %vm2275_vm5, %v2761_v29 }
 0x865   : > { %v2958_v34 = vadd.f32 %v12769_v26, %v2957_v30 }
 0x867   : > { %v15298_v36 = vpack.c.bf16 %v2963_v21, %v2958_v34  ;;  %v14214_v37 = vpop.f32.mrb[36].mxu1 }
 0x868   : > { %v2973_v39 = vadd.f32 %v14214_v37, %v12769_v26  ;;  %v2967_v40 = vpop.f32.mrb[37].mxu1 }
 0x869   : > { %v2968_v41 = vadd.f32 %v12769_v26, %v2967_v40  ;;  %15299 = vmatprep.subr.bf16.mxu1 %v15298_v36 }
 0x86a   : > { %15301 = vmatpush3.bf16.msra.mxu1 %v15298_v36 }
 0x86b   : > { %v15302_v48 = vpack.c.bf16 %v2973_v39, %v2968_v41  ;;  %v14217_v38 = vpop.f32.mrb[38].mxu1 }
 0x86c   : > { %v2983_v51 = vadd.f32 %v14217_v38, %v12769_v26  ;;  %v2977_v7 = vpop.f32.mrb[39].mxu1 }
 0x86d   : > { %v2978_v56 = vadd.f32 %v12769_v26, %v2977_v7  ;;  %15303 = vmatprep.subr.bf16.mxu1 %v15302_v48 }
 0x86e   : > { %15305 = vmatpush3.bf16.msra.mxu1 %v15302_v48 }
 0x86f   : > { %v15306_v58 = vpack.c.bf16 %v2983_v51, %v2978_v56  ;;  %v14220_v22 = vpop.f32.mrb[40].mxu1 }
 0x870   : > { %v2993_v60 = vadd.f32 %v14220_v22, %v12769_v26  ;;  %v2987_v61 = vpop.f32.mrb[41].mxu1 }
 0x871   : > { %v2988_v31 = vadd.f32 %v12769_v26, %v2987_v61  ;;  %15307 = vmatprep.subr.bf16.mxu1 %v15306_v58 }
 0x872   : > { %15309 = vmatpush3.bf16.msra.mxu1 %v15306_v58 }
 0x873   : > { %v15310_v33 = vpack.c.bf16 %v2993_v60, %v2988_v31 }
 0x875   : > { %15311 = vmatprep.subr.bf16.mxu1 %v15310_v33 }
 0x876   : > { %15313 = vmatpush3.bf16.msra.mxu1 %v15310_v33 }
 0x92b   : > { %v14239_v53 = vpop.f32.mrb[30].mxu0 }
 0x92c   : > { %v3125_v4 = vadd.f32 %v14239_v53, %v12779_v32  ;;  %v3119_v42 = vpop.f32.mrb[31].mxu0 }
 0x92d   : > { %v3120_v43 = vadd.f32 %v12778_v35, %v3119_v42 }
 0x92e   : > { %v3161_v49 = vsel %vm2429_vm7, %v3125_v4, -inf }
 0x92f   : > { %3162 = vmax.xlane.f32.xlu1 %v3161_v49  ;;  %v14242_v5 = vpop.f32.mrb[32].mxu0  ;;  %v3158_v15 = vsel %vm2429_vm7, %v3120_v43, -inf }
 0x930   : > { %v3135_v45 = vadd.f32 %v14242_v5, %v12781_v8  ;;  %v3129_v52 = vpop.f32.mrb[33].mxu0  ;;  %3159 = vmax.xlane.f32.xlu0 %v3158_v15 }
 0x931   : > { %v3130_v24 = vadd.f32 %v12780_v10, %v3129_v52 }
 0x932   : > { %v3167_v17 = vsel %vm2429_vm7, %v3135_v45, -inf }
 0x933   : > { %3168 = vmax.xlane.f32.xlu1 %v3167_v17  ;;  %v14245_v6 = vpop.f32.mrb[34].mxu0  ;;  %v3164_v18 = vsel %vm2429_vm7, %v3130_v24, -inf }
 0x934   : > { %v3145_v20 = vadd.f32 %v14245_v6, %v12783_v16  ;;  %v3139_v23 = vpop.f32.mrb[35].mxu0  ;;  %3165 = vmax.xlane.f32.xlu0 %v3164_v18 }
 0x935   : > { %v3140_v25 = vadd.f32 %v12782_v3, %v3139_v23 }
 0x936   : > { %v3173_v28 = vsel %vm2429_vm7, %v3145_v20, -inf }
 0x937   : > { %3174 = vmax.xlane.f32.xlu1 %v3173_v28  ;;  %v14248_v26 = vpop.f32.mrb[36].mxu0  ;;  %v3170_v29 = vsel %vm2429_vm7, %v3140_v25, -inf }
 0x938   : > { %v3155_v0 = vadd.f32 %v14248_v26, %v12785_v27  ;;  %v3149_v21 = vpop.f32.mrb[37].mxu0  ;;  %3171 = vmax.xlane.f32.xlu0 %v3170_v29  ;;  %v12810_v26 = vld [vmem:[%s19130_s2 + $0x8] sm:$0xff] }
 0x939   : > { %v3150_v30 = vadd.f32 %v12784_v11, %v3149_v21  ;;  %14277 = vmatprep.subr.mxu1 %v12810_v26 }
 0x93a   : > { %v3179_v34 = vsel %vm2429_vm7, %v3155_v0, -inf }
 0x93b   : > { %3180 = vmax.xlane.f32.xlu1 %v3179_v34  ;;  %v3176_v36 = vsel %vm2429_vm7, %v3150_v30, -inf }
 0x93c   : > { %3177 = vmax.xlane.f32.xlu0 %v3176_v36 }
 0x9bc   : > { %v3163_v37 = vpop.xlane.xlu1 %3162 }
 0x9bd   : > { %v3183_v39 = vsub.f32 %v3125_v4, %v3163_v37  ;;  %v3160_v40 = vpop.xlane.xlu0 %3159 }
 0x9be   : > { %v3182_v41 = vsub.f32 %v3120_v43, %v3160_v40 }
 0x9bf   : > { %v3192_v48 = vmul.f32 1.442695, %v3183_v39 }
 0x9c0   : > { %v3190_v38 = vmul.f32 1.442695, %v3182_v41  ;;  %v3169_v51 = vpop.xlane.xlu1 %3168 }
 0x9c1   : > { %16099 = vpow2.f32 %v3192_v48  ;;  %v3185_v7 = vsub.f32 %v3135_v45, %v3169_v51  ;;  %v3166_v56 = vpop.xlane.xlu0 %3165 }
 0x9c2   : > { %16101 = vpow2.f32 %v3190_v38  ;;  %v3184_v58 = vsub.f32 %v3130_v24, %v3166_v56 }
 0x9c3   : > { %v3196_v22 = vmul.f32 1.442695, %v3185_v7 }
 0x9c4   : > { %v3194_v60 = vmul.f32 1.442695, %v3184_v58  ;;  %v3175_v61 = vpop.xlane.xlu1 %3174 }
 0x9c5   : > { %16103 = vpow2.f32 %v3196_v22  ;;  %v3187_v31 = vsub.f32 %v3145_v20, %v3175_v61  ;;  %v3172_v33 = vpop.xlane.xlu0 %3171 }
 0x9c6   : > { %16105 = vpow2.f32 %v3194_v60  ;;  %v3186_v32 = vsub.f32 %v3140_v25, %v3172_v33 }
 0x9c7   : > { %v3200_v35 = vmul.f32 1.442695, %v3187_v31 }
 0x9c8   : > { %v3198_v53 = vmul.f32 1.442695, %v3186_v32  ;;  %v3181_v4 = vpop.xlane.xlu1 %3180 }
 0x9c9   : > { %16107 = vpow2.f32 %v3200_v35  ;;  %v3189_v42 = vsub.f32 %v3155_v0, %v3181_v4  ;;  %v3178_v43 = vpop.xlane.xlu0 %3177  ;;  %v2647_v4 = vld [vmem:[%s19130_s2] sm:$0xff] }
 0x9ca   : > { %16109 = vpow2.f32 %v3198_v53  ;;  %v3188_v8 = vsub.f32 %v3150_v30, %v3178_v43 }
 0x9cb   : > { %v16100_v49 = vpop.eup %16099  ;;  %v3204_v10 = vmul.f32 1.442695, %v3189_v42 }
 0x9cc   : > { %v16102_v5 = vpop.eup %16101  ;;  %v3202_v15 = vmul.f32 1.442695, %v3188_v8  ;;  %v3209_v45 = vsel %vm2429_vm7, %v16100_v49, 0.0 }
 0x9cd   : > { %16111 = vpow2.f32 %v3204_v10  ;;  %3210 = vadd.xlane.f32.xlu1 %v3209_v45  ;;  %v3206_v52 = vsel %vm2429_vm7, %v16102_v5, 0.0 }
 0x9ce   : > { %16113 = vpow2.f32 %v3202_v15  ;;  %3207 = vadd.xlane.f32.xlu0 %v3206_v52 }
 0x9cf   : > { %v16104_v24 = vpop.eup %16103 }
 0x9d0   : > { %v16106_v16 = vpop.eup %16105  ;;  %v3215_v17 = vsel %vm2429_vm7, %v16104_v24, 0.0 }
 0x9d1   : > { %3216 = vadd.xlane.f32.xlu1 %v3215_v17  ;;  %v3212_v3 = vsel %vm2429_vm7, %v16106_v16, 0.0 }
 0x9d2   : > { %3213 = vadd.xlane.f32.xlu0 %v3212_v3 }
 0x9d3   : > { %v16108_v6 = vpop.eup %16107 }
 0x9d4   : > { %v16110_v18 = vpop.eup %16109  ;;  %v3221_v20 = vsel %vm2429_vm7, %v16108_v6, 0.0 }
 0x9d5   : > { %3222 = vadd.xlane.f32.xlu1 %v3221_v20  ;;  %v3218_v23 = vsel %vm2429_vm7, %v16110_v18, 0.0 }
 0x9d6   : > { %3219 = vadd.xlane.f32.xlu0 %v3218_v23 }
 0x9d7   : > { %v16112_v25 = vpop.eup %16111 }
 0x9d8   : > { %v16114_v27 = vpop.eup %16113  ;;  %v3227_v28 = vsel %vm2429_vm7, %v16112_v25, 0.0 }
 0x9d9   : > { %3228 = vadd.xlane.f32.xlu1 %v3227_v28  ;;  %v3224_v11 = vsel %vm2429_vm7, %v16114_v27, 0.0 }
 0x9da   : > { %3225 = vadd.xlane.f32.xlu0 %v3224_v11 }
 0xa5a   : > { %v3211_v29 = vpop.xlane.xlu1 %3210 }
 0xa5b   : > { %16115 = vrcp.f32 %v3211_v29  ;;  %v3208_v0 = vpop.xlane.xlu0 %3207 }
 0xa5c   : > { %16117 = vrcp.f32 %v3208_v0 }
 0xa5e   : > { %v3217_v21 = vpop.xlane.xlu1 %3216 }
 0xa5f   : > { %16119 = vrcp.f32 %v3217_v21  ;;  %v3214_v30 = vpop.xlane.xlu0 %3213 }
 0xa60   : > { %16121 = vrcp.f32 %v3214_v30 }
 0xa62   : > { %v3223_v34 = vpop.xlane.xlu1 %3222 }
 0xa63   : > { %16123 = vrcp.f32 %v3223_v34  ;;  %v3220_v36 = vpop.xlane.xlu0 %3219 }
 0xa64   : > { %16125 = vrcp.f32 %v3220_v36 }
 0xa65   : > { %v16116_v37 = vpop.eup %16115 }
 0xa66   : > { %v16118_v39 = vpop.eup %16117  ;;  %v3229_v40 = vpop.xlane.xlu1 %3228  ;;  %v3239_v38 = vmul.f32 %v16116_v37, %v16100_v49 }
 0xa67   : > { %16127 = vrcp.f32 %v3229_v40  ;;  %v3226_v41 = vpop.xlane.xlu0 %3225  ;;  %v3238_v48 = vmul.f32 %v16118_v39, %v16102_v5 }
 0xa68   : > { %16129 = vrcp.f32 %v3226_v41 }
 0xa69   : > { %v16120_v51 = vpop.eup %16119  ;;  %14265 = vmatprep.mubr.msk.f32.mxu1 %vm2429_vm7, %v3238_v48 }
 0xa6a   : > { %v16122_v7 = vpop.eup %16121  ;;  %14266 = vmatmul.mubr.msk.f32.vlgmr.msra.gmra.mrb[42].mxu1 %vm2429_vm7, %v3239_v38  ;;  %v3241_v58 = vmul.f32 %v16120_v51, %v16104_v24 }
 0xa6b   : > { %v3240_v56 = vmul.f32 %v16122_v7, %v16106_v16  ;;  %14278 = vmatpush3.msra.mxu1 %v12810_v26 }
 0xa6c   : > { %14291 = vmatprep.subr.mxu1 %v2647_v4 }
 0xa6d   : > { %v16124_v22 = vpop.eup %16123  ;;  %14268 = vmatprep.mubr.msk.f32.mxu1 %vm2429_vm7, %v3240_v56 }
 0xa6e   : > { %v16126_v60 = vpop.eup %16125  ;;  %14269 = vmatmul.mubr.msk.f32.gmra.mrb[44].mxu1 %vm2429_vm7, %v3241_v58  ;;  %v3243_v31 = vmul.f32 %v16124_v22, %v16108_v6 }
 0xa6f   : > { %v3242_v61 = vmul.f32 %v16126_v60, %v16110_v18 }
 0xa71   : > { %v16128_v33 = vpop.eup %16127  ;;  %14271 = vmatprep.mubr.msk.f32.mxu1 %vm2429_vm7, %v3242_v61 }
 0xa72   : > { %v16130_v32 = vpop.eup %16129  ;;  %14272 = vmatmul.mubr.msk.f32.gmra.mrb[46].mxu1 %vm2429_vm7, %v3243_v31  ;;  %v3245_v53 = vmul.f32 %v16128_v33, %v16112_v25 }
 0xa73   : > { %v3244_v35 = vmul.f32 %v16130_v32, %v16114_v27 }
 0xa75   : > { %14274 = vmatprep.mubr.msk.f32.mxu1 %vm2429_vm7, %v3244_v35 }
 0xa76   : > { %14275 = vmatmul.mubr.msk.f32.gmra.mrb[48].mxu1 %vm2429_vm7, %v3245_v53 }
 0xb3d   : > { %v14267_v42 = vpop.f32.mrb[42].mxu1 }
 0xb3e   : > { %v3336_v43 = vpop.f32.mrb[43].mxu1 }
 0xb3f   : > { %14279 = vmatprep.mubr.msk.f32.mxu1 %vm2275_vm5, %v3336_v43 }
 0xb40   : > { %14280 = vmatmul.mubr.msk.f32.vlgmr.msra.gmra.mrb[50].mxu1 %vm2275_vm5, %v14267_v42 }
 0xb41   : > { %14292 = vmatpush3.msra.mxu1 %v2647_v4  ;;  %v14270_v8 = vpop.f32.mrb[44].mxu1 }
 0xb42   : > { %v3346_v49 = vpop.f32.mrb[45].mxu1 }
 0xb43   : > { %14282 = vmatprep.mubr.msk.f32.mxu1 %vm2275_vm5, %v3346_v49 }
 0xb44   : > { %14283 = vmatmul.mubr.msk.f32.gmra.mrb[52].mxu1 %vm2275_vm5, %v14270_v8 }
 0xb45   : > { %v14273_v10 = vpop.f32.mrb[46].mxu1 }
 0xb46   : > { %v3356_v5 = vpop.f32.mrb[47].mxu1 }
 0xb47   : > { %14285 = vmatprep.mubr.msk.f32.mxu1 %vm2275_vm5, %v3356_v5 }
 0xb48   : > { %14286 = vmatmul.mubr.msk.f32.gmra.mrb[54].mxu1 %vm2275_vm5, %v14273_v10 }
 0xb49   : > { %v14276_v15 = vpop.f32.mrb[48].mxu1 }
 0xb4a   : > { %v3366_v45 = vpop.f32.mrb[49].mxu1 }
 0xb4b   : > { %14288 = vmatprep.mubr.msk.f32.mxu1 %vm2275_vm5, %v3366_v45 }
 0xb4c   : > { %14289 = vmatmul.mubr.msk.f32.gmra.mrb[56].mxu1 %vm2275_vm5, %v14276_v15 }
 0xb4d   : > { %14293 = vmatprep.mubr.msk.f32.mxu1 %vm2275_vm5, %v17502_v44 }
 0xb50   : > { %14294 = vmatmul.mubr.msk.f32.vlgmr.msra.gmra.mrb[50].mxu1 %vm2275_vm5, %v17500_v50  ;;  %v12827_v50 = vld [vmem:[%s19131_s7] ss:$0 sm:$0xff] }
 0xb51   : > { %14296 = vmatprep.mubr.msk.f32.mxu1 %vm2275_vm5, %v17506_v12 }
 0xb54   : > { %14297 = vmatmul.mubr.msk.f32.gmra.mrb[52].mxu1 %vm2275_vm5, %v17504_v59 }
 0xb55   : > { %14299 = vmatprep.mubr.msk.f32.mxu1 %vm2275_vm5, %v17510_v54 }
 0xb58   : > { %14300 = vmatmul.mubr.msk.f32.gmra.mrb[54].mxu1 %vm2275_vm5, %v17508_v62 }
 0xb59   : > { %14302 = vmatprep.mubr.msk.f32.mxu1 %vm2275_vm5, %v17514_v47 }
 0xb5c   : > { %14303 = vmatmul.mubr.msk.f32.gmra.mrb[56].mxu1 %vm2275_vm5, %v17512_v14 }
 0xc23   : > { %v14295_v44 = vpop.f32.mrb[50].mxu1 }
 0xc24   : > { %v3636_v52 = vadd.f32 %v14295_v44, %v17151_v55  ;;  %v3596_v12 = vpop.f32.mrb[51].mxu1 }
 0xc25   : > { %v3635_v24 = vadd.f32 %v3596_v12, %v17145_v46 }
 0xc26   : > { %v17587_v59 = vadd.f32 %v12827_v50, %v3636_v52 }
 0xc27   : > { %v17589_v16 = vadd.f32 %v12827_v50, %v3635_v24  ;;  %v14298_v54 = vpop.f32.mrb[52].mxu1 }
 0xc28   : > { %v3638_v62 = vadd.f32 %v14298_v54, %v17161_v1  ;;  %v3606_v17 = vpop.f32.mrb[53].mxu1  ;;  %v3663_v47 = vsel %vm1633_vm4, %v17587_v59, 0.0 }
 0xc29   : > { %v3637_v14 = vadd.f32 %v3606_v17, %v17154_v57  ;;  %3664 = vadd.xlane.f32.xlu1 %v3663_v47  ;;  %v3660_v55 = vsel %vm1633_vm4, %v17589_v16, 0.0 }
 0xc2a   : > { %v17597_v3 = vadd.f32 %v12827_v50, %v3638_v62  ;;  %3661 = vadd.xlane.f32.xlu0 %v3660_v55  ;;  %v3792_v55 = vld [vmem:[%s19132_s22] sm:$0xff]  ;;  %s19138_s22 = sld [smem:[#allocation33_spill]] }
 0xc2b   : > { %v17599_v46 = vadd.f32 %v12827_v50, %v3637_v14  ;;  %v14301_v6 = vpop.f32.mrb[54].mxu1 }
 0xc2c   : > { %v3640_v18 = vadd.f32 %v14301_v6, %v17171_v9  ;;  %v3616_v20 = vpop.f32.mrb[55].mxu1  ;;  %v3669_v1 = vsel %vm1633_vm4, %v17597_v3, 0.0  ;;  %v3793_v6 = vld [vmem:[%s19133_s16 + $0x8] sm:$0xff] }
 0xc2d   : > { %v3639_v23 = vadd.f32 %v3616_v20, %v17164_v2  ;;  %3670 = vadd.xlane.f32.xlu1 %v3669_v1  ;;  %v3666_v57 = vsel %vm1633_vm4, %v17599_v46, 0.0 }
 0xc2e   : > { %v17607_v25 = vadd.f32 %v12827_v50, %v3640_v18  ;;  %3667 = vadd.xlane.f32.xlu0 %v3666_v57  ;;  %v15314_v18 = vpack.c.bf16 %v3793_v6, %v3792_v55 }
 0xc2f   : > { %v17609_v27 = vadd.f32 %v12827_v50, %v3639_v23  ;;  %v14304_v28 = vpop.f32.mrb[56].mxu1 }
 0xc30   : > { %v3642_v11 = vadd.f32 %v14304_v28, %v17180_v13  ;;  %v3626_v26 = vpop.f32.mrb[57].mxu1  ;;  %v3675_v9 = vsel %vm1633_vm4, %v17607_v25, 0.0  ;;  %15315 = vmatprep.subr.bf16.mxu0 %v15314_v18  ;;  %s19139_s3 = smov %s19138_s22 }
 0xc31   : > { %v3641_v29 = vadd.f32 %v3626_v26, %v17174_v63  ;;  %3676 = vadd.xlane.f32.xlu1 %v3675_v9  ;;  %v3672_v2 = vsel %vm1633_vm4, %v17609_v27, 0.0  ;;  %15317 = vmatpush3.bf16.msra.mxu0 %v15314_v18 }
 0xc32   : > { %v17617_v0 = vadd.f32 %v12827_v50, %v3642_v11  ;;  %3673 = vadd.xlane.f32.xlu0 %v3672_v2 }
 0xc33   : > { %v17619_v21 = vadd.f32 %v12827_v50, %v3641_v29 }
 0xc34   : > { %v3681_v30 = vsel %vm1633_vm4, %v17617_v0, 0.0 }
 0xc35   : > { %3682 = vadd.xlane.f32.xlu1 %v3681_v30  ;;  %v3678_v13 = vsel %vm1633_vm4, %v17619_v21, 0.0 }
 0xc36   : > { %3679 = vadd.xlane.f32.xlu0 %v3678_v13 }
 0xcb6   : > { %v3665_v34 = vpop.xlane.xlu1 %3664 }
 0xcb7   : > { %v3685_v36 = vmul.f32 0.0625, %v3665_v34  ;;  %v3662_v63 = vpop.xlane.xlu0 %3661 }
 0xcb8   : > { %v3684_v37 = vmul.f32 0.0625, %v3662_v63 }
 0xcb9   : > { %v17626_v39 = vsub.f32 %v17587_v59, %v3685_v36 }
 0xcba   : > { %v17629_v40 = vsub.f32 %v17589_v16, %v3684_v37  ;;  %v3671_v41 = vpop.xlane.xlu1 %3670 }
 0xcbb   : > { %v3687_v48 = vmul.f32 0.0625, %v3671_v41  ;;  %v3668_v38 = vpop.xlane.xlu0 %3667  ;;  %v3701_v51 = vmul.f32 %v17626_v39, %v17626_v39 }
 0xcbc   : > { %v3686_v7 = vmul.f32 0.0625, %v3668_v38  ;;  %v3700_v56 = vmul.f32 %v17629_v40, %v17629_v40 }
 0xcbd   : > { %v17636_v58 = vsub.f32 %v17597_v3, %v3687_v48  ;;  %v3711_v22 = vsel %vm1633_vm4, %v3701_v51, 0.0 }
 0xcbe   : > { %v17640_v60 = vsub.f32 %v17599_v46, %v3686_v7  ;;  %v3677_v61 = vpop.xlane.xlu1 %3676  ;;  %3712 = vadd.xlane.f32.xlu1 %v3711_v22  ;;  %v3708_v31 = vsel %vm1633_vm4, %v3700_v56, 0.0 }
 0xcbf   : > { %v3689_v33 = vmul.f32 0.0625, %v3677_v61  ;;  %v3674_v32 = vpop.xlane.xlu0 %3673  ;;  %3709 = vadd.xlane.f32.xlu0 %v3708_v31  ;;  %v3703_v35 = vmul.f32 %v17636_v58, %v17636_v58  ;;  %v12828_v61 = vld [vmem:[%s19134_s29] ss:$0 sm:$0xff] }
 0xcc0   : > { %v3688_v53 = vmul.f32 0.0625, %v3674_v32  ;;  %v3702_v4 = vmul.f32 %v17640_v60, %v17640_v60 }
 0xcc1   : > { %v17648_v42 = vsub.f32 %v17607_v25, %v3689_v33  ;;  %v3717_v43 = vsel %vm1633_vm4, %v3703_v35, 0.0 }
 0xcc2   : > { %v17652_v8 = vsub.f32 %v17609_v27, %v3688_v53  ;;  %3718 = vadd.xlane.f32.xlu1 %v3717_v43  ;;  %v3683_v49 = vpop.xlane.xlu1 %3682  ;;  %v3714_v10 = vsel %vm1633_vm4, %v3702_v4, 0.0  ;;  %v12829_v43 = vld [vmem:[%s19135_s8] ss:$0 sm:$0xff] }
 0xcc3   : > { %v3691_v5 = vmul.f32 0.0625, %v3683_v49  ;;  %3715 = vadd.xlane.f32.xlu0 %v3714_v10  ;;  %v3680_v15 = vpop.xlane.xlu0 %3679  ;;  %v3705_v45 = vmul.f32 %v17648_v42, %v17648_v42 }
 0xcc4   : > { %v3690_v44 = vmul.f32 0.0625, %v3680_v15  ;;  %v3704_v50 = vmul.f32 %v17652_v8, %v17652_v8 }
 0xcc5   : > { %v17660_v52 = vsub.f32 %v17617_v0, %v3691_v5  ;;  %v3723_v12 = vsel %vm1633_vm4, %v3705_v45, 0.0 }
 0xcc6   : > { %v17664_v24 = vsub.f32 %v17619_v21, %v3690_v44  ;;  %3724 = vadd.xlane.f32.xlu1 %v3723_v12  ;;  %v3720_v54 = vsel %vm1633_vm4, %v3704_v50, 0.0 }
 0xcc7   : > { %3721 = vadd.xlane.f32.xlu0 %v3720_v54  ;;  %v3707_v62 = vmul.f32 %v17660_v52, %v17660_v52 }
 0xcc8   : > { %v3706_v17 = vmul.f32 %v17664_v24, %v17664_v24 }
 0xcc9   : > { %v3729_v47 = vsel %vm1633_vm4, %v3707_v62, 0.0 }
 0xcca   : > { %3730 = vadd.xlane.f32.xlu1 %v3729_v47  ;;  %v3726_v14 = vsel %vm1633_vm4, %v3706_v17, 0.0 }
 0xccb   : > { %3727 = vadd.xlane.f32.xlu0 %v3726_v14 }
 0xd4b   : > { %v3713_v20 = vpop.xlane.xlu1 %3712 }
 0xd4c   : > { %v3733_v1 = vmul.f32 0.0625, %v3713_v20  ;;  %v3710_v23 = vpop.xlane.xlu0 %3709 }
 0xd4d   : > { %v3732_v57 = vmul.f32 0.0625, %v3710_v23 }
 0xd4e   : > { %v3741_v28 = vadd.f32 1e-05, %v3733_v1 }
 0xd4f   : > { %v3740_v11 = vadd.f32 1e-05, %v3732_v57  ;;  %v3719_v26 = vpop.xlane.xlu1 %3718 }
 0xd50   : > { %16131 = vrsqrt.f32 %v3741_v28  ;;  %v3735_v9 = vmul.f32 0.0625, %v3719_v26  ;;  %v3716_v29 = vpop.xlane.xlu0 %3715 }
 0xd51   : > { %16133 = vrsqrt.f32 %v3740_v11  ;;  %v3734_v2 = vmul.f32 0.0625, %v3716_v29  ;;  %v4003_v11 = vld [vmem:[%s19137_s18 + $0x8] sm:$0xff] }
 0xd52   : > { %v3743_v30 = vadd.f32 1e-05, %v3735_v9  ;;  %v4005_v9 = vld [vmem:[%s19137_s18 + $0x18] sm:$0xff] }
 0xd53   : > { %v3742_v13 = vadd.f32 1e-05, %v3734_v2  ;;  %v3725_v34 = vpop.xlane.xlu1 %3724  ;;  %v12830_v2 = vld [vmem:[%s19138_s22] ss:$0 sm:$0xff]  ;;  %s19142_s22 = sld [smem:[#allocation23_spill]] }
 0xd54   : > { %16135 = vrsqrt.f32 %v3743_v30  ;;  %v3737_v36 = vmul.f32 0.0625, %v3725_v34  ;;  %v3722_v63 = vpop.xlane.xlu0 %3721 }
 0xd55   : > { %16137 = vrsqrt.f32 %v3742_v13  ;;  %v3736_v37 = vmul.f32 0.0625, %v3722_v63 }
 0xd56   : > { %v3745_v41 = vadd.f32 1e-05, %v3737_v36 }
 0xd57   : > { %v3744_v48 = vadd.f32 1e-05, %v3736_v37  ;;  %v3731_v38 = vpop.xlane.xlu1 %3730 }
 0xd58   : > { %16139 = vrsqrt.f32 %v3745_v41  ;;  %v3739_v51 = vmul.f32 0.0625, %v3731_v38  ;;  %v3728_v7 = vpop.xlane.xlu0 %3727 }
 0xd59   : > { %16141 = vrsqrt.f32 %v3744_v48  ;;  %v3738_v56 = vmul.f32 0.0625, %v3728_v7 }
 0xd5a   : > { %v16132_v22 = vpop.eup %16131  ;;  %v3747_v31 = vadd.f32 1e-05, %v3739_v51 }
 0xd5b   : > { %v16134_v33 = vpop.eup %16133  ;;  %v3757_v32 = vmul.f32 %v16132_v22, %v17626_v39  ;;  %v3746_v35 = vadd.f32 1e-05, %v3738_v56 }
 0xd5c   : > { %16143 = vrsqrt.f32 %v3747_v31  ;;  %v3756_v53 = vmul.f32 %v16134_v33, %v17629_v40 }
 0xd5d   : > { %v3771_v4 = vmul.f32 %v12828_v61, %v3757_v32  ;;  %16145 = vrsqrt.f32 %v3746_v35 }
 0xd5e   : > { %v16136_v49 = vpop.eup %16135  ;;  %v3770_v10 = vmul.f32 %v12828_v61, %v3756_v53 }
 0xd5f   : > { %v16138_v5 = vpop.eup %16137  ;;  %v3759_v15 = vmul.f32 %v16136_v49, %v17636_v58  ;;  %v3785_v50 = vadd.f32 %v12829_v43, %v3771_v4 }
 0xd60   : > { %v3784_v45 = vadd.f32 %v12829_v43, %v3770_v10  ;;  %v3758_v44 = vmul.f32 %v16138_v5, %v17640_v60 }
 0xd61   : > { %v3773_v12 = vmul.f32 %v12828_v61, %v3759_v15 }
 0xd62   : > { %v16140_v54 = vpop.eup %16139  ;;  %14309 = vmatprep.mubr.msk.f32.mxu0 %vm1633_vm4, %v3784_v45  ;;  %v3772_v39 = vmul.f32 %v12828_v61, %v3758_v44 }
 0xd63   : > { %v16142_v62 = vpop.eup %16141  ;;  %14310 = vmatmul.mubr.msk.f32.vlgmr.msra.gmra.mrb[38].mxu0 %vm1633_vm4, %v3785_v50  ;;  %v3761_v40 = vmul.f32 %v16140_v54, %v17648_v42  ;;  %v3787_v14 = vadd.f32 %v12829_v43, %v3773_v12 }
 0xd64   : > { %v3786_v17 = vadd.f32 %v12829_v43, %v3772_v39  ;;  %v3760_v47 = vmul.f32 %v16142_v62, %v17652_v8 }
 0xd65   : > { %v3775_v55 = vmul.f32 %v12828_v61, %v3761_v40 }
 0xd66   : > { %v16144_v58 = vpop.eup %16143  ;;  %14312 = vmatprep.mubr.msk.f32.mxu0 %vm1633_vm4, %v3786_v17  ;;  %v3774_v60 = vmul.f32 %v12828_v61, %v3760_v47 }
 0xd67   : > { %v16146_v6 = vpop.eup %16145  ;;  %14313 = vmatmul.mubr.msk.f32.gmra.mrb[40].mxu0 %vm1633_vm4, %v3787_v14  ;;  %v3763_v18 = vmul.f32 %v16144_v58, %v17660_v52  ;;  %v3789_v1 = vadd.f32 %v12829_v43, %v3775_v55  ;;  %v4002_v52 = vld [vmem:[%s19136_s26] sm:$0xff]  ;;  %s19140_s26 = sld [smem:[#allocation35_spill]] }
 0xd68   : > { %v3788_v20 = vadd.f32 %v12829_v43, %v3774_v60  ;;  %v3762_v42 = vmul.f32 %v16146_v6, %v17664_v24  ;;  %v15318_v26 = vpack.c.bf16 %v4003_v11, %v4002_v52  ;;  %v4004_v24 = vld [vmem:[%s19137_s18 + $0x10] sm:$0xff] }
 0xd69   : > { %v3777_v8 = vmul.f32 %v12828_v61, %v3763_v18  ;;  %v15322_v29 = vpack.c.bf16 %v4005_v9, %v4004_v24 }
 0xd6a   : > { %14315 = vmatprep.mubr.msk.f32.mxu0 %vm1633_vm4, %v3788_v20  ;;  %v3776_v23 = vmul.f32 %v12828_v61, %v3762_v42  ;;  %15319 = vmatprep.subr.bf16.mxu0 %v15318_v26 }
 0xd6b   : > { %14316 = vmatmul.mubr.msk.f32.gmra.mrb[42].mxu0 %vm1633_vm4, %v3789_v1  ;;  %v3791_v28 = vadd.f32 %v12829_v43, %v3777_v8 }
 0xd6c   : > { %v3790_v57 = vadd.f32 %v12829_v43, %v3776_v23  ;;  %15321 = vmatpush3.bf16.msra.mxu0 %v15318_v26 }
 0xd6d   : > { %15323 = vmatprep.subr.bf16.mxu0 %v15322_v29  ;;  %s19141_s5 = smov %s19140_s26 }
 0xd6e   : > { %14318 = vmatprep.mubr.msk.f32.mxu0 %vm1633_vm4, %v3790_v57 }
 0xd6f   : > { %14319 = vmatmul.mubr.msk.f32.gmra.mrb[44].mxu0 %vm1633_vm4, %v3791_v28 }
 0xd70   : > { %15325 = vmatpush3.bf16.msra.mxu0 %v15322_v29 }
 0xe36   : > { %v14311_v30 = vpop.f32.mrb[38].mxu0 }
 0xe37   : > { %v17698_v13 = vadd.f32 %v14311_v30, %v12830_v2  ;;  %v3891_v34 = vpop.f32.mrb[39].mxu0 }
 0xe38   : > { %v17700_v36 = vadd.f32 %v12830_v2, %v3891_v34 }
 0xe39   : > { %v3931_v63 = vmul.f32 %v17698_v13, %v17698_v13 }
 0xe3a   : > { %v3930_v37 = vmul.f32 %v17700_v36, %v17700_v36  ;;  %v14314_v41 = vpop.f32.mrb[40].mxu0 }
 0xe3b   : > { %v3939_v48 = vmul.f32 %v3931_v63, %v17698_v13  ;;  %v17707_v38 = vadd.f32 %v14314_v41, %v12830_v2  ;;  %v3901_v51 = vpop.f32.mrb[41].mxu0 }
 0xe3c   : > { %v3938_v7 = vmul.f32 %v3930_v37, %v17700_v36  ;;  %v17710_v56 = vadd.f32 %v12830_v2, %v3901_v51 }
 0xe3d   : > { %v3947_v22 = vmul.f32 0.044715, %v3939_v48  ;;  %v3933_v61 = vmul.f32 %v17707_v38, %v17707_v38 }
 0xe3e   : > { %v3946_v31 = vmul.f32 0.044715, %v3938_v7  ;;  %v3932_v33 = vmul.f32 %v17710_v56, %v17710_v56  ;;  %v14317_v32 = vpop.f32.mrb[42].mxu0 }
 0xe3f   : > { %v3955_v35 = vadd.f32 %v3947_v22, %v17698_v13  ;;  %v3941_v53 = vmul.f32 %v3933_v61, %v17707_v38  ;;  %v17718_v4 = vadd.f32 %v14317_v32, %v12830_v2  ;;  %v3911_v43 = vpop.f32.mrb[43].mxu0 }
 0xe40   : > { %v3954_v49 = vadd.f32 %v3946_v31, %v17700_v36  ;;  %v3940_v10 = vmul.f32 %v3932_v33, %v17710_v56  ;;  %v17722_v5 = vadd.f32 %v12830_v2, %v3911_v43 }
 0xe41   : > { %v3963_v15 = vmul.f32 0.7978846, %v3955_v35  ;;  %v3949_v45 = vmul.f32 0.044715, %v3941_v53  ;;  %v3935_v44 = vmul.f32 %v17718_v4, %v17718_v4 }
 0xe42   : > { %v3962_v50 = vmul.f32 0.7978846, %v3954_v49  ;;  %v3948_v12 = vmul.f32 0.044715, %v3940_v10  ;;  %v3934_v54 = vmul.f32 %v17722_v5, %v17722_v5  ;;  %v14320_v39 = vpop.f32.mrb[44].mxu0 }
 0xe43   : > { %16147 = vtanh.f32 %v3963_v15  ;;  %v3957_v62 = vadd.f32 %v3949_v45, %v17707_v38  ;;  %v3943_v40 = vmul.f32 %v3935_v44, %v17718_v4  ;;  %v17730_v17 = vadd.f32 %v14320_v39, %v12830_v2  ;;  %v3921_v47 = vpop.f32.mrb[45].mxu0 }
 0xe44   : > { %16149 = vtanh.f32 %v3962_v50  ;;  %v3956_v14 = vadd.f32 %v3948_v12, %v17710_v56  ;;  %v3942_v55 = vmul.f32 %v3934_v54, %v17722_v5  ;;  %v3922_v58 = vadd.f32 %v12830_v2, %v3921_v47 }
 0xe45   : > { %v3965_v60 = vmul.f32 0.7978846, %v3957_v62  ;;  %v3951_v6 = vmul.f32 0.044715, %v3943_v40  ;;  %v3937_v18 = vmul.f32 %v17730_v17, %v17730_v17 }
 0xe46   : > { %v3964_v20 = vmul.f32 0.7978846, %v3956_v14  ;;  %v3950_v42 = vmul.f32 0.044715, %v3942_v55  ;;  %v3936_v1 = vmul.f32 %v3922_v58, %v3922_v58  ;;  %v12839_v55 = vld [vmem:[%s19140_s26] ss:$0 sm:$0xff] }
 0xe47   : > { %16151 = vtanh.f32 %v3965_v60  ;;  %v3959_v8 = vadd.f32 %v3951_v6, %v17718_v4  ;;  %v3945_v23 = vmul.f32 %v3937_v18, %v17730_v17  ;;  %s19144_s26 = sld [smem:[#allocation24_spill]] }
 0xe48   : > { %16153 = vtanh.f32 %v3964_v20  ;;  %v3958_v57 = vadd.f32 %v3950_v42, %v17722_v5  ;;  %v3944_v28 = vmul.f32 %v3936_v1, %v3922_v58 }
 0xe49   : > { %v3967_v52 = vmul.f32 0.7978846, %v3959_v8  ;;  %v3953_v11 = vmul.f32 0.044715, %v3945_v23 }
 0xe4a   : > { %v3966_v26 = vmul.f32 0.7978846, %v3958_v57  ;;  %v3952_v24 = vmul.f32 0.044715, %v3944_v28 }
 0xe4b   : > { %16155 = vtanh.f32 %v3967_v52  ;;  %v3961_v9 = vadd.f32 %v3953_v11, %v17730_v17 }
 0xe4c   : > { %16157 = vtanh.f32 %v3966_v26  ;;  %v3960_v29 = vadd.f32 %v3952_v24, %v3922_v58 }
 0xe4d   : > { %v16148_v2 = vpop.eup %16147  ;;  %v3969_v30 = vmul.f32 0.7978846, %v3961_v9 }
 0xe4e   : > { %v16150_v34 = vpop.eup %16149  ;;  %v3979_v63 = vadd.f32 1.0, %v16148_v2  ;;  %v3968_v37 = vmul.f32 0.7978846, %v3960_v29 }
 0xe4f   : > { %16159 = vtanh.f32 %v3969_v30  ;;  %v3978_v41 = vadd.f32 1.0, %v16150_v34 }
 0xe50   : > { %v3987_v48 = vmul.f32 0.5, %v3979_v63  ;;  %16161 = vtanh.f32 %v3968_v37 }
 0xe51   : > { %v16152_v51 = vpop.eup %16151  ;;  %v3986_v7 = vmul.f32 0.5, %v3978_v41 }
 0xe52   : > { %v16154_v22 = vpop.eup %16153  ;;  %v3981_v61 = vadd.f32 1.0, %v16152_v51  ;;  %v3995_v32 = vmul.f32 %v3987_v48, %v17698_v13 }
 0xe53   : > { %v3994_v31 = vmul.f32 %v3986_v7, %v17700_v36  ;;  %v3980_v33 = vadd.f32 1.0, %v16154_v22 }
 0xe54   : > { %v3989_v35 = vmul.f32 0.5, %v3981_v61 }
 0xe55   : > { %v16156_v53 = vpop.eup %16155  ;;  %14329 = vmatprep.mubr.msk.f32.mxu0 %vm4013_vm8, %v3994_v31  ;;  %v3988_v43 = vmul.f32 0.5, %v3980_v33 }
 0xe56   : > { %v16158_v49 = vpop.eup %16157  ;;  %14330 = vmatmul.mubr.msk.f32.vlgmr.msra.gmra.mrb[46].mxu0 %vm4013_vm8, %v3995_v32  ;;  %v3983_v10 = vadd.f32 1.0, %v16156_v53  ;;  %v3997_v44 = vmul.f32 %v3989_v35, %v17707_v38 }
 0xe57   : > { %v3996_v15 = vmul.f32 %v3988_v43, %v17710_v56  ;;  %v3982_v45 = vadd.f32 1.0, %v16158_v49 }
 0xe58   : > { %v3991_v50 = vmul.f32 0.5, %v3983_v10 }
 0xe59   : > { %v16160_v12 = vpop.eup %16159  ;;  %14332 = vmatprep.mubr.msk.f32.mxu0 %vm4013_vm8, %v3996_v15  ;;  %v3990_v13 = vmul.f32 0.5, %v3982_v45 }
 0xe5a   : > { %v16162_v36 = vpop.eup %16161  ;;  %14333 = vmatmul.mubr.msk.f32.gmra.mrb[48].mxu0 %vm4013_vm8, %v3997_v44  ;;  %v3985_v54 = vadd.f32 1.0, %v16160_v12  ;;  %v3999_v40 = vmul.f32 %v3991_v50, %v17718_v4 }
 0xe5b   : > { %v3998_v39 = vmul.f32 %v3990_v13, %v17722_v5  ;;  %v3984_v62 = vadd.f32 1.0, %v16162_v36 }
 0xe5c   : > { %v3993_v47 = vmul.f32 0.5, %v3985_v54 }
 0xe5d   : > { %14335 = vmatprep.mubr.msk.f32.mxu0 %vm4013_vm8, %v3998_v39  ;;  %v3992_v56 = vmul.f32 0.5, %v3984_v62 }
 0xe5e   : > { %14336 = vmatmul.mubr.msk.f32.gmra.mrb[50].mxu0 %vm4013_vm8, %v3999_v40  ;;  %v4001_v14 = vmul.f32 %v3993_v47, %v17730_v17 }
 0xe5f   : > { %v4000_v38 = vmul.f32 %v3992_v56, %v3922_v58 }
 0xe61   : > { %14338 = vmatprep.mubr.msk.f32.mxu0 %vm4013_vm8, %v4000_v38 }
 0xe62   : > { %14339 = vmatmul.mubr.msk.f32.gmra.mrb[52].mxu0 %vm4013_vm8, %v4001_v14 }
 0xf29   : > { %v14331_v60 = vpop.f32.mrb[46].mxu0 }
 0xf2a   : > { %v4110_v6 = vadd.f32 %v14331_v60, %v12839_v55  ;;  %v4104_v5 = vpop.f32.mrb[47].mxu0 }
 0xf2b   : > { %v4105_v18 = vadd.f32 %v12839_v55, %v4104_v5 }
 0xf2c   : > { %v17757_v4 = vadd.f32 %v4110_v6, %v17587_v59 }
 0xf2d   : > { %v17760_v20 = vadd.f32 %v4105_v18, %v17589_v16  ;;  %v14334_v42 = vpop.f32.mrb[48].mxu0 }
 0xf2e   : > { %v4120_v1 = vadd.f32 %v14334_v42, %v12839_v55  ;;  %v4114_v58 = vpop.f32.mrb[49].mxu0  ;;  %v4158_v17 = vsel %vm1633_vm4, %v17757_v4, 0.0 }
 0xf2f   : > { %v4115_v8 = vadd.f32 %v12839_v55, %v4114_v58  ;;  %4159 = vadd.xlane.f32.xlu1 %v4158_v17  ;;  %v4155_v23 = vsel %vm1633_vm4, %v17760_v20, 0.0 }
 0xf30   : > { %v17767_v57 = vadd.f32 %v4120_v1, %v17597_v3  ;;  %4156 = vadd.xlane.f32.xlu0 %v4155_v23  ;;  %v12864_v23 = vld [vmem:[%s19099_s13 + $0x20] sm:$0xff] }
 0xf31   : > { %v17770_v59 = vadd.f32 %v4115_v8, %v17599_v46  ;;  %v14337_v16 = vpop.f32.mrb[50].mxu0 }
 0xf32   : > { %v4130_v28 = vadd.f32 %v14337_v16, %v12839_v55  ;;  %v4124_v52 = vpop.f32.mrb[51].mxu0  ;;  %v4164_v11 = vsel %vm1633_vm4, %v17767_v57, 0.0  ;;  %v12865_v16 = vld [vmem:[%s19099_s13 + $0x28] sm:$0xff] }
 0xf33   : > { %v4125_v26 = vadd.f32 %v12839_v55, %v4124_v52  ;;  %4165 = vadd.xlane.f32.xlu1 %v4164_v11  ;;  %v4161_v24 = vsel %vm1633_vm4, %v17770_v59, 0.0  ;;  %v15330_v52 = vpack.c.bf16 %v12865_v16, %v12864_v23  ;;  %v12853_v11 = vld [vmem:[%s16820_s27 + $0x28] sm:$0xff] }
 0xf34   : > { %v17777_v9 = vadd.f32 %v4130_v28, %v17607_v25  ;;  %4162 = vadd.xlane.f32.xlu0 %v4161_v24  ;;  %v12852_v28 = vld [vmem:[%s16820_s27 + $0x20] sm:$0xff] }
 0xf35   : > { %v17780_v3 = vadd.f32 %v4125_v26, %v17609_v27  ;;  %v14340_v46 = vpop.f32.mrb[52].mxu0  ;;  %v15326_v26 = vpack.c.bf16 %v12853_v11, %v12852_v28  ;;  %15331 = vmatprep.subr.bf16.mxu0 %v15330_v52  ;;  %v12876_v24 = vld [vmem:[%s19097_s17 + $0x20] sm:$0xff] }
 0xf36   : > { %v4140_v29 = vadd.f32 %v14340_v46, %v12839_v55  ;;  %v4134_v2 = vpop.f32.mrb[53].mxu0  ;;  %v4170_v30 = vsel %vm1633_vm4, %v17777_v9, 0.0  ;;  %15333 = vmatpush3.bf16.msra.mxu0 %v15330_v52  ;;  %v12877_v46 = vld [vmem:[%s19097_s17 + $0x28] sm:$0xff] }
 0xf37   : > { %v4135_v34 = vadd.f32 %v12839_v55, %v4134_v2  ;;  %4171 = vadd.xlane.f32.xlu1 %v4170_v30  ;;  %v4167_v63 = vsel %vm1633_vm4, %v17780_v3, 0.0  ;;  %15327 = vmatprep.subr.bf16.mxu1 %v15326_v26 }
 0xf38   : > { %v17787_v37 = vadd.f32 %v4140_v29, %v17617_v0  ;;  %4168 = vadd.xlane.f32.xlu0 %v4167_v63  ;;  %15329 = vmatpush3.bf16.msra.mxu1 %v15326_v26  ;;  %v15334_v29 = vpack.c.bf16 %v12877_v46, %v12876_v24 }
 0xf39   : > { %v17790_v25 = vadd.f32 %v4135_v34, %v17619_v21 }
 0xf3a   : > { %v4176_v27 = vsel %vm1633_vm4, %v17787_v37, 0.0  ;;  %15335 = vmatprep.subr.bf16.mxu1 %v15334_v29 }
 0xf3b   : > { %4177 = vadd.xlane.f32.xlu1 %v4176_v27  ;;  %v4173_v41 = vsel %vm1633_vm4, %v17790_v25, 0.0 }
 0xf3c   : > { %4174 = vadd.xlane.f32.xlu0 %v4173_v41 }
 0xfbc   : > { %v4160_v48 = vpop.xlane.xlu1 %4159 }
 0xfbd   : > { %v4180_v51 = vmul.f32 0.0625, %v4160_v48  ;;  %v4157_v7 = vpop.xlane.xlu0 %4156 }
 0xfbe   : > { %v4179_v22 = vmul.f32 0.0625, %v4157_v7 }
 0xfbf   : > { %v17797_v61 = vsub.f32 %v17757_v4, %v4180_v51 }
 0xfc0   : > { %v17800_v0 = vsub.f32 %v17760_v20, %v4179_v22  ;;  %v4166_v21 = vpop.xlane.xlu1 %4165 }
 0xfc1   : > { %v4182_v31 = vmul.f32 0.0625, %v4166_v21  ;;  %v4163_v33 = vpop.xlane.xlu0 %4162  ;;  %v4196_v32 = vmul.f32 %v17797_v61, %v17797_v61 }
 0xfc2   : > { %v4181_v35 = vmul.f32 0.0625, %v4163_v33  ;;  %v4195_v53 = vmul.f32 %v17800_v0, %v17800_v0 }
 0xfc3   : > { %v17807_v43 = vsub.f32 %v17767_v57, %v4182_v31  ;;  %v4206_v49 = vsel %vm1633_vm4, %v4196_v32, 0.0 }
 0xfc4   : > { %v17811_v10 = vsub.f32 %v17770_v59, %v4181_v35  ;;  %v4172_v15 = vpop.xlane.xlu1 %4171  ;;  %4207 = vadd.xlane.f32.xlu1 %v4206_v49  ;;  %v4203_v45 = vsel %vm1633_vm4, %v4195_v53, 0.0 }
 0xfc5   : > { %v4184_v44 = vmul.f32 0.0625, %v4172_v15  ;;  %v4169_v50 = vpop.xlane.xlu0 %4168  ;;  %4204 = vadd.xlane.f32.xlu0 %v4203_v45  ;;  %v4198_v12 = vmul.f32 %v17807_v43, %v17807_v43 }
 0xfc6   : > { %v4183_v13 = vmul.f32 0.0625, %v4169_v50  ;;  %v4197_v36 = vmul.f32 %v17811_v10, %v17811_v10 }
 0xfc7   : > { %v17819_v54 = vsub.f32 %v17777_v9, %v4184_v44  ;;  %v4212_v39 = vsel %vm1633_vm4, %v4198_v12, 0.0 }
 0xfc8   : > { %v17823_v62 = vsub.f32 %v17780_v3, %v4183_v13  ;;  %4213 = vadd.xlane.f32.xlu1 %v4212_v39  ;;  %v4178_v40 = vpop.xlane.xlu1 %4177  ;;  %v4209_v47 = vsel %vm1633_vm4, %v4197_v36, 0.0  ;;  %v12850_v36 = vld [vmem:[%s16790_s21 + $0x1] ss:$0 sm:$0xff] }
 0xfc9   : > { %v4186_v56 = vmul.f32 0.0625, %v4178_v40  ;;  %4210 = vadd.xlane.f32.xlu0 %v4209_v47  ;;  %v4175_v38 = vpop.xlane.xlu0 %4174  ;;  %v4200_v14 = vmul.f32 %v17819_v54, %v17819_v54 }
 0xfca   : > { %v4185_v55 = vmul.f32 0.0625, %v4175_v38  ;;  %v4199_v60 = vmul.f32 %v17823_v62, %v17823_v62 }
 0xfcb   : > { %v17831_v6 = vsub.f32 %v17787_v37, %v4186_v56  ;;  %v4218_v5 = vsel %vm1633_vm4, %v4200_v14, 0.0 }
 0xfcc   : > { %v17835_v18 = vsub.f32 %v17790_v25, %v4185_v55  ;;  %4219 = vadd.xlane.f32.xlu1 %v4218_v5  ;;  %v4215_v42 = vsel %vm1633_vm4, %v4199_v60, 0.0  ;;  %v12851_v55 = vld [vmem:[%s16785_s25 + $0x1] ss:$0 sm:$0xff] }
 0xfcd   : > { %4216 = vadd.xlane.f32.xlu0 %v4215_v42  ;;  %v4202_v1 = vmul.f32 %v17831_v6, %v17831_v6 }
 0xfce   : > { %v4201_v58 = vmul.f32 %v17835_v18, %v17835_v18 }
 0xfcf   : > { %v4224_v17 = vsel %vm1633_vm4, %v4202_v1, 0.0 }
 0xfd0   : > { %4225 = vadd.xlane.f32.xlu1 %v4224_v17  ;;  %v4221_v8 = vsel %vm1633_vm4, %v4201_v58, 0.0 }
 0xfd1   : > { %4222 = vadd.xlane.f32.xlu0 %v4221_v8 }
0x1051   : > { %v4208_v2 = vpop.xlane.xlu1 %4207 }
0x1052   : > { %v4228_v30 = vmul.f32 0.0625, %v4208_v2  ;;  %v4205_v34 = vpop.xlane.xlu0 %4204 }
0x1053   : > { %v4227_v63 = vmul.f32 0.0625, %v4205_v34 }
0x1054   : > { %v4236_v27 = vadd.f32 1e-05, %v4228_v30 }
0x1055   : > { %v4235_v41 = vadd.f32 1e-05, %v4227_v63  ;;  %v4214_v48 = vpop.xlane.xlu1 %4213  ;;  %v12867_v63 = vld [vmem:[%s19101_s6 + $0x2] ss:$0 sm:$0xff] }
0x1056   : > { %16163 = vrsqrt.f32 %v4236_v27  ;;  %v4230_v51 = vmul.f32 0.0625, %v4214_v48  ;;  %v4211_v7 = vpop.xlane.xlu0 %4210  ;;  %v17926_v27 = vld [vmem:[%s19125_s1 + $0x2] ss:$0 sm:$0xff] }
0x1057   : > { %16165 = vrsqrt.f32 %v4235_v41  ;;  %v4229_v22 = vmul.f32 0.0625, %v4211_v7 }
0x1058   : > { %v4238_v21 = vadd.f32 1e-05, %v4230_v51 }
0x1059   : > { %v4237_v31 = vadd.f32 1e-05, %v4229_v22  ;;  %v4220_v33 = vpop.xlane.xlu1 %4219 }
0x105a   : > { %16167 = vrsqrt.f32 %v4238_v21  ;;  %v4232_v32 = vmul.f32 0.0625, %v4220_v33  ;;  %v4217_v35 = vpop.xlane.xlu0 %4216 }
0x105b   : > { %16169 = vrsqrt.f32 %v4237_v31  ;;  %v4231_v53 = vmul.f32 0.0625, %v4217_v35 }
0x105c   : > { %v4240_v49 = vadd.f32 1e-05, %v4232_v32 }
0x105d   : > { %v4239_v15 = vadd.f32 1e-05, %v4231_v53  ;;  %v4226_v45 = vpop.xlane.xlu1 %4225 }
0x105e   : > { %16171 = vrsqrt.f32 %v4240_v49  ;;  %v4234_v44 = vmul.f32 0.0625, %v4226_v45  ;;  %v4223_v50 = vpop.xlane.xlu0 %4222 }
0x105f   : > { %16173 = vrsqrt.f32 %v4239_v15  ;;  %v4233_v12 = vmul.f32 0.0625, %v4223_v50 }
0x1060   : > { %v16164_v13 = vpop.eup %16163  ;;  %v4242_v39 = vadd.f32 1e-05, %v4234_v44 }
0x1061   : > { %v16166_v40 = vpop.eup %16165  ;;  %v4252_v47 = vmul.f32 %v16164_v13, %v17797_v61  ;;  %v4241_v56 = vadd.f32 1e-05, %v4233_v12 }
0x1062   : > { %v4251_v38 = vmul.f32 %v16166_v40, %v17800_v0  ;;  %16175 = vrsqrt.f32 %v4242_v39 }
0x1063   : > { %v4266_v14 = vmul.f32 %v12850_v36, %v4252_v47  ;;  %16177 = vrsqrt.f32 %v4241_v56 }
0x1064   : > { %v16168_v60 = vpop.eup %16167  ;;  %v4265_v5 = vmul.f32 %v12850_v36, %v4251_v38 }
0x1065   : > { %v16170_v42 = vpop.eup %16169  ;;  %v4254_v1 = vmul.f32 %v16168_v60, %v17807_v43  ;;  %v17858_v23 = vadd.f32 %v12851_v55, %v4266_v14 }
0x1066   : > { %v4253_v58 = vmul.f32 %v16170_v42, %v17811_v10  ;;  %v17856_v17 = vadd.f32 %v12851_v55, %v4265_v5  ;;  %v12879_v42 = vld [vmem:[%s19128_s10 + $0x2] ss:$0 sm:$0xff] }
0x1067   : > { %v4268_v8 = vmul.f32 %v12850_v36, %v4254_v1 }
0x1068   : > { %v16172_v61 = vpop.eup %16171  ;;  %v4267_v16 = vmul.f32 %v12850_v36, %v4253_v58  ;;  %14345 = vmatprep.mubr.msk.f32.mxu1 %vm1633_vm4, %v17856_v17  ;;  %14361 = vmatprep.mubr.msk.f32.mxu0 %vm1633_vm4, %v17856_v17 }
0x1069   : > { %v16174_v0 = vpop.eup %16173  ;;  %v4256_v28 = vmul.f32 %v16172_v61, %v17819_v54  ;;  %14346 = vmatmul.mubr.msk.f32.vlgmr.msra.gmra.mrb[58].mxu1 %vm1633_vm4, %v17858_v23  ;;  %14362 = vmatmul.mubr.msk.f32.vlgmr.msra.gmra.mrb[54].mxu0 %vm1633_vm4, %v17858_v23  ;;  %v17872_v11 = vadd.f32 %v12851_v55, %v4268_v8 }
0x106a   : > { %v4255_v43 = vmul.f32 %v16174_v0, %v17823_v62  ;;  %v17870_v10 = vadd.f32 %v12851_v55, %v4267_v16  ;;  %15337 = vmatpush3.bf16.msra.mxu1 %v15334_v29 }
0x106b   : > { %v4270_v52 = vmul.f32 %v12850_v36, %v4256_v28 }
0x106c   : > { %v16176_v26 = vpop.eup %16175  ;;  %v4269_v24 = vmul.f32 %v12850_v36, %v4255_v43  ;;  %14348 = vmatprep.mubr.msk.f32.mxu1 %vm1633_vm4, %v17870_v10  ;;  %14364 = vmatprep.mubr.msk.f32.mxu0 %vm1633_vm4, %v17870_v10 }
0x106d   : > { %v16178_v54 = vpop.eup %16177  ;;  %v4258_v46 = vmul.f32 %v16176_v26, %v17831_v6  ;;  %14349 = vmatmul.mubr.msk.f32.gmra.mrb[60].mxu1 %vm1633_vm4, %v17872_v11  ;;  %14365 = vmatmul.mubr.msk.f32.gmra.mrb[56].mxu0 %vm1633_vm4, %v17872_v11  ;;  %v17886_v30 = vadd.f32 %v12851_v55, %v4270_v52 }
0x106e   : > { %v4257_v62 = vmul.f32 %v16178_v54, %v17835_v18  ;;  %v17884_v29 = vadd.f32 %v12851_v55, %v4269_v24 }
0x106f   : > { %v4272_v2 = vmul.f32 %v12850_v36, %v4258_v46 }
0x1070   : > { %v4271_v34 = vmul.f32 %v12850_v36, %v4257_v62  ;;  %14351 = vmatprep.mubr.msk.f32.mxu1 %vm1633_vm4, %v17884_v29  ;;  %14367 = vmatprep.mubr.msk.f32.mxu0 %vm1633_vm4, %v17884_v29 }
0x1071   : > { %14352 = vmatmul.mubr.msk.f32.gmra.mrb[62].mxu1 %vm1633_vm4, %v17886_v30  ;;  %14368 = vmatmul.mubr.msk.f32.gmra.mrb[58].mxu0 %vm1633_vm4, %v17886_v30  ;;  %v17898_v18 = vadd.f32 %v12851_v55, %v4272_v2  ;;  %v12933_v2 = vld [vmem:[%s19099_s13 + $0x30] sm:$0xff] }
0x1072   : > { %v17896_v6 = vadd.f32 %v12851_v55, %v4271_v34  ;;  %v12934_v34 = vld [vmem:[%s19099_s13 + $0x38] sm:$0xff] }
0x1074   : > { %14354 = vmatprep.mubr.msk.f32.mxu1 %vm1633_vm4, %v17896_v6  ;;  %14370 = vmatprep.mubr.msk.f32.mxu0 %vm1633_vm4, %v17896_v6 }
0x1075   : > { %14355 = vmatmul.mubr.msk.f32.gmra.mrb[64].mxu1 %vm1633_vm4, %v17898_v18  ;;  %14371 = vmatmul.mubr.msk.f32.gmra.mrb[60].mxu0 %vm1633_vm4, %v17898_v18 }
0x1076   : > { %14377 = vmatprep.mubr.msk.f32.mxu1 %vm1633_vm4, %v17856_v17 }
0x1079   : > { %14378 = vmatmul.mubr.msk.f32.vlgmr.msra.gmra.mrb[66].mxu1 %vm1633_vm4, %v17858_v23 }
0x107a   : > { %14380 = vmatprep.mubr.msk.f32.mxu1 %vm1633_vm4, %v17870_v10 }
0x107d   : > { %14381 = vmatmul.mubr.msk.f32.gmra.mrb[68].mxu1 %vm1633_vm4, %v17872_v11 }
0x107e   : > { %14383 = vmatprep.mubr.msk.f32.mxu1 %vm1633_vm4, %v17884_v29 }
0x1081   : > { %14384 = vmatmul.mubr.msk.f32.gmra.mrb[70].mxu1 %vm1633_vm4, %v17886_v30 }
0x1082   : > { %14386 = vmatprep.mubr.msk.f32.mxu1 %vm1633_vm4, %v17896_v6 }
0x1085   : > { %14387 = vmatmul.mubr.msk.f32.gmra.mrb[72].mxu1 %vm1633_vm4, %v17898_v18 }
0x113c   : > { %v17928_v41 = vpop.f32.mrb[58].mxu1  ;;  %v14363_v48 = vpop.f32.mrb[54].mxu0 }
0x113d   : > { %v4510_v51 = vadd.f32 %v14363_v48, %v12867_v63  ;;  %v4388_v7 = vpop.f32.mrb[59].mxu1  ;;  %v4504_v22 = vpop.f32.mrb[55].mxu0 }
0x113e   : > { %v4389_v21 = vadd.f32 %v17926_v27, %v4388_v7  ;;  %v4505_v31 = vadd.f32 %v12867_v63, %v4504_v22  ;;  %v15382_v7 = vpack.c.bf16 %v12934_v34, %v12933_v2  ;;  %v12936_v2 = vld [vmem:[%s19101_s6 + $0x3] ss:$0 sm:$0xff]  ;;  %s19157_s6 = sld [smem:[#allocation45_spill]] }
0x1140   : > { %v15338_v33 = vpack.c.bf16 %v4510_v51, %v4505_v31  ;;  %v17931_v32 = vpop.f32.mrb[60].mxu1  ;;  %v14366_v35 = vpop.f32.mrb[56].mxu0  ;;  %14405 = vmatprep.mubr.msk.f32.mxu0 %vm2275_vm5, %v4389_v21 }
0x1141   : > { %v4520_v53 = vadd.f32 %v14366_v35, %v12867_v63  ;;  %v4398_v49 = vpop.f32.mrb[61].mxu1  ;;  %v4514_v15 = vpop.f32.mrb[57].mxu0  ;;  %v4394_v35 = vadd.f32 %v17928_v41, %v17926_v27 }
0x1142   : > { %v4515_v45 = vadd.f32 %v12867_v63, %v4514_v15  ;;  %15340 = vmatprep.subr.msk.bf16.mxu0 %vm17325_vm6, %v15338_v33  ;;  %v4404_v15 = vadd.f32 %v17931_v32, %v17926_v27  ;;  %v12888_v32 = vld [vmem:[%s19129_s11 + $0x80] sm:$0xff] }
0x1143   : > { %15343 = vmatpush3.bf16.xpose.msk.msra.mxu0 %vm17325_vm6, %v15338_v33 }
0x1144   : > { %v15344_v44 = vpack.c.bf16 %v4520_v53, %v4515_v45  ;;  %v14353_v50 = vpop.f32.mrb[62].mxu1  ;;  %v14369_v12 = vpop.f32.mrb[58].mxu0  ;;  %v4399_v53 = vadd.f32 %v17926_v27, %v4398_v49 }
0x1145   : > { %v4530_v13 = vadd.f32 %v14369_v12, %v12867_v63  ;;  %v4408_v36 = vpop.f32.mrb[63].mxu1  ;;  %v4524_v39 = vpop.f32.mrb[59].mxu0  ;;  %v4414_v41 = vadd.f32 %v14353_v50, %v17926_v27 }
0x1146   : > { %v4525_v40 = vadd.f32 %v12867_v63, %v4524_v39  ;;  %15346 = vmatprep.subr.msk.bf16.mxu0 %vm17325_vm6, %v15344_v44  ;;  %v4409_v45 = vadd.f32 %v17926_v27, %v4408_v36  ;;  %v12891_v39 = vld [vmem:[%s19129_s11 + $0x98] sm:$0xff] }
0x1148   : > { %v15350_v47 = vpack.c.bf16 %v4530_v13, %v4525_v40  ;;  %v14356_v56 = vpop.f32.mrb[64].mxu1  ;;  %v14372_v38 = vpop.f32.mrb[60].mxu0 }
0x1149   : > { %v4540_v14 = vadd.f32 %v14372_v38, %v12867_v63  ;;  %v4418_v55 = vpop.f32.mrb[65].mxu1  ;;  %v4534_v60 = vpop.f32.mrb[61].mxu0 }
0x114a   : > { %v4535_v5 = vadd.f32 %v12867_v63, %v4534_v60  ;;  %v4419_v49 = vadd.f32 %v17926_v27, %v4418_v55 }
0x114b   : > { %15349 = vmatpush3.bf16.xpose.msk.msra.mxu0 %vm17325_vm6, %v15344_v44  ;;  %v4424_v44 = vadd.f32 %v14356_v56, %v17926_v27  ;;  %v12889_v27 = vld [vmem:[%s19129_s11 + $0x88] sm:$0xff] }
0x114c   : > { %v15356_v1 = vpack.c.bf16 %v4540_v14, %v4535_v5  ;;  %v14379_v58 = vpop.f32.mrb[66].mxu1  ;;  %15352 = vmatprep.subr.msk.bf16.mxu0 %vm17325_vm6, %v15350_v47  ;;  %v12893_v5 = vld [vmem:[%s19129_s11 + $0xa8] sm:$0xff] }
0x114d   : > { %v4626_v8 = vadd.f32 %v14379_v58, %v12879_v42  ;;  %v4620_v61 = vpop.f32.mrb[67].mxu1 }
0x114e   : > { %v4621_v16 = vadd.f32 %v12879_v42, %v4620_v61 }
0x1150   : > { %v15362_v0 = vpack.c.bf16 %v4626_v8, %v4621_v16  ;;  %v14382_v28 = vpop.f32.mrb[68].mxu1 }
0x1151   : > { %v4636_v43 = vadd.f32 %v14382_v28, %v12879_v42  ;;  %v4630_v52 = vpop.f32.mrb[69].mxu1  ;;  %v12895_v28 = vld [vmem:[%s19129_s11 + $0xb8] sm:$0xff] }
0x1152   : > { %v4631_v26 = vadd.f32 %v12879_v42, %v4630_v52  ;;  %15363 = vmatprep.subr.bf16.mxu1 %v15362_v0  ;;  %v12894_v52 = vld [vmem:[%s19129_s11 + $0xb0] sm:$0xff] }
0x1153   : > { %15355 = vmatpush3.bf16.xpose.msk.msra.mxu0 %vm17325_vm6, %v15350_v47  ;;  %15365 = vmatpush3.bf16.msra.mxu1 %v15362_v0  ;;  %v12890_v47 = vld [vmem:[%s19129_s11 + $0x90] sm:$0xff] }
0x1154   : > { %v15366_v24 = vpack.c.bf16 %v4636_v43, %v4631_v26  ;;  %v14385_v54 = vpop.f32.mrb[70].mxu1  ;;  %15358 = vmatprep.subr.msk.bf16.mxu0 %vm17325_vm6, %v15356_v1 }
0x1155   : > { %v4646_v46 = vadd.f32 %v14385_v54, %v12879_v42  ;;  %v4640_v62 = vpop.f32.mrb[71].mxu1 }
0x1156   : > { %v4641_v63 = vadd.f32 %v12879_v42, %v4640_v62  ;;  %15367 = vmatprep.subr.bf16.mxu1 %v15366_v24 }
0x1157   : > { %15369 = vmatpush3.bf16.msra.mxu1 %v15366_v24 }
0x1158   : > { %v15370_v48 = vpack.c.bf16 %v4646_v46, %v4641_v63  ;;  %v14388_v51 = vpop.f32.mrb[72].mxu1 }
0x1159   : > { %v4656_v22 = vadd.f32 %v14388_v51, %v12879_v42  ;;  %v4650_v21 = vpop.f32.mrb[73].mxu1 }
0x115a   : > { %v4651_v31 = vadd.f32 %v12879_v42, %v4650_v21  ;;  %15371 = vmatprep.subr.bf16.mxu1 %v15370_v48 }
0x115b   : > { %15361 = vmatpush3.bf16.xpose.msk.msra.mxu0 %vm17325_vm6, %v15356_v1  ;;  %15373 = vmatpush3.bf16.msra.mxu1 %v15370_v48  ;;  %v12892_v1 = vld [vmem:[%s19129_s11 + $0xa0] sm:$0xff] }
0x115c   : > { %v15374_v33 = vpack.c.bf16 %v4656_v22, %v4651_v31  ;;  %15383 = vmatprep.subr.bf16.mxu0 %v15382_v7 }
0x115e   : > { %15375 = vmatprep.subr.bf16.mxu1 %v15374_v33 }
0x115f   : > { %15377 = vmatpush3.bf16.msra.mxu1 %v15374_v33 }
0x1162   : > { %14406 = vmatmul.mubr.msk.f32.vlgmr.msra.gmra.mrb[62].mxu0 %vm2275_vm5, %v4394_v35 }
0x1163   : > { %14408 = vmatprep.mubr.msk.f32.mxu0 %vm2275_vm5, %v4399_v53  ;;  %15385 = vmatpush3.bf16.msra.mxu0 %v15382_v7 }
0x1166   : > { %14409 = vmatmul.mubr.msk.f32.gmra.mrb[64].mxu0 %vm2275_vm5, %v4404_v15 }
0x1167   : > { %14411 = vmatprep.mubr.msk.f32.mxu0 %vm2275_vm5, %v4409_v45 }
0x116a   : > { %14412 = vmatmul.mubr.msk.f32.gmra.mrb[66].mxu0 %vm2275_vm5, %v4414_v41 }
0x116b   : > { %14414 = vmatprep.mubr.msk.f32.mxu0 %vm2275_vm5, %v4419_v49 }
0x116e   : > { %14415 = vmatmul.mubr.msk.f32.gmra.mrb[68].mxu0 %vm2275_vm5, %v4424_v44 }
0x116f   : > { %14465 = vmatprep.mubr.msk.f32.mxu0 %vm1633_vm4, %v17856_v17 }
0x1172   : > { %14466 = vmatmul.mubr.msk.f32.vlgmr.msra.gmra.mrb[70].mxu0 %vm1633_vm4, %v17858_v23 }
0x1173   : > { %14468 = vmatprep.mubr.msk.f32.mxu0 %vm1633_vm4, %v17870_v10 }
0x1176   : > { %14469 = vmatmul.mubr.msk.f32.gmra.mrb[72].mxu0 %vm1633_vm4, %v17872_v11 }
0x1177   : > { %14471 = vmatprep.mubr.msk.f32.mxu0 %vm1633_vm4, %v17884_v29 }
0x117a   : > { %14472 = vmatmul.mubr.msk.f32.gmra.mrb[74].mxu0 %vm1633_vm4, %v17886_v30 }
0x117b   : > { %14474 = vmatprep.mubr.msk.f32.mxu0 %vm1633_vm4, %v17896_v6 }
0x117e   : > { %14475 = vmatmul.mubr.msk.f32.gmra.mrb[76].mxu0 %vm1633_vm4, %v17898_v18 }
0x1235   : > { %v14407_v50 = vpop.f32.mrb[62].mxu0 }
0x1236   : > { %v17987_v12 = vadd.f32 %v14407_v50, %v12889_v27  ;;  %v4782_v13 = vpop.f32.mrb[63].mxu0 }
0x1237   : > { %v17989_v36 = vadd.f32 %v12888_v32, %v4782_v13 }
0x1238   : > { %v4824_v40 = vsel %vm2429_vm7, %v17987_v12, -inf }
0x1239   : > { %4825 = vmax.xlane.f32.xlu1 %v4824_v40  ;;  %v14410_v56 = vpop.f32.mrb[64].mxu0  ;;  %v4821_v38 = vsel %vm2429_vm7, %v17989_v36, -inf }
0x123a   : > { %v17997_v14 = vadd.f32 %v14410_v56, %v12891_v39  ;;  %v4792_v55 = vpop.f32.mrb[65].mxu0  ;;  %4822 = vmax.xlane.f32.xlu0 %v4821_v38 }
0x123b   : > { %v17999_v60 = vadd.f32 %v12890_v47, %v4792_v55 }
0x123c   : > { %v4830_v42 = vsel %vm2429_vm7, %v17997_v14, -inf }
0x123d   : > { %4831 = vmax.xlane.f32.xlu1 %v4830_v42  ;;  %v14413_v58 = vpop.f32.mrb[66].mxu0  ;;  %v4827_v8 = vsel %vm2429_vm7, %v17999_v60, -inf }
0x123e   : > { %v18007_v61 = vadd.f32 %v14413_v58, %v12893_v5  ;;  %v4802_v16 = vpop.f32.mrb[67].mxu0  ;;  %4828 = vmax.xlane.f32.xlu0 %v4827_v8 }
0x123f   : > { %v18009_v0 = vadd.f32 %v12892_v1, %v4802_v16 }
0x1240   : > { %v4836_v43 = vsel %vm2429_vm7, %v18007_v61, -inf }
0x1241   : > { %4837 = vmax.xlane.f32.xlu1 %v4836_v43  ;;  %v14416_v26 = vpop.f32.mrb[68].mxu0  ;;  %v4833_v24 = vsel %vm2429_vm7, %v18009_v0, -inf }
0x1242   : > { %v18017_v54 = vadd.f32 %v14416_v26, %v12895_v28  ;;  %4834 = vmax.xlane.f32.xlu0 %v4833_v24  ;;  %v4812_v46 = vpop.f32.mrb[69].mxu0 }
0x1243   : > { %v18019_v62 = vadd.f32 %v12894_v52, %v4812_v46 }
0x1244   : > { %v4842_v34 = vsel %vm2429_vm7, %v18017_v54, -inf }
0x1245   : > { %4843 = vmax.xlane.f32.xlu1 %v4842_v34  ;;  %v14467_v63 = vpop.f32.mrb[70].mxu0  ;;  %v4839_v48 = vsel %vm2429_vm7, %v18019_v62, -inf }
0x1246   : > { %v5239_v51 = vadd.f32 %v14467_v63, %v12936_v2  ;;  %v5233_v7 = vpop.f32.mrb[71].mxu0  ;;  %4840 = vmax.xlane.f32.xlu0 %v4839_v48 }
0x1247   : > { %v5234_v22 = vadd.f32 %v12936_v2, %v5233_v7 }
0x1249   : > { %v15390_v21 = vpack.c.bf16 %v5239_v51, %v5234_v22  ;;  %v14470_v31 = vpop.f32.mrb[72].mxu0 }
0x124a   : > { %v5249_v33 = vadd.f32 %v14470_v31, %v12936_v2  ;;  %v5243_v35 = vpop.f32.mrb[73].mxu0 }
0x124b   : > { %v5244_v53 = vadd.f32 %v12936_v2, %v5243_v35  ;;  %15392 = vmatprep.subr.msk.bf16.mxu0 %vm17325_vm6, %v15390_v21 }
0x124c   : > { %15395 = vmatpush3.bf16.xpose.msk.msra.mxu0 %vm17325_vm6, %v15390_v21 }
0x124d   : > { %v15396_v15 = vpack.c.bf16 %v5249_v33, %v5244_v53  ;;  %v14473_v45 = vpop.f32.mrb[74].mxu0 }
0x124e   : > { %v5259_v41 = vadd.f32 %v14473_v45, %v12936_v2  ;;  %v5253_v49 = vpop.f32.mrb[75].mxu0 }
0x124f   : > { %v5254_v44 = vadd.f32 %v12936_v2, %v5253_v49  ;;  %15398 = vmatprep.subr.msk.bf16.mxu0 %vm17325_vm6, %v15396_v15 }
0x1251   : > { %v15402_v27 = vpack.c.bf16 %v5259_v41, %v5254_v44  ;;  %v14476_v32 = vpop.f32.mrb[76].mxu0  ;;  %v12921_v44 = vld [vmem:[%s16820_s27 + $0x30] sm:$0xff] }
0x1252   : > { %v5269_v50 = vadd.f32 %v14476_v32, %v12936_v2  ;;  %v5263_v13 = vpop.f32.mrb[77].mxu0 }
0x1253   : > { %v5264_v39 = vadd.f32 %v12936_v2, %v5263_v13 }
0x1254   : > { %15401 = vmatpush3.bf16.xpose.msk.msra.mxu0 %vm17325_vm6, %v15396_v15 }
0x1255   : > { %v15408_v40 = vpack.c.bf16 %v5269_v50, %v5264_v39  ;;  %15404 = vmatprep.subr.msk.bf16.mxu0 %vm17325_vm6, %v15402_v27 }
0x125c   : > { %15407 = vmatpush3.bf16.xpose.msk.msra.mxu0 %vm17325_vm6, %v15402_v27  ;;  %v12922_v27 = vld [vmem:[%s16820_s27 + $0x38] sm:$0xff] }
0x125d   : > { %15410 = vmatprep.subr.msk.bf16.mxu0 %vm17325_vm6, %v15408_v40  ;;  %v15378_v32 = vpack.c.bf16 %v12922_v27, %v12921_v44 }
0x125f   : > { %15379 = vmatprep.subr.bf16.mxu1 %v15378_v32 }
0x1264   : > { %15413 = vmatpush3.bf16.xpose.msk.msra.mxu0 %vm17325_vm6, %v15408_v40 }
0x12c6   : > { %v4826_v47 = vpop.xlane.xlu1 %4825 }
0x12c7   : > { %v4846_v56 = vsub.f32 %v17987_v12, %v4826_v47  ;;  %v4823_v38 = vpop.xlane.xlu0 %4822 }
0x12c8   : > { %v4845_v55 = vsub.f32 %v17989_v36, %v4823_v38 }
0x12c9   : > { %v4855_v5 = vmul.f32 1.442695, %v4846_v56 }
0x12ca   : > { %v4853_v42 = vmul.f32 1.442695, %v4845_v55  ;;  %v4832_v1 = vpop.xlane.xlu1 %4831  ;;  %v12945_v55 = vld [vmem:[%s19097_s17 + $0x30] sm:$0xff] }
0x12cb   : > { %16179 = vpow2.f32 %v4855_v5  ;;  %v4848_v58 = vsub.f32 %v17997_v14, %v4832_v1  ;;  %v4829_v8 = vpop.xlane.xlu0 %4828  ;;  %v12946_v5 = vld [vmem:[%s19097_s17 + $0x38] sm:$0xff] }
0x12cc   : > { %16181 = vpow2.f32 %v4853_v42  ;;  %v4847_v16 = vsub.f32 %v17999_v60, %v4829_v8 }
0x12cd   : > { %v4859_v28 = vmul.f32 1.442695, %v4848_v58 }
0x12ce   : > { %v4857_v43 = vmul.f32 1.442695, %v4847_v16  ;;  %v4838_v52 = vpop.xlane.xlu1 %4837 }
0x12cf   : > { %16183 = vpow2.f32 %v4859_v28  ;;  %v4850_v26 = vsub.f32 %v18007_v61, %v4838_v52  ;;  %v4835_v12 = vpop.xlane.xlu0 %4834  ;;  %v15386_v28 = vpack.c.bf16 %v12946_v5, %v12945_v55 }
0x12d0   : > { %16185 = vpow2.f32 %v4857_v43  ;;  %v4849_v36 = vsub.f32 %v18009_v0, %v4835_v12 }
0x12d1   : > { %v4863_v24 = vmul.f32 1.442695, %v4850_v26 }
0x12d2   : > { %v4861_v46 = vmul.f32 1.442695, %v4849_v36  ;;  %v4844_v2 = vpop.xlane.xlu1 %4843 }
0x12d3   : > { %16187 = vpow2.f32 %v4863_v24  ;;  %v4852_v14 = vsub.f32 %v18017_v54, %v4844_v2  ;;  %v4841_v34 = vpop.xlane.xlu0 %4840 }
0x12d4   : > { %16189 = vpow2.f32 %v4861_v46  ;;  %v4851_v60 = vsub.f32 %v18019_v62, %v4841_v34 }
0x12d5   : > { %v16180_v63 = vpop.eup %16179  ;;  %v4867_v48 = vmul.f32 1.442695, %v4852_v14 }
0x12d6   : > { %v16182_v51 = vpop.eup %16181  ;;  %v4865_v7 = vmul.f32 1.442695, %v4851_v60  ;;  %v4872_v61 = vsel %vm2429_vm7, %v16180_v63, 0.0 }
0x12d7   : > { %16191 = vpow2.f32 %v4867_v48  ;;  %4873 = vadd.xlane.f32.xlu1 %v4872_v61  ;;  %v4869_v0 = vsel %vm2429_vm7, %v16182_v51, 0.0 }
0x12d8   : > { %16193 = vpow2.f32 %v4865_v7  ;;  %4870 = vadd.xlane.f32.xlu0 %v4869_v0 }
0x12d9   : > { %v16184_v22 = vpop.eup %16183 }
0x12da   : > { %v16186_v21 = vpop.eup %16185  ;;  %v4878_v54 = vsel %vm2429_vm7, %v16184_v22, 0.0 }
0x12db   : > { %4879 = vadd.xlane.f32.xlu1 %v4878_v54  ;;  %v4875_v62 = vsel %vm2429_vm7, %v16186_v21, 0.0 }
0x12dc   : > { %4876 = vadd.xlane.f32.xlu0 %v4875_v62 }
0x12dd   : > { %v16188_v31 = vpop.eup %16187 }
0x12de   : > { %v16190_v33 = vpop.eup %16189  ;;  %v4884_v35 = vsel %vm2429_vm7, %v16188_v31, 0.0 }
0x12df   : > { %4885 = vadd.xlane.f32.xlu1 %v4884_v35  ;;  %v4881_v53 = vsel %vm2429_vm7, %v16190_v33, 0.0 }
0x12e0   : > { %4882 = vadd.xlane.f32.xlu0 %v4881_v53 }
0x12e1   : > { %v16192_v15 = vpop.eup %16191 }
0x12e2   : > { %v16194_v45 = vpop.eup %16193  ;;  %v4890_v41 = vsel %vm2429_vm7, %v16192_v15, 0.0 }
0x12e3   : > { %4891 = vadd.xlane.f32.xlu1 %v4890_v41  ;;  %v4887_v49 = vsel %vm2429_vm7, %v16194_v45, 0.0 }
0x12e4   : > { %4888 = vadd.xlane.f32.xlu0 %v4887_v49  ;;  %v12948_v49 = vld [vmem:[%s19128_s10 + $0x3] ss:$0 sm:$0xff] }
0x1364   : > { %v4874_v50 = vpop.xlane.xlu1 %4873 }
0x1365   : > { %16195 = vrcp.f32 %v4874_v50  ;;  %v4871_v13 = vpop.xlane.xlu0 %4870 }
0x1366   : > { %16197 = vrcp.f32 %v4871_v13 }
0x1368   : > { %v4880_v39 = vpop.xlane.xlu1 %4879 }
0x1369   : > { %16199 = vrcp.f32 %v4880_v39  ;;  %v4877_v40 = vpop.xlane.xlu0 %4876 }
0x136a   : > { %16201 = vrcp.f32 %v4877_v40 }
0x136c   : > { %v4886_v47 = vpop.xlane.xlu1 %4885 }
0x136d   : > { %16203 = vrcp.f32 %v4886_v47  ;;  %v4883_v56 = vpop.xlane.xlu0 %4882 }
0x136e   : > { %16205 = vrcp.f32 %v4883_v56 }
0x136f   : > { %v16196_v38 = vpop.eup %16195 }
0x1370   : > { %v16198_v42 = vpop.eup %16197  ;;  %v4892_v1 = vpop.xlane.xlu1 %4891  ;;  %v4902_v16 = vmul.f32 %v16196_v38, %v16180_v63 }
0x1371   : > { %16207 = vrcp.f32 %v4892_v1  ;;  %v4889_v58 = vpop.xlane.xlu0 %4888  ;;  %v4901_v8 = vmul.f32 %v16198_v42, %v16182_v51 }
0x1372   : > { %16209 = vrcp.f32 %v4889_v58 }
0x1373   : > { %v16200_v43 = vpop.eup %16199  ;;  %14433 = vmatprep.mubr.msk.f32.mxu1 %vm2429_vm7, %v4901_v8 }
0x1374   : > { %v16202_v52 = vpop.eup %16201  ;;  %14434 = vmatmul.mubr.msk.f32.vlgmr.msra.gmra.mrb[74].mxu1 %vm2429_vm7, %v4902_v16  ;;  %v4904_v12 = vmul.f32 %v16200_v43, %v16184_v22 }
0x1375   : > { %15381 = vmatpush3.bf16.msra.mxu1 %v15378_v32  ;;  %v4903_v26 = vmul.f32 %v16202_v52, %v16186_v21 }
0x1376   : > { %15387 = vmatprep.subr.bf16.mxu1 %v15386_v28 }
0x1377   : > { %v16204_v36 = vpop.eup %16203  ;;  %14436 = vmatprep.mubr.msk.f32.mxu1 %vm2429_vm7, %v4903_v26 }
0x1378   : > { %v16206_v24 = vpop.eup %16205  ;;  %14437 = vmatmul.mubr.msk.f32.gmra.mrb[76].mxu1 %vm2429_vm7, %v4904_v12  ;;  %v4906_v2 = vmul.f32 %v16204_v36, %v16188_v31  ;;  %v12958_v12 = vld [vmem:[%s19129_s11 + $0xc8] sm:$0xff]  ;;  %v12957_v36 = vld [vmem:[%s19129_s11 + $0xc0] sm:$0xff] }
0x1379   : > { %v4905_v46 = vmul.f32 %v16206_v24, %v16190_v33 }
0x137b   : > { %v16208_v14 = vpop.eup %16207  ;;  %14439 = vmatprep.mubr.msk.f32.mxu1 %vm2429_vm7, %v4905_v46 }
0x137c   : > { %v16210_v34 = vpop.eup %16209  ;;  %14440 = vmatmul.mubr.msk.f32.gmra.mrb[78].mxu1 %vm2429_vm7, %v4906_v2  ;;  %v4908_v63 = vmul.f32 %v16208_v14, %v16192_v15 }
0x137d   : > { %v4907_v60 = vmul.f32 %v16210_v34, %v16194_v45  ;;  %v12960_v34 = vld [vmem:[%s19129_s11 + $0xd8] sm:$0xff] }
0x137f   : > { %14442 = vmatprep.mubr.msk.f32.mxu1 %vm2429_vm7, %v4907_v60 }
0x1380   : > { %14443 = vmatmul.mubr.msk.f32.gmra.mrb[80].mxu1 %vm2429_vm7, %v4908_v63  ;;  %v12959_v63 = vld [vmem:[%s19129_s11 + $0xd0] sm:$0xff] }
0x1381   : > { %14449 = vmatprep.mubr.msk.f32.mxu1 %vm1633_vm4, %v17856_v17 }
0x1384   : > { %14450 = vmatmul.mubr.msk.f32.vlgmr.msra.gmra.mrb[82].mxu1 %vm1633_vm4, %v17858_v23 }
0x1385   : > { %14452 = vmatprep.mubr.msk.f32.mxu1 %vm1633_vm4, %v17870_v10  ;;  %15389 = vmatpush3.bf16.msra.mxu1 %v15386_v28 }
0x1388   : > { %14453 = vmatmul.mubr.msk.f32.gmra.mrb[84].mxu1 %vm1633_vm4, %v17872_v11 }
0x1389   : > { %14455 = vmatprep.mubr.msk.f32.mxu1 %vm1633_vm4, %v17884_v29 }
0x138c   : > { %14456 = vmatmul.mubr.msk.f32.gmra.mrb[86].mxu1 %vm1633_vm4, %v17886_v30 }
0x138d   : > { %14458 = vmatprep.mubr.msk.f32.mxu1 %vm1633_vm4, %v17896_v6 }
0x1390   : > { %14459 = vmatmul.mubr.msk.f32.gmra.mrb[88].mxu1 %vm1633_vm4, %v17898_v18 }
0x1391   : > { %14481 = vmatprep.mubr.msk.f32.mxu1 %vm1633_vm4, %v17856_v17 }
0x1394   : > { %14482 = vmatmul.mubr.msk.f32.vlgmr.msra.gmra.mrb[90].mxu1 %vm1633_vm4, %v17858_v23 }
0x1395   : > { %14484 = vmatprep.mubr.msk.f32.mxu1 %vm1633_vm4, %v17870_v10 }
0x1398   : > { %14485 = vmatmul.mubr.msk.f32.gmra.mrb[92].mxu1 %vm1633_vm4, %v17872_v11 }
0x1399   : > { %14487 = vmatprep.mubr.msk.f32.mxu1 %vm1633_vm4, %v17884_v29 }
0x139c   : > { %14488 = vmatmul.mubr.msk.f32.gmra.mrb[94].mxu1 %vm1633_vm4, %v17886_v30 }
0x139d   : > { %14490 = vmatprep.mubr.msk.f32.mxu1 %vm1633_vm4, %v17896_v6  ;;  %v12924_v6 = vld [vmem:[%s19125_s1 + $0x3] ss:$0 sm:$0xff]  ;;  %s19143_s1 = smov %s19142_s22 }
0x13a0   : > { %14491 = vmatmul.mubr.msk.f32.gmra.mrb[96].mxu1 %vm1633_vm4, %v17898_v18 }
0x1447   : > { %v18102_v17 = vpop.f32.mrb[74].mxu1 }
0x1448   : > { %v18104_v23 = vpop.f32.mrb[75].mxu1 }
0x144b   : > { %v18106_v10 = vpop.f32.mrb[76].mxu1 }
0x144c   : > { %v18108_v48 = vpop.f32.mrb[77].mxu1 }
0x144f   : > { %v18110_v11 = vpop.f32.mrb[78].mxu1 }
0x1450   : > { %v18112_v29 = vpop.f32.mrb[79].mxu1 }
0x1453   : > { %v18114_v51 = vpop.f32.mrb[80].mxu1 }
0x1454   : > { %v18116_v30 = vpop.f32.mrb[81].mxu1 }
0x1457   : > { %v14451_v7 = vpop.f32.mrb[82].mxu1 }
0x1458   : > { %v5117_v61 = vpop.f32.mrb[83].mxu1  ;;  %v5123_v0 = vadd.f32 %v14451_v7, %v12924_v6 }
0x1459   : > { %v5118_v18 = vadd.f32 %v12924_v6, %v5117_v61 }
0x145b   : > { %v14454_v22 = vpop.f32.mrb[84].mxu1  ;;  %14509 = vmatprep.mubr.msk.f32.mxu0 %vm2275_vm5, %v5118_v18 }
0x145c   : > { %v5127_v21 = vpop.f32.mrb[85].mxu1  ;;  %14510 = vmatmul.mubr.msk.f32.vlgmr.msra.gmra.mrb[78].mxu0 %vm2275_vm5, %v5123_v0  ;;  %v5133_v62 = vadd.f32 %v14454_v22, %v12924_v6  ;;  %v12962_v22 = vld [vmem:[%s19129_s11 + $0xe8] sm:$0xff] }
0x145d   : > { %v5128_v54 = vadd.f32 %v12924_v6, %v5127_v21 }
0x145f   : > { %v14457_v31 = vpop.f32.mrb[86].mxu1  ;;  %14512 = vmatprep.mubr.msk.f32.mxu0 %vm2275_vm5, %v5128_v54  ;;  %v12961_v54 = vld [vmem:[%s19129_s11 + $0xe0] sm:$0xff] }
0x1460   : > { %v5137_v33 = vpop.f32.mrb[87].mxu1  ;;  %14513 = vmatmul.mubr.msk.f32.gmra.mrb[80].mxu0 %vm2275_vm5, %v5133_v62  ;;  %v5143_v53 = vadd.f32 %v14457_v31, %v12924_v6 }
0x1461   : > { %v5138_v35 = vadd.f32 %v12924_v6, %v5137_v33 }
0x1463   : > { %v14460_v15 = vpop.f32.mrb[88].mxu1  ;;  %14515 = vmatprep.mubr.msk.f32.mxu0 %vm2275_vm5, %v5138_v35 }
0x1464   : > { %v5147_v45 = vpop.f32.mrb[89].mxu1  ;;  %14516 = vmatmul.mubr.msk.f32.gmra.mrb[82].mxu0 %vm2275_vm5, %v5143_v53  ;;  %v5153_v44 = vadd.f32 %v14460_v15, %v12924_v6  ;;  %v12964_v15 = vld [vmem:[%s19129_s11 + $0xf8] sm:$0xff] }
0x1465   : > { %v5148_v41 = vadd.f32 %v12924_v6, %v5147_v45 }
0x1467   : > { %v14483_v27 = vpop.f32.mrb[90].mxu1  ;;  %14518 = vmatprep.mubr.msk.f32.mxu0 %vm2275_vm5, %v5148_v41  ;;  %v12963_v41 = vld [vmem:[%s19129_s11 + $0xf0] sm:$0xff] }
0x1468   : > { %v5355_v32 = vadd.f32 %v14483_v27, %v12948_v49  ;;  %v5349_v50 = vpop.f32.mrb[91].mxu1  ;;  %14519 = vmatmul.mubr.msk.f32.gmra.mrb[84].mxu0 %vm2275_vm5, %v5153_v44 }
0x1469   : > { %v5350_v13 = vadd.f32 %v12948_v49, %v5349_v50 }
0x146b   : > { %v15414_v39 = vpack.c.bf16 %v5355_v32, %v5350_v13  ;;  %v14486_v40 = vpop.f32.mrb[92].mxu1 }
0x146c   : > { %v5365_v47 = vadd.f32 %v14486_v40, %v12948_v49  ;;  %v5359_v56 = vpop.f32.mrb[93].mxu1 }
0x146d   : > { %v5360_v38 = vadd.f32 %v12948_v49, %v5359_v56  ;;  %15415 = vmatprep.subr.bf16.mxu1 %v15414_v39 }
0x146e   : > { %15417 = vmatpush3.bf16.msra.mxu1 %v15414_v39 }
0x146f   : > { %v15418_v55 = vpack.c.bf16 %v5365_v47, %v5360_v38  ;;  %v14489_v5 = vpop.f32.mrb[94].mxu1 }
0x1470   : > { %v5375_v42 = vadd.f32 %v14489_v5, %v12948_v49  ;;  %v5369_v1 = vpop.f32.mrb[95].mxu1 }
0x1471   : > { %v5370_v58 = vadd.f32 %v12948_v49, %v5369_v1  ;;  %15419 = vmatprep.subr.bf16.mxu1 %v15418_v55 }
0x1472   : > { %15421 = vmatpush3.bf16.msra.mxu1 %v15418_v55 }
0x1473   : > { %v15422_v8 = vpack.c.bf16 %v5375_v42, %v5370_v58  ;;  %v14492_v16 = vpop.f32.mrb[96].mxu1 }
0x1474   : > { %v5385_v28 = vadd.f32 %v14492_v16, %v12948_v49  ;;  %v5379_v43 = vpop.f32.mrb[97].mxu1 }
0x1475   : > { %v5380_v52 = vadd.f32 %v12948_v49, %v5379_v43  ;;  %15423 = vmatprep.subr.bf16.mxu1 %v15422_v8 }
0x1476   : > { %15425 = vmatpush3.bf16.msra.mxu1 %v15422_v8 }
0x1477   : > { %v15426_v26 = vpack.c.bf16 %v5385_v28, %v5380_v52 }
0x1479   : > { %15427 = vmatprep.subr.bf16.mxu1 %v15426_v26 }
0x147a   : > { %15429 = vmatpush3.bf16.msra.mxu1 %v15426_v26 }
0x152f   : > { %v14511_v24 = vpop.f32.mrb[78].mxu0 }
0x1530   : > { %v5517_v46 = vadd.f32 %v14511_v24, %v12958_v12  ;;  %v5511_v2 = vpop.f32.mrb[79].mxu0 }
0x1531   : > { %v5512_v14 = vadd.f32 %v12957_v36, %v5511_v2 }
0x1532   : > { %v5553_v60 = vsel %vm2429_vm7, %v5517_v46, -inf }
0x1533   : > { %5554 = vmax.xlane.f32.xlu1 %v5553_v60  ;;  %v14514_v6 = vpop.f32.mrb[80].mxu0  ;;  %v5550_v7 = vsel %vm2429_vm7, %v5512_v14, -inf }
0x1534   : > { %v5527_v61 = vadd.f32 %v14514_v6, %v12960_v34  ;;  %v5521_v18 = vpop.f32.mrb[81].mxu0  ;;  %5551 = vmax.xlane.f32.xlu0 %v5550_v7 }
0x1535   : > { %v5522_v0 = vadd.f32 %v12959_v63, %v5521_v18 }
0x1536   : > { %v5559_v21 = vsel %vm2429_vm7, %v5527_v61, -inf }
0x1537   : > { %5560 = vmax.xlane.f32.xlu1 %v5559_v21  ;;  %v14517_v62 = vpop.f32.mrb[82].mxu0  ;;  %v5556_v31 = vsel %vm2429_vm7, %v5522_v0, -inf }
0x1538   : > { %v5537_v33 = vadd.f32 %v14517_v62, %v12962_v22  ;;  %v5531_v35 = vpop.f32.mrb[83].mxu0  ;;  %5557 = vmax.xlane.f32.xlu0 %v5556_v31 }
0x1539   : > { %v5532_v53 = vadd.f32 %v12961_v54, %v5531_v35 }
0x153a   : > { %v5565_v45 = vsel %vm2429_vm7, %v5537_v33, -inf }
0x153b   : > { %5566 = vmax.xlane.f32.xlu1 %v5565_v45  ;;  %v14520_v49 = vpop.f32.mrb[84].mxu0  ;;  %v5562_v44 = vsel %vm2429_vm7, %v5532_v53, -inf }
0x153c   : > { %v5547_v27 = vadd.f32 %v14520_v49, %v12964_v15  ;;  %v5541_v32 = vpop.f32.mrb[85].mxu0  ;;  %5563 = vmax.xlane.f32.xlu0 %v5562_v44  ;;  %v12989_v49 = vld [vmem:[%s19130_s2 + $0x18] sm:$0xff] }
0x153d   : > { %v5542_v50 = vadd.f32 %v12963_v41, %v5541_v32  ;;  %14549 = vmatprep.subr.mxu1 %v12989_v49 }
0x153e   : > { %v5571_v13 = vsel %vm2429_vm7, %v5547_v27, -inf }
0x153f   : > { %5572 = vmax.xlane.f32.xlu1 %v5571_v13  ;;  %v5568_v39 = vsel %vm2429_vm7, %v5542_v50, -inf }
0x1540   : > { %5569 = vmax.xlane.f32.xlu0 %v5568_v39 }
0x15c0   : > { %v5555_v40 = vpop.xlane.xlu1 %5554 }
0x15c1   : > { %v5575_v47 = vsub.f32 %v5517_v46, %v5555_v40  ;;  %v5552_v56 = vpop.xlane.xlu0 %5551 }
0x15c2   : > { %v5574_v38 = vsub.f32 %v5512_v14, %v5552_v56 }
0x15c3   : > { %v5584_v55 = vmul.f32 1.442695, %v5575_v47 }
0x15c4   : > { %v5582_v5 = vmul.f32 1.442695, %v5574_v38  ;;  %v5561_v42 = vpop.xlane.xlu1 %5560 }
0x15c5   : > { %16211 = vpow2.f32 %v5584_v55  ;;  %v5577_v1 = vsub.f32 %v5527_v61, %v5561_v42  ;;  %v5558_v58 = vpop.xlane.xlu0 %5557 }
0x15c6   : > { %16213 = vpow2.f32 %v5582_v5  ;;  %v5576_v8 = vsub.f32 %v5522_v0, %v5558_v58 }
0x15c7   : > { %v5588_v16 = vmul.f32 1.442695, %v5577_v1 }
0x15c8   : > { %v5586_v28 = vmul.f32 1.442695, %v5576_v8  ;;  %v5567_v43 = vpop.xlane.xlu1 %5566 }
0x15c9   : > { %16215 = vpow2.f32 %v5588_v16  ;;  %v5579_v52 = vsub.f32 %v5537_v33, %v5567_v43  ;;  %v5564_v26 = vpop.xlane.xlu0 %5563 }
0x15ca   : > { %16217 = vpow2.f32 %v5586_v28  ;;  %v5578_v12 = vsub.f32 %v5532_v53, %v5564_v26 }
0x15cb   : > { %v5592_v36 = vmul.f32 1.442695, %v5579_v52 }
0x15cc   : > { %v5590_v24 = vmul.f32 1.442695, %v5578_v12  ;;  %v5573_v46 = vpop.xlane.xlu1 %5572 }
0x15cd   : > { %16219 = vpow2.f32 %v5592_v36  ;;  %v5581_v2 = vsub.f32 %v5547_v27, %v5573_v46  ;;  %v5570_v14 = vpop.xlane.xlu0 %5569  ;;  %v12920_v46 = vld [vmem:[%s19130_s2 + $0x10] sm:$0xff] }
0x15ce   : > { %16221 = vpow2.f32 %v5590_v24  ;;  %v5580_v34 = vsub.f32 %v5542_v50, %v5570_v14 }
0x15cf   : > { %v16212_v60 = vpop.eup %16211  ;;  %v5596_v63 = vmul.f32 1.442695, %v5581_v2 }
0x15d0   : > { %v16214_v6 = vpop.eup %16213  ;;  %v5594_v7 = vmul.f32 1.442695, %v5580_v34  ;;  %v5601_v61 = vsel %vm2429_vm7, %v16212_v60, 0.0 }
0x15d1   : > { %16223 = vpow2.f32 %v5596_v63  ;;  %5602 = vadd.xlane.f32.xlu1 %v5601_v61  ;;  %v5598_v18 = vsel %vm2429_vm7, %v16214_v6, 0.0 }
0x15d2   : > { %16225 = vpow2.f32 %v5594_v7  ;;  %5599 = vadd.xlane.f32.xlu0 %v5598_v18 }
0x15d3   : > { %v16216_v0 = vpop.eup %16215 }
0x15d4   : > { %v16218_v22 = vpop.eup %16217  ;;  %v5607_v21 = vsel %vm2429_vm7, %v16216_v0, 0.0 }
0x15d5   : > { %5608 = vadd.xlane.f32.xlu1 %v5607_v21  ;;  %v5604_v54 = vsel %vm2429_vm7, %v16218_v22, 0.0 }
0x15d6   : > { %5605 = vadd.xlane.f32.xlu0 %v5604_v54 }
0x15d7   : > { %v16220_v62 = vpop.eup %16219 }
0x15d8   : > { %v16222_v31 = vpop.eup %16221  ;;  %v5613_v33 = vsel %vm2429_vm7, %v16220_v62, 0.0 }
0x15d9   : > { %5614 = vadd.xlane.f32.xlu1 %v5613_v33  ;;  %v5610_v35 = vsel %vm2429_vm7, %v16222_v31, 0.0 }
0x15da   : > { %5611 = vadd.xlane.f32.xlu0 %v5610_v35 }
0x15db   : > { %v16224_v53 = vpop.eup %16223 }
0x15dc   : > { %v16226_v15 = vpop.eup %16225  ;;  %v5619_v45 = vsel %vm2429_vm7, %v16224_v53, 0.0 }
0x15dd   : > { %5620 = vadd.xlane.f32.xlu1 %v5619_v45  ;;  %v5616_v41 = vsel %vm2429_vm7, %v16226_v15, 0.0 }
0x15de   : > { %5617 = vadd.xlane.f32.xlu0 %v5616_v41 }
0x165e   : > { %v5603_v44 = vpop.xlane.xlu1 %5602 }
0x165f   : > { %16227 = vrcp.f32 %v5603_v44  ;;  %v5600_v27 = vpop.xlane.xlu0 %5599 }
0x1660   : > { %16229 = vrcp.f32 %v5600_v27 }
0x1662   : > { %v5609_v32 = vpop.xlane.xlu1 %5608 }
0x1663   : > { %16231 = vrcp.f32 %v5609_v32  ;;  %v5606_v50 = vpop.xlane.xlu0 %5605 }
0x1664   : > { %16233 = vrcp.f32 %v5606_v50 }
0x1666   : > { %v5615_v13 = vpop.xlane.xlu1 %5614 }
0x1667   : > { %16235 = vrcp.f32 %v5615_v13  ;;  %v5612_v39 = vpop.xlane.xlu0 %5611 }
0x1668   : > { %16237 = vrcp.f32 %v5612_v39 }
0x1669   : > { %v16228_v40 = vpop.eup %16227 }
0x166a   : > { %v16230_v47 = vpop.eup %16229  ;;  %v5621_v56 = vpop.xlane.xlu1 %5620  ;;  %v5631_v5 = vmul.f32 %v16228_v40, %v16212_v60 }
0x166b   : > { %16239 = vrcp.f32 %v5621_v56  ;;  %v5618_v38 = vpop.xlane.xlu0 %5617  ;;  %v5630_v55 = vmul.f32 %v16230_v47, %v16214_v6 }
0x166c   : > { %16241 = vrcp.f32 %v5618_v38 }
0x166d   : > { %v16232_v42 = vpop.eup %16231  ;;  %14537 = vmatprep.mubr.msk.f32.mxu1 %vm2429_vm7, %v5630_v55 }
0x166e   : > { %v16234_v1 = vpop.eup %16233  ;;  %14538 = vmatmul.mubr.msk.f32.vlgmr.msra.gmra.mrb[98].mxu1 %vm2429_vm7, %v5631_v5  ;;  %v5633_v8 = vmul.f32 %v16232_v42, %v16216_v0 }
0x166f   : > { %v5632_v58 = vmul.f32 %v16234_v1, %v16218_v22  ;;  %14550 = vmatpush3.msra.mxu1 %v12989_v49 }
0x1670   : > { %14563 = vmatprep.subr.mxu1 %v12920_v46 }
0x1671   : > { %v16236_v16 = vpop.eup %16235  ;;  %14540 = vmatprep.mubr.msk.f32.mxu1 %vm2429_vm7, %v5632_v58 }
0x1672   : > { %v16238_v28 = vpop.eup %16237  ;;  %14541 = vmatmul.mubr.msk.f32.gmra.mrb[100].mxu1 %vm2429_vm7, %v5633_v8  ;;  %v5635_v52 = vmul.f32 %v16236_v16, %v16220_v62 }
0x1673   : > { %v5634_v43 = vmul.f32 %v16238_v28, %v16222_v31 }
0x1675   : > { %v16240_v26 = vpop.eup %16239  ;;  %14543 = vmatprep.mubr.msk.f32.mxu1 %vm2429_vm7, %v5634_v43 }
0x1676   : > { %v16242_v12 = vpop.eup %16241  ;;  %14544 = vmatmul.mubr.msk.f32.gmra.mrb[102].mxu1 %vm2429_vm7, %v5635_v52  ;;  %v5637_v24 = vmul.f32 %v16240_v26, %v16224_v53 }
0x1677   : > { %v5636_v36 = vmul.f32 %v16242_v12, %v16226_v15 }
0x1679   : > { %14546 = vmatprep.mubr.msk.f32.mxu1 %vm2429_vm7, %v5636_v36 }
0x167a   : > { %14547 = vmatmul.mubr.msk.f32.gmra.mrb[104].mxu1 %vm2429_vm7, %v5637_v24 }
0x1741   : > { %v14539_v2 = vpop.f32.mrb[98].mxu1 }
0x1742   : > { %v5728_v14 = vpop.f32.mrb[99].mxu1 }
0x1743   : > { %14551 = vmatprep.mubr.msk.f32.mxu1 %vm2275_vm5, %v5728_v14 }
0x1744   : > { %14552 = vmatmul.mubr.msk.f32.vlgmr.msra.gmra.mrb[106].mxu1 %vm2275_vm5, %v14539_v2 }
0x1745   : > { %14564 = vmatpush3.msra.mxu1 %v12920_v46  ;;  %v14542_v34 = vpop.f32.mrb[100].mxu1 }
0x1746   : > { %v5738_v60 = vpop.f32.mrb[101].mxu1 }
0x1747   : > { %14554 = vmatprep.mubr.msk.f32.mxu1 %vm2275_vm5, %v5738_v60 }
0x1748   : > { %14555 = vmatmul.mubr.msk.f32.gmra.mrb[108].mxu1 %vm2275_vm5, %v14542_v34 }
0x1749   : > { %v14545_v63 = vpop.f32.mrb[102].mxu1 }
0x174a   : > { %v5748_v6 = vpop.f32.mrb[103].mxu1 }
0x174b   : > { %14557 = vmatprep.mubr.msk.f32.mxu1 %vm2275_vm5, %v5748_v6 }
0x174c   : > { %14558 = vmatmul.mubr.msk.f32.gmra.mrb[110].mxu1 %vm2275_vm5, %v14545_v63 }
0x174d   : > { %v14548_v7 = vpop.f32.mrb[104].mxu1 }
0x174e   : > { %v5758_v61 = vpop.f32.mrb[105].mxu1 }
0x174f   : > { %14560 = vmatprep.mubr.msk.f32.mxu1 %vm2275_vm5, %v5758_v61 }
0x1750   : > { %14561 = vmatmul.mubr.msk.f32.gmra.mrb[112].mxu1 %vm2275_vm5, %v14548_v7 }
0x1751   : > { %14565 = vmatprep.mubr.msk.f32.mxu1 %vm2275_vm5, %v18104_v23 }
0x1754   : > { %14566 = vmatmul.mubr.msk.f32.vlgmr.msra.gmra.mrb[106].mxu1 %vm2275_vm5, %v18102_v17  ;;  %v13007_v17 = vld [vmem:[%s19131_s7 + $0x1] ss:$0 sm:$0xff] }
0x1755   : > { %14568 = vmatprep.mubr.msk.f32.mxu1 %vm2275_vm5, %v18108_v48 }
0x1758   : > { %14569 = vmatmul.mubr.msk.f32.gmra.mrb[108].mxu1 %vm2275_vm5, %v18106_v10 }
0x1759   : > { %14571 = vmatprep.mubr.msk.f32.mxu1 %vm2275_vm5, %v18112_v29 }
0x175c   : > { %14572 = vmatmul.mubr.msk.f32.gmra.mrb[110].mxu1 %vm2275_vm5, %v18110_v11 }
0x175d   : > { %14574 = vmatprep.mubr.msk.f32.mxu1 %vm2275_vm5, %v18116_v30 }
0x1760   : > { %14575 = vmatmul.mubr.msk.f32.gmra.mrb[112].mxu1 %vm2275_vm5, %v18114_v51 }
0x1827   : > { %v14567_v23 = vpop.f32.mrb[106].mxu1 }
0x1828   : > { %v6028_v18 = vadd.f32 %v14567_v23, %v17757_v4  ;;  %v5988_v48 = vpop.f32.mrb[107].mxu1 }
0x1829   : > { %v6027_v0 = vadd.f32 %v5988_v48, %v17760_v20 }
0x182a   : > { %v18189_v10 = vadd.f32 %v13007_v17, %v6028_v18 }
0x182b   : > { %v18191_v22 = vadd.f32 %v13007_v17, %v6027_v0  ;;  %v14570_v29 = vpop.f32.mrb[108].mxu1 }
0x182c   : > { %v6030_v11 = vadd.f32 %v14570_v29, %v17767_v57  ;;  %v5998_v21 = vpop.f32.mrb[109].mxu1  ;;  %v6058_v30 = vsel %vm1633_vm4, %v18189_v10, 0.0 }
0x182d   : > { %v6029_v51 = vadd.f32 %v5998_v21, %v17770_v59  ;;  %6059 = vadd.xlane.f32.xlu1 %v6058_v30  ;;  %v6055_v4 = vsel %vm1633_vm4, %v18191_v22, 0.0 }
0x182e   : > { %v18199_v54 = vadd.f32 %v13007_v17, %v6030_v11  ;;  %6056 = vadd.xlane.f32.xlu0 %v6055_v4  ;;  %v13012_v4 = vld [vmem:[%s19133_s16 + $0x10] sm:$0xff] }
0x182f   : > { %v18201_v20 = vadd.f32 %v13007_v17, %v6029_v51  ;;  %v14573_v62 = vpop.f32.mrb[110].mxu1 }
0x1830   : > { %v6032_v31 = vadd.f32 %v14573_v62, %v17777_v9  ;;  %v6008_v33 = vpop.f32.mrb[111].mxu1  ;;  %v6064_v57 = vsel %vm1633_vm4, %v18199_v54, 0.0  ;;  %v13013_v62 = vld [vmem:[%s19133_s16 + $0x18] sm:$0xff]  ;;  %s19171_s16 = sld [smem:[#allocation50_spill]] }
0x1831   : > { %v6031_v35 = vadd.f32 %v6008_v33, %v17780_v3  ;;  %6065 = vadd.xlane.f32.xlu1 %v6064_v57  ;;  %v6061_v59 = vsel %vm1633_vm4, %v18201_v20, 0.0 }
0x1832   : > { %v18209_v53 = vadd.f32 %v13007_v17, %v6032_v31  ;;  %6062 = vadd.xlane.f32.xlu0 %v6061_v59  ;;  %v15430_v31 = vpack.c.bf16 %v13013_v62, %v13012_v4 }
0x1833   : > { %v18211_v15 = vadd.f32 %v13007_v17, %v6031_v35  ;;  %v14576_v45 = vpop.f32.mrb[112].mxu1 }
0x1834   : > { %v6034_v41 = vadd.f32 %v14576_v45, %v17787_v37  ;;  %v6018_v49 = vpop.f32.mrb[113].mxu1  ;;  %v6070_v9 = vsel %vm1633_vm4, %v18209_v53, 0.0  ;;  %15431 = vmatprep.subr.bf16.mxu0 %v15430_v31 }
0x1835   : > { %v6033_v44 = vadd.f32 %v6018_v49, %v17790_v25  ;;  %6071 = vadd.xlane.f32.xlu1 %v6070_v9  ;;  %v6067_v3 = vsel %vm1633_vm4, %v18211_v15, 0.0  ;;  %15433 = vmatpush3.bf16.msra.mxu0 %v15430_v31 }
0x1836   : > { %v18219_v27 = vadd.f32 %v13007_v17, %v6034_v41  ;;  %6068 = vadd.xlane.f32.xlu0 %v6067_v3 }
0x1837   : > { %v18221_v32 = vadd.f32 %v13007_v17, %v6033_v44 }
0x1838   : > { %v6076_v50 = vsel %vm1633_vm4, %v18219_v27, 0.0 }
0x1839   : > { %6077 = vadd.xlane.f32.xlu1 %v6076_v50  ;;  %v6073_v37 = vsel %vm1633_vm4, %v18221_v32, 0.0 }
0x183a   : > { %6074 = vadd.xlane.f32.xlu0 %v6073_v37 }
0x18ba   : > { %v6060_v13 = vpop.xlane.xlu1 %6059 }
0x18bb   : > { %v6080_v39 = vmul.f32 0.0625, %v6060_v13  ;;  %v6057_v25 = vpop.xlane.xlu0 %6056 }
0x18bc   : > { %v6079_v40 = vmul.f32 0.0625, %v6057_v25 }
0x18bd   : > { %v18228_v47 = vsub.f32 %v18189_v10, %v6080_v39 }
0x18be   : > { %v18231_v56 = vsub.f32 %v18191_v22, %v6079_v40  ;;  %v6066_v38 = vpop.xlane.xlu1 %6065 }
0x18bf   : > { %v6082_v55 = vmul.f32 0.0625, %v6066_v38  ;;  %v6063_v5 = vpop.xlane.xlu0 %6062  ;;  %v6096_v42 = vmul.f32 %v18228_v47, %v18228_v47 }
0x18c0   : > { %v6081_v1 = vmul.f32 0.0625, %v6063_v5  ;;  %v6095_v58 = vmul.f32 %v18231_v56, %v18231_v56 }
0x18c1   : > { %v18238_v8 = vsub.f32 %v18199_v54, %v6082_v55  ;;  %v6106_v16 = vsel %vm1633_vm4, %v6096_v42, 0.0 }
0x18c2   : > { %v18242_v28 = vsub.f32 %v18201_v20, %v6081_v1  ;;  %v6072_v43 = vpop.xlane.xlu1 %6071  ;;  %6107 = vadd.xlane.f32.xlu1 %v6106_v16  ;;  %v6103_v52 = vsel %vm1633_vm4, %v6095_v58, 0.0 }
0x18c3   : > { %v6084_v26 = vmul.f32 0.0625, %v6072_v43  ;;  %v6069_v12 = vpop.xlane.xlu0 %6068  ;;  %6104 = vadd.xlane.f32.xlu0 %v6103_v52  ;;  %v6098_v36 = vmul.f32 %v18238_v8, %v18238_v8  ;;  %v13010_v43 = vld [vmem:[%s19134_s29 + $0x1] ss:$0 sm:$0xff] }
0x18c4   : > { %v6083_v24 = vmul.f32 0.0625, %v6069_v12  ;;  %v6097_v46 = vmul.f32 %v18242_v28, %v18242_v28 }
0x18c5   : > { %v18250_v2 = vsub.f32 %v18209_v53, %v6084_v26  ;;  %v6112_v14 = vsel %vm1633_vm4, %v6098_v36, 0.0 }
0x18c6   : > { %v18254_v34 = vsub.f32 %v18211_v15, %v6083_v24  ;;  %6113 = vadd.xlane.f32.xlu1 %v6112_v14  ;;  %v6078_v60 = vpop.xlane.xlu1 %6077  ;;  %v6109_v63 = vsel %vm1633_vm4, %v6097_v46, 0.0  ;;  %v13011_v46 = vld [vmem:[%s19135_s8 + $0x1] ss:$0 sm:$0xff] }
0x18c7   : > { %v6086_v6 = vmul.f32 0.0625, %v6078_v60  ;;  %6110 = vadd.xlane.f32.xlu0 %v6109_v63  ;;  %v6075_v7 = vpop.xlane.xlu0 %6074  ;;  %v6100_v61 = vmul.f32 %v18250_v2, %v18250_v2 }
0x18c8   : > { %v6085_v23 = vmul.f32 0.0625, %v6075_v7  ;;  %v6099_v17 = vmul.f32 %v18254_v34, %v18254_v34 }
0x18c9   : > { %v18262_v18 = vsub.f32 %v18219_v27, %v6086_v6  ;;  %v6118_v48 = vsel %vm1633_vm4, %v6100_v61, 0.0 }
0x18ca   : > { %v18266_v0 = vsub.f32 %v18221_v32, %v6085_v23  ;;  %6119 = vadd.xlane.f32.xlu1 %v6118_v48  ;;  %v6115_v29 = vsel %vm1633_vm4, %v6099_v17, 0.0 }
0x18cb   : > { %6116 = vadd.xlane.f32.xlu0 %v6115_v29  ;;  %v6102_v11 = vmul.f32 %v18262_v18, %v18262_v18 }
0x18cc   : > { %v6101_v21 = vmul.f32 %v18266_v0, %v18266_v0 }
0x18cd   : > { %v6124_v30 = vsel %vm1633_vm4, %v6102_v11, 0.0 }
0x18ce   : > { %6125 = vadd.xlane.f32.xlu1 %v6124_v30  ;;  %v6121_v51 = vsel %vm1633_vm4, %v6101_v21, 0.0 }
0x18cf   : > { %6122 = vadd.xlane.f32.xlu0 %v6121_v51 }
0x194f   : > { %v6108_v33 = vpop.xlane.xlu1 %6107 }
0x1950   : > { %v6128_v57 = vmul.f32 0.0625, %v6108_v33  ;;  %v6105_v35 = vpop.xlane.xlu0 %6104 }
0x1951   : > { %v6127_v59 = vmul.f32 0.0625, %v6105_v35 }
0x1952   : > { %v6136_v45 = vadd.f32 1e-05, %v6128_v57 }
0x1953   : > { %v6135_v41 = vadd.f32 1e-05, %v6127_v59  ;;  %v6114_v49 = vpop.xlane.xlu1 %6113 }
0x1954   : > { %16243 = vrsqrt.f32 %v6136_v45  ;;  %v6130_v9 = vmul.f32 0.0625, %v6114_v49  ;;  %v6111_v44 = vpop.xlane.xlu0 %6110 }
0x1955   : > { %16245 = vrsqrt.f32 %v6135_v41  ;;  %v6129_v3 = vmul.f32 0.0625, %v6111_v44  ;;  %v13025_v41 = vld [vmem:[%s19137_s18 + $0x28] sm:$0xff] }
0x1956   : > { %v6138_v50 = vadd.f32 1e-05, %v6130_v9  ;;  %v13027_v9 = vld [vmem:[%s19137_s18 + $0x38] sm:$0xff] }
0x1957   : > { %v6137_v37 = vadd.f32 1e-05, %v6129_v3  ;;  %v6120_v13 = vpop.xlane.xlu1 %6119  ;;  %v13015_v3 = vld [vmem:[%s19139_s3 + $0x1] ss:$0 sm:$0xff] }
0x1958   : > { %16247 = vrsqrt.f32 %v6138_v50  ;;  %v6132_v39 = vmul.f32 0.0625, %v6120_v13  ;;  %v6117_v25 = vpop.xlane.xlu0 %6116 }
0x1959   : > { %16249 = vrsqrt.f32 %v6137_v37  ;;  %v6131_v40 = vmul.f32 0.0625, %v6117_v25 }
0x195a   : > { %v6140_v38 = vadd.f32 1e-05, %v6132_v39 }
0x195b   : > { %v6139_v55 = vadd.f32 1e-05, %v6131_v40  ;;  %v6126_v5 = vpop.xlane.xlu1 %6125 }
0x195c   : > { %16251 = vrsqrt.f32 %v6140_v38  ;;  %v6134_v42 = vmul.f32 0.0625, %v6126_v5  ;;  %v6123_v1 = vpop.xlane.xlu0 %6122 }
0x195d   : > { %16253 = vrsqrt.f32 %v6139_v55  ;;  %v6133_v58 = vmul.f32 0.0625, %v6123_v1 }
0x195e   : > { %v16244_v16 = vpop.eup %16243  ;;  %v6142_v52 = vadd.f32 1e-05, %v6134_v42 }
0x195f   : > { %v16246_v26 = vpop.eup %16245  ;;  %v6152_v12 = vmul.f32 %v16244_v16, %v18228_v47  ;;  %v6141_v36 = vadd.f32 1e-05, %v6133_v58 }
0x1960   : > { %16255 = vrsqrt.f32 %v6142_v52  ;;  %v6151_v24 = vmul.f32 %v16246_v26, %v18231_v56 }
0x1961   : > { %v6166_v14 = vmul.f32 %v13010_v43, %v6152_v12  ;;  %16257 = vrsqrt.f32 %v6141_v36 }
0x1962   : > { %v16248_v60 = vpop.eup %16247  ;;  %v6165_v63 = vmul.f32 %v13010_v43, %v6151_v24 }
0x1963   : > { %v16250_v6 = vpop.eup %16249  ;;  %v6154_v7 = vmul.f32 %v16248_v60, %v18238_v8  ;;  %v6180_v17 = vadd.f32 %v13011_v46, %v6166_v14 }
0x1964   : > { %v6179_v61 = vadd.f32 %v13011_v46, %v6165_v63  ;;  %v6153_v23 = vmul.f32 %v16250_v6, %v18242_v28 }
0x1965   : > { %v6168_v48 = vmul.f32 %v13010_v43, %v6154_v7 }
0x1966   : > { %v16252_v29 = vpop.eup %16251  ;;  %14581 = vmatprep.mubr.msk.f32.mxu0 %vm1633_vm4, %v6179_v61  ;;  %v6167_v47 = vmul.f32 %v13010_v43, %v6153_v23 }
0x1967   : > { %v16254_v11 = vpop.eup %16253  ;;  %14582 = vmatmul.mubr.msk.f32.vlgmr.msra.gmra.mrb[86].mxu0 %vm1633_vm4, %v6180_v17  ;;  %v6156_v56 = vmul.f32 %v16252_v29, %v18250_v2  ;;  %v6182_v51 = vadd.f32 %v13011_v46, %v6168_v48 }
0x1968   : > { %v6181_v21 = vadd.f32 %v13011_v46, %v6167_v47  ;;  %v6155_v30 = vmul.f32 %v16254_v11, %v18254_v34 }
0x1969   : > { %v6170_v4 = vmul.f32 %v13010_v43, %v6156_v56 }
0x196a   : > { %v16256_v8 = vpop.eup %16255  ;;  %14584 = vmatprep.mubr.msk.f32.mxu0 %vm1633_vm4, %v6181_v21  ;;  %v6169_v28 = vmul.f32 %v13010_v43, %v6155_v30 }
0x196b   : > { %v16258_v62 = vpop.eup %16257  ;;  %14585 = vmatmul.mubr.msk.f32.gmra.mrb[88].mxu0 %vm1633_vm4, %v6182_v51  ;;  %v6158_v31 = vmul.f32 %v16256_v8, %v18262_v18  ;;  %v6184_v57 = vadd.f32 %v13011_v46, %v6170_v4  ;;  %v13024_v18 = vld [vmem:[%s19137_s18 + $0x20] sm:$0xff] }
0x196c   : > { %v6183_v33 = vadd.f32 %v13011_v46, %v6169_v28  ;;  %v6157_v2 = vmul.f32 %v16258_v62, %v18266_v0  ;;  %v15434_v49 = vpack.c.bf16 %v13025_v41, %v13024_v18  ;;  %v13026_v0 = vld [vmem:[%s19137_s18 + $0x30] sm:$0xff] }
0x196d   : > { %v6172_v34 = vmul.f32 %v13010_v43, %v6158_v31  ;;  %v15438_v44 = vpack.c.bf16 %v13027_v9, %v13026_v0 }
0x196e   : > { %14587 = vmatprep.mubr.msk.f32.mxu0 %vm1633_vm4, %v6183_v33  ;;  %v6171_v35 = vmul.f32 %v13010_v43, %v6157_v2  ;;  %15435 = vmatprep.subr.bf16.mxu0 %v15434_v49 }
0x196f   : > { %14588 = vmatmul.mubr.msk.f32.gmra.mrb[90].mxu0 %vm1633_vm4, %v6184_v57  ;;  %v6186_v45 = vadd.f32 %v13011_v46, %v6172_v34 }
0x1970   : > { %v6185_v59 = vadd.f32 %v13011_v46, %v6171_v35  ;;  %15437 = vmatpush3.bf16.msra.mxu0 %v15434_v49 }
0x1971   : > { %15439 = vmatprep.subr.bf16.mxu0 %v15438_v44 }
0x1972   : > { %14590 = vmatprep.mubr.msk.f32.mxu0 %vm1633_vm4, %v6185_v59 }
0x1973   : > { %14591 = vmatmul.mubr.msk.f32.gmra.mrb[92].mxu0 %vm1633_vm4, %v6186_v45 }
0x1974   : > { %15441 = vmatpush3.bf16.msra.mxu0 %v15438_v44 }
0x1a3a   : > { %v14583_v50 = vpop.f32.mrb[86].mxu0 }
0x1a3b   : > { %v18300_v37 = vadd.f32 %v14583_v50, %v13015_v3  ;;  %v6288_v13 = vpop.f32.mrb[87].mxu0 }
0x1a3c   : > { %v18302_v39 = vadd.f32 %v13015_v3, %v6288_v13 }
0x1a3d   : > { %v6328_v25 = vmul.f32 %v18300_v37, %v18300_v37 }
0x1a3e   : > { %v6327_v40 = vmul.f32 %v18302_v39, %v18302_v39  ;;  %v14586_v38 = vpop.f32.mrb[88].mxu0 }
0x1a3f   : > { %v6336_v55 = vmul.f32 %v6328_v25, %v18300_v37  ;;  %v18309_v5 = vadd.f32 %v14586_v38, %v13015_v3  ;;  %v6298_v42 = vpop.f32.mrb[89].mxu0 }
0x1a40   : > { %v6335_v1 = vmul.f32 %v6327_v40, %v18302_v39  ;;  %v18312_v58 = vadd.f32 %v13015_v3, %v6298_v42 }
0x1a41   : > { %v6344_v16 = vmul.f32 0.044715, %v6336_v55  ;;  %v6330_v43 = vmul.f32 %v18309_v5, %v18309_v5 }
0x1a42   : > { %v6343_v52 = vmul.f32 0.044715, %v6335_v1  ;;  %v6329_v26 = vmul.f32 %v18312_v58, %v18312_v58  ;;  %v14589_v12 = vpop.f32.mrb[90].mxu0 }
0x1a43   : > { %v6352_v36 = vadd.f32 %v6344_v16, %v18300_v37  ;;  %v6338_v24 = vmul.f32 %v6330_v43, %v18309_v5  ;;  %v18320_v46 = vadd.f32 %v14589_v12, %v13015_v3  ;;  %v6308_v14 = vpop.f32.mrb[91].mxu0 }
0x1a44   : > { %v6351_v60 = vadd.f32 %v6343_v52, %v18302_v39  ;;  %v6337_v63 = vmul.f32 %v6329_v26, %v18312_v58  ;;  %v18324_v6 = vadd.f32 %v13015_v3, %v6308_v14 }
0x1a45   : > { %v6360_v7 = vmul.f32 0.7978846, %v6352_v36  ;;  %v6346_v61 = vmul.f32 0.044715, %v6338_v24  ;;  %v6332_v23 = vmul.f32 %v18320_v46, %v18320_v46 }
0x1a46   : > { %v6359_v17 = vmul.f32 0.7978846, %v6351_v60  ;;  %v6345_v48 = vmul.f32 0.044715, %v6337_v63  ;;  %v6331_v29 = vmul.f32 %v18324_v6, %v18324_v6  ;;  %v14592_v47 = vpop.f32.mrb[92].mxu0 }
0x1a47   : > { %16259 = vtanh.f32 %v6360_v7  ;;  %v6354_v11 = vadd.f32 %v6346_v61, %v18309_v5  ;;  %v6340_v56 = vmul.f32 %v6332_v23, %v18320_v46  ;;  %v18332_v21 = vadd.f32 %v14592_v47, %v13015_v3  ;;  %v6318_v30 = vpop.f32.mrb[93].mxu0 }
0x1a48   : > { %16261 = vtanh.f32 %v6359_v17  ;;  %v6353_v51 = vadd.f32 %v6345_v48, %v18312_v58  ;;  %v6339_v4 = vmul.f32 %v6331_v29, %v18324_v6  ;;  %v6319_v8 = vadd.f32 %v13015_v3, %v6318_v30 }
0x1a49   : > { %v6362_v28 = vmul.f32 0.7978846, %v6354_v11  ;;  %v6348_v62 = vmul.f32 0.044715, %v6340_v56  ;;  %v6334_v31 = vmul.f32 %v18332_v21, %v18332_v21 }
0x1a4a   : > { %v6361_v33 = vmul.f32 0.7978846, %v6353_v51  ;;  %v6347_v2 = vmul.f32 0.044715, %v6339_v4  ;;  %v6333_v57 = vmul.f32 %v6319_v8, %v6319_v8  ;;  %v6549_v4 = vld [vmem:[%s19142_s22] sm:$0xff]  ;;  %s19146_s22 = sld [smem:[#allocation22_spill]] }
0x1a4b   : > { %16263 = vtanh.f32 %v6362_v28  ;;  %v6356_v34 = vadd.f32 %v6348_v62, %v18320_v46  ;;  %v6342_v35 = vmul.f32 %v6334_v31, %v18332_v21  ;;  %v13040_v28 = vld [vmem:[%s19143_s1 + $0x10] sm:$0xff]  ;;  %14629 = vmatprep.mubr.msk.f32.mxu1 %vm2429_vm7, %v6549_v4 }
0x1a4c   : > { %16265 = vtanh.f32 %v6361_v33  ;;  %v6355_v59 = vadd.f32 %v6347_v2, %v18324_v6  ;;  %v6341_v45 = vmul.f32 %v6333_v57, %v6319_v8 }
0x1a4d   : > { %v6364_v18 = vmul.f32 0.7978846, %v6356_v34  ;;  %v6350_v41 = vmul.f32 0.044715, %v6342_v35 }
0x1a4e   : > { %v6363_v49 = vmul.f32 0.7978846, %v6355_v59  ;;  %v6349_v0 = vmul.f32 0.044715, %v6341_v45 }
0x1a4f   : > { %16267 = vtanh.f32 %v6364_v18  ;;  %v6358_v9 = vadd.f32 %v6350_v41, %v18332_v21 }
0x1a50   : > { %16269 = vtanh.f32 %v6363_v49  ;;  %v6357_v44 = vadd.f32 %v6349_v0, %v6319_v8  ;;  %s19147_s2 = smov %s19146_s22 }
0x1a51   : > { %v16260_v3 = vpop.eup %16259  ;;  %v6366_v50 = vmul.f32 0.7978846, %v6358_v9 }
0x1a52   : > { %v16262_v13 = vpop.eup %16261  ;;  %v6376_v25 = vadd.f32 1.0, %v16260_v3  ;;  %v6365_v40 = vmul.f32 0.7978846, %v6357_v44 }
0x1a53   : > { %16271 = vtanh.f32 %v6366_v50  ;;  %v6375_v38 = vadd.f32 1.0, %v16262_v13 }
0x1a54   : > { %v6384_v55 = vmul.f32 0.5, %v6376_v25  ;;  %16273 = vtanh.f32 %v6365_v40 }
0x1a55   : > { %v16264_v42 = vpop.eup %16263  ;;  %v6383_v1 = vmul.f32 0.5, %v6375_v38  ;;  %v13041_v38 = vld [vmem:[%s19143_s1 + $0x18] sm:$0xff] }
0x1a56   : > { %v16266_v16 = vpop.eup %16265  ;;  %v6378_v43 = vadd.f32 1.0, %v16264_v42  ;;  %v6392_v12 = vmul.f32 %v6384_v55, %v18300_v37  ;;  %v13045_v55 = vld [vmem:[%s19143_s1 + $0x28] sm:$0xff]  ;;  %v13049_v42 = vld [vmem:[%s19143_s1 + $0x38] sm:$0xff] }
0x1a57   : > { %v6391_v52 = vmul.f32 %v6383_v1, %v18302_v39  ;;  %v6377_v26 = vadd.f32 1.0, %v16266_v16 }
0x1a58   : > { %v6386_v36 = vmul.f32 0.5, %v6378_v43 }
0x1a59   : > { %v16268_v24 = vpop.eup %16267  ;;  %14601 = vmatprep.mubr.msk.f32.mxu0 %vm4013_vm8, %v6391_v52  ;;  %v6385_v14 = vmul.f32 0.5, %v6377_v26 }
0x1a5a   : > { %v16270_v60 = vpop.eup %16269  ;;  %14602 = vmatmul.mubr.msk.f32.vlgmr.msra.gmra.mrb[94].mxu0 %vm4013_vm8, %v6392_v12  ;;  %v6380_v63 = vadd.f32 1.0, %v16268_v24  ;;  %v6394_v23 = vmul.f32 %v6386_v36, %v18309_v5 }
0x1a5b   : > { %v6393_v7 = vmul.f32 %v6385_v14, %v18312_v58  ;;  %v6379_v61 = vadd.f32 1.0, %v16270_v60 }
0x1a5c   : > { %v6388_v17 = vmul.f32 0.5, %v6380_v63 }
0x1a5d   : > { %v16272_v48 = vpop.eup %16271  ;;  %14604 = vmatprep.mubr.msk.f32.mxu0 %vm4013_vm8, %v6393_v7  ;;  %v6387_v37 = vmul.f32 0.5, %v6379_v61 }
0x1a5e   : > { %v16274_v39 = vpop.eup %16273  ;;  %14605 = vmatmul.mubr.msk.f32.gmra.mrb[96].mxu0 %vm4013_vm8, %v6394_v23  ;;  %v6382_v29 = vadd.f32 1.0, %v16272_v48  ;;  %v6396_v58 = vmul.f32 %v6388_v17, %v18320_v46  ;;  %v13029_v46 = vld [vmem:[%s19141_s5 + $0x1] ss:$0 sm:$0xff]  ;;  %s19156_s5 = sld [smem:[#allocation44_spill]] }
0x1a5f   : > { %v6395_v47 = vmul.f32 %v6387_v37, %v18324_v6  ;;  %v6381_v11 = vadd.f32 1.0, %v16274_v39 }
0x1a60   : > { %v6390_v56 = vmul.f32 0.5, %v6382_v29 }
0x1a61   : > { %14607 = vmatprep.mubr.msk.f32.mxu0 %vm4013_vm8, %v6395_v47  ;;  %v6389_v5 = vmul.f32 0.5, %v6381_v11 }
0x1a62   : > { %14608 = vmatmul.mubr.msk.f32.gmra.mrb[98].mxu0 %vm4013_vm8, %v6396_v58  ;;  %v6398_v51 = vmul.f32 %v6390_v56, %v18332_v21 }
0x1a63   : > { %v6397_v30 = vmul.f32 %v6389_v5, %v6319_v8 }
0x1a65   : > { %14610 = vmatprep.mubr.msk.f32.mxu0 %vm4013_vm8, %v6397_v30 }
0x1a66   : > { %14611 = vmatmul.mubr.msk.f32.gmra.mrb[100].mxu0 %vm4013_vm8, %v6398_v51 }
0x1a67   : > { %14648 = vmatprep.mubr.msk.f32.mxu0 %vm2429_vm7, %v13040_v28 }
0x1b2d   : > { %v14603_v6 = vpop.f32.mrb[94].mxu0 }
0x1b2e   : > { %v6508_v62 = vadd.f32 %v14603_v6, %v13029_v46  ;;  %v6502_v31 = vpop.f32.mrb[95].mxu0 }
0x1b2f   : > { %v6503_v33 = vadd.f32 %v13029_v46, %v6502_v31 }
0x1b30   : > { %v6542_v2 = vadd.f32 %v6508_v62, %v18189_v10 }
0x1b31   : > { %v6541_v8 = vadd.f32 %v6503_v33, %v18191_v22  ;;  %v14606_v21 = vpop.f32.mrb[96].mxu0 }
0x1b32   : > { %v6518_v57 = vadd.f32 %v14606_v21, %v13029_v46  ;;  %v6512_v34 = vpop.f32.mrb[97].mxu0 }
0x1b33   : > { %v15442_v35 = vpack.c.bf16 %v6542_v2, %v6541_v8  ;;  %v6513_v59 = vadd.f32 %v13029_v46, %v6512_v34 }
0x1b34   : > { %v6544_v45 = vadd.f32 %v6518_v57, %v18199_v54 }
0x1b35   : > { %v6543_v18 = vadd.f32 %v6513_v59, %v18201_v20  ;;  %v14609_v41 = vpop.f32.mrb[98].mxu0  ;;  %15443 = vmatprep.subr.bf16.mxu1 %v15442_v35  ;;  %15459 = vmatprep.subr.bf16.mxu0 %v15442_v35 }
0x1b36   : > { %v6528_v49 = vadd.f32 %v14609_v41, %v13029_v46  ;;  %v6522_v0 = vpop.f32.mrb[99].mxu0  ;;  %15445 = vmatpush3.bf16.msra.mxu1 %v15442_v35  ;;  %15461 = vmatpush3.bf16.msra.mxu0 %v15442_v35 }
0x1b37   : > { %v15446_v9 = vpack.c.bf16 %v6544_v45, %v6543_v18  ;;  %v6523_v10 = vadd.f32 %v13029_v46, %v6522_v0 }
0x1b38   : > { %v6546_v22 = vadd.f32 %v6528_v49, %v18209_v53 }
0x1b39   : > { %v6545_v44 = vadd.f32 %v6523_v10, %v18211_v15  ;;  %v14612_v3 = vpop.f32.mrb[100].mxu0  ;;  %15447 = vmatprep.subr.bf16.mxu1 %v15446_v9  ;;  %15463 = vmatprep.subr.bf16.mxu0 %v15446_v9  ;;  %v6550_v15 = vld [vmem:[%s19143_s1 + $0x8] sm:$0xff] }
0x1b3a   : > { %v6538_v50 = vadd.f32 %v14612_v3, %v13029_v46  ;;  %v6532_v54 = vpop.f32.mrb[101].mxu0  ;;  %15449 = vmatpush3.bf16.msra.mxu1 %v15446_v9  ;;  %15465 = vmatpush3.bf16.msra.mxu0 %v15446_v9 }
0x1b3b   : > { %v15450_v20 = vpack.c.bf16 %v6546_v22, %v6545_v44  ;;  %v6533_v13 = vadd.f32 %v13029_v46, %v6532_v54 }
0x1b3c   : > { %v6548_v25 = vadd.f32 %v6538_v50, %v18219_v27  ;;  %v13044_v27 = vld [vmem:[%s19143_s1 + $0x20] sm:$0xff] }
0x1b3d   : > { %v6547_v40 = vadd.f32 %v6533_v13, %v18221_v32  ;;  %15451 = vmatprep.subr.bf16.mxu1 %v15450_v20  ;;  %15467 = vmatprep.subr.bf16.mxu0 %v15450_v20  ;;  %v13048_v32 = vld [vmem:[%s19143_s1 + $0x30] sm:$0xff]  ;;  %s19145_s1 = smov %s19144_s26 }
0x1b3e   : > { %15453 = vmatpush3.bf16.msra.mxu1 %v15450_v20  ;;  %15469 = vmatpush3.bf16.msra.mxu0 %v15450_v20 }
0x1b3f   : > { %v15454_v53 = vpack.c.bf16 %v6548_v25, %v6547_v40 }
0x1b41   : > { %15455 = vmatprep.subr.bf16.mxu1 %v15454_v53  ;;  %15471 = vmatprep.subr.bf16.mxu0 %v15454_v53 }
0x1b42   : > { %15457 = vmatpush3.bf16.msra.mxu1 %v15454_v53  ;;  %15473 = vmatpush3.bf16.msra.mxu0 %v15454_v53 }
0x1b43   : > { %15475 = vmatprep.subr.bf16.mxu1 %v15442_v35  ;;  %15491 = vmatprep.subr.bf16.mxu0 %v15442_v35 }
0x1b45   : > { %14630 = vmatmul.mubr.msk.f32.vlgmr.msra.gmra.mrb[114].mxu1 %vm2429_vm7, %v6550_v15  ;;  %14649 = vmatmul.mubr.msk.f32.vlgmr.msra.gmra.mrb[102].mxu0 %vm2429_vm7, %v13041_v38  ;;  %v13059_v15 = vld [vmem:[%s19145_s1 + $0x18] sm:$0xff] }
0x1b46   : > { %15477 = vmatpush3.bf16.msra.mxu1 %v15442_v35  ;;  %15493 = vmatpush3.bf16.msra.mxu0 %v15442_v35 }
0x1b47   : > { %15479 = vmatprep.subr.bf16.mxu1 %v15446_v9  ;;  %15495 = vmatprep.subr.bf16.mxu0 %v15446_v9 }
0x1b48   : > { %14667 = vmatprep.mubr.msk.f32.mxu1 %vm2429_vm7, %v13044_v27  ;;  %14686 = vmatprep.mubr.msk.f32.mxu0 %vm2429_vm7, %v13048_v32  ;;  %v6989_v27 = vld [vmem:[%s19145_s1] sm:$0xff]  ;;  %v6990_v32 = vld [vmem:[%s19145_s1 + $0x8] sm:$0xff] }
0x1b4a   : > { %15481 = vmatpush3.bf16.msra.mxu1 %v15446_v9  ;;  %15497 = vmatpush3.bf16.msra.mxu0 %v15446_v9 }
0x1b4b   : > { %15483 = vmatprep.subr.bf16.mxu1 %v15450_v20  ;;  %15499 = vmatprep.subr.bf16.mxu0 %v15450_v20 }
0x1b4e   : > { %15485 = vmatpush3.bf16.msra.mxu1 %v15450_v20  ;;  %15501 = vmatpush3.bf16.msra.mxu0 %v15450_v20 }
0x1b4f   : > { %15487 = vmatprep.subr.bf16.mxu1 %v15454_v53  ;;  %15503 = vmatprep.subr.bf16.mxu0 %v15454_v53 }
0x1b52   : > { %15489 = vmatpush3.bf16.msra.mxu1 %v15454_v53  ;;  %15505 = vmatpush3.bf16.msra.mxu0 %v15454_v53  ;;  %v13058_v53 = vld [vmem:[%s19144_s26 + $0x10] sm:$0xff]  ;;  %s19148_s26 = sld [smem:[#allocation21_spill]] }
0x1b53   : > { %v15506_v38 = vpack.c.bf16 %v13059_v15, %v13058_v53 }
0x1b55   : > { %14668 = vmatmul.mubr.msk.f32.vlgmr.msra.gmra.mrb[116].mxu1 %vm2429_vm7, %v13045_v55  ;;  %14687 = vmatmul.mubr.msk.f32.vlgmr.msra.gmra.mrb[104].mxu0 %vm2429_vm7, %v13049_v42  ;;  %v15510_v55 = vpack.c.bf16 %v6990_v32, %v6989_v27 }
0x1b56   : > { %15507 = vmatprep.subr.bf16.mxu1 %v15506_v38 }
0x1b57   : > { %15509 = vmatpush3.bf16.msra.mxu1 %v15506_v38 }
0x1b58   : > { %15511 = vmatprep.subr.bf16.mxu1 %v15510_v55  ;;  %s19149_s3 = smov %s19148_s26 }
0x1c18   : > { %v14631_v1 = vpop.f32.mrb[114].mxu1  ;;  %v14650_v16 = vpop.f32.mrb[102].mxu0 }
0x1c19   : > { %v6623_v43 = vpop.f32.mrb[115].mxu1  ;;  %v6893_v52 = vsel %vm1633_vm4, %v14650_v16, 0.0  ;;  %v6887_v26 = vsel %vm1633_vm4, %v14631_v1, 0.0  ;;  %v6707_v12 = vpop.f32.mrb[103].mxu0 }
0x1c1a   : > { %6894 = vadd.xlane.f32.xlu1 %v6893_v52  ;;  %6888 = vadd.xlane.f32.xlu0 %v6887_v26  ;;  %v6890_v36 = vsel %vm1633_vm4, %v6707_v12, 0.0  ;;  %v6884_v24 = vsel %vm1633_vm4, %v6623_v43, 0.0 }
0x1c1e   : > { %6891 = vadd.xlane.f32.xlu1 %v6890_v36  ;;  %6885 = vadd.xlane.f32.xlu0 %v6884_v24 }
0x1c28   : > { %v14669_v14 = vpop.f32.mrb[116].mxu1  ;;  %v14688_v60 = vpop.f32.mrb[104].mxu0 }
0x1c29   : > { %v6791_v63 = vpop.f32.mrb[117].mxu1  ;;  %v6901_v7 = vsel %vm1633_vm4, %v14669_v14, 0.0  ;;  %v6875_v61 = vpop.f32.mrb[105].mxu0  ;;  %v6909_v17 = vsel %vm1633_vm4, %v14688_v60, 0.0 }
0x1c2a   : > { %6902 = vadd.xlane.f32.xlu1 %v6901_v7  ;;  %v6898_v23 = vsel %vm1633_vm4, %v6791_v63, 0.0  ;;  %v6906_v48 = vsel %vm1633_vm4, %v6875_v61, 0.0 }
0x1c2b   : > { %6899 = vadd.xlane.f32.xlu0 %v6898_v23 }
0x1c2e   : > { %6910 = vadd.xlane.f32.xlu1 %v6909_v17 }
0x1c2f   : > { %6907 = vadd.xlane.f32.xlu0 %v6906_v48 }
0x1ca7   : > { %v6895_v37 = vpop.xlane.xlu1 %6894  ;;  %v6889_v39 = vpop.xlane.xlu0 %6888 }
0x1ca8   : > { %v6897_v58 = vadd.f32 %v6895_v37, %v6889_v39 }
0x1cab   : > { %v6892_v29 = vpop.xlane.xlu1 %6891  ;;  %v6886_v47 = vpop.xlane.xlu0 %6885 }
0x1cac   : > { %v6896_v5 = vadd.f32 %v6892_v29, %v6886_v47  ;;  %v13055_v29 = vld [vmem:[%s19146_s22 + $0x1] ss:$0 sm:$0xff]  ;;  %s19150_s22 = sld [smem:[#allocation57_spill]] }
0x1cb7   : > { %v6903_v11 = vpop.xlane.xlu1 %6902 }
0x1cb8   : > { %v6900_v56 = vpop.xlane.xlu0 %6899  ;;  %v6905_v30 = vadd.f32 %v6903_v11, %v6897_v58  ;;  %v13052_v58 = vld [vmem:[%s19147_s2] ss:$0 sm:$0xff] }
0x1cb9   : > { %v6904_v51 = vadd.f32 %v6900_v56, %v6896_v5  ;;  %v13057_v5 = vld [vmem:[%s19148_s26 + $0x1] ss:$0 sm:$0xff]  ;;  %s19152_s26 = sld [smem:[#allocation52_spill]] }
0x1cbb   : > { %v6911_v4 = vpop.xlane.xlu1 %6910 }
0x1cbc   : > { %v6913_v28 = vadd.f32 %v6911_v4, %v6905_v30  ;;  %v6908_v46 = vpop.xlane.xlu0 %6907 }
0x1cbd   : > { %v6912_v6 = vadd.f32 %v6908_v46, %v6904_v51  ;;  %v13068_v46 = vld [vmem:[%s19145_s1 + $0x20] sm:$0xff] }
0x1cbe   : > { %v6916_v62 = vmul.f32 0.015625, %v6913_v28 }
0x1cbf   : > { %v6915_v31 = vmul.f32 0.015625, %v6912_v6  ;;  %v13069_v6 = vld [vmem:[%s19145_s1 + $0x28] sm:$0xff] }
0x1cc0   : > { %v18390_v33 = vsub.f32 %v14650_v16, %v6916_v62  ;;  %v18392_v2 = vsub.f32 %v14631_v1, %v6916_v62  ;;  %v18402_v35 = vsub.f32 %v14669_v14, %v6916_v62  ;;  %v18412_v0 = vsub.f32 %v14688_v60, %v6916_v62 }
0x1cc1   : > { %v18394_v8 = vsub.f32 %v6707_v12, %v6915_v31  ;;  %v18396_v21 = vsub.f32 %v6623_v43, %v6915_v31  ;;  %v18404_v59 = vsub.f32 %v6791_v63, %v6915_v31  ;;  %v18414_v9 = vsub.f32 %v6875_v61, %v6915_v31  ;;  %v13053_v31 = vld [vmem:[%s19149_s3] ss:$0 sm:$0xff] }
0x1cc2   : > { %v6930_v57 = vmul.f32 %v18390_v33, %v18390_v33  ;;  %v6920_v34 = vmul.f32 %v18392_v2, %v18392_v2  ;;  %v6942_v44 = vmul.f32 %v18402_v35, %v18402_v35  ;;  %v6954_v20 = vmul.f32 %v18412_v0, %v18412_v0 }
0x1cc3   : > { %v6929_v41 = vmul.f32 %v18394_v8, %v18394_v8  ;;  %v6919_v49 = vmul.f32 %v18396_v21, %v18396_v21  ;;  %v6941_v3 = vmul.f32 %v18404_v59, %v18404_v59  ;;  %v6953_v13 = vmul.f32 %v18414_v9, %v18414_v9 }
0x1cc4   : > { %v6934_v45 = vsel %vm1633_vm4, %v6930_v57, 0.0  ;;  %v6924_v18 = vsel %vm1633_vm4, %v6920_v34, 0.0  ;;  %v6946_v50 = vsel %vm1633_vm4, %v6942_v44, 0.0  ;;  %v6958_v25 = vsel %vm1633_vm4, %v6954_v20, 0.0 }
0x1cc5   : > { %6935 = vadd.xlane.f32.xlu1 %v6934_v45  ;;  %6925 = vadd.xlane.f32.xlu0 %v6924_v18  ;;  %v6931_v10 = vsel %vm1633_vm4, %v6929_v41, 0.0  ;;  %v6921_v22 = vsel %vm1633_vm4, %v6919_v49, 0.0  ;;  %v6943_v54 = vsel %vm1633_vm4, %v6941_v3, 0.0  ;;  %v6955_v40 = vsel %vm1633_vm4, %v6953_v13, 0.0  ;;  %v13076_v49 = vld [vmem:[%s19145_s1 + $0x30] sm:$0xff] }
0x1cc6   : > { %v15514_v34 = vpack.c.bf16 %v13069_v6, %v13068_v46 }
0x1cc9   : > { %6932 = vadd.xlane.f32.xlu1 %v6931_v10  ;;  %6922 = vadd.xlane.f32.xlu0 %v6921_v22  ;;  %v13077_v10 = vld [vmem:[%s19145_s1 + $0x38] sm:$0xff]  ;;  %s19151_s1 = smov %s19150_s22 }
0x1cca   : > { %v15518_v3 = vpack.c.bf16 %v13077_v10, %v13076_v49 }
0x1ccd   : > { %6947 = vadd.xlane.f32.xlu1 %v6946_v50  ;;  %6944 = vadd.xlane.f32.xlu0 %v6943_v54  ;;  %v13073_v54 = vld [vmem:[%s19147_s2 + $0x3] ss:$0 sm:$0xff] }
0x1cd1   : > { %6959 = vadd.xlane.f32.xlu1 %v6958_v25  ;;  %6956 = vadd.xlane.f32.xlu0 %v6955_v40  ;;  %v13075_v25 = vld [vmem:[%s19149_s3 + $0x3] ss:$0 sm:$0xff] }
0x1d52   : > { %v6936_v42 = vpop.xlane.xlu1 %6935  ;;  %v6926_v1 = vpop.xlane.xlu0 %6925 }
0x1d53   : > { %v6938_v12 = vadd.f32 %v6936_v42, %v6926_v1 }
0x1d56   : > { %v6933_v16 = vpop.xlane.xlu1 %6932  ;;  %v6923_v43 = vpop.xlane.xlu0 %6922 }
0x1d57   : > { %v6937_v36 = vadd.f32 %v6933_v16, %v6923_v43 }
0x1d5a   : > { %v6948_v52 = vpop.xlane.xlu1 %6947  ;;  %v6945_v26 = vpop.xlane.xlu0 %6944 }
0x1d5b   : > { %v6950_v24 = vadd.f32 %v6948_v52, %v6938_v12  ;;  %v6949_v14 = vadd.f32 %v6945_v26, %v6937_v36 }
0x1d5e   : > { %v6960_v60 = vpop.xlane.xlu1 %6959  ;;  %v6957_v63 = vpop.xlane.xlu0 %6956 }
0x1d5f   : > { %v6962_v7 = vadd.f32 %v6960_v60, %v6950_v24  ;;  %v6961_v61 = vadd.f32 %v6957_v63, %v6949_v14  ;;  %v7439_v14 = vld [vmem:[%s16905_s12] sm:$0xff]  ;;  %v7440_v60 = vld [vmem:[%s16905_s12 + $0x8] sm:$0xff] }
0x1d60   : > { %v15522_v63 = vpack.c.bf16 %v7440_v60, %v7439_v14  ;;  %v13116_v14 = vld [vmem:[%s19096_s4 + $0x38] sm:$0xff] }
0x1d61   : > { %v6964_v23 = vmul.f32 0.015625, %v6962_v7  ;;  %v6963_v17 = vmul.f32 0.015625, %v6961_v61  ;;  %v7531_v7 = vld [vmem:[%s19150_s22] sm:$0xff]  ;;  %v7532_v61 = vld [vmem:[%s19151_s1 + $0x8] sm:$0xff]  ;;  %s19154_s22 = sld [smem:[#allocation51_spill]] }
0x1d62   : > { %15523 = vmatprep.subr.bf16.mxu0 %v15522_v63 }
0x1d63   : > { %v6966_v48 = vadd.f32 1e-05, %v6964_v23  ;;  %v6965_v37 = vadd.f32 1e-05, %v6963_v17  ;;  %v15530_v23 = vpack.c.bf16 %v7532_v61, %v7531_v7  ;;  %15525 = vmatpush3.bf16.msra.mxu0 %v15522_v63  ;;  %v7441_v17 = vld [vmem:[%s16905_s12 + $0x10] sm:$0xff] }
0x1d65   : > { %16275 = vrsqrt.f32 %v6966_v48  ;;  %v7442_v48 = vld [vmem:[%s16905_s12 + $0x18] sm:$0xff] }
0x1d66   : > { %16277 = vrsqrt.f32 %v6965_v37  ;;  %v15526_v37 = vpack.c.bf16 %v7442_v48, %v7441_v17 }
0x1d68   : > { %15527 = vmatprep.subr.bf16.mxu0 %v15526_v37 }
0x1d69   : > { %15529 = vmatpush3.bf16.msra.mxu0 %v15526_v37 }
0x1d6f   : > { %v16276_v39 = vpop.eup %16275 }
0x1d70   : > { %v16278_v47 = vpop.eup %16277  ;;  %v6992_v11 = vmul.f32 %v16276_v39, %v18390_v33  ;;  %v6970_v33 = vmul.f32 %v16276_v39, %v18392_v2  ;;  %v13067_v2 = vld [vmem:[%s19149_s3 + $0x2] ss:$0 sm:$0xff]  ;;  %v7179_v44 = vmul.f32 %v16276_v39, %v18402_v35  ;;  %v7287_v53 = vmul.f32 %v16276_v39, %v18412_v0  ;;  %v7533_v39 = vld [vmem:[%s19151_s1 + $0x10] sm:$0xff]  ;;  %s19155_s3 = smov %s19154_s22 }
0x1d71   : > { %v6991_v56 = vmul.f32 %v16278_v47, %v18394_v8  ;;  %v6969_v30 = vmul.f32 %v16278_v47, %v18396_v21  ;;  %v7178_v45 = vmul.f32 %v16278_v47, %v18404_v59  ;;  %v13065_v21 = vld [vmem:[%s19147_s2 + $0x2] ss:$0 sm:$0xff]  ;;  %v7286_v59 = vmul.f32 %v16278_v47, %v18414_v9  ;;  %s19153_s2 = smov %s19152_s26 }
0x1d72   : > { %v7002_v51 = vmul.f32 %v13055_v29, %v6992_v11  ;;  %v6979_v18 = vmul.f32 %v13052_v58, %v6970_v33  ;;  %v7189_v20 = vmul.f32 %v13065_v21, %v7179_v44  ;;  %v7297_v35 = vmul.f32 %v13073_v54, %v7287_v53  ;;  %v7617_v11 = vld [vmem:[%s19096_s4] sm:$0xff] }
0x1d73   : > { %v7001_v4 = vmul.f32 %v13055_v29, %v6991_v56  ;;  %v6978_v28 = vmul.f32 %v13052_v58, %v6969_v30  ;;  %v7188_v41 = vmul.f32 %v13065_v21, %v7178_v45  ;;  %v7296_v13 = vmul.f32 %v13073_v54, %v7286_v59  ;;  %v7534_v29 = vld [vmem:[%s19151_s1 + $0x18] sm:$0xff]  ;;  %v7618_v58 = vld [vmem:[%s19096_s4 + $0x8] sm:$0xff]  ;;  %v7619_v21 = vld [vmem:[%s19096_s4 + $0x10] sm:$0xff] }
0x1d74   : > { %v7012_v62 = vadd.f32 %v13057_v5, %v7002_v51  ;;  %v6988_v22 = vadd.f32 %v13053_v31, %v6979_v18  ;;  %v7199_v40 = vadd.f32 %v13067_v2, %v7189_v20  ;;  %v7307_v9 = vadd.f32 %v13075_v25, %v7297_v35  ;;  %v7620_v18 = vld [vmem:[%s19096_s4 + $0x18] sm:$0xff]  ;;  %v13097_v20 = vld [vmem:[%s16905_s12 + $0x20] sm:$0xff] }
0x1d75   : > { %v7011_v57 = vadd.f32 %v13057_v5, %v7001_v4  ;;  %v6987_v8 = vadd.f32 %v13053_v31, %v6978_v28  ;;  %v7198_v50 = vadd.f32 %v13067_v2, %v7188_v41  ;;  %v7306_v15 = vadd.f32 %v13075_v25, %v7296_v13  ;;  %v13085_v2 = vld [vmem:[%s19156_s5] ss:$0 sm:$0xff]  ;;  %v13098_v13 = vld [vmem:[%s16905_s12 + $0x28] sm:$0xff] }
0x1d76   : > { %v15534_v47 = vpack.c.bf16 %v7534_v29, %v7533_v39  ;;  %v15538_v56 = vpack.c.bf16 %v7618_v58, %v7617_v11  ;;  %v15542_v10 = vpack.c.bf16 %v7620_v18, %v7619_v21  ;;  %v13102_v29 = vld [vmem:[%s19157_s6 + $0x1] ss:$0 sm:$0xff] }
0x1d77   : > { %14693 = vmatprep.mubr.msk.f32.mxu1 %vm1633_vm4, %v7011_v57  ;;  %v13105_v18 = vld [vmem:[%s19151_s1 + $0x20] sm:$0xff] }
0x1d78   : > { %14694 = vmatmul.mubr.msk.f32.vlgmr.msra.gmra.mrb[118].mxu1 %vm1633_vm4, %v7012_v62  ;;  %15539 = vmatprep.subr.bf16.mxu0 %v15538_v56  ;;  %v13080_v62 = vld [vmem:[%s19152_s26] ss:$0 sm:$0xff]  ;;  %s19158_s26 = sld [smem:[#allocation46_spill]] }
0x1d79   : > { %15513 = vmatpush3.bf16.msra.mxu1 %v15510_v55  ;;  %14700 = vmatprep.mubr.msk.f32.mxu1 %vm1633_vm4, %v6987_v8 }
0x1d7a   : > { %15515 = vmatprep.subr.bf16.mxu1 %v15514_v34 }
0x1d7e   : > { %s19159_s7 = smov %s19158_s26  ;;  %v13088_v35 = vld [vmem:[%s19158_s26] ss:$0 sm:$0xff]  ;;  %s19162_s26 = sld [smem:[#allocation56_spill]] }
0x1d80   : > { %14701 = vmatmul.mubr.msk.f32.vlgmr.msra.gmra.mrb[118].mxu1 %vm1633_vm4, %v6988_v22  ;;  %v13082_v22 = vld [vmem:[%s19157_s6] ss:$0 sm:$0xff] }
0x1d81   : > { %15517 = vmatpush3.bf16.msra.mxu1 %v15514_v34  ;;  %14707 = vmatprep.mubr.msk.f32.mxu1 %vm1633_vm4, %v7198_v50  ;;  %v13081_v34 = vld [vmem:[%s19154_s22] ss:$0 sm:$0xff]  ;;  %s19160_s22 = sld [smem:[#allocation43_spill]] }
0x1d82   : > { %15519 = vmatprep.subr.bf16.mxu1 %v15518_v3 }
0x1d84   : > { %s19163_s9 = smov %s19162_s26 }
0x1d87   : > { %s19161_s8 = smov %s19160_s22  ;;  %v7704_v63 = vld [vmem:[%s19160_s22 + $0x8] sm:$0xff]  ;;  %s19164_s22 = sld [smem:[#allocation55_spill]] }
0x1d88   : > { %14708 = vmatmul.mubr.msk.f32.vlgmr.msra.gmra.mrb[118].mxu1 %vm1633_vm4, %v7199_v40  ;;  %v7703_v7 = vld [vmem:[%s19161_s8] sm:$0xff] }
0x1d89   : > { %15521 = vmatpush3.bf16.msra.mxu1 %v15518_v3  ;;  %14714 = vmatprep.mubr.msk.f32.mxu1 %vm1633_vm4, %v7306_v15  ;;  %v15556_v15 = vpack.c.bf16 %v13098_v13, %v13097_v20 }
0x1d8a   : > { %15531 = vmatprep.subr.bf16.mxu1 %v15530_v23 }
0x1d8d   : > { %s19165_s10 = smov %s19164_s22 }
0x1d90   : > { %14715 = vmatmul.mubr.msk.f32.vlgmr.msra.gmra.mrb[118].mxu1 %vm1633_vm4, %v7307_v9 }
0x1d91   : > { %15533 = vmatpush3.bf16.msra.mxu1 %v15530_v23 }
0x1d92   : > { %15535 = vmatprep.subr.bf16.mxu1 %v15534_v47 }
0x1d95   : > { %15537 = vmatpush3.bf16.msra.mxu1 %v15534_v47 }
0x1e63   : > { %v18462_v38 = vpop.f32.mrb[118].mxu1 }
0x1e64   : > { %v18464_v27 = vpop.f32.mrb[119].mxu1  ;;  %v7399_v32 = vsel %vm4013_vm8, %v18462_v38, 0.0 }
0x1e65   : > { %7400 = vadd.xlane.f32.xlu1 %v7399_v32  ;;  %v7396_v0 = vsel %vm4013_vm8, %v18464_v27, 0.0 }
0x1e66   : > { %7397 = vadd.xlane.f32.xlu0 %v7396_v0 }
0x1ef2   : > { %v7401_v55 = vpop.xlane.xlu1 %7400 }
0x1ef3   : > { %v7404_v42 = vmul.f32 0.03125, %v7401_v55  ;;  %v7398_v1 = vpop.xlane.xlu0 %7397  ;;  %v13099_v55 = vld [vmem:[%s16905_s12 + $0x30] sm:$0xff] }
0x1ef4   : > { %v7403_v16 = vmul.f32 0.03125, %v7398_v1 }
0x1ef5   : > { %v7406_v43 = vsub.f32 %v18462_v38, %v7404_v42  ;;  %v13100_v42 = vld [vmem:[%s16905_s12 + $0x38] sm:$0xff] }
0x1ef6   : > { %v7405_v52 = vsub.f32 %v18464_v27, %v7403_v16 }
0x1ef7   : > { %v7408_v26 = vmul.f32 %v7406_v43, %v7406_v43 }
0x1ef8   : > { %v7407_v12 = vmul.f32 %v7405_v52, %v7405_v52 }
0x1ef9   : > { %v7412_v36 = vsel %vm4013_vm8, %v7408_v26, 0.0  ;;  %v13113_v26 = vld [vmem:[%s19096_s4 + $0x20] sm:$0xff] }
0x1efa   : > { %7413 = vadd.xlane.f32.xlu1 %v7412_v36  ;;  %v7409_v24 = vsel %vm4013_vm8, %v7407_v12, 0.0  ;;  %v13114_v12 = vld [vmem:[%s19096_s4 + $0x28] sm:$0xff] }
0x1efb   : > { %7410 = vadd.xlane.f32.xlu0 %v7409_v24  ;;  %v15572_v36 = vpack.c.bf16 %v13114_v12, %v13113_v26  ;;  %v13115_v24 = vld [vmem:[%s19096_s4 + $0x30] sm:$0xff] }
0x1efc   : > { %v15576_v60 = vpack.c.bf16 %v13116_v14, %v13115_v24 }
0x1f87   : > { %v7414_v5 = vpop.xlane.xlu1 %7413 }
0x1f88   : > { %v7416_v30 = vmul.f32 0.03125, %v7414_v5  ;;  %v7411_v51 = vpop.xlane.xlu0 %7410 }
0x1f89   : > { %v7415_v4 = vmul.f32 0.03125, %v7411_v51 }
0x1f8a   : > { %v7418_v28 = vadd.f32 1e-05, %v7416_v30 }
0x1f8b   : > { %v7417_v46 = vadd.f32 1e-05, %v7415_v4 }
0x1f8c   : > { %16279 = vrsqrt.f32 %v7418_v28 }
0x1f8d   : > { %16281 = vrsqrt.f32 %v7417_v46 }
0x1f96   : > { %v16280_v6 = vpop.eup %16279 }
0x1f97   : > { %v16282_v31 = vpop.eup %16281  ;;  %v7422_v57 = vmul.f32 %v16280_v6, %v7406_v43 }
0x1f98   : > { %v7421_v33 = vmul.f32 %v16282_v31, %v7405_v52  ;;  %v15560_v52 = vpack.c.bf16 %v13100_v42, %v13099_v55 }
0x1f99   : > { %v7430_v8 = vmul.f32 %v13080_v62, %v7422_v57 }
0x1f9a   : > { %v7429_v45 = vmul.f32 %v13080_v62, %v7421_v33 }
0x1f9b   : > { %v18490_v49 = vadd.f32 %v13081_v34, %v7430_v8 }
0x1f9c   : > { %v18488_v41 = vadd.f32 %v13081_v34, %v7429_v45 }
0x1f9e   : > { %14725 = vmatprep.mubr.msk.f32.mxu0 %vm4013_vm8, %v18488_v41  ;;  %14736 = vmatprep.mubr.msk.f32.mxu1 %vm4013_vm8, %v18488_v41 }
0x1f9f   : > { %14726 = vmatmul.mubr.msk.f32.vlgmr.msra.gmra.mrb[106].mxu0 %vm4013_vm8, %v18490_v49  ;;  %14737 = vmatmul.mubr.msk.f32.vlgmr.msra.gmra.mrb[120].mxu1 %vm4013_vm8, %v18490_v49 }
0x1fa0   : > { %15541 = vmatpush3.bf16.msra.mxu0 %v15538_v56  ;;  %14747 = vmatprep.mubr.msk.f32.mxu0 %vm4013_vm8, %v18488_v41  ;;  %v13118_v56 = vld [vmem:[%s19159_s7 + $0x1] ss:$0 sm:$0xff] }
0x1fa1   : > { %15543 = vmatprep.subr.bf16.mxu0 %v15542_v10 }
0x1fa4   : > { %15545 = vmatpush3.bf16.msra.mxu0 %v15542_v10  ;;  %v13106_v10 = vld [vmem:[%s19151_s1 + $0x28] sm:$0xff] }
0x1fa7   : > { %14748 = vmatmul.mubr.msk.f32.vlgmr.msra.gmra.mrb[108].mxu0 %vm4013_vm8, %v18490_v49 }
0x2072   : > { %v14727_v44 = vpop.f32.mrb[106].mxu0  ;;  %v14738_v3 = vpop.f32.mrb[120].mxu1 }
0x2073   : > { %v7614_v50 = vadd.f32 %v14738_v3, %v13085_v2  ;;  %v7522_v59 = vpop.f32.mrb[107].mxu0  ;;  %v7608_v54 = vpop.f32.mrb[121].mxu1  ;;  %v7528_v16 = vadd.f32 %v14727_v44, %v13082_v22 }
0x2074   : > { %v7523_v25 = vadd.f32 %v13082_v22, %v7522_v59  ;;  %v7609_v40 = vadd.f32 %v13085_v2, %v7608_v54  ;;  %v15564_v2 = vpack.c.bf16 %v13106_v10, %v13105_v18  ;;  %v13108_v59 = vld [vmem:[%s19151_s1 + $0x38] sm:$0xff]  ;;  %v13142_v18 = vld [vmem:[%s19151_s1 + $0x40] sm:$0xff]  ;;  %v13143_v10 = vld [vmem:[%s19151_s1 + $0x48] sm:$0xff] }
0x2076   : > { %v15546_v53 = vpack.c.bf16 %v7614_v50, %v7609_v40  ;;  %14754 = vmatprep.mubr.msk.f32.mxu1 %vm2275_vm5, %v7523_v25  ;;  %v13107_v50 = vld [vmem:[%s19151_s1 + $0x30] sm:$0xff] }
0x2077   : > { %v15568_v25 = vpack.c.bf16 %v13108_v59, %v13107_v50  ;;  %v13144_v50 = vld [vmem:[%s19151_s1 + $0x50] sm:$0xff]  ;;  %v13145_v59 = vld [vmem:[%s19151_s1 + $0x58] sm:$0xff] }
0x2078   : > { %15548 = vmatprep.subr.msk.bf16.mxu1 %vm17325_vm6, %v15546_v53 }
0x2079   : > { %15551 = vmatpush3.bf16.xpose.msk.msra.mxu1 %vm17325_vm6, %v15546_v53 }
0x207a   : > { %v14749_v9 = vpop.f32.mrb[108].mxu0  ;;  %15557 = vmatprep.subr.bf16.mxu1 %v15556_v15 }
0x207b   : > { %v7700_v32 = vadd.f32 %v14749_v9, %v13088_v35  ;;  %v7694_v0 = vpop.f32.mrb[109].mxu0 }
0x207c   : > { %v7695_v1 = vadd.f32 %v13088_v35, %v7694_v0  ;;  %v13110_v35 = vld [vmem:[%s19156_s5 + $0x1] ss:$0 sm:$0xff] }
0x207e   : > { %v15552_v43 = vpack.c.bf16 %v7700_v32, %v7695_v1  ;;  %v13122_v1 = vld [vmem:[%s19161_s8 + $0x18] sm:$0xff] }
0x2080   : > { %15553 = vmatprep.subr.bf16.mxu0 %v15552_v43  ;;  %14755 = vmatmul.mubr.msk.f32.vlgmr.msra.gmra.mrb[122].mxu1 %vm2275_vm5, %v7528_v16  ;;  %v13121_v16 = vld [vmem:[%s19161_s8 + $0x10] sm:$0xff] }
0x2081   : > { %15555 = vmatpush3.bf16.msra.mxu0 %v15552_v43  ;;  %15559 = vmatpush3.bf16.msra.mxu1 %v15556_v15 }
0x2082   : > { %14772 = vmatprep.mubr.msk.f32.mxu1 %vm4013_vm8, %v18488_v41  ;;  %15561 = vmatprep.subr.bf16.mxu1 %v15560_v52 }
0x2083   : > { %15565 = vmatprep.subr.bf16.mxu0 %v15564_v2 }
0x2085   : > { %15563 = vmatpush3.bf16.msra.mxu1 %v15560_v52 }
0x2086   : > { %15573 = vmatprep.subr.bf16.mxu1 %v15572_v36 }
0x2088   : > { %14773 = vmatmul.mubr.msk.f32.vlgmr.msra.gmra.mrb[124].mxu1 %vm4013_vm8, %v18490_v49 }
0x2089   : > { %15575 = vmatpush3.bf16.msra.mxu1 %v15572_v36  ;;  %14794 = vmatprep.mubr.msk.f32.mxu1 %vm4013_vm8, %v18488_v41 }
0x208a   : > { %15577 = vmatprep.subr.bf16.mxu1 %v15576_v60 }
0x208d   : > { %15579 = vmatpush3.bf16.msra.mxu1 %v15576_v60 }
0x2090   : > { %14795 = vmatmul.mubr.msk.f32.vlgmr.msra.gmra.mrb[126].mxu1 %vm4013_vm8, %v18490_v49 }
0x2153   : > { %v14756_v61 = vpop.f32.mrb[122].mxu1 }
0x2154   : > { %v7789_v23 = vadd.f32 %v14756_v61, %v7704_v63  ;;  %v7783_v17 = vpop.f32.mrb[123].mxu1 }
0x2155   : > { %v7784_v48 = vadd.f32 %v7783_v17, %v7703_v7 }
0x2156   : > { %v7795_v37 = vsel %vm1633_vm4, %v7789_v23, -inf }
0x2157   : > { %7796 = vmax.xlane.f32.xlu1 %v7795_v37  ;;  %v7792_v39 = vsel %vm1633_vm4, %v7784_v48, -inf }
0x2158   : > { %7793 = vmax.xlane.f32.xlu0 %v7792_v39 }
0x215b   : > { %v14774_v47 = vpop.f32.mrb[124].mxu1 }
0x215c   : > { %v7981_v11 = vadd.f32 %v14774_v47, %v13102_v29  ;;  %v7975_v58 = vpop.f32.mrb[125].mxu1  ;;  %v13135_v47 = vld [vmem:[%s16905_s12 + $0x48] sm:$0xff] }
0x215d   : > { %v7976_v40 = vadd.f32 %v13102_v29, %v7975_v58  ;;  %v13134_v29 = vld [vmem:[%s16905_s12 + $0x40] sm:$0xff]  ;;  %v13129_v58 = vld [vmem:[%s19162_s26 + $0x8] sm:$0xff]  ;;  %s19166_s26 = sld [smem:[#allocation48_spill]] }
0x2163   : > { %v14796_v5 = vpop.f32.mrb[126].mxu1  ;;  %s19167_s11 = smov %s19166_s26 }
0x2164   : > { %v8157_v30 = vadd.f32 %v14796_v5, %v13118_v56  ;;  %v8151_v51 = vpop.f32.mrb[127].mxu1 }
0x2165   : > { %v8152_v4 = vadd.f32 %v13118_v56, %v8151_v51  ;;  %v13136_v51 = vld [vmem:[%s16905_s12 + $0x50] sm:$0xff] }
0x2167   : > { %v15586_v28 = vpack.c.bf16 %v8157_v30, %v8152_v4  ;;  %v13137_v4 = vld [vmem:[%s16905_s12 + $0x58] sm:$0xff] }
0x2169   : > { %15587 = vmatprep.subr.bf16.mxu1 %v15586_v28 }
0x216a   : > { %15589 = vmatpush3.bf16.msra.mxu1 %v15586_v28 }
0x21e4   : > { %v7797_v46 = vpop.xlane.xlu1 %7796 }
0x21e5   : > { %v7799_v6 = vsub.f32 %v7789_v23, %v7797_v46  ;;  %v7794_v62 = vpop.xlane.xlu0 %7793 }
0x21e6   : > { %v7798_v31 = vsub.f32 %v7784_v48, %v7794_v62  ;;  %v15594_v62 = vpack.c.bf16 %v13137_v4, %v13136_v51  ;;  %v13166_v51 = vld [vmem:[%s19163_s9 + $0x10] sm:$0xff] }
0x21e7   : > { %v7802_v57 = vmul.f32 1.442695, %v7799_v6 }
0x21e8   : > { %v7800_v33 = vmul.f32 1.442695, %v7798_v31  ;;  %v13150_v31 = vld [vmem:[%s19096_s4 + $0x40] sm:$0xff] }
0x21e9   : > { %16283 = vpow2.f32 %v7802_v57  ;;  %v13151_v57 = vld [vmem:[%s19096_s4 + $0x48] sm:$0xff] }
0x21ea   : > { %16285 = vpow2.f32 %v7800_v33  ;;  %v15606_v33 = vpack.c.bf16 %v13151_v57, %v13150_v31 }
0x21f3   : > { %v16284_v34 = vpop.eup %16283 }
0x21f4   : > { %v16286_v8 = vpop.eup %16285  ;;  %v7807_v45 = vsel %vm1633_vm4, %v16284_v34, 0.0 }
0x21f5   : > { %7808 = vadd.xlane.f32.xlu1 %v7807_v45  ;;  %v7804_v21 = vsel %vm1633_vm4, %v16286_v8, 0.0 }
0x21f6   : > { %7805 = vadd.xlane.f32.xlu0 %v7804_v21  ;;  %v7895_v21 = vld [vmem:[%s19163_s9] sm:$0xff] }
0x2282   : > { %v7809_v22 = vpop.xlane.xlu1 %7808 }
0x2283   : > { %16287 = vrcp.f32 %v7809_v22  ;;  %v7806_v44 = vpop.xlane.xlu0 %7805 }
0x2284   : > { %16289 = vrcp.f32 %v7806_v44  ;;  %v15598_v44 = vpack.c.bf16 %v13143_v10, %v13142_v18  ;;  %v13187_v18 = vld [vmem:[%s19096_s4 + $0x70] sm:$0xff]  ;;  %v13188_v10 = vld [vmem:[%s19096_s4 + $0x78] sm:$0xff] }
0x228d   : > { %v16288_v3 = vpop.eup %16287 }
0x228e   : > { %v16290_v54 = vpop.eup %16289  ;;  %v7813_v13 = vmul.f32 %v16288_v3, %v16284_v34  ;;  %v13152_v34 = vld [vmem:[%s19096_s4 + $0x50] sm:$0xff]  ;;  %v13139_v3 = vld [vmem:[%s19157_s6 + $0x2] ss:$0 sm:$0xff] }
0x228f   : > { %v7812_v20 = vmul.f32 %v16290_v54, %v16286_v8  ;;  %v13153_v8 = vld [vmem:[%s19096_s4 + $0x58] sm:$0xff] }
0x2290   : > { %v15610_v45 = vpack.c.bf16 %v13153_v8, %v13152_v34  ;;  %v13185_v8 = vld [vmem:[%s19096_s4 + $0x60] sm:$0xff] }
0x2291   : > { %14761 = vmatprep.mubr.msk.f32.mxu0 %vm1633_vm4, %v7812_v20 }
0x2292   : > { %14762 = vmatmul.mubr.msk.f32.vlgmr.msra.gmra.mrb[110].mxu0 %vm1633_vm4, %v7813_v13 }
0x2293   : > { %15567 = vmatpush3.bf16.msra.mxu0 %v15564_v2  ;;  %14783 = vmatprep.mubr.msk.f32.mxu0 %vm4013_vm8, %v18488_v41 }
0x2294   : > { %15569 = vmatprep.subr.bf16.mxu0 %v15568_v25 }
0x2297   : > { %15571 = vmatpush3.bf16.msra.mxu0 %v15568_v25  ;;  %v15602_v25 = vpack.c.bf16 %v13145_v59, %v13144_v50  ;;  %v13179_v50 = vld [vmem:[%s19151_s1 + $0x70] sm:$0xff]  ;;  %v13180_v59 = vld [vmem:[%s19151_s1 + $0x78] sm:$0xff] }
0x229a   : > { %14784 = vmatmul.mubr.msk.f32.vlgmr.msra.gmra.mrb[112].mxu0 %vm4013_vm8, %v18490_v49 }
0x229b   : > { %14801 = vmatprep.mubr.msk.f32.mxu0 %vm2275_vm5, %v7976_v40  ;;  %v13155_v40 = vld [vmem:[%s19159_s7 + $0x2] ss:$0 sm:$0xff] }
0x2365   : > { %v18548_v53 = vpop.f32.mrb[110].mxu0 }
0x2366   : > { %v18550_v15 = vpop.f32.mrb[111].mxu0 }
0x236d   : > { %v14785_v9 = vpop.f32.mrb[112].mxu0 }
0x236e   : > { %v8069_v32 = vadd.f32 %v14785_v9, %v13110_v35  ;;  %v8063_v0 = vpop.f32.mrb[113].mxu0 }
0x236f   : > { %v8064_v55 = vadd.f32 %v13110_v35, %v8063_v0 }
0x2371   : > { %v15580_v42 = vpack.c.bf16 %v8069_v32, %v8064_v55 }
0x2373   : > { %15582 = vmatprep.subr.msk.bf16.mxu0 %vm17325_vm6, %v15580_v42 }
0x2374   : > { %15585 = vmatpush3.bf16.xpose.msk.msra.mxu0 %vm17325_vm6, %v15580_v42 }
0x2375   : > { %14811 = vmatprep.subr.mxu0 %v13129_v58 }
0x237b   : > { %14802 = vmatmul.mubr.msk.f32.vlgmr.msra.gmra.mrb[114].mxu0 %vm2275_vm5, %v7981_v11  ;;  %v15590_v11 = vpack.c.bf16 %v13135_v47, %v13134_v29 }
0x237c   : > { %14812 = vmatpush3.msra.mxu0 %v13129_v58 }
0x237d   : > { %15591 = vmatprep.subr.bf16.mxu1 %v15590_v11  ;;  %14816 = vmatprep.subr.mxu0 %v7895_v21 }
0x244e   : > { %v14803_v43 = vpop.f32.mrb[114].mxu0 }
0x244f   : > { %v8247_v52 = vadd.f32 %v14803_v43, %v13122_v1  ;;  %v8241_v26 = vpop.f32.mrb[115].mxu0 }
0x2450   : > { %v8242_v12 = vadd.f32 %v13121_v16, %v8241_v26  ;;  %v13159_v26 = vld [vmem:[%s19161_s8 + $0x28] sm:$0xff] }
0x2451   : > { %v8253_v36 = vsel %vm1633_vm4, %v8247_v52, -inf }
0x2452   : > { %8254 = vmax.xlane.f32.xlu1 %v8253_v36  ;;  %v8250_v24 = vsel %vm1633_vm4, %v8242_v12, -inf }
0x2453   : > { %8251 = vmax.xlane.f32.xlu0 %v8250_v24 }
0x24df   : > { %v8255_v14 = vpop.xlane.xlu1 %8254 }
0x24e0   : > { %v8257_v60 = vsub.f32 %v8247_v52, %v8255_v14  ;;  %v8252_v63 = vpop.xlane.xlu0 %8251 }
0x24e1   : > { %v8256_v7 = vsub.f32 %v8242_v12, %v8252_v63  ;;  %v13158_v12 = vld [vmem:[%s19161_s8 + $0x20] sm:$0xff] }
0x24e2   : > { %v8260_v61 = vmul.f32 1.442695, %v8257_v60 }
0x24e3   : > { %v8258_v23 = vmul.f32 1.442695, %v8256_v7 }
0x24e4   : > { %16291 = vpow2.f32 %v8260_v61 }
0x24e5   : > { %16293 = vpow2.f32 %v8258_v23 }
0x24ee   : > { %v16292_v17 = vpop.eup %16291 }
0x24ef   : > { %v16294_v48 = vpop.eup %16293  ;;  %v8265_v37 = vsel %vm1633_vm4, %v16292_v17, 0.0 }
0x24f0   : > { %8266 = vadd.xlane.f32.xlu1 %v8265_v37  ;;  %v8262_v39 = vsel %vm1633_vm4, %v16294_v48, 0.0 }
0x24f1   : > { %8263 = vadd.xlane.f32.xlu0 %v8262_v39 }
0x257d   : > { %v8267_v56 = vpop.xlane.xlu1 %8266 }
0x257e   : > { %16295 = vrcp.f32 %v8267_v56  ;;  %v8264_v5 = vpop.xlane.xlu0 %8263  ;;  %v13169_v56 = vld [vmem:[%s16905_s12 + $0x60] sm:$0xff] }
0x257f   : > { %16297 = vrcp.f32 %v8264_v5  ;;  %v13170_v5 = vld [vmem:[%s16905_s12 + $0x68] sm:$0xff] }
0x2588   : > { %v16296_v30 = vpop.eup %16295 }
0x2589   : > { %v16298_v28 = vpop.eup %16297  ;;  %v8271_v6 = vmul.f32 %v16296_v30, %v16292_v17  ;;  %v15624_v30 = vpack.c.bf16 %v13170_v5, %v13169_v56  ;;  %v13201_v5 = vld [vmem:[%s19163_s9 + $0x18] sm:$0xff] }
0x258a   : > { %v8270_v46 = vmul.f32 %v16298_v28, %v16294_v48 }
0x258c   : > { %14808 = vmatprep.mubr.msk.f32.mxu1 %vm1633_vm4, %v8270_v46 }
0x258d   : > { %14809 = vmatmul.mubr.msk.f32.vlgmr.msra.gmra.mrb[128].mxu1 %vm1633_vm4, %v8271_v6  ;;  %v13171_v6 = vld [vmem:[%s16905_s12 + $0x70] sm:$0xff] }
0x258e   : > { %15593 = vmatpush3.bf16.msra.mxu1 %v15590_v11  ;;  %14829 = vmatprep.mubr.msk.f32.mxu1 %vm4013_vm8, %v18488_v41 }
0x258f   : > { %15595 = vmatprep.subr.bf16.mxu1 %v15594_v62 }
0x2592   : > { %15597 = vmatpush3.bf16.msra.mxu1 %v15594_v62  ;;  %v13172_v62 = vld [vmem:[%s16905_s12 + $0x78] sm:$0xff] }
0x2593   : > { %15607 = vmatprep.subr.bf16.mxu1 %v15606_v33  ;;  %v15628_v34 = vpack.c.bf16 %v13172_v62, %v13171_v6 }
0x2595   : > { %14830 = vmatmul.mubr.msk.f32.vlgmr.msra.gmra.mrb[130].mxu1 %vm4013_vm8, %v18490_v49 }
0x2596   : > { %15609 = vmatpush3.bf16.msra.mxu1 %v15606_v33  ;;  %14851 = vmatprep.mubr.msk.f32.mxu1 %vm4013_vm8, %v18488_v41 }
0x2597   : > { %15611 = vmatprep.subr.bf16.mxu1 %v15610_v45 }
0x259a   : > { %15613 = vmatpush3.bf16.msra.mxu1 %v15610_v45  ;;  %v13186_v45 = vld [vmem:[%s19096_s4 + $0x68] sm:$0xff] }
0x259d   : > { %14852 = vmatmul.mubr.msk.f32.vlgmr.msra.gmra.mrb[132].mxu1 %vm4013_vm8, %v18490_v49 }
0x2660   : > { %v14810_v2 = vpop.f32.mrb[128].mxu1 }
0x2661   : > { %v8344_v22 = vpop.f32.mrb[129].mxu1 }
0x2662   : > { %14813 = vmatprep.mubr.msk.f32.mxu0 %vm2275_vm5, %v8344_v22  ;;  %v13177_v22 = vld [vmem:[%s19151_s1 + $0x60] sm:$0xff] }
0x2663   : > { %14814 = vmatmul.mubr.msk.f32.vlgmr.msra.gmra.mrb[116].mxu0 %vm2275_vm5, %v14810_v2  ;;  %v15644_v2 = vpack.c.bf16 %v13188_v10, %v13187_v18 }
0x2664   : > { %14817 = vmatpush3.msra.mxu0 %v7895_v21  ;;  %14818 = vmatprep.mubr.msk.f32.mxu0 %vm2275_vm5, %v18550_v15  ;;  %v15640_v21 = vpack.c.bf16 %v13186_v45, %v13185_v8 }
0x2665   : > { %15599 = vmatprep.subr.bf16.mxu0 %v15598_v44 }
0x2668   : > { %v14831_v54 = vpop.f32.mrb[130].mxu1 }
0x2669   : > { %v8602_v20 = vadd.f32 %v14831_v54, %v13139_v3  ;;  %v8596_v13 = vpop.f32.mrb[131].mxu1 }
0x266a   : > { %v8597_v32 = vadd.f32 %v13139_v3, %v8596_v13  ;;  %v15636_v13 = vpack.c.bf16 %v13180_v59, %v13179_v50 }
0x266b   : > { %14819 = vmatmul.mubr.msk.f32.vlgmr.msra.gmra.mrb[116].mxu0 %vm2275_vm5, %v18548_v53  ;;  %v13147_v53 = vld [vmem:[%s19156_s5 + $0x2] ss:$0 sm:$0xff] }
0x266c   : > { %15601 = vmatpush3.bf16.msra.mxu0 %v15598_v44  ;;  %14840 = vmatprep.mubr.msk.f32.mxu0 %vm4013_vm8, %v18488_v41  ;;  %v13178_v44 = vld [vmem:[%s19151_s1 + $0x68] sm:$0xff] }
0x266d   : > { %15603 = vmatprep.subr.bf16.mxu0 %v15602_v25  ;;  %v15632_v3 = vpack.c.bf16 %v13178_v44, %v13177_v22 }
0x2670   : > { %15605 = vmatpush3.bf16.msra.mxu0 %v15602_v25  ;;  %v14853_v15 = vpop.f32.mrb[132].mxu1  ;;  %v13174_v25 = vld [vmem:[%s19157_s6 + $0x3] ss:$0 sm:$0xff] }
0x2671   : > { %v8778_v35 = vadd.f32 %v14853_v15, %v13155_v40  ;;  %v8772_v9 = vpop.f32.mrb[133].mxu1 }
0x2672   : > { %v8773_v0 = vadd.f32 %v13155_v40, %v8772_v9 }
0x2673   : > { %14841 = vmatmul.mubr.msk.f32.vlgmr.msra.gmra.mrb[118].mxu0 %vm4013_vm8, %v18490_v49 }
0x2674   : > { %v15620_v55 = vpack.c.bf16 %v8778_v35, %v8773_v0  ;;  %14858 = vmatprep.mubr.msk.f32.mxu0 %vm2275_vm5, %v8597_v32  ;;  %v13190_v32 = vld [vmem:[%s19159_s7 + $0x3] ss:$0 sm:$0xff] }
0x2676   : > { %15621 = vmatprep.subr.bf16.mxu1 %v15620_v55 }
0x2677   : > { %15623 = vmatpush3.bf16.msra.mxu1 %v15620_v55 }
0x2678   : > { %15625 = vmatprep.subr.bf16.mxu1 %v15624_v30 }
0x2746   : > { %v14842_v42 = vpop.f32.mrb[118].mxu0 }
0x2747   : > { %v8690_v1 = vadd.f32 %v14842_v42, %v13147_v53  ;;  %v8684_v16 = vpop.f32.mrb[119].mxu0 }
0x2748   : > { %v8685_v43 = vadd.f32 %v13147_v53, %v8684_v16 }
0x274a   : > { %v15614_v52 = vpack.c.bf16 %v8690_v1, %v8685_v43  ;;  %v13182_v1 = vld [vmem:[%s19156_s5 + $0x3] ss:$0 sm:$0xff] }
0x274c   : > { %15616 = vmatprep.subr.msk.bf16.mxu0 %vm17325_vm6, %v15614_v52 }
0x274d   : > { %15619 = vmatpush3.bf16.xpose.msk.msra.mxu0 %vm17325_vm6, %v15614_v52 }
0x274e   : > { %14868 = vmatprep.subr.mxu0 %v13166_v51 }
0x2754   : > { %14859 = vmatmul.mubr.msk.f32.vlgmr.msra.gmra.mrb[120].mxu0 %vm2275_vm5, %v8602_v20 }
0x2755   : > { %14869 = vmatpush3.msra.mxu0 %v13166_v51 }
0x2756   : > { %15633 = vmatprep.subr.bf16.mxu0 %v15632_v3 }
0x2827   : > { %v14860_v36 = vpop.f32.mrb[120].mxu0 }
0x2828   : > { %v8868_v24 = vadd.f32 %v14860_v36, %v13159_v26  ;;  %v8862_v14 = vpop.f32.mrb[121].mxu0  ;;  %v13193_v36 = vld [vmem:[%s19161_s8 + $0x30] sm:$0xff] }
0x2829   : > { %v8863_v60 = vadd.f32 %v13158_v12, %v8862_v14 }
0x282a   : > { %v8874_v63 = vsel %vm1633_vm4, %v8868_v24, -inf }
0x282b   : > { %8875 = vmax.xlane.f32.xlu1 %v8874_v63  ;;  %v8871_v7 = vsel %vm1633_vm4, %v8863_v60, -inf }
0x282c   : > { %8872 = vmax.xlane.f32.xlu0 %v8871_v7 }
0x28b8   : > { %v8876_v61 = vpop.xlane.xlu1 %8875 }
0x28b9   : > { %v8878_v23 = vsub.f32 %v8868_v24, %v8876_v61  ;;  %v8873_v17 = vpop.xlane.xlu0 %8872 }
0x28ba   : > { %v8877_v48 = vsub.f32 %v8863_v60, %v8873_v17 }
0x28bb   : > { %v8881_v37 = vmul.f32 1.442695, %v8878_v23 }
0x28bc   : > { %v8879_v39 = vmul.f32 1.442695, %v8877_v48 }
0x28bd   : > { %16299 = vpow2.f32 %v8881_v37 }
0x28be   : > { %16301 = vpow2.f32 %v8879_v39 }
0x28c7   : > { %v16300_v29 = vpop.eup %16299 }
0x28c8   : > { %v16302_v47 = vpop.eup %16301  ;;  %v8886_v11 = vsel %vm1633_vm4, %v16300_v29, 0.0 }
0x28c9   : > { %8887 = vadd.xlane.f32.xlu1 %v8886_v11  ;;  %v8883_v58 = vsel %vm1633_vm4, %v16302_v47, 0.0 }
0x28ca   : > { %8884 = vadd.xlane.f32.xlu0 %v8883_v58 }
0x2956   : > { %v8888_v4 = vpop.xlane.xlu1 %8887 }
0x2957   : > { %16303 = vrcp.f32 %v8888_v4  ;;  %v8885_v28 = vpop.xlane.xlu0 %8884 }
0x2958   : > { %16305 = vrcp.f32 %v8885_v28 }
0x2961   : > { %v16304_v46 = vpop.eup %16303 }
0x2962   : > { %v16306_v31 = vpop.eup %16305  ;;  %v8892_v33 = vmul.f32 %v16304_v46, %v16300_v29 }
0x2963   : > { %v8891_v57 = vmul.f32 %v16306_v31, %v16302_v47 }
0x2965   : > { %14865 = vmatprep.mubr.msk.f32.mxu1 %vm1633_vm4, %v8891_v57 }
0x2966   : > { %14866 = vmatmul.mubr.msk.f32.vlgmr.msra.gmra.mrb[134].mxu1 %vm1633_vm4, %v8892_v33  ;;  %v13204_v33 = vld [vmem:[%s19164_s22] ss:$0 sm:$0xff]  ;;  %s19168_s22 = sld [smem:[#allocation54_spill]] }
0x2967   : > { %15627 = vmatpush3.bf16.msra.mxu1 %v15624_v30  ;;  %14881 = vmatprep.mubr.msk.f32.mxu1 %vm4013_vm8, %v18488_v41 }
0x2968   : > { %15629 = vmatprep.subr.bf16.mxu1 %v15628_v34 }
0x296b   : > { %15631 = vmatpush3.bf16.msra.mxu1 %v15628_v34 }
0x296c   : > { %15641 = vmatprep.subr.bf16.mxu1 %v15640_v21  ;;  %s19169_s13 = smov %s19168_s22 }
0x296e   : > { %14882 = vmatmul.mubr.msk.f32.vlgmr.msra.gmra.mrb[136].mxu1 %vm4013_vm8, %v18490_v49 }
0x296f   : > { %15643 = vmatpush3.bf16.msra.mxu1 %v15640_v21  ;;  %14903 = vmatprep.mubr.msk.f32.mxu1 %vm4013_vm8, %v18488_v41 }
0x2970   : > { %15645 = vmatprep.subr.bf16.mxu1 %v15644_v2 }
0x2973   : > { %15647 = vmatpush3.bf16.msra.mxu1 %v15644_v2 }
0x2976   : > { %14904 = vmatmul.mubr.msk.f32.vlgmr.msra.gmra.mrb[138].mxu1 %vm4013_vm8, %v18490_v49 }
0x2a39   : > { %v14867_v54 = vpop.f32.mrb[134].mxu1 }
0x2a3a   : > { %v8965_v20 = vpop.f32.mrb[135].mxu1 }
0x2a3b   : > { %14870 = vmatprep.mubr.msk.f32.mxu0 %vm2275_vm5, %v8965_v20 }
0x2a3c   : > { %14871 = vmatmul.mubr.msk.f32.vlgmr.msra.gmra.mrb[116].mxu0 %vm2275_vm5, %v14867_v54 }
0x2a3d   : > { %15635 = vmatpush3.bf16.msra.mxu0 %v15632_v3  ;;  %14892 = vmatprep.mubr.msk.f32.mxu0 %vm4013_vm8, %v18488_v41 }
0x2a3e   : > { %15637 = vmatprep.subr.bf16.mxu0 %v15636_v13 }
0x2a41   : > { %v14883_v40 = vpop.f32.mrb[136].mxu1  ;;  %15639 = vmatpush3.bf16.msra.mxu0 %v15636_v13 }
0x2a42   : > { %v9144_v15 = vadd.f32 %v14883_v40, %v13174_v25  ;;  %v9138_v35 = vpop.f32.mrb[137].mxu1  ;;  %v9657_v40 = vld [vmem:[%s19167_s11 + $0x8] sm:$0xff] }
0x2a43   : > { %v9139_v9 = vadd.f32 %v13174_v25, %v9138_v35  ;;  %v9656_v25 = vld [vmem:[%s19166_s26] sm:$0xff]  ;;  %v9658_v35 = vld [vmem:[%s19167_s11 + $0x10] sm:$0xff]  ;;  %s19172_s26 = sld [smem:[#allocation47_spill]] }
0x2a44   : > { %14893 = vmatmul.mubr.msk.f32.vlgmr.msra.gmra.mrb[122].mxu0 %vm4013_vm8, %v18490_v49  ;;  %v13194_v49 = vld [vmem:[%s19161_s8 + $0x38] sm:$0xff] }
0x2a45   : > { %14910 = vmatprep.mubr.msk.f32.mxu0 %vm2275_vm5, %v9139_v9  ;;  %v9659_v9 = vld [vmem:[%s19167_s11 + $0x18] sm:$0xff] }
0x2a49   : > { %v14905_v0 = vpop.f32.mrb[138].mxu1  ;;  %s19173_s17 = smov %s19172_s26 }
0x2a4a   : > { %v9320_v55 = vadd.f32 %v14905_v0, %v13190_v32  ;;  %v9314_v53 = vpop.f32.mrb[139].mxu1 }
0x2a4b   : > { %v9315_v41 = vadd.f32 %v13190_v32, %v9314_v53  ;;  %v15662_v32 = vpack.c.bf16 %v9659_v9, %v9658_v35 }
0x2a4d   : > { %v15654_v42 = vpack.c.bf16 %v9320_v55, %v9315_v41 }
0x2a4f   : > { %15655 = vmatprep.subr.bf16.mxu1 %v15654_v42 }
0x2a50   : > { %15657 = vmatpush3.bf16.msra.mxu1 %v15654_v42 }
0x2b17   : > { %v14894_v16 = vpop.f32.mrb[122].mxu0 }
0x2b18   : > { %v9232_v43 = vadd.f32 %v14894_v16, %v13182_v1  ;;  %v9226_v52 = vpop.f32.mrb[123].mxu0 }
0x2b19   : > { %v9227_v26 = vadd.f32 %v13182_v1, %v9226_v52 }
0x2b1b   : > { %v15648_v12 = vpack.c.bf16 %v9232_v43, %v9227_v26  ;;  %v13205_v43 = vld [vmem:[%s19168_s22] ss:$0 sm:$0xff]  ;;  %s19174_s22 = sld [smem:[#allocation49_spill]] }
0x2b1d   : > { %15650 = vmatprep.subr.msk.bf16.mxu0 %vm17325_vm6, %v15648_v12 }
0x2b1e   : > { %15653 = vmatpush3.bf16.xpose.msk.msra.mxu0 %vm17325_vm6, %v15648_v12 }
0x2b1f   : > { %14920 = vmatprep.subr.mxu0 %v13201_v5 }
0x2b21   : > { %s19175_s18 = smov %s19174_s22 }
0x2b25   : > { %14911 = vmatmul.mubr.msk.f32.vlgmr.msra.gmra.mrb[124].mxu0 %vm2275_vm5, %v9144_v15  ;;  %v15658_v15 = vpack.c.bf16 %v9657_v40, %v9656_v25 }
0x2b26   : > { %14921 = vmatpush3.msra.mxu0 %v13201_v5 }
0x2b27   : > { %15659 = vmatprep.subr.bf16.mxu1 %v15658_v15 }
0x2bf8   : > { %v14912_v24 = vpop.f32.mrb[124].mxu0 }
0x2bf9   : > { %v9410_v14 = vadd.f32 %v14912_v24, %v13194_v49  ;;  %v9404_v60 = vpop.f32.mrb[125].mxu0  ;;  %v13206_v49 = vld [vmem:[%s19170_s14] ss:$0 sm:$0xff] }
0x2bfa   : > { %v9405_v63 = vadd.f32 %v13193_v36, %v9404_v60 }
0x2bfb   : > { %v9416_v7 = vsel %vm1633_vm4, %v9410_v14, -inf }
0x2bfc   : > { %9417 = vmax.xlane.f32.xlu1 %v9416_v7  ;;  %v9413_v61 = vsel %vm1633_vm4, %v9405_v63, -inf  ;;  %v9767_v7 = vld [vmem:[%s19171_s16 + $0x8] sm:$0xff] }
0x2bfd   : > { %9414 = vmax.xlane.f32.xlu0 %v9413_v61 }
0x2c89   : > { %v9418_v23 = vpop.xlane.xlu1 %9417 }
0x2c8a   : > { %v9420_v17 = vsub.f32 %v9410_v14, %v9418_v23  ;;  %v9415_v48 = vpop.xlane.xlu0 %9414  ;;  %v9768_v23 = vld [vmem:[%s19171_s16 + $0x10] sm:$0xff] }
0x2c8b   : > { %v9419_v37 = vsub.f32 %v9405_v63, %v9415_v48  ;;  %v9766_v63 = vld [vmem:[%s19171_s16] sm:$0xff] }
0x2c8c   : > { %v9423_v39 = vmul.f32 1.442695, %v9420_v17  ;;  %v15666_v61 = vpack.c.bf16 %v9767_v7, %v9766_v63  ;;  %v9769_v17 = vld [vmem:[%s19171_s16 + $0x18] sm:$0xff]  ;;  %v13235_v63 = vld [vmem:[%s19096_s4 + $0x90] sm:$0xff] }
0x2c8d   : > { %v9421_v29 = vmul.f32 1.442695, %v9419_v37  ;;  %v15670_v48 = vpack.c.bf16 %v9769_v17, %v9768_v23  ;;  %v9770_v37 = vld [vmem:[%s19171_s16 + $0x20] sm:$0xff]  ;;  %v13236_v7 = vld [vmem:[%s19096_s4 + $0x98] sm:$0xff]  ;;  %v13226_v17 = vld [vmem:[%s19151_s1 + $0x88] sm:$0xff] }
0x2c8e   : > { %16307 = vpow2.f32 %v9423_v39  ;;  %15667 = vmatprep.subr.bf16.mxu0 %v15666_v61  ;;  %v9771_v39 = vld [vmem:[%s19171_s16 + $0x28] sm:$0xff]  ;;  %v13225_v23 = vld [vmem:[%s19151_s1 + $0x80] sm:$0xff] }
0x2c8f   : > { %16309 = vpow2.f32 %v9421_v29  ;;  %v15674_v29 = vpack.c.bf16 %v9771_v39, %v9770_v37 }
0x2c98   : > { %v16308_v47 = vpop.eup %16307 }
0x2c99   : > { %v16310_v11 = vpop.eup %16309  ;;  %v9428_v58 = vsel %vm1633_vm4, %v16308_v47, 0.0 }
0x2c9a   : > { %9429 = vadd.xlane.f32.xlu1 %v9428_v58  ;;  %v9425_v56 = vsel %vm1633_vm4, %v16310_v11, 0.0 }
0x2c9b   : > { %9426 = vadd.xlane.f32.xlu0 %v9425_v56  ;;  %v13207_v56 = vld [vmem:[%s19172_s26] ss:$0 sm:$0xff]  ;;  %s1473_s26 = sand.u32 1, %s16609_s23  }
0x2d27   : > { %v9430_v30 = vpop.xlane.xlu1 %9429 }
0x2d28   : > { %16311 = vrcp.f32 %v9430_v30  ;;  %v9427_v51 = vpop.xlane.xlu0 %9426 }
0x2d29   : > { %16313 = vrcp.f32 %v9427_v51 }
0x2d32   : > { %v16312_v4 = vpop.eup %16311 }
0x2d33   : > { %v16314_v28 = vpop.eup %16313  ;;  %v9434_v6 = vmul.f32 %v16312_v4, %v16308_v47  ;;  %v9772_v47 = vld [vmem:[%s19171_s16 + $0x30] sm:$0xff] }
0x2d34   : > { %v9433_v46 = vmul.f32 %v16314_v28, %v16310_v11  ;;  %v9773_v11 = vld [vmem:[%s19171_s16 + $0x38] sm:$0xff] }
0x2d35   : > { %v15678_v58 = vpack.c.bf16 %v9773_v11, %v9772_v47 }
0x2d36   : > { %14917 = vmatprep.mubr.msk.f32.mxu1 %vm1633_vm4, %v9433_v46 }
0x2d37   : > { %14918 = vmatmul.mubr.msk.f32.vlgmr.msra.gmra.mrb[140].mxu1 %vm1633_vm4, %v9434_v6 }
0x2d38   : > { %15661 = vmatpush3.bf16.msra.mxu1 %v15658_v15 }
0x2d39   : > { %15663 = vmatprep.subr.bf16.mxu1 %v15662_v32 }
0x2d3c   : > { %15665 = vmatpush3.bf16.msra.mxu1 %v15662_v32 }
0x2e0a   : > { %v14919_v62 = vpop.f32.mrb[140].mxu1 }
0x2e0b   : > { %v9507_v31 = vpop.f32.mrb[141].mxu1 }
0x2e0c   : > { %14922 = vmatprep.mubr.msk.f32.mxu0 %vm2275_vm5, %v9507_v31 }
0x2e0d   : > { %14923 = vmatmul.mubr.msk.f32.vlgmr.msra.gmra.mrb[116].mxu0 %vm2275_vm5, %v14919_v62 }
0x2e0e   : > { %15669 = vmatpush3.bf16.msra.mxu0 %v15666_v61  ;;  %v15702_v61 = vpack.c.bf16 %v13236_v7, %v13235_v63  ;;  %v13255_v7 = vld [vmem:[%s19157_s6 + $0x5] ss:$0 sm:$0xff] }
0x2e0f   : > { %15671 = vmatprep.subr.bf16.mxu0 %v15670_v48 }
0x2e12   : > { %15673 = vmatpush3.bf16.msra.mxu0 %v15670_v48  ;;  %v15690_v48 = vpack.c.bf16 %v13226_v17, %v13225_v23 }
0x2e13   : > { %15675 = vmatprep.subr.bf16.mxu0 %v15674_v29 }
0x2e16   : > { %15677 = vmatpush3.bf16.msra.mxu0 %v15674_v29 }
0x2e17   : > { %15679 = vmatprep.subr.bf16.mxu0 %v15678_v58 }
0x2e1a   : > { %15681 = vmatpush3.bf16.msra.mxu0 %v15678_v58 }
0x2ee0   : > { %v14924_v57 = vpop.f32.mrb[116].mxu0 }
0x2ee1   : > { %v9602_v34 = vadd.f32 %v14924_v57, %v18462_v38  ;;  %v9590_v8 = vpop.f32.mrb[117].mxu0 }
0x2ee2   : > { %v9601_v45 = vadd.f32 %v9590_v8, %v18464_v27 }
0x2ee3   : > { %v18665_v21 = vadd.f32 %v13204_v33, %v9602_v34 }
0x2ee4   : > { %v18667_v18 = vadd.f32 %v13204_v33, %v9601_v45 }
0x2ee5   : > { %v9617_v10 = vsel %vm4013_vm8, %v18665_v21, 0.0 }
0x2ee6   : > { %9618 = vadd.xlane.f32.xlu1 %v9617_v10  ;;  %v9614_v2 = vsel %vm4013_vm8, %v18667_v18, 0.0 }
0x2ee7   : > { %9615 = vadd.xlane.f32.xlu0 %v9614_v2 }
0x2f73   : > { %v9619_v22 = vpop.xlane.xlu1 %9618 }
0x2f74   : > { %v9621_v38 = vmul.f32 0.03125, %v9619_v22  ;;  %v9616_v44 = vpop.xlane.xlu0 %9615 }
0x2f75   : > { %v9620_v27 = vmul.f32 0.03125, %v9616_v44 }
0x2f76   : > { %v9623_v3 = vsub.f32 %v18665_v21, %v9621_v38 }
0x2f77   : > { %v9622_v50 = vsub.f32 %v18667_v18, %v9620_v27 }
0x2f78   : > { %v9625_v59 = vmul.f32 %v9623_v3, %v9623_v3 }
0x2f79   : > { %v9624_v54 = vmul.f32 %v9622_v50, %v9622_v50 }
0x2f7a   : > { %v9629_v20 = vsel %vm4013_vm8, %v9625_v59, 0.0  ;;  %v13210_v59 = vld [vmem:[%s19174_s22] ss:$0 sm:$0xff]  ;;  %s13386_s22 = sshll.u32 %s16943_s0, 4  ;;  %s16676_s0 = smov [#allocation13]  }
0x2f7b   : > { %9630 = vadd.xlane.f32.xlu1 %v9629_v20  ;;  %v9626_v13 = vsel %vm4013_vm8, %v9624_v54, 0.0 }
0x2f7c   : > { %9627 = vadd.xlane.f32.xlu0 %v9626_v13 }
0x3008   : > { %v9631_v0 = vpop.xlane.xlu1 %9630 }
0x3009   : > { %v9633_v55 = vmul.f32 0.03125, %v9631_v0  ;;  %v9628_v53 = vpop.xlane.xlu0 %9627 }
0x300a   : > { %v9632_v41 = vmul.f32 0.03125, %v9628_v53 }
0x300b   : > { %v9635_v42 = vadd.f32 1e-05, %v9633_v55 }
0x300c   : > { %v9634_v1 = vadd.f32 1e-05, %v9632_v41 }
0x300d   : > { %16315 = vrsqrt.f32 %v9635_v42 }
0x300e   : > { %16317 = vrsqrt.f32 %v9634_v1 }
0x3017   : > { %v16316_v16 = vpop.eup %16315 }
0x3018   : > { %v16318_v52 = vpop.eup %16317  ;;  %v9639_v26 = vmul.f32 %v16316_v16, %v9623_v3 }
0x3019   : > { %v9638_v12 = vmul.f32 %v16318_v52, %v9622_v50  ;;  %v13218_v52 = vld [vmem:[%s16905_s12 + $0x88] sm:$0xff] }
0x301a   : > { %v9647_v36 = vmul.f32 %v13205_v43, %v9639_v26 }
0x301b   : > { %v9646_v24 = vmul.f32 %v13205_v43, %v9638_v12  ;;  %v13217_v43 = vld [vmem:[%s16905_s12 + $0x80] sm:$0xff] }
0x301c   : > { %v9655_v60 = vadd.f32 %v13206_v49, %v9647_v36  ;;  %v15682_v26 = vpack.c.bf16 %v13218_v52, %v13217_v43  ;;  %v13233_v12 = vld [vmem:[%s19096_s4 + $0x80] sm:$0xff]  ;;  %v13269_v43 = vld [vmem:[%s19096_s4 + $0xb8] sm:$0xff] }
0x301d   : > { %v9654_v14 = vadd.f32 %v13206_v49, %v9646_v24  ;;  %v13234_v49 = vld [vmem:[%s19096_s4 + $0x88] sm:$0xff]  ;;  %v13219_v24 = vld [vmem:[%s16905_s12 + $0x90] sm:$0xff] }
0x301e   : > { %v15698_v36 = vpack.c.bf16 %v13234_v49, %v13233_v12  ;;  %15683 = vmatprep.subr.bf16.mxu1 %v15682_v26  ;;  %v13241_v12 = vld [vmem:[%s19161_s8 + $0x40] sm:$0xff] }
0x301f   : > { %14933 = vmatprep.mubr.msk.f32.mxu1 %vm4013_vm8, %v9654_v14  ;;  %v13220_v14 = vld [vmem:[%s16905_s12 + $0x98] sm:$0xff] }
0x3020   : > { %14934 = vmatmul.mubr.msk.f32.vlgmr.msra.gmra.mrb[142].mxu1 %vm4013_vm8, %v9655_v60  ;;  %15699 = vmatprep.subr.bf16.mxu0 %v15698_v36  ;;  %v15686_v60 = vpack.c.bf16 %v13220_v14, %v13219_v24 }
0x3021   : > { %15685 = vmatpush3.bf16.msra.mxu1 %v15682_v26  ;;  %v13242_v26 = vld [vmem:[%s19161_s8 + $0x48] sm:$0xff] }
0x3022   : > { %15687 = vmatprep.subr.bf16.mxu1 %v15686_v60 }
0x3025   : > { %15689 = vmatpush3.bf16.msra.mxu1 %v15686_v60 }
0x3026   : > { %15691 = vmatprep.subr.bf16.mxu1 %v15690_v48 }
0x30f3   : > { %v14935_v5 = vpop.f32.mrb[142].mxu1 }
0x30f4   : > { %v9745_v30 = vadd.f32 %v14935_v5, %v13207_v56  ;;  %v9739_v51 = vpop.f32.mrb[143].mxu1  ;;  %v13215_v5 = vld [vmem:[%s19153_s2 + $0x1] ss:$0 sm:$0xff] }
0x30f5   : > { %v9740_v4 = vadd.f32 %v13207_v56, %v9739_v51 }
0x30f6   : > { %v9749_v28 = vmul.f32 %v9745_v30, %v9745_v30 }
0x30f7   : > { %v9748_v46 = vmul.f32 %v9740_v4, %v9740_v4 }
0x30f8   : > { %v9751_v6 = vmul.f32 %v9749_v28, %v9745_v30  ;;  %v13216_v28 = vld [vmem:[%s19155_s3 + $0x1] ss:$0 sm:$0xff]  ;;  %s18950_s3 = scalar_lea.hbm %s16920_s20, %s13386_s22 }
0x30f9   : > { %v9750_v62 = vmul.f32 %v9748_v46, %v9740_v4 }
0x30fa   : > { %v9753_v31 = vmul.f32 0.044715, %v9751_v6 }
0x30fb   : > { %v9752_v57 = vmul.f32 0.044715, %v9750_v62  ;;  %v13227_v62 = vld [vmem:[%s19151_s1 + $0x90] sm:$0xff] }
0x30fc   : > { %v9755_v33 = vadd.f32 %v9753_v31, %v9745_v30  ;;  %v13228_v31 = vld [vmem:[%s19151_s1 + $0x98] sm:$0xff] }
0x30fd   : > { %v9754_v34 = vadd.f32 %v9752_v57, %v9740_v4 }
0x30fe   : > { %v9757_v8 = vmul.f32 0.7978846, %v9755_v33 }
0x30ff   : > { %v9756_v45 = vmul.f32 0.7978846, %v9754_v34  ;;  %v15694_v34 = vpack.c.bf16 %v13228_v31, %v13227_v62  ;;  %v13258_v31 = vld [vmem:[%s19151_s1 + $0xa0] sm:$0xff] }
0x3100   : > { %16319 = vtanh.f32 %v9757_v8  ;;  %v13238_v8 = vld [vmem:[%s19159_s7 + $0x4] ss:$0 sm:$0xff] }
0x3101   : > { %16321 = vtanh.f32 %v9756_v45  ;;  %v13222_v45 = vld [vmem:[%s19157_s6 + $0x4] ss:$0 sm:$0xff] }
0x310a   : > { %v16320_v10 = vpop.eup %16319 }
0x310b   : > { %v16322_v2 = vpop.eup %16321  ;;  %v9761_v22 = vadd.f32 1.0, %v16320_v10 }
0x310c   : > { %v9760_v38 = vadd.f32 1.0, %v16322_v2 }
0x310d   : > { %v9763_v44 = vmul.f32 0.5, %v9761_v22 }
0x310e   : > { %v9762_v27 = vmul.f32 0.5, %v9760_v38 }
0x310f   : > { %v9765_v50 = vmul.f32 %v9763_v44, %v9745_v30 }
0x3110   : > { %v9764_v3 = vmul.f32 %v9762_v27, %v9740_v4 }
0x3112   : > { %14952 = vmatprep.mubr.msk.f32.mxu0 %vm2429_vm7, %v9764_v3 }
0x3113   : > { %14953 = vmatmul.mubr.msk.f32.vlgmr.msra.gmra.mrb[126].mxu0 %vm2429_vm7, %v9765_v50 }
0x3114   : > { %15701 = vmatpush3.bf16.msra.mxu0 %v15698_v36 }
0x3115   : > { %15703 = vmatprep.subr.bf16.mxu0 %v15702_v61 }
0x3118   : > { %15705 = vmatpush3.bf16.msra.mxu0 %v15702_v61 }
0x31e6   : > { %v14954_v54 = vpop.f32.mrb[126].mxu0 }
0x31e7   : > { %v9859_v20 = vadd.f32 %v14954_v54, %v13210_v59  ;;  %v9853_v13 = vpop.f32.mrb[127].mxu0 }
0x31e8   : > { %v9854_v25 = vadd.f32 %v13210_v59, %v9853_v13  ;;  %v13230_v59 = vld [vmem:[%s19156_s5 + $0x4] ss:$0 sm:$0xff] }
0x31e9   : > { %v18698_v40 = vadd.f32 %v9859_v20, %v18665_v21 }
0x31ea   : > { %v18701_v15 = vadd.f32 %v9854_v25, %v18667_v18  ;;  %v13250_v25 = vld [vmem:[%s16905_s12 + $0xa0] sm:$0xff] }
0x31eb   : > { %v9871_v35 = vsel %vm4013_vm8, %v18698_v40, 0.0 }
0x31ec   : > { %9872 = vadd.xlane.f32.xlu1 %v9871_v35  ;;  %v9868_v9 = vsel %vm4013_vm8, %v18701_v15, 0.0  ;;  %v13251_v35 = vld [vmem:[%s16905_s12 + $0xa8] sm:$0xff] }
0x31ed   : > { %9869 = vadd.xlane.f32.xlu0 %v9868_v9 }
0x3279   : > { %v9873_v32 = vpop.xlane.xlu1 %9872 }
0x327a   : > { %v9875_v0 = vmul.f32 0.03125, %v9873_v32  ;;  %v9870_v55 = vpop.xlane.xlu0 %9869 }
0x327b   : > { %v9874_v21 = vmul.f32 0.03125, %v9870_v55  ;;  %v13252_v55 = vld [vmem:[%s16905_s12 + $0xb0] sm:$0xff] }
0x327c   : > { %v9877_v53 = vsub.f32 %v18698_v40, %v9875_v0  ;;  %v15716_v0 = vpack.c.bf16 %v13251_v35, %v13250_v25 }
0x327d   : > { %v9876_v18 = vsub.f32 %v18701_v15, %v9874_v21  ;;  %v13253_v21 = vld [vmem:[%s16905_s12 + $0xb8] sm:$0xff] }
0x327e   : > { %v9879_v41 = vmul.f32 %v9877_v53, %v9877_v53 }
0x327f   : > { %v9878_v42 = vmul.f32 %v9876_v18, %v9876_v18 }
0x3280   : > { %v9883_v1 = vsel %vm4013_vm8, %v9879_v41, 0.0  ;;  %v13266_v41 = vld [vmem:[%s19096_s4 + $0xa0] sm:$0xff] }
0x3281   : > { %9884 = vadd.xlane.f32.xlu1 %v9883_v1  ;;  %v9880_v16 = vsel %vm4013_vm8, %v9878_v42, 0.0  ;;  %v13267_v42 = vld [vmem:[%s19096_s4 + $0xa8] sm:$0xff] }
0x3282   : > { %9881 = vadd.xlane.f32.xlu0 %v9880_v16  ;;  %v15732_v1 = vpack.c.bf16 %v13267_v42, %v13266_v41  ;;  %v13268_v16 = vld [vmem:[%s19096_s4 + $0xb0] sm:$0xff] }
0x3283   : > { %v15736_v52 = vpack.c.bf16 %v13269_v43, %v13268_v16 }
0x330e   : > { %v9885_v37 = vpop.xlane.xlu1 %9884 }
0x330f   : > { %v9887_v39 = vmul.f32 0.03125, %v9885_v37  ;;  %v9882_v29 = vpop.xlane.xlu0 %9881 }
0x3310   : > { %v9886_v47 = vmul.f32 0.03125, %v9882_v29 }
0x3311   : > { %v9889_v11 = vadd.f32 1e-05, %v9887_v39 }
0x3312   : > { %v9888_v58 = vadd.f32 1e-05, %v9886_v47 }
0x3313   : > { %16323 = vrsqrt.f32 %v9889_v11 }
0x3314   : > { %16325 = vrsqrt.f32 %v9888_v58 }
0x331d   : > { %v16324_v56 = vpop.eup %16323 }
0x331e   : > { %v16326_v30 = vpop.eup %16325  ;;  %v9893_v51 = vmul.f32 %v16324_v56, %v9877_v53 }
0x331f   : > { %v9892_v4 = vmul.f32 %v16326_v30, %v9876_v18  ;;  %v15720_v18 = vpack.c.bf16 %v13253_v21, %v13252_v55  ;;  %v13275_v55 = vld [vmem:[%s19161_s8 + $0x58] sm:$0xff]  ;;  %v13274_v21 = vld [vmem:[%s19161_s8 + $0x50] sm:$0xff] }
0x3320   : > { %v9901_v46 = vmul.f32 %v13215_v5, %v9893_v51 }
0x3321   : > { %v9900_v6 = vmul.f32 %v13215_v5, %v9892_v4 }
0x3322   : > { %v18727_v33 = vadd.f32 %v13216_v28, %v9901_v46 }
0x3323   : > { %v18725_v57 = vadd.f32 %v13216_v28, %v9900_v6 }
0x3325   : > { %14963 = vmatprep.mubr.msk.f32.mxu1 %vm4013_vm8, %v18725_v57  ;;  %14985 = vmatprep.mubr.msk.f32.mxu0 %vm4013_vm8, %v18725_v57 }
0x3326   : > { %14964 = vmatmul.mubr.msk.f32.vlgmr.msra.gmra.mrb[144].mxu1 %vm4013_vm8, %v18727_v33  ;;  %14986 = vmatmul.mubr.msk.f32.vlgmr.msra.gmra.mrb[128].mxu0 %vm4013_vm8, %v18727_v33 }
0x3327   : > { %15693 = vmatpush3.bf16.msra.mxu1 %v15690_v48  ;;  %14974 = vmatprep.mubr.msk.f32.mxu1 %vm4013_vm8, %v18725_v57  ;;  %v13271_v48 = vld [vmem:[%s19159_s7 + $0x5] ss:$0 sm:$0xff] }
0x3328   : > { %15695 = vmatprep.subr.bf16.mxu1 %v15694_v34 }
0x332b   : > { %15697 = vmatpush3.bf16.msra.mxu1 %v15694_v34  ;;  %v13259_v34 = vld [vmem:[%s19151_s1 + $0xa8] sm:$0xff] }
0x332e   : > { %14975 = vmatmul.mubr.msk.f32.vlgmr.msra.gmra.mrb[146].mxu1 %vm4013_vm8, %v18727_v33 }
0x33f9   : > { %v14965_v10 = vpop.f32.mrb[144].mxu1  ;;  %v14987_v2 = vpop.f32.mrb[128].mxu0 }
0x33fa   : > { %v10177_v22 = vadd.f32 %v14987_v2, %v13238_v8  ;;  %v9995_v38 = vpop.f32.mrb[145].mxu1  ;;  %v10171_v44 = vpop.f32.mrb[129].mxu0  ;;  %v10001_v53 = vadd.f32 %v14965_v10, %v13222_v45 }
0x33fb   : > { %v9996_v27 = vadd.f32 %v13222_v45, %v9995_v38  ;;  %v10172_v3 = vadd.f32 %v13238_v8, %v10171_v44  ;;  %v15724_v8 = vpack.c.bf16 %v13259_v34, %v13258_v31  ;;  %v13261_v38 = vld [vmem:[%s19151_s1 + $0xb8] sm:$0xff]  ;;  %v13295_v31 = vld [vmem:[%s19151_s1 + $0xc0] sm:$0xff]  ;;  %v13296_v34 = vld [vmem:[%s19151_s1 + $0xc8] sm:$0xff] }
0x33fd   : > { %v15712_v50 = vpack.c.bf16 %v10177_v22, %v10172_v3  ;;  %14992 = vmatprep.mubr.msk.f32.mxu1 %vm2275_vm5, %v9996_v27  ;;  %v13260_v22 = vld [vmem:[%s19151_s1 + $0xb0] sm:$0xff] }
0x33ff   : > { %15713 = vmatprep.subr.bf16.mxu0 %v15712_v50 }
0x3400   : > { %15715 = vmatpush3.bf16.msra.mxu0 %v15712_v50  ;;  %v15728_v50 = vpack.c.bf16 %v13261_v38, %v13260_v22  ;;  %v13297_v22 = vld [vmem:[%s19151_s1 + $0xd0] sm:$0xff]  ;;  %v13298_v38 = vld [vmem:[%s19151_s1 + $0xd8] sm:$0xff] }
0x3401   : > { %v14976_v54 = vpop.f32.mrb[146].mxu1  ;;  %15725 = vmatprep.subr.bf16.mxu0 %v15724_v8 }
0x3402   : > { %v10089_v20 = vadd.f32 %v14976_v54, %v13230_v59  ;;  %v10083_v13 = vpop.f32.mrb[147].mxu1 }
0x3403   : > { %v10084_v9 = vadd.f32 %v13230_v59, %v10083_v13  ;;  %v13263_v13 = vld [vmem:[%s19156_s5 + $0x5] ss:$0 sm:$0xff] }
0x3405   : > { %v15706_v32 = vpack.c.bf16 %v10089_v20, %v10084_v9 }
0x3407   : > { %15708 = vmatprep.subr.msk.bf16.mxu1 %vm17325_vm6, %v15706_v32 }
0x3408   : > { %15711 = vmatpush3.bf16.xpose.msk.msra.mxu1 %vm17325_vm6, %v15706_v32 }
0x3409   : > { %15717 = vmatprep.subr.bf16.mxu1 %v15716_v0 }
0x340f   : > { %14993 = vmatmul.mubr.msk.f32.vlgmr.msra.gmra.mrb[148].mxu1 %vm2275_vm5, %v10001_v53 }
0x3410   : > { %15719 = vmatpush3.bf16.msra.mxu1 %v15716_v0  ;;  %15010 = vmatprep.mubr.msk.f32.mxu1 %vm4013_vm8, %v18725_v57 }
0x3411   : > { %15721 = vmatprep.subr.bf16.mxu1 %v15720_v18 }
0x3414   : > { %15723 = vmatpush3.bf16.msra.mxu1 %v15720_v18 }
0x3415   : > { %15733 = vmatprep.subr.bf16.mxu1 %v15732_v1 }
0x3417   : > { %15011 = vmatmul.mubr.msk.f32.vlgmr.msra.gmra.mrb[150].mxu1 %vm4013_vm8, %v18727_v33 }
0x3418   : > { %15735 = vmatpush3.bf16.msra.mxu1 %v15732_v1  ;;  %15032 = vmatprep.mubr.msk.f32.mxu1 %vm4013_vm8, %v18725_v57 }
0x3419   : > { %15737 = vmatprep.subr.bf16.mxu1 %v15736_v52 }
0x341c   : > { %15739 = vmatpush3.bf16.msra.mxu1 %v15736_v52 }
0x341f   : > { %15033 = vmatmul.mubr.msk.f32.vlgmr.msra.gmra.mrb[152].mxu1 %vm4013_vm8, %v18727_v33 }
0x34e2   : > { %v14994_v49 = vpop.f32.mrb[148].mxu1 }
0x34e3   : > { %v10267_v36 = vadd.f32 %v14994_v49, %v13242_v26  ;;  %v10261_v24 = vpop.f32.mrb[149].mxu1 }
0x34e4   : > { %v10262_v14 = vadd.f32 %v13241_v12, %v10261_v24 }
0x34e5   : > { %v10273_v60 = vsel %vm1633_vm4, %v10267_v36, -inf }
0x34e6   : > { %10274 = vmax.xlane.f32.xlu1 %v10273_v60  ;;  %v10270_v63 = vsel %vm1633_vm4, %v10262_v14, -inf }
0x34e7   : > { %10271 = vmax.xlane.f32.xlu0 %v10270_v63 }
0x34ea   : > { %v15012_v61 = vpop.f32.mrb[150].mxu1 }
0x34eb   : > { %v10460_v23 = vadd.f32 %v15012_v61, %v13255_v7  ;;  %v10454_v17 = vpop.f32.mrb[151].mxu1  ;;  %v13288_v61 = vld [vmem:[%s16905_s12 + $0xc8] sm:$0xff] }
0x34ec   : > { %v10455_v59 = vadd.f32 %v13255_v7, %v10454_v17  ;;  %v13287_v7 = vld [vmem:[%s16905_s12 + $0xc0] sm:$0xff]  ;;  %v13282_v17 = vld [vmem:[%s19163_s9 + $0x28] sm:$0xff] }
0x34f2   : > { %v15034_v37 = vpop.f32.mrb[152].mxu1 }
0x34f3   : > { %v10636_v39 = vadd.f32 %v15034_v37, %v13271_v48  ;;  %v10630_v29 = vpop.f32.mrb[153].mxu1 }
0x34f4   : > { %v10631_v47 = vadd.f32 %v13271_v48, %v10630_v29  ;;  %v13289_v29 = vld [vmem:[%s16905_s12 + $0xd0] sm:$0xff] }
0x34f6   : > { %v15746_v11 = vpack.c.bf16 %v10636_v39, %v10631_v47  ;;  %v13290_v47 = vld [vmem:[%s16905_s12 + $0xd8] sm:$0xff] }
0x34f8   : > { %15747 = vmatprep.subr.bf16.mxu1 %v15746_v11 }
0x34f9   : > { %15749 = vmatpush3.bf16.msra.mxu1 %v15746_v11 }
0x3573   : > { %v10275_v58 = vpop.xlane.xlu1 %10274 }
0x3574   : > { %v10277_v56 = vsub.f32 %v10267_v36, %v10275_v58  ;;  %v10272_v5 = vpop.xlane.xlu0 %10271 }
0x3575   : > { %v10276_v30 = vsub.f32 %v10262_v14, %v10272_v5  ;;  %v15754_v5 = vpack.c.bf16 %v13290_v47, %v13289_v29  ;;  %v13319_v29 = vld [vmem:[%s19163_s9 + $0x30] sm:$0xff] }
0x3576   : > { %v10280_v51 = vmul.f32 1.442695, %v10277_v56 }
0x3577   : > { %v10278_v4 = vmul.f32 1.442695, %v10276_v30  ;;  %v13303_v30 = vld [vmem:[%s19096_s4 + $0xc0] sm:$0xff] }
0x3578   : > { %16327 = vpow2.f32 %v10280_v51  ;;  %v13304_v51 = vld [vmem:[%s19096_s4 + $0xc8] sm:$0xff] }
0x3579   : > { %16329 = vpow2.f32 %v10278_v4  ;;  %v15766_v4 = vpack.c.bf16 %v13304_v51, %v13303_v30 }
0x3582   : > { %v16328_v28 = vpop.eup %16327 }
0x3583   : > { %v16330_v46 = vpop.eup %16329  ;;  %v10285_v6 = vsel %vm1633_vm4, %v16328_v28, 0.0 }
0x3584   : > { %10286 = vadd.xlane.f32.xlu1 %v10285_v6  ;;  %v10282_v62 = vsel %vm1633_vm4, %v16330_v46, 0.0 }
0x3585   : > { %10283 = vadd.xlane.f32.xlu0 %v10282_v62  ;;  %v13249_v62 = vld [vmem:[%s19163_s9 + $0x20] sm:$0xff] }
0x3611   : > { %v10287_v45 = vpop.xlane.xlu1 %10286 }
0x3612   : > { %16331 = vrcp.f32 %v10287_v45  ;;  %v10284_v10 = vpop.xlane.xlu0 %10283 }
0x3613   : > { %16333 = vrcp.f32 %v10284_v10  ;;  %v15758_v10 = vpack.c.bf16 %v13296_v34, %v13295_v31  ;;  %v13340_v31 = vld [vmem:[%s19096_s4 + $0xf0] sm:$0xff]  ;;  %v13341_v34 = vld [vmem:[%s19096_s4 + $0xf8] sm:$0xff] }
0x361c   : > { %v16332_v2 = vpop.eup %16331 }
0x361d   : > { %v16334_v44 = vpop.eup %16333  ;;  %v10291_v3 = vmul.f32 %v16332_v2, %v16328_v28  ;;  %v13305_v28 = vld [vmem:[%s19096_s4 + $0xd0] sm:$0xff]  ;;  %v13292_v2 = vld [vmem:[%s19157_s6 + $0x6] ss:$0 sm:$0xff] }
0x361e   : > { %v10290_v27 = vmul.f32 %v16334_v44, %v16330_v46  ;;  %v13306_v46 = vld [vmem:[%s19096_s4 + $0xd8] sm:$0xff] }
0x361f   : > { %v15770_v6 = vpack.c.bf16 %v13306_v46, %v13305_v28  ;;  %v13338_v46 = vld [vmem:[%s19096_s4 + $0xe0] sm:$0xff] }
0x3620   : > { %14999 = vmatprep.mubr.msk.f32.mxu0 %vm1633_vm4, %v10290_v27 }
0x3621   : > { %15000 = vmatmul.mubr.msk.f32.vlgmr.msra.gmra.mrb[130].mxu0 %vm1633_vm4, %v10291_v3 }
0x3622   : > { %15727 = vmatpush3.bf16.msra.mxu0 %v15724_v8  ;;  %15021 = vmatprep.mubr.msk.f32.mxu0 %vm4013_vm8, %v18725_v57 }
0x3623   : > { %15729 = vmatprep.subr.bf16.mxu0 %v15728_v50 }
0x3626   : > { %15731 = vmatpush3.bf16.msra.mxu0 %v15728_v50  ;;  %v15762_v50 = vpack.c.bf16 %v13298_v38, %v13297_v22  ;;  %v13332_v22 = vld [vmem:[%s19151_s1 + $0xf0] sm:$0xff]  ;;  %v13333_v38 = vld [vmem:[%s19151_s1 + $0xf8] sm:$0xff] }
0x3629   : > { %15022 = vmatmul.mubr.msk.f32.vlgmr.msra.gmra.mrb[132].mxu0 %vm4013_vm8, %v18727_v33 }
0x362a   : > { %15039 = vmatprep.mubr.msk.f32.mxu0 %vm2275_vm5, %v10455_v59  ;;  %v13308_v59 = vld [vmem:[%s19159_s7 + $0x6] ss:$0 sm:$0xff] }
0x36f4   : > { %v18785_v54 = vpop.f32.mrb[130].mxu0 }
0x36f5   : > { %v18787_v20 = vpop.f32.mrb[131].mxu0 }
0x36fc   : > { %v15023_v25 = vpop.f32.mrb[132].mxu0 }
0x36fd   : > { %v10548_v35 = vadd.f32 %v15023_v25, %v13263_v13  ;;  %v10542_v9 = vpop.f32.mrb[133].mxu0 }
0x36fe   : > { %v10543_v32 = vadd.f32 %v13263_v13, %v10542_v9 }
0x3700   : > { %v15740_v0 = vpack.c.bf16 %v10548_v35, %v10543_v32 }
0x3702   : > { %15742 = vmatprep.subr.msk.bf16.mxu0 %vm17325_vm6, %v15740_v0 }
0x3703   : > { %15745 = vmatpush3.bf16.xpose.msk.msra.mxu0 %vm17325_vm6, %v15740_v0 }
0x3704   : > { %15049 = vmatprep.subr.mxu0 %v13282_v17 }
0x370a   : > { %15040 = vmatmul.mubr.msk.f32.vlgmr.msra.gmra.mrb[134].mxu0 %vm2275_vm5, %v10460_v23  ;;  %v15750_v23 = vpack.c.bf16 %v13288_v61, %v13287_v7 }
0x370b   : > { %15050 = vmatpush3.msra.mxu0 %v13282_v17 }
0x370c   : > { %15751 = vmatprep.subr.bf16.mxu1 %v15750_v23  ;;  %15054 = vmatprep.subr.mxu0 %v13249_v62 }
0x37dd   : > { %v15041_v53 = vpop.f32.mrb[134].mxu0 }
0x37de   : > { %v10726_v18 = vadd.f32 %v15041_v53, %v13275_v55  ;;  %v10720_v41 = vpop.f32.mrb[135].mxu0 }
0x37df   : > { %v10721_v42 = vadd.f32 %v13274_v21, %v10720_v41  ;;  %v13312_v41 = vld [vmem:[%s19161_s8 + $0x68] sm:$0xff] }
0x37e0   : > { %v10732_v1 = vsel %vm1633_vm4, %v10726_v18, -inf }
0x37e1   : > { %10733 = vmax.xlane.f32.xlu1 %v10732_v1  ;;  %v10729_v16 = vsel %vm1633_vm4, %v10721_v42, -inf }
0x37e2   : > { %10730 = vmax.xlane.f32.xlu0 %v10729_v16 }
0x386e   : > { %v10734_v43 = vpop.xlane.xlu1 %10733 }
0x386f   : > { %v10736_v52 = vsub.f32 %v10726_v18, %v10734_v43  ;;  %v10731_v26 = vpop.xlane.xlu0 %10730 }
0x3870   : > { %v10735_v12 = vsub.f32 %v10721_v42, %v10731_v26  ;;  %v13311_v42 = vld [vmem:[%s19161_s8 + $0x60] sm:$0xff] }
0x3871   : > { %v10739_v49 = vmul.f32 1.442695, %v10736_v52 }
0x3872   : > { %v10737_v36 = vmul.f32 1.442695, %v10735_v12 }
0x3873   : > { %16335 = vpow2.f32 %v10739_v49 }
0x3874   : > { %16337 = vpow2.f32 %v10737_v36 }
0x387d   : > { %v16336_v24 = vpop.eup %16335 }
0x387e   : > { %v16338_v14 = vpop.eup %16337  ;;  %v10744_v60 = vsel %vm1633_vm4, %v16336_v24, 0.0 }
0x387f   : > { %10745 = vadd.xlane.f32.xlu1 %v10744_v60  ;;  %v10741_v63 = vsel %vm1633_vm4, %v16338_v14, 0.0 }
0x3880   : > { %10742 = vadd.xlane.f32.xlu0 %v10741_v63 }
0x390c   : > { %v10746_v48 = vpop.xlane.xlu1 %10745 }
0x390d   : > { %16339 = vrcp.f32 %v10746_v48  ;;  %v10743_v37 = vpop.xlane.xlu0 %10742  ;;  %v13322_v48 = vld [vmem:[%s16905_s12 + $0xe0] sm:$0xff] }
0x390e   : > { %16341 = vrcp.f32 %v10743_v37  ;;  %v13323_v37 = vld [vmem:[%s16905_s12 + $0xe8] sm:$0xff] }
0x3917   : > { %v16340_v39 = vpop.eup %16339 }
0x3918   : > { %v16342_v11 = vpop.eup %16341  ;;  %v10750_v56 = vmul.f32 %v16340_v39, %v16336_v24  ;;  %v15784_v39 = vpack.c.bf16 %v13323_v37, %v13322_v48  ;;  %v13354_v48 = vld [vmem:[%s19163_s9 + $0x38] sm:$0xff] }
0x3919   : > { %v10749_v58 = vmul.f32 %v16342_v11, %v16338_v14 }
0x391b   : > { %15046 = vmatprep.mubr.msk.f32.mxu1 %vm1633_vm4, %v10749_v58 }
0x391c   : > { %15047 = vmatmul.mubr.msk.f32.vlgmr.msra.gmra.mrb[154].mxu1 %vm1633_vm4, %v10750_v56  ;;  %v13324_v56 = vld [vmem:[%s16905_s12 + $0xf0] sm:$0xff] }
0x391d   : > { %15753 = vmatpush3.bf16.msra.mxu1 %v15750_v23  ;;  %15067 = vmatprep.mubr.msk.f32.mxu1 %vm4013_vm8, %v18725_v57 }
0x391e   : > { %15755 = vmatprep.subr.bf16.mxu1 %v15754_v5 }
0x3921   : > { %15757 = vmatpush3.bf16.msra.mxu1 %v15754_v5  ;;  %v13325_v5 = vld [vmem:[%s16905_s12 + $0xf8] sm:$0xff] }
0x3922   : > { %15767 = vmatprep.subr.bf16.mxu1 %v15766_v4  ;;  %v15788_v28 = vpack.c.bf16 %v13325_v5, %v13324_v56 }
0x3924   : > { %15068 = vmatmul.mubr.msk.f32.vlgmr.msra.gmra.mrb[156].mxu1 %vm4013_vm8, %v18727_v33 }
0x3925   : > { %15769 = vmatpush3.bf16.msra.mxu1 %v15766_v4  ;;  %15089 = vmatprep.mubr.msk.f32.mxu1 %vm4013_vm8, %v18725_v57 }
0x3926   : > { %15771 = vmatprep.subr.bf16.mxu1 %v15770_v6 }
0x3929   : > { %15773 = vmatpush3.bf16.msra.mxu1 %v15770_v6  ;;  %v13339_v6 = vld [vmem:[%s19096_s4 + $0xe8] sm:$0xff]  ;;  %s12485_s4 = scalar_lea.sflag [#allocation4], %s1473_s26 }
0x392c   : > { %15090 = vmatmul.mubr.msk.f32.vlgmr.msra.gmra.mrb[158].mxu1 %vm4013_vm8, %v18727_v33 }
0x39ef   : > { %v15048_v8 = vpop.f32.mrb[154].mxu1 }
0x39f0   : > { %v10823_v45 = vpop.f32.mrb[155].mxu1 }
0x39f1   : > { %15051 = vmatprep.mubr.msk.f32.mxu0 %vm2275_vm5, %v10823_v45  ;;  %v13330_v45 = vld [vmem:[%s19151_s1 + $0xe0] sm:$0xff] }
0x39f2   : > { %15052 = vmatmul.mubr.msk.f32.vlgmr.msra.gmra.mrb[136].mxu0 %vm2275_vm5, %v15048_v8  ;;  %v15804_v8 = vpack.c.bf16 %v13341_v34, %v13340_v31 }
0x39f3   : > { %15055 = vmatpush3.msra.mxu0 %v13249_v62  ;;  %15056 = vmatprep.mubr.msk.f32.mxu0 %vm2275_vm5, %v18787_v20  ;;  %v15800_v62 = vpack.c.bf16 %v13339_v6, %v13338_v46 }
0x39f4   : > { %15759 = vmatprep.subr.bf16.mxu0 %v15758_v10 }
0x39f7   : > { %v15069_v44 = vpop.f32.mrb[156].mxu1 }
0x39f8   : > { %v11081_v27 = vadd.f32 %v15069_v44, %v13292_v2  ;;  %v11075_v3 = vpop.f32.mrb[157].mxu1 }
0x39f9   : > { %v11076_v35 = vadd.f32 %v13292_v2, %v11075_v3  ;;  %v15796_v3 = vpack.c.bf16 %v13333_v38, %v13332_v22 }
0x39fa   : > { %15057 = vmatmul.mubr.msk.f32.vlgmr.msra.gmra.mrb[136].mxu0 %vm2275_vm5, %v18785_v54  ;;  %v13300_v54 = vld [vmem:[%s19156_s5 + $0x6] ss:$0 sm:$0xff] }
0x39fb   : > { %15761 = vmatpush3.bf16.msra.mxu0 %v15758_v10  ;;  %15078 = vmatprep.mubr.msk.f32.mxu0 %vm4013_vm8, %v18725_v57  ;;  %v13331_v10 = vld [vmem:[%s19151_s1 + $0xe8] sm:$0xff]  ;;  %s1474_s1 = scalar_lea.vmem [#allocation13], %s1473_s26 }
0x39fc   : > { %15763 = vmatprep.subr.bf16.mxu0 %v15762_v50  ;;  %v15792_v2 = vpack.c.bf16 %v13331_v10, %v13330_v45  ;;  %s12497_s2 = sshll.u32 %s1474_s1, 4  ;;  %s18952_s2 = int_to_ptr.vmem [resolvable:$true] %s12497_s2 }
0x39ff   : > { %15765 = vmatpush3.bf16.msra.mxu0 %v15762_v50  ;;  %v15091_v20 = vpop.f32.mrb[158].mxu1  ;;  %v13327_v50 = vld [vmem:[%s19157_s6 + $0x7] ss:$0 sm:$0xff]  ;;  %s16543_s6 = sshll.u32 %s16676_s0, 4  ;;  %s16544_s6 = int_to_ptr.vmem [resolvable:$false] %s16543_s6 }
0x3a00   : > { %v11257_v13 = vadd.f32 %v15091_v20, %v13308_v59  ;;  %v11251_v25 = vpop.f32.mrb[159].mxu1  ;;  %p16546_p13 = scmp.lt.s32.totalorder %s18952_s2, %s16544_s6 }
0x3a01   : > { %v11252_v9 = vadd.f32 %v13308_v59, %v11251_v25 }
0x3a02   : > { %15079 = vmatmul.mubr.msk.f32.vlgmr.msra.gmra.mrb[138].mxu0 %vm4013_vm8, %v18727_v33 }
0x3a03   : > { %v15780_v32 = vpack.c.bf16 %v11257_v13, %v11252_v9  ;;  %15096 = vmatprep.mubr.msk.f32.mxu0 %vm2275_vm5, %v11076_v35  ;;  %v13343_v35 = vld [vmem:[%s19159_s7 + $0x7] ss:$0 sm:$0xff]  ;;  %s16545_s7 = scalar_lea.vmem %s16544_s6, 32 }
0x3a05   : > { %15781 = vmatprep.subr.bf16.mxu1 %v15780_v32 }
0x3a06   : > { %15783 = vmatpush3.bf16.msra.mxu1 %v15780_v32 }
0x3a07   : > { %15785 = vmatprep.subr.bf16.mxu1 %v15784_v39 }
0x3ad5   : > { %v15080_v0 = vpop.f32.mrb[138].mxu0 }
0x3ad6   : > { %v11169_v55 = vadd.f32 %v15080_v0, %v13300_v54  ;;  %v11163_v21 = vpop.f32.mrb[139].mxu0 }
0x3ad7   : > { %v11164_v53 = vadd.f32 %v13300_v54, %v11163_v21 }
0x3ad9   : > { %v15774_v18 = vpack.c.bf16 %v11169_v55, %v11164_v53  ;;  %v13335_v55 = vld [vmem:[%s19156_s5 + $0x7] ss:$0 sm:$0xff]  ;;  %s16539_s5 = scalar_lea.vmem %s18952_s2, 16 }
0x3ada   : > { %p16540_p10 = scmp.ne.s32.totalorder %s18952_s2, %s16539_s5  ;;  %p16547_p1 = scmp.lt.s32.totalorder %s16545_s7, %s16539_s5 }
0x3adb   : > { %15776 = vmatprep.subr.msk.bf16.mxu0 %vm17325_vm6, %v15774_v18 }
0x3adc   : > { %15779 = vmatpush3.bf16.xpose.msk.msra.mxu0 %vm17325_vm6, %v15774_v18  ;;  %p16541_p8 = pnand %p16540_p10, %p19176_p7  ;;  %p16548_p2 = por %p16547_p1, %p16546_p13 }
0x3add   : > { %15106 = vmatprep.subr.mxu0 %v13319_v29 }
0x3ade   : > { %p16542_p11 = pneg %p16541_p8 }
0x3ae0   : > { %p16549_p0 = pnand %p16548_p2, %p16542_p11 }
0x3ae3   : > { %15097 = vmatmul.mubr.msk.f32.vlgmr.msra.gmra.mrb[140].mxu0 %vm2275_vm5, %v11081_v27 }
0x3ae4   : > { %15107 = vmatpush3.msra.mxu0 %v13319_v29 }
0x3ae5   : > { %15793 = vmatprep.subr.bf16.mxu0 %v15792_v2 }
0x3bb6   : > { %v15098_v1 = vpop.f32.mrb[140].mxu0 }
0x3bb7   : > { %v11347_v16 = vadd.f32 %v15098_v1, %v13312_v41  ;;  %v11341_v43 = vpop.f32.mrb[141].mxu0  ;;  %v13346_v1 = vld [vmem:[%s19161_s8 + $0x70] sm:$0xff] }
0x3bb8   : > { %v11342_v52 = vadd.f32 %v13311_v42, %v11341_v43 }
0x3bb9   : > { %v11353_v26 = vsel %vm1633_vm4, %v11347_v16, -inf }
0x3bba   : > { %11354 = vmax.xlane.f32.xlu1 %v11353_v26  ;;  %v11350_v12 = vsel %vm1633_vm4, %v11342_v52, -inf }
0x3bbb   : > { %11351 = vmax.xlane.f32.xlu0 %v11350_v12 }
0x3c47   : > { %v11355_v49 = vpop.xlane.xlu1 %11354 }
0x3c48   : > { %v11357_v36 = vsub.f32 %v11347_v16, %v11355_v49  ;;  %v11352_v24 = vpop.xlane.xlu0 %11351 }
0x3c49   : > { %v11356_v14 = vsub.f32 %v11342_v52, %v11352_v24 }
0x3c4a   : > { %v11360_v60 = vmul.f32 1.442695, %v11357_v36 }
0x3c4b   : > { %v11358_v63 = vmul.f32 1.442695, %v11356_v14 }
0x3c4c   : > { %16343 = vpow2.f32 %v11360_v60 }
0x3c4d   : > { %16345 = vpow2.f32 %v11358_v63 }
0x3c56   : > { %v16344_v7 = vpop.eup %16343 }
0x3c57   : > { %v16346_v61 = vpop.eup %16345  ;;  %v11365_v23 = vsel %vm1633_vm4, %v16344_v7, 0.0 }
0x3c58   : > { %11366 = vadd.xlane.f32.xlu1 %v11365_v23  ;;  %v11362_v17 = vsel %vm1633_vm4, %v16346_v61, 0.0 }
0x3c59   : > { %11363 = vadd.xlane.f32.xlu0 %v11362_v17 }
0x3ce5   : > { %v11367_v47 = vpop.xlane.xlu1 %11366 }
0x3ce6   : > { %16347 = vrcp.f32 %v11367_v47  ;;  %v11364_v11 = vpop.xlane.xlu0 %11363 }
0x3ce7   : > { %16349 = vrcp.f32 %v11364_v11 }
0x3cf0   : > { %v16348_v58 = vpop.eup %16347 }
0x3cf1   : > { %v16350_v30 = vpop.eup %16349  ;;  %v11371_v4 = vmul.f32 %v16348_v58, %v16344_v7 }
0x3cf2   : > { %v11370_v51 = vmul.f32 %v16350_v30, %v16346_v61 }
0x3cf4   : > { %15103 = vmatprep.mubr.msk.f32.mxu1 %vm1633_vm4, %v11370_v51  ;;  %v13358_v51 = vld [vmem:[%s19165_s10 + $0x1] ss:$0 sm:$0xff] }
0x3cf5   : > { %15104 = vmatmul.mubr.msk.f32.vlgmr.msra.gmra.mrb[160].mxu1 %vm1633_vm4, %v11371_v4 }
0x3cf6   : > { %15787 = vmatpush3.bf16.msra.mxu1 %v15784_v39  ;;  %15119 = vmatprep.mubr.msk.f32.mxu1 %vm4013_vm8, %v18725_v57 }
0x3cf7   : > { %15789 = vmatprep.subr.bf16.mxu1 %v15788_v28 }
0x3cfa   : > { %15791 = vmatpush3.bf16.msra.mxu1 %v15788_v28 }
0x3cfb   : > { %15801 = vmatprep.subr.bf16.mxu1 %v15800_v62 }
0x3cfd   : > { %15120 = vmatmul.mubr.msk.f32.vlgmr.msra.gmra.mrb[162].mxu1 %vm4013_vm8, %v18727_v33 }
0x3cfe   : > { %15803 = vmatpush3.bf16.msra.mxu1 %v15800_v62  ;;  %15141 = vmatprep.mubr.msk.f32.mxu1 %vm4013_vm8, %v18725_v57 }
0x3cff   : > { %15805 = vmatprep.subr.bf16.mxu1 %v15804_v8 }
0x3d02   : > { %15807 = vmatpush3.bf16.msra.mxu1 %v15804_v8 }
0x3d05   : > { %15142 = vmatmul.mubr.msk.f32.vlgmr.msra.gmra.mrb[164].mxu1 %vm4013_vm8, %v18727_v33 }
0x3dc8   : > { %v15105_v44 = vpop.f32.mrb[160].mxu1 }
0x3dc9   : > { %v11444_v27 = vpop.f32.mrb[161].mxu1 }
0x3dca   : > { %15108 = vmatprep.mubr.msk.f32.mxu0 %vm2275_vm5, %v11444_v27 }
0x3dcb   : > { %15109 = vmatmul.mubr.msk.f32.vlgmr.msra.gmra.mrb[136].mxu0 %vm2275_vm5, %v15105_v44 }
0x3dcc   : > { %15795 = vmatpush3.bf16.msra.mxu0 %v15792_v2  ;;  %15130 = vmatprep.mubr.msk.f32.mxu0 %vm4013_vm8, %v18725_v57 }
0x3dcd   : > { %15797 = vmatprep.subr.bf16.mxu0 %v15796_v3 }
0x3dd0   : > { %v15121_v59 = vpop.f32.mrb[162].mxu1  ;;  %15799 = vmatpush3.bf16.msra.mxu0 %v15796_v3  ;;  %v13363_v3 = vld [vmem:[%s19167_s11 + $0x20] sm:$0xff] }
0x3dd1   : > { %v11623_v20 = vadd.f32 %v15121_v59, %v13327_v50  ;;  %v11617_v13 = vpop.f32.mrb[163].mxu1 }
0x3dd2   : > { %v11618_v25 = vadd.f32 %v13327_v50, %v11617_v13  ;;  %v13364_v50 = vld [vmem:[%s19167_s11 + $0x28] sm:$0xff]  ;;  %v13366_v13 = vld [vmem:[%s19167_s11 + $0x38] sm:$0xff] }
0x3dd3   : > { %15131 = vmatmul.mubr.msk.f32.vlgmr.msra.gmra.mrb[142].mxu0 %vm4013_vm8, %v18727_v33  ;;  %v13347_v33 = vld [vmem:[%s19161_s8 + $0x78] sm:$0xff]  ;;  %v15818_v59 = vpack.c.bf16 %v13364_v50, %v13363_v3 }
0x3dd4   : > { %15148 = vmatprep.mubr.msk.f32.mxu0 %vm2275_vm5, %v11618_v25 }
0x3dd8   : > { %v15143_v9 = vpop.f32.mrb[164].mxu1 }
0x3dd9   : > { %v11799_v32 = vadd.f32 %v15143_v9, %v13343_v35  ;;  %v11793_v54 = vpop.f32.mrb[165].mxu1 }
0x3dda   : > { %v11794_v57 = vadd.f32 %v13343_v35, %v11793_v54 }
0x3ddc   : > { %v15814_v0 = vpack.c.bf16 %v11799_v32, %v11794_v57 }
0x3dde   : > { %15815 = vmatprep.subr.bf16.mxu1 %v15814_v0 }
0x3ddf   : > { %15817 = vmatpush3.bf16.msra.mxu1 %v15814_v0 }
0x3de0   : > { %15819 = vmatprep.subr.bf16.mxu1 %v15818_v59 }
0x3ea6   : > { %v15132_v21 = vpop.f32.mrb[142].mxu0 }
0x3ea7   : > { %v11711_v53 = vadd.f32 %v15132_v21, %v13335_v55  ;;  %v11705_v18 = vpop.f32.mrb[143].mxu0  ;;  %v13361_v21 = vld [vmem:[%s19169_s13 + $0x1] ss:$0 sm:$0xff] }
0x3ea8   : > { %v11706_v41 = vadd.f32 %v13335_v55, %v11705_v18 }
0x3eaa   : > { %v15808_v42 = vpack.c.bf16 %v11711_v53, %v11706_v41 }
0x3eac   : > { %15810 = vmatprep.subr.msk.bf16.mxu0 %vm17325_vm6, %v15808_v42 }
0x3ead   : > { %15813 = vmatpush3.bf16.xpose.msk.msra.mxu0 %vm17325_vm6, %v15808_v42  ;;  %v13362_v42 = vld [vmem:[%s19170_s14 + $0x1] ss:$0 sm:$0xff] }
0x3eae   : > { %15158 = vmatprep.subr.mxu0 %v13354_v48 }
0x3eb4   : > { %15149 = vmatmul.mubr.msk.f32.vlgmr.msra.gmra.mrb[144].mxu0 %vm2275_vm5, %v11623_v20  ;;  %v13365_v20 = vld [vmem:[%s19167_s11 + $0x30] sm:$0xff] }
0x3eb5   : > { %15159 = vmatpush3.msra.mxu0 %v13354_v48  ;;  %v15822_v25 = vpack.c.bf16 %v13366_v13, %v13365_v20 }
0x3f87   : > { %v15150_v16 = vpop.f32.mrb[144].mxu0 }
0x3f88   : > { %v11889_v43 = vadd.f32 %v15150_v16, %v13347_v33  ;;  %v11883_v52 = vpop.f32.mrb[145].mxu0 }
0x3f89   : > { %v11884_v26 = vadd.f32 %v13346_v1, %v11883_v52  ;;  %v13371_v52 = vld [vmem:[%s19171_s16 + $0x40] sm:$0xff] }
0x3f8a   : > { %v11895_v12 = vsel %vm1633_vm4, %v11889_v43, -inf }
0x3f8b   : > { %11896 = vmax.xlane.f32.xlu1 %v11895_v12  ;;  %v11892_v49 = vsel %vm1633_vm4, %v11884_v26, -inf }
0x3f8c   : > { %11893 = vmax.xlane.f32.xlu0 %v11892_v49  ;;  %v13373_v49 = vld [vmem:[%s19171_s16 + $0x50] sm:$0xff] }
0x4018   : > { %v11897_v36 = vpop.xlane.xlu1 %11896 }
0x4019   : > { %v11899_v24 = vsub.f32 %v11889_v43, %v11897_v36  ;;  %v11894_v14 = vpop.xlane.xlu0 %11893  ;;  %v13374_v36 = vld [vmem:[%s19171_s16 + $0x58] sm:$0xff] }
0x401a   : > { %v11898_v19 = vsub.f32 %v11884_v26, %v11894_v14  ;;  %v13372_v26 = vld [vmem:[%s19171_s16 + $0x48] sm:$0xff]  ;;  %v13375_v14 = vld [vmem:[%s19171_s16 + $0x60] sm:$0xff] }
0x401b   : > { %v11902_v60 = vmul.f32 1.442695, %v11899_v24  ;;  %v15826_v12 = vpack.c.bf16 %v13372_v26, %v13371_v52  ;;  %v15830_v24 = vpack.c.bf16 %v13374_v36, %v13373_v49 }
0x401c   : > { %v11900_v63 = vmul.f32 1.442695, %v11898_v19  ;;  %v13376_v19 = vld [vmem:[%s19171_s16 + $0x68] sm:$0xff] }
0x401d   : > { %16351 = vpow2.f32 %v11902_v60  ;;  %15827 = vmatprep.subr.bf16.mxu0 %v15826_v12  ;;  %v15834_v60 = vpack.c.bf16 %v13376_v19, %v13375_v14 }
0x401e   : > { %16353 = vpow2.f32 %v11900_v63  ;;  %v13377_v63 = vld [vmem:[%s19171_s16 + $0x70] sm:$0xff] }
0x4027   : > { %v16352_v7 = vpop.eup %16351 }
0x4028   : > { %v16354_v61 = vpop.eup %16353  ;;  %v11907_v23 = vsel %vm1633_vm4, %v16352_v7, 0.0 }
0x4029   : > { %11908 = vadd.xlane.f32.xlu1 %v11907_v23  ;;  %v11904_v17 = vsel %vm1633_vm4, %v16354_v61, 0.0  ;;  %v13368_v23 = vld [vmem:[%s19173_s17 + $0x1] ss:$0 sm:$0xff] }
0x402a   : > { %11905 = vadd.xlane.f32.xlu0 %v11904_v17 }
0x40b6   : > { %v11909_v37 = vpop.xlane.xlu1 %11908 }
0x40b7   : > { %16355 = vrcp.f32 %v11909_v37  ;;  %v11906_v39 = vpop.xlane.xlu0 %11905 }
0x40b8   : > { %16357 = vrcp.f32 %v11906_v39 }
0x40c1   : > { %v16356_v29 = vpop.eup %16355 }
0x40c2   : > { %v16358_v47 = vpop.eup %16357  ;;  %v11913_v58 = vmul.f32 %v16356_v29, %v16352_v7  ;;  %v13378_v7 = vld [vmem:[%s19171_s16 + $0x78] sm:$0xff] }
0x40c3   : > { %v11912_v11 = vmul.f32 %v16358_v47, %v16354_v61  ;;  %v15838_v61 = vpack.c.bf16 %v13378_v7, %v13377_v63 }
0x40c5   : > { %15155 = vmatprep.mubr.msk.f32.mxu1 %vm1633_vm4, %v11912_v11 }
0x40c6   : > { %15156 = vmatmul.mubr.msk.f32.vlgmr.msra.gmra.mrb[166].mxu1 %vm1633_vm4, %v11913_v58 }
0x40c7   : > { %15821 = vmatpush3.bf16.msra.mxu1 %v15818_v59 }
0x40c8   : > { %15823 = vmatprep.subr.bf16.mxu1 %v15822_v25 }
0x40cb   : > { %15825 = vmatpush3.bf16.msra.mxu1 %v15822_v25 }
0x4199   : > { %v15157_v56 = vpop.f32.mrb[166].mxu1 }
0x419a   : > { %v11986_v5 = vpop.f32.mrb[167].mxu1 }
0x419b   : > { %15160 = vmatprep.mubr.msk.f32.mxu0 %vm2275_vm5, %v11986_v5 }
0x419c   : > { %15161 = vmatmul.mubr.msk.f32.vlgmr.msra.gmra.mrb[136].mxu0 %vm2275_vm5, %v15157_v56 }
0x419d   : > { %15829 = vmatpush3.bf16.msra.mxu0 %v15826_v12 }
0x419e   : > { %15831 = vmatprep.subr.bf16.mxu0 %v15830_v24 }
0x41a1   : > { %15833 = vmatpush3.bf16.msra.mxu0 %v15830_v24  ;;  %v13383_v24 = vld [vmem:[#allocation7] ss:$0 sm:$0xff] }
0x41a2   : > { %15835 = vmatprep.subr.bf16.mxu0 %v15834_v60 }
0x41a5   : > { %15837 = vmatpush3.bf16.msra.mxu0 %v15834_v60  ;;  %v13384_v60 = vld [vmem:[#allocation5] ss:$0 sm:$0xff] }
0x41a6   : > { %15839 = vmatprep.subr.bf16.mxu0 %v15838_v61 }
0x41a9   : > { %15841 = vmatpush3.bf16.msra.mxu0 %v15838_v61 }
0x426f   : > { %v15162_v30 = vpop.f32.mrb[136].mxu0 }
0x4270   : > { %v12081_v4 = vadd.f32 %v15162_v30, %v18698_v40  ;;  %v12069_v28 = vpop.f32.mrb[137].mxu0 }
0x4271   : > { %v12080_v46 = vadd.f32 %v12069_v28, %v18701_v15 }
0x4272   : > { %v18902_v6 = vadd.f32 %v13358_v51, %v12081_v4 }
0x4273   : > { %v18904_v62 = vadd.f32 %v13358_v51, %v12080_v46 }
0x4274   : > { %v12099_v31 = vsel %vm4013_vm8, %v18902_v6, 0.0 }
0x4275   : > { %12100 = vadd.xlane.f32.xlu1 %v12099_v31  ;;  %v12096_v34 = vsel %vm4013_vm8, %v18904_v62, 0.0 }
0x4276   : > { %12097 = vadd.xlane.f32.xlu0 %v12096_v34 }
0x4302   : > { %v12101_v8 = vpop.xlane.xlu1 %12100 }
0x4303   : > { %v12103_v40 = vmul.f32 0.03125, %v12101_v8  ;;  %v12098_v45 = vpop.xlane.xlu0 %12097 }
0x4304   : > { %v12102_v15 = vmul.f32 0.03125, %v12098_v45 }
0x4305   : > { %v12105_v10 = vsub.f32 %v18902_v6, %v12103_v40 }
0x4306   : > { %v12104_v2 = vsub.f32 %v18904_v62, %v12102_v15 }
0x4307   : > { %v12107_v22 = vmul.f32 %v12105_v10, %v12105_v10 }
0x4308   : > { %v12106_v38 = vmul.f32 %v12104_v2, %v12104_v2 }
0x4309   : > { %v12111_v44 = vsel %vm4013_vm8, %v12107_v22, 0.0 }
0x430a   : > { %12112 = vadd.xlane.f32.xlu1 %v12111_v44  ;;  %v12108_v27 = vsel %vm4013_vm8, %v12106_v38, 0.0 }
0x430b   : > { %12109 = vadd.xlane.f32.xlu0 %v12108_v27 }
0x4397   : > { %v12113_v35 = vpop.xlane.xlu1 %12112 }
0x4398   : > { %v12115_v9 = vmul.f32 0.03125, %v12113_v35  ;;  %v12110_v32 = vpop.xlane.xlu0 %12109 }
0x4399   : > { %v12114_v54 = vmul.f32 0.03125, %v12110_v32 }
0x439a   : > { %v12117_v57 = vadd.f32 1e-05, %v12115_v9 }
0x439b   : > { %v12116_v0 = vadd.f32 1e-05, %v12114_v54 }
0x439c   : > { %16359 = vrsqrt.f32 %v12117_v57 }
0x439d   : > { %16361 = vrsqrt.f32 %v12116_v0 }
0x43a6   : > { %v16360_v55 = vpop.eup %16359 }
0x43a7   : > { %v16362_v53 = vpop.eup %16361  ;;  %v12121_v18 = vmul.f32 %v16360_v55, %v12105_v10  ;;  %v12404_v55 = vld [vmem:[%s16915_s30] sm:$0xff] }
0x43a8   : > { %v12120_v41 = vmul.f32 %v16362_v53, %v12104_v2  ;;  %v13380_v2 = vld [vmem:[%s19175_s18 + $0x1] ss:$0 sm:$0xff]  ;;  %v12406_v53 = vld [vmem:[%s16915_s30 + $0x10] sm:$0xff] }
0x43a9   : > { %v12129_v33 = vmul.f32 %v13361_v21, %v12121_v18  ;;  %v16673_v18 = vmov 0.0|0.0  }
0x43aa   : > { %v12128_v1 = vmul.f32 %v13361_v21, %v12120_v41  ;;  %v12405_v21 = vld [vmem:[%s16915_s30 + $0x8] sm:$0xff]  ;;  %15842 = vmatprep.subr.bf16.mxu1 %v16673_v18 }
0x43ab   : > { %v12137_v43 = vadd.f32 %v13362_v42, %v12129_v33  ;;  %v15843_v41 = vpack.c.bf16 %v12405_v21, %v12404_v55  ;;  %v16675_v33 = vmov 0.0  }
0x43ac   : > { %v12136_v16 = vadd.f32 %v13362_v42, %v12128_v1  ;;  %v12407_v42 = vld [vmem:[%s16915_s30 + $0x18] sm:$0xff] }
0x43ad   : > { %v15846_v1 = vpack.c.bf16 %v12407_v42, %v12406_v53 }
0x43ae   : > { %15171 = vmatprep.mubr.msk.f32.mxu1 %vm4013_vm8, %v12136_v16 }
0x43af   : > { %15172 = vmatmul.mubr.msk.f32.vlgmr.msra.gmra.mrb[168].mxu1 %vm4013_vm8, %v12137_v43 }
0x43b0   : > { %15201 = vmatprep.mubr.msk.f32.mxu1 %vm16674_vm9, %v16675_v33  ;;  %15844 = vmatpush3.bf16.msra.mxu1 %v15843_v41 }
0x43b1   : > { %15845 = vmatprep.subr.bf16.mxu1 %v16673_v18 }
0x43b4   : > { %15847 = vmatpush3.bf16.msra.mxu1 %v15846_v1 }
0x4482   : > { %v15173_v17 = vpop.f32.mrb[168].mxu1 }
0x4483   : > { %v12229_v48 = vadd.f32 %v15173_v17, %v13368_v23  ;;  %v12223_v37 = vpop.f32.mrb[169].mxu1 }
0x4484   : > { %v12224_v39 = vadd.f32 %v13368_v23, %v12223_v37 }
0x4485   : > { %v12233_v29 = vmul.f32 %v12229_v48, %v12229_v48 }
0x4486   : > { %v12232_v47 = vmul.f32 %v12224_v39, %v12224_v39 }
0x4487   : > { %v12235_v11 = vmul.f32 %v12233_v29, %v12229_v48 }
0x4488   : > { %v12234_v58 = vmul.f32 %v12232_v47, %v12224_v39 }
0x4489   : > { %v12237_v56 = vmul.f32 0.044715, %v12235_v11 }
0x448a   : > { %v12236_v5 = vmul.f32 0.044715, %v12234_v58 }
0x448b   : > { %v12239_v30 = vadd.f32 %v12237_v56, %v12229_v48 }
0x448c   : > { %v12238_v51 = vadd.f32 %v12236_v5, %v12224_v39 }
0x448d   : > { %v12241_v4 = vmul.f32 0.7978846, %v12239_v30 }
0x448e   : > { %v12240_v28 = vmul.f32 0.7978846, %v12238_v51  ;;  %v12408_v51 = vld [vmem:[#allocation2] sm:$0x1] }
0x448f   : > { %16363 = vtanh.f32 %v12241_v4 }
0x4490   : > { %16365 = vtanh.f32 %v12240_v28 }
0x4499   : > { %v16364_v46 = vpop.eup %16363 }
0x449a   : > { %v16366_v31 = vpop.eup %16365  ;;  %v12245_v34 = vadd.f32 1.0, %v16364_v46 }
0x449b   : > { %v12244_v8 = vadd.f32 1.0, %v16366_v31 }
0x449c   : > { %v12247_v40 = vmul.f32 0.5, %v12245_v34 }
0x449d   : > { %v12246_v45 = vmul.f32 0.5, %v12244_v8 }
0x449e   : > { %v12249_v10 = vmul.f32 %v12247_v40, %v12229_v48 }
0x449f   : > { %v12248_v15 = vmul.f32 %v12246_v45, %v12224_v39 }
0x44a1   : > { %15190 = vmatprep.mubr.msk.f32.mxu0 %vm2429_vm7, %v12248_v15 }
0x44a2   : > { %15191 = vmatmul.mubr.msk.f32.vlgmr.msra.gmra.mrb[146].mxu0 %vm2429_vm7, %v12249_v10 }
0x4575   : > { %v15192_v22 = vpop.f32.mrb[146].mxu0 }
0x4576   : > { %v12345_v38 = vadd.f32 %v15192_v22, %v13380_v2  ;;  %v12339_v44 = vpop.f32.mrb[147].mxu0 }
0x4577   : > { %v12340_v27 = vadd.f32 %v13380_v2, %v12339_v44 }
0x4578   : > { %v12349_v3 = vadd.f32 %v12345_v38, %v18902_v6 }
0x4579   : > { %v12348_v50 = vadd.f32 %v12340_v27, %v18904_v62 }
0x457a   : > { %v12355_v59 = vsel %vm4013_vm8, %v12349_v3, 0.0 }
0x457b   : > { %12356 = vadd.xlane.f32.xlu1 %v12355_v59  ;;  %v12352_v20 = vsel %vm4013_vm8, %v12348_v50, 0.0 }
0x457c   : > { %12353 = vadd.xlane.f32.xlu0 %v12352_v20 }
0x4608   : > { %v12357_v13 = vpop.xlane.xlu1 %12356 }
0x4609   : > { %v12359_v25 = vmul.f32 0.03125, %v12357_v13  ;;  %v12354_v35 = vpop.xlane.xlu0 %12353 }
0x460a   : > { %v12358_v9 = vmul.f32 0.03125, %v12354_v35 }
0x460b   : > { %v12361_v32 = vsub.f32 %v12349_v3, %v12359_v25 }
0x460c   : > { %v12360_v54 = vsub.f32 %v12348_v50, %v12358_v9 }
0x460d   : > { %v12363_v57 = vmul.f32 %v12361_v32, %v12361_v32 }
0x460e   : > { %v12362_v6 = vmul.f32 %v12360_v54, %v12360_v54 }
0x460f   : > { %v12367_v62 = vsel %vm4013_vm8, %v12363_v57, 0.0 }
0x4610   : > { %12368 = vadd.xlane.f32.xlu1 %v12367_v62  ;;  %v12364_v0 = vsel %vm4013_vm8, %v12362_v6, 0.0 }
0x4611   : > { %12365 = vadd.xlane.f32.xlu0 %v12364_v0 }
0x469d   : > { %v12369_v16 = vpop.xlane.xlu1 %12368 }
0x469e   : > { %v12371_v43 = vmul.f32 0.03125, %v12369_v16  ;;  %v12366_v52 = vpop.xlane.xlu0 %12365 }
0x469f   : > { %v12370_v26 = vmul.f32 0.03125, %v12366_v52 }
0x46a0   : > { %v12373_v12 = vadd.f32 1e-05, %v12371_v43 }
0x46a1   : > { %v12372_v49 = vadd.f32 1e-05, %v12370_v26 }
0x46a2   : > { %16367 = vrsqrt.f32 %v12373_v12 }
0x46a3   : > { %16369 = vrsqrt.f32 %v12372_v49 }
0x46ac   : > { %v16368_v36 = vpop.eup %16367 }
0x46ad   : > { %v16370_v14 = vpop.eup %16369  ;;  %v12377_v19 = vmul.f32 %v16368_v36, %v12361_v32 }
0x46ae   : > { %v12376_v63 = vmul.f32 %v16370_v14, %v12360_v54 }
0x46af   : > { %v12385_v7 = vmul.f32 %v13383_v24, %v12377_v19 }
0x46b0   : > { %v12384_v61 = vmul.f32 %v13383_v24, %v12376_v63 }
0x46b1   : > { %v12393_v23 = vadd.f32 %v13384_v60, %v12385_v7 }
0x46b2   : > { %v12392_v17 = vadd.f32 %v13384_v60, %v12384_v61 }
0x46b3   : > { %v12395_v48 = vsel %vm4013_vm8, %v12393_v23, 0.0 }
0x46b4   : > { %v12394_v37 = vsel %vm4013_vm8, %v12392_v17, 0.0 }
0x46b5   : > { %v12396_v39 = vadd.f32 %v12395_v48, %v12394_v37 }
0x46b7   : > { %v12397_v29 = vrot.slane %v12396_v39, 4 }
0x46b9   : > { %v12398_v47 = vadd.f32 %v12397_v29, %v12396_v39 }
0x46bb   : > { %v12399_v11 = vrot.slane %v12398_v47, 2 }
0x46bd   : > { %v12400_v58 = vadd.f32 %v12399_v11, %v12398_v47 }
0x46bf   : > { %v12401_v56 = vrot.slane %v12400_v58, 1 }
0x46c1   : > { %v12402_v5 = vadd.f32 %v12401_v56, %v12400_v58 }
0x46c3   : > { %v12403_v30 = vmul.f32 0.0625, %v12402_v5 }
0x46c5   : > { %15202 = vmatmul.mubr.msk.f32.vlgmr.msra.gmra.mrb[170].mxu1 %vm4013_vm8, %v12403_v30 }
0x4798   : > { %v12478_v4 = vpop.f32.mrb[170].mxu1 }
0x4799   : > { %v12479_v28 = vadd.f32 %v12478_v4, %v12408_v51  ;;  %v15203_v46 = vpop.f32.mrb[171].mxu1 }
0x479b   : > { %12483 = vst.msk [vmem:[%s1474_s1] sm:$0x1] %vm12482_vm10, %v12479_v28 }
0x479c   : > { %16552 = shalt.err (!%p16549_p0)
}
0x479d   : > { %s16553_s1 = scalar_lea.hbm %s18950_s3, 16  ;;  %s16557_s26 = scalar_lea.hbm %s16920_s20, 32 }
0x479e   : > { %p16554_p3 = scmp.ne.s32.totalorder %s18950_s3, %s16553_s1  ;;  %p16558_p5 = scmp.lt.u32.totalorder %s18950_s3, %s16920_s20 }
0x479f   : > { %p16559_p6 = scmp.lt.u32.totalorder %s16557_s26, %s16553_s1  ;;  %p16561_p10 = scmp.lt.u32.totalorder %s16553_s1, %s18950_s3 }
0x47a0   : > { %p16555_p4 = pnand %p16554_p3, %p19176_p7 }
0x47a1   : > { %p16560_p9 = por %p16559_p6, %p16558_p5 }
0x47a2   : > { %p16556_p12 = pneg %p16555_p4 }
0x47a3   : > { %p16562_p8 = por %p16561_p10, %p16560_p9 }
0x47a5   : > { %p16563_p11 = pnand %p16562_p8, %p16556_p12 }
0x47a7   : > { %16566 = shalt.err (!%p16563_p11)
}
0x47a8   : > { %15908 = dma.vmem_to_hbm [thread:$0]  (%p19176_p7), %s18952_s2, 16, %s18950_s3, %s12485_s4  }
0x47a9 PF: > { %s19177_s5 = sld [smem:[#allocation59_spill]]  ;;  %s19178_s6 = sld [smem:[#allocation63_spill]] }
0x47aa   : > { %p15945_p13 = scmp.ge.s32.totalorder %s16617_s28, 2 }
0x47af   : > { %s12509_s7 = sand.u32 1, %s19177_s5   ;;  %p19179_p1 = scmp.ne.s32.totalorder %s19178_s6, 0 }
0x47b0   : > { %s12510_s22 = scalar_lea.sflag [#allocation4], %s12509_s7 }
0x47b1   : > { %p15930_p2 = pnand %p15945_p13, %p19179_p1 }
0x47b3   : > { %16600 = dma.done.wait (!%p15930_p2), %s12510_s22, 16  }
0x47b4   : > { %16602 = vsyncadd (!%p15930_p2), %s12510_s22, 4294967280  ;;  %s19180_s28 = sld [smem:[#allocation61_spill]]  ;;  %s19181_s0 = sld [smem:[#allocation60_spill]] }
0x47b5   : > { %s19182_s26 = sld [smem:[#allocation62_spill]]  ;;  %s19183_s22 = smov %s16609_s23 }
0x47ba   : > { %p109_p0 = scmp.ge.s32.totalorder %s19180_s28, 4   ;;  %s19184_s23 = smov %s19181_s0 }
0x47bc   :  { %111 = sbr.rel (!%p109_p0) target bundleno = 100 (0x64), region = 425 }
0x47c3   :  { %12514 = vsyncpa [#allocation3], 1 }
0x47c4   :  { %12516 = vsyncpa [#allocation3 + $0x1], 1 }
0x47c5   :  { %12517 = vsyncpa [#allocation6], 1 }
0x47c6   :  { %12518 = vsyncpa [#allocation9], 1 }
0x47c7   :  { %12519 = vsyncpa [#allocation12], 1 }
0x47c8   :  { %12520 = vsyncpa [#allocation4], 1 }
0x47c9   :  { %12522 = vsyncpa [#allocation4 + $0x1], 1 }

</bundles_post_ra>
